<compile_context>
chip_gen: v7x
topology: tpu7x:2x2x1
jax: 0.10.0
libtpu: 0.0.40
codegen_flags: <defaults>
</compile_context>

<pallas_src>
import functools
import math

import jax
import jax.numpy as jnp
from jax.experimental import pallas as pl
from jax.experimental.pallas import tpu as pltpu

_SQRT1_2 = 1.0 / math.sqrt(2.0)
_LN_EPS = 1e-5


def _layer_norm(t, g, b, eps=_LN_EPS):
    mean = jnp.mean(t, axis=-1, keepdims=True)
    c = t - mean
    var = jnp.mean(c * c, axis=-1, keepdims=True)
    return c * jax.lax.rsqrt(var + eps) * g + b


def _gelu_exact(t):
    # torch.nn.GELU() default (erf-based)
    return 0.5 * t * (1.0 + jax.lax.erf(t * _SQRT1_2))


# ------------------------- fused Resampler kernel -------------------------

def _resampler_kernel(x_ref, piw_ref, pib_ref, lat0_ref, norm_ref,
                      qw_ref, kw_ref, vw_ref, ow_ref, w1_ref, w2_ref,
                      pow_ref, pob_ref, nog_ref, nob_ref,
                      o_ref,
                      xhat_scr, lat_scr, oatt_scr,
                      *, heads, dim_head, tb):
    d = pl.program_id(1)
    n1 = x_ref.shape[1]
    l = lat0_ref.shape[1]

    # --- once per batch block: proj_in + hoisted x-side LN statistics -----
    @pl.when(d == 0)
    def _init():
        xb = x_ref[...].reshape(tb * n1, x_ref.shape[2]).astype(jnp.bfloat16)
        xproj = (jnp.dot(xb, piw_ref[...], preferred_element_type=jnp.float32)
                 + pib_ref[...])
        mean = jnp.mean(xproj, axis=-1, keepdims=True)
        c = xproj - mean
        var = jnp.mean(c * c, axis=-1, keepdims=True)
        # LN statistics of the projected features are depth-invariant; only
        # the per-layer gamma/beta affine is applied inside the depth loop.
        xhat_scr[...] = (c * jax.lax.rsqrt(var + _LN_EPS)).astype(jnp.bfloat16)
        lat0 = lat0_ref[0]                                  # (L, dim) f32
        lat_scr[...] = jnp.concatenate([lat0] * tb, axis=0)

    lat = lat_scr[...]                                      # (tb*L, dim) f32

    g1 = norm_ref[0, 0:1, :]; b1 = norm_ref[0, 1:2, :]      # x LN affine
    g2 = norm_ref[0, 2:3, :]; b2 = norm_ref[0, 3:4, :]      # latent LN
    g3 = norm_ref[0, 4:5, :]; b3 = norm_ref[0, 5:6, :]      # FF LN

    # --- PerceiverAttention ---
    x_nb = (xhat_scr[...] * g1 + b1).astype(jnp.bfloat16)       # (tb*n1, dim)
    lat_nb = _layer_norm(lat, g2, b2).astype(jnp.bfloat16)      # (tb*L, dim)

    # fused lane-dense projections (N = inner = heads*dim_head, bf16 MXU)
    qw = qw_ref[0]; kw = kw_ref[0]; vw = vw_ref[0]
    q = jnp.dot(lat_nb, qw, preferred_element_type=jnp.float32).astype(jnp.bfloat16)
    k_x = jnp.dot(x_nb, kw, preferred_element_type=jnp.float32).astype(jnp.bfloat16)
    v_x = jnp.dot(x_nb, vw, preferred_element_type=jnp.float32).astype(jnp.bfloat16)
    k_l = jnp.dot(lat_nb, kw, preferred_element_type=jnp.float32).astype(jnp.bfloat16)
    v_l = jnp.dot(lat_nb, vw, preferred_element_type=jnp.float32).astype(jnp.bfloat16)

    # Per-(batch, head) softmax attention.  The kv concat is replaced by a
    # joint softmax over the two score pieces + PV accumulation from both.
    # TODO(synk): for production heads=16 process heads in groups
    # (lax.fori_loop unroll=2/4) instead of a full static unroll.
    for b in range(tb):
        q_b = q[b * l:(b + 1) * l]
        kx_b = k_x[b * n1:(b + 1) * n1]
        vx_b = v_x[b * n1:(b + 1) * n1]
        kl_b = k_l[b * l:(b + 1) * l]
        vl_b = v_l[b * l:(b + 1) * l]
        for h in range(heads):
            sl = slice(h * dim_head, (h + 1) * dim_head)
            qh = q_b[:, sl]
            s_x = jax.lax.dot_general(qh, kx_b[:, sl], (((1,), (1,)), ((), ())),
                                      preferred_element_type=jnp.float32)
            s_l = jax.lax.dot_general(qh, kl_b[:, sl], (((1,), (1,)), ((), ())),
                                      preferred_element_type=jnp.float32)
            m = jnp.maximum(jnp.max(s_x, axis=-1, keepdims=True),
                            jnp.max(s_l, axis=-1, keepdims=True))
            e_x = jnp.exp(s_x - m)
            e_l = jnp.exp(s_l - m)
            inv = pl.reciprocal(jnp.sum(e_x, axis=-1, keepdims=True)
                                + jnp.sum(e_l, axis=-1, keepdims=True),
                                approx=True)
            oh = (jnp.dot(e_x.astype(jnp.bfloat16), vx_b[:, sl],
                          preferred_element_type=jnp.float32)
                  + jnp.dot(e_l.astype(jnp.bfloat16), vl_b[:, sl],
                            preferred_element_type=jnp.float32)) * inv
            oatt_scr[b * l:(b + 1) * l, sl] = oh       # lane-slot per head

    # ONE lane-dense out-projection (K = inner) instead of per-head matmuls.
    attn = jnp.dot(oatt_scr[...].astype(jnp.bfloat16), ow_ref[0],
                   preferred_element_type=jnp.float32)
    lat = lat + attn

    # --- FeedForward ---
    hid = _layer_norm(lat, g3, b3).astype(jnp.bfloat16)
    hid = jnp.dot(hid, w1_ref[0], preferred_element_type=jnp.float32)
    hid = _gelu_exact(hid).astype(jnp.bfloat16)
    hid = jnp.dot(hid, w2_ref[0], preferred_element_type=jnp.float32)
    lat = lat + hid

    lat_scr[...] = lat

    # --- once per batch block: proj_out + norm_out, write final output ----
    # (accumulator pattern: output written only on the last depth step; depth
    #  must remain the innermost, "arbitrary" grid axis)
    @pl.when(d == pl.num_programs(1) - 1)
    def _finalize():
        y = (jnp.dot(lat.astype(jnp.bfloat16), pow_ref[...],
                     preferred_element_type=jnp.float32) + pob_ref[...])
        y = _layer_norm(y, nog_ref[...], nob_ref[...])
        # TODO(synk): pad out_dim to a 128 multiple for lane-dense stores at
        # production sizes (demo out_dim=64 -> one masked store per block).
        o_ref[...] = y.reshape(tb, l, y.shape[-1]).astype(o_ref.dtype)


def resampler_forward(p, x, coherent_queries=None, *, dim_head, batch_tile=8):
    B, n1, emb = x.shape
    lat0 = p["latents"]
    if coherent_queries is not None:
        lat0 = jnp.concatenate([p["latents"], coherent_queries], axis=1)
    L = lat0.shape[1]
    depth, dim, inner = p["q_w"].shape
    heads = inner // dim_head
    ffi = p["ff_w1"].shape[2]
    out_dim = p["proj_out_w"].shape[1]

    tb = min(batch_tile, B)
    while B % tb:
        tb -= 1

    kernel = functools.partial(_resampler_kernel, heads=heads,
                               dim_head=dim_head, tb=tb)

    # TODO(synk): at production sizes (dim=1024, ff_mult=4) stream ff_w1/ff_w2
    # in K/N tiles (emit_pipeline or an extra grid axis) so a double-buffered
    # layer fits v7x's 64 MiB VMEM; whole-operand blocks are right at demo size.
    return pl.pallas_call(
        kernel,
        out_shape=jax.ShapeDtypeStruct((B, L, out_dim), jnp.float32),
        grid=(B // tb, depth),
        in_specs=[
            pl.BlockSpec((tb, n1, emb), lambda b, d: (b, 0, 0)),          # raw x
            pl.BlockSpec((emb, dim), lambda b, d: (0, 0)),                # proj_in_w
            pl.BlockSpec((1, dim), lambda b, d: (0, 0)),                  # proj_in_b
            pl.BlockSpec((1, L, dim), lambda b, d: (0, 0, 0)),            # init latents
            pl.BlockSpec((1, 6, dim), lambda b, d: (d, 0, 0)),            # per-layer LN g/b
            pl.BlockSpec((1, dim, inner), lambda b, d: (d, 0, 0)),        # q_w (scaled)
            pl.BlockSpec((1, dim, inner), lambda b, d: (d, 0, 0)),        # k_w (scaled)
            pl.BlockSpec((1, dim, inner), lambda b, d: (d, 0, 0)),        # v_w
            pl.BlockSpec((1, inner, dim), lambda b, d: (d, 0, 0)),        # out_w
            pl.BlockSpec((1, dim, ffi), lambda b, d: (d, 0, 0)),          # ff w1
            pl.BlockSpec((1, ffi, dim), lambda b, d: (d, 0, 0)),          # ff w2
            pl.BlockSpec((dim, out_dim), lambda b, d: (0, 0)),            # proj_out_w
            pl.BlockSpec((1, out_dim), lambda b, d: (0, 0)),              # proj_out_b
            pl.BlockSpec((1, out_dim), lambda b, d: (0, 0)),              # norm_out gamma
            pl.BlockSpec((1, out_dim), lambda b, d: (0, 0)),              # norm_out beta
        ],
        out_specs=pl.BlockSpec((tb, L, out_dim), lambda b, d: (b, 0, 0)),
        scratch_shapes=[
            pltpu.VMEM((tb * n1, dim), jnp.bfloat16),   # hoisted-LN image features
            pltpu.VMEM((tb * L, dim), jnp.float32),     # latent residual carry (f32)
            pltpu.VMEM((tb * L, inner), jnp.float32),   # per-head attn-out assembly
        ],
        compiler_params=pltpu.CompilerParams(
            dimension_semantics=("parallel", "arbitrary"),
            vmem_limit_bytes=48 * 1024 * 1024),
    )(x, p["proj_in_w"], p["proj_in_b"], lat0, p["layer_norms"],
      p["q_w"], p["k_w"], p["v_w"], p["out_w"], p["ff_w1"], p["ff_w2"],
      p["proj_out_w"], p["proj_out_b"], p["norm_out_g"], p["norm_out_b"])


# ----------------------------- parameter init -----------------------------

def _uniform(key, shape, fan_in):
    s = 1.0 / math.sqrt(fan_in)
    return jax.random.uniform(key, shape, jnp.float32, -s, s)


def init_resampler_params(key, *, dim, depth, dim_head, heads, num_queries,
                          embedding_dim, output_dim, ff_mult=4):
    inner = dim_head * heads
    ffi = int(dim * ff_mult)
    # PerceiverAttention scales q and k each by dim_head**-0.25 before the
    # logits matmul; fold that into the q/k projection weights.
    scale = 1.0 / math.sqrt(math.sqrt(dim_head))
    bf16 = jnp.bfloat16

    keys = jax.random.split(key, 5 + depth)
    p = {
        "latents": jax.random.normal(keys[0], (1, num_queries, dim), jnp.float32)
                   / math.sqrt(dim),
        "proj_in_w": _uniform(keys[1], (embedding_dim, dim), embedding_dim).astype(bf16),
        "proj_in_b": _uniform(keys[2], (1, dim), embedding_dim),
        "proj_out_w": _uniform(keys[3], (dim, output_dim), dim).astype(bf16),
        "proj_out_b": _uniform(keys[4], (1, output_dim), dim),
        "norm_out_g": jnp.ones((1, output_dim), jnp.float32),
        "norm_out_b": jnp.zeros((1, output_dim), jnp.float32),
    }

    norms, qws, kws, vws, ows, w1s, w2s = [], [], [], [], [], [], []
    for i in range(depth):
        lk = jax.random.split(keys[5 + i], 5)
        # Lane-dense, head-major columns: column block h*dh:(h+1)*dh == head h
        # (matches torch's view(bs, n, heads, dh) split of the fused Linear).
        q_w = _uniform(lk[0], (dim, inner), dim) * scale
        kv_w = _uniform(lk[1], (dim, 2 * inner), dim)
        k_w = kv_w[:, :inner] * scale
        v_w = kv_w[:, inner:]
        out_w = _uniform(lk[2], (inner, dim), inner)
        w1 = _uniform(lk[3], (dim, ffi), dim)
        w2 = _uniform(lk[4], (ffi, dim), ffi)
        qws.append(q_w); kws.append(k_w); vws.append(v_w); ows.append(out_w)
        w1s.append(w1); w2s.append(w2)
        norms.append(jnp.stack([
            jnp.ones((dim,), jnp.float32), jnp.zeros((dim,), jnp.float32),   # norm1 (x)
            jnp.ones((dim,), jnp.float32), jnp.zeros((dim,), jnp.float32),   # norm2 (latents)
            jnp.ones((dim,), jnp.float32), jnp.zeros((dim,), jnp.float32),   # FF LayerNorm
        ]))
    p["layer_norms"] = jnp.stack(norms)          # (depth, 6, dim) f32
    p["q_w"] = jnp.stack(qws).astype(bf16)       # (depth, dim, inner)
    p["k_w"] = jnp.stack(kws).astype(bf16)
    p["v_w"] = jnp.stack(vws).astype(bf16)
    p["out_w"] = jnp.stack(ows).astype(bf16)     # (depth, inner, dim)
    p["ff_w1"] = jnp.stack(w1s).astype(bf16)     # (depth, dim, ffi)
    p["ff_w2"] = jnp.stack(w2s).astype(bf16)     # (depth, ffi, dim)
    return p


def init_serial_sampler(key, *, dim, depth, dim_head, num_queries,
                        embedding_dim, output_dim):
    heads = dim // dim_head
    k_fg, k_bg, k_cq = jax.random.split(key, 3)
    return {
        "fg": init_resampler_params(k_fg, dim=dim, depth=depth, dim_head=dim_head,
                                    heads=heads, num_queries=num_queries[0],
                                    embedding_dim=embedding_dim, output_dim=output_dim),
        "bg": init_resampler_params(k_bg, dim=dim, depth=depth, dim_head=dim_head,
                                    heads=heads, num_queries=num_queries[1],
                                    embedding_dim=embedding_dim, output_dim=output_dim),
        "coherent_queries": jax.random.normal(k_cq, (1, num_queries[2], dim), jnp.float32)
                            / math.sqrt(dim),
    }


# ----------------------------- forward passes -----------------------------

def serial_sampler_forward(params, x_objs, x_bg, *, dim_head, batch_tile=8):
    # TODO(synk): PositionNet (point_net), GatedSelfAttentionDense
    # (coherent_bridge) and the host-side numpy obbox preprocessing are not
    # defined in the reference source; the learned coherent_queries parameter
    # is passed straight to the bg resampler (same latent-concat path as the
    # original Resampler.forward).
    embed_objs = resampler_forward(params["fg"], x_objs,
                                   dim_head=dim_head, batch_tile=batch_tile)
    embed_context = resampler_forward(params["bg"], x_bg,
                                      coherent_queries=params["coherent_queries"],
                                      dim_head=dim_head, batch_tile=batch_tile)
    return embed_objs, embed_context


# ------------------------ plain-JAX reference check ------------------------

def _reference_resampler(p, x, coherent_queries=None, *, heads, dim_head):
    lat = p["latents"]
    if coherent_queries is not None:
        lat = jnp.concatenate([lat, coherent_queries], axis=1)
    B = x.shape[0]
    lat = jnp.broadcast_to(lat, (B,) + lat.shape[1:])
    depth = p["q_w"].shape[0]
    f32 = jnp.float32

    def split(t):
        b, n, _ = t.shape
        return t.reshape(b, n, heads, dim_head).transpose(0, 2, 1, 3)

    xp = jnp.einsum("bne,ed->bnd", x, p["proj_in_w"].astype(f32)) + p["proj_in_b"]
    for i in range(depth):
        n = p["layer_norms"][i]
        x_n = _layer_norm(xp, n[0], n[1])
        lat_n = _layer_norm(lat, n[2], n[3])
        kv_in = jnp.concatenate([x_n, lat_n], axis=1)
        q = split(jnp.einsum("bld,de->ble", lat_n, p["q_w"][i].astype(f32)))
        k = split(jnp.einsum("bsd,de->bse", kv_in, p["k_w"][i].astype(f32)))
        v = split(jnp.einsum("bsd,de->bse", kv_in, p["v_w"][i].astype(f32)))
        w = jax.nn.softmax(jnp.einsum("bhle,bhse->bhls", q, k), axis=-1)
        o = jnp.einsum("bhls,bhse->bhle", w, v)
        o = o.transpose(0, 2, 1, 3).reshape(B, -1, heads * dim_head)
        lat = lat + jnp.einsum("ble,ed->bld", o, p["out_w"][i].astype(f32))
        hid = _layer_norm(lat, n[4], n[5])
        hid = _gelu_exact(jnp.einsum("bld,df->blf", hid, p["ff_w1"][i].astype(f32)))
        lat = lat + jnp.einsum("blf,fd->bld", hid, p["ff_w2"][i].astype(f32))
    y = jnp.einsum("bld,do->blo", lat, p["proj_out_w"].astype(f32)) + p["proj_out_b"]
    return _layer_norm(y, p["norm_out_g"], p["norm_out_b"])


# ----------------------------------- main -----------------------------------

if __name__ == "__main__":
    key = jax.random.PRNGKey(0)
    k_params, k_objs, k_bg = jax.random.split(key, 3)

    # small config consistent with the module (heads = dim // dim_head)
    dim, depth, dim_head = 64, 2, 16
    num_queries = [8, 8, 8]
    embedding_dim, output_dim = 48, 64
    B, n_seq = 2, 16

    params = init_serial_sampler(k_params, dim=dim, depth=depth, dim_head=dim_head,
                                 num_queries=num_queries, embedding_dim=embedding_dim,
                                 output_dim=output_dim)

    x_objs = jax.random.normal(k_objs, (B, n_seq, embedding_dim), jnp.float32)
    x_bg = jax.random.normal(k_bg, (B, n_seq, embedding_dim), jnp.float32)

    fwd = jax.jit(functools.partial(serial_sampler_forward,
                                    dim_head=dim_head, batch_tile=2))
    embed_objs, embed_context = fwd(params, x_objs, x_bg)
    jax.block_until_ready((embed_objs, embed_context))

    assert embed_objs.shape == (B, num_queries[0], output_dim)
    assert embed_context.shape == (B, num_queries[1] + num_queries[2], output_dim)

    # sanity check against a plain-JAX f32 reference of the same module;
    # tolerance accounts for bf16 MXU inputs (f32 accumulation) + approx recip.
    heads = dim // dim_head
    ref_objs = _reference_resampler(params["fg"], x_objs,
                                    heads=heads, dim_head=dim_head)
    ref_ctx = _reference_resampler(params["bg"], x_bg,
                                   coherent_queries=params["coherent_queries"],
                                   heads=heads, dim_head=dim_head)
    err = max(float(jnp.max(jnp.abs(embed_objs - ref_objs))),
              float(jnp.max(jnp.abs(embed_context - ref_ctx))))
    assert err < 7.5e-2, f"mismatch vs reference: {err}"

    print("KERNEL_OK")
</pallas_src>

<mosaic_0001>
module attributes {stable_mosaic.version = 11 : i64} {
  func.func @_resampler_kernel(%arg0: i32, %arg1: i32, %arg2: memref<2x16x48xf32, #tpu.memory_space<vmem>>, %arg3: memref<48x64xbf16, #tpu.memory_space<vmem>>, %arg4: memref<1x64xf32, #tpu.memory_space<vmem>>, %arg5: memref<1x16x64xf32, #tpu.memory_space<vmem>>, %arg6: memref<1x6x64xf32, #tpu.memory_space<vmem>>, %arg7: memref<1x64x64xbf16, #tpu.memory_space<vmem>>, %arg8: memref<1x64x64xbf16, #tpu.memory_space<vmem>>, %arg9: memref<1x64x64xbf16, #tpu.memory_space<vmem>>, %arg10: memref<1x64x64xbf16, #tpu.memory_space<vmem>>, %arg11: memref<1x64x256xbf16, #tpu.memory_space<vmem>>, %arg12: memref<1x256x64xbf16, #tpu.memory_space<vmem>>, %arg13: memref<64x64xbf16, #tpu.memory_space<vmem>>, %arg14: memref<1x64xf32, #tpu.memory_space<vmem>>, %arg15: memref<1x64xf32, #tpu.memory_space<vmem>>, %arg16: memref<1x64xf32, #tpu.memory_space<vmem>>, %arg17: memref<2x16x64xf32, #tpu.memory_space<vmem>>, %arg18: memref<32x64xbf16, #tpu.memory_space<vmem>>, %arg19: memref<32x64xf32, #tpu.memory_space<vmem>>, %arg20: memref<32x64xf32, #tpu.memory_space<vmem>>) attributes {dimension_semantics = [#tpu.dimension_semantics<parallel>, #tpu.dimension_semantics<arbitrary>], iteration_bounds = array<i64: 1, 2>, scalar_prefetch = 0 : i64, scratch_operands = 3 : i64, tpu.core_type = #tpu.core_type<tc>, window_params = [{transform_indices = @transform_0, window_bounds = array<i64: 2, 16, 48>}, {pipeline_mode = #tpu.pipeline_mode<synchronous>, transform_indices = @transform_1, window_bounds = array<i64: 48, 64>}, {pipeline_mode = #tpu.pipeline_mode<synchronous>, transform_indices = @transform_2, window_bounds = array<i64: 1, 64>}, {pipeline_mode = #tpu.pipeline_mode<synchronous>, transform_indices = @transform_3, window_bounds = array<i64: 1, 16, 64>}, {transform_indices = @transform_4, window_bounds = array<i64: 1, 6, 64>}, {transform_indices = @transform_5, window_bounds = array<i64: 1, 64, 64>}, {transform_indices = @transform_6, window_bounds = array<i64: 1, 64, 64>}, {transform_indices = @transform_7, window_bounds = array<i64: 1, 64, 64>}, {transform_indices = @transform_8, window_bounds = array<i64: 1, 64, 64>}, {transform_indices = @transform_9, window_bounds = array<i64: 1, 64, 256>}, {transform_indices = @transform_10, window_bounds = array<i64: 1, 256, 64>}, {pipeline_mode = #tpu.pipeline_mode<synchronous>, transform_indices = @transform_11, window_bounds = array<i64: 64, 64>}, {pipeline_mode = #tpu.pipeline_mode<synchronous>, transform_indices = @transform_12, window_bounds = array<i64: 1, 64>}, {pipeline_mode = #tpu.pipeline_mode<synchronous>, transform_indices = @transform_13, window_bounds = array<i64: 1, 64>}, {pipeline_mode = #tpu.pipeline_mode<synchronous>, transform_indices = @transform_14, window_bounds = array<i64: 1, 64>}, {transform_indices = @transform_15, window_bounds = array<i64: 2, 16, 64>}]} {
    %c0_i32 = arith.constant 0 : i32
    %0 = arith.cmpi eq, %arg1, %c0_i32 : i32
    %1 = arith.extui %0 : i1 to i32
    %c0_i32_0 = arith.constant 0 : i32
    %2 = arith.cmpi ne, %1, %c0_i32_0 : i32
    scf.if %2 {
      %c0_137 = arith.constant 0 : index
      %c0_138 = arith.constant 0 : index
      %c0_139 = arith.constant 0 : index
      %373 = vector.load %arg2[%c0_137, %c0_138, %c0_139] : memref<2x16x48xf32, #tpu.memory_space<vmem>>, vector<2x16x48xf32>
      %374 = vector.shape_cast %373 : vector<2x16x48xf32> to vector<32x48xf32>
      %375 = arith.truncf %374 : vector<32x48xf32> to vector<32x48xbf16>
      %c0_140 = arith.constant 0 : index
      %c0_141 = arith.constant 0 : index
      %376 = vector.load %arg3[%c0_140, %c0_141] : memref<48x64xbf16, #tpu.memory_space<vmem>>, vector<48x64xbf16>
      %cst_142 = arith.constant dense<0.000000e+00> : vector<32x64xf32>
      %377 = tpu.matmul %375, %376, %cst_142 {dimension_numbers = #tpu.dot_dimension_numbers<[1], [0], [0], [1], [0, 0, 1, 1], [], []>} : vector<32x48xbf16>, vector<48x64xbf16>, vector<32x64xf32> -> vector<32x64xf32>
      %c0_143 = arith.constant 0 : index
      %c0_144 = arith.constant 0 : index
      %378 = vector.load %arg4[%c0_143, %c0_144] : memref<1x64xf32, #tpu.memory_space<vmem>>, vector<1x64xf32>
      %379 = vector.broadcast %378 : vector<1x64xf32> to vector<32x64xf32>
      %380 = arith.addf %377, %379 : vector<32x64xf32>
      %cst_145 = arith.constant dense<0.000000e+00> : vector<32xf32>
      %381 = vector.multi_reduction <add>, %380, %cst_145 [1] : vector<32x64xf32> to vector<32xf32>
      %382 = vector.shape_cast %381 : vector<32xf32> to vector<32x1xf32>
      %cst_146 = arith.constant 6.400000e+01 : f32
      %383 = vector.broadcast %cst_146 : f32 to vector<32x1xf32>
      %384 = arith.divf %382, %383 : vector<32x1xf32>
      %385 = vector.broadcast %384 : vector<32x1xf32> to vector<32x64xf32>
      %386 = arith.subf %380, %385 : vector<32x64xf32>
      %387 = arith.mulf %386, %386 : vector<32x64xf32>
      %cst_147 = arith.constant dense<0.000000e+00> : vector<32xf32>
      %388 = vector.multi_reduction <add>, %387, %cst_147 [1] : vector<32x64xf32> to vector<32xf32>
      %389 = vector.shape_cast %388 : vector<32xf32> to vector<32x1xf32>
      %cst_148 = arith.constant 6.400000e+01 : f32
      %390 = vector.broadcast %cst_148 : f32 to vector<32x1xf32>
      %391 = arith.divf %389, %390 : vector<32x1xf32>
      %cst_149 = arith.constant 9.99999974E-6 : f32
      %392 = vector.broadcast %cst_149 : f32 to vector<32x1xf32>
      %393 = arith.addf %391, %392 : vector<32x1xf32>
      %394 = math.rsqrt %393 : vector<32x1xf32>
      %395 = vector.broadcast %394 : vector<32x1xf32> to vector<32x64xf32>
      %396 = arith.mulf %386, %395 : vector<32x64xf32>
      %397 = arith.truncf %396 : vector<32x64xf32> to vector<32x64xbf16>
      %c0_150 = arith.constant 0 : index
      %c0_151 = arith.constant 0 : index
      %398 = vector.load %arg18[%c0_150, %c0_151] : memref<32x64xbf16, #tpu.memory_space<vmem>>, vector<32x64xbf16>
      tpu.vector_store %arg18[%c0_150, %c0_151], %397 {strides = array<i32>} : memref<32x64xbf16, #tpu.memory_space<vmem>>, vector<32x64xbf16>,
      %c0_152 = arith.constant 0 : index
      %c0_153 = arith.constant 0 : index
      %c0_154 = arith.constant 0 : index
      %399 = vector.load %arg5[%c0_152, %c0_153, %c0_154] : memref<1x16x64xf32, #tpu.memory_space<vmem>>, vector<1x16x64xf32>
      %400 = vector.shape_cast %399 : vector<1x16x64xf32> to vector<16x64xf32>
      %401 = tpu.concatenate %400, %400 in 0 : vector<16x64xf32>, vector<16x64xf32> -> vector<32x64xf32>
      %c0_155 = arith.constant 0 : index
      %c0_156 = arith.constant 0 : index
      %402 = vector.load %arg19[%c0_155, %c0_156] : memref<32x64xf32, #tpu.memory_space<vmem>>, vector<32x64xf32>
      tpu.vector_store %arg19[%c0_155, %c0_156], %401 {strides = array<i32>} : memref<32x64xf32, #tpu.memory_space<vmem>>, vector<32x64xf32>,
    } else {
    }
    %c0 = arith.constant 0 : index
    %c0_1 = arith.constant 0 : index
    %3 = vector.load %arg19[%c0, %c0_1] : memref<32x64xf32, #tpu.memory_space<vmem>>, vector<32x64xf32>
    %c0_2 = arith.constant 0 : index
    %c0_3 = arith.constant 0 : index
    %c0_4 = arith.constant 0 : index
    %4 = vector.load %arg6[%c0_2, %c0_3, %c0_4] : memref<1x6x64xf32, #tpu.memory_space<vmem>>, vector<1x1x64xf32>
    %5 = vector.shape_cast %4 : vector<1x1x64xf32> to vector<1x64xf32>
    %c0_5 = arith.constant 0 : index
    %c1 = arith.constant 1 : index
    %c0_6 = arith.constant 0 : index
    %6 = vector.load %arg6[%c0_5, %c1, %c0_6] : memref<1x6x64xf32, #tpu.memory_space<vmem>>, vector<1x1x64xf32>
    %7 = vector.shape_cast %6 : vector<1x1x64xf32> to vector<1x64xf32>
    %c0_7 = arith.constant 0 : index
    %c2 = arith.constant 2 : index
    %c0_8 = arith.constant 0 : index
    %8 = vector.load %arg6[%c0_7, %c2, %c0_8] : memref<1x6x64xf32, #tpu.memory_space<vmem>>, vector<1x1x64xf32>
    %9 = vector.shape_cast %8 : vector<1x1x64xf32> to vector<1x64xf32>
    %c0_9 = arith.constant 0 : index
    %c3 = arith.constant 3 : index
    %c0_10 = arith.constant 0 : index
    %10 = vector.load %arg6[%c0_9, %c3, %c0_10] : memref<1x6x64xf32, #tpu.memory_space<vmem>>, vector<1x1x64xf32>
    %11 = vector.shape_cast %10 : vector<1x1x64xf32> to vector<1x64xf32>
    %c0_11 = arith.constant 0 : index
    %c4 = arith.constant 4 : index
    %c0_12 = arith.constant 0 : index
    %12 = vector.load %arg6[%c0_11, %c4, %c0_12] : memref<1x6x64xf32, #tpu.memory_space<vmem>>, vector<1x1x64xf32>
    %13 = vector.shape_cast %12 : vector<1x1x64xf32> to vector<1x64xf32>
    %c0_13 = arith.constant 0 : index
    %c5 = arith.constant 5 : index
    %c0_14 = arith.constant 0 : index
    %14 = vector.load %arg6[%c0_13, %c5, %c0_14] : memref<1x6x64xf32, #tpu.memory_space<vmem>>, vector<1x1x64xf32>
    %15 = vector.shape_cast %14 : vector<1x1x64xf32> to vector<1x64xf32>
    %c0_15 = arith.constant 0 : index
    %c0_16 = arith.constant 0 : index
    %16 = vector.load %arg18[%c0_15, %c0_16] : memref<32x64xbf16, #tpu.memory_space<vmem>>, vector<32x64xbf16>
    %17 = arith.extf %16 : vector<32x64xbf16> to vector<32x64xf32>
    %18 = vector.broadcast %5 : vector<1x64xf32> to vector<32x64xf32>
    %19 = arith.mulf %17, %18 : vector<32x64xf32>
    %20 = vector.broadcast %7 : vector<1x64xf32> to vector<32x64xf32>
    %21 = arith.addf %19, %20 : vector<32x64xf32>
    %22 = arith.truncf %21 : vector<32x64xf32> to vector<32x64xbf16>
    %cst = arith.constant dense<0.000000e+00> : vector<32xf32>
    %23 = vector.multi_reduction <add>, %3, %cst [1] : vector<32x64xf32> to vector<32xf32>
    %24 = vector.shape_cast %23 : vector<32xf32> to vector<32x1xf32>
    %cst_17 = arith.constant 6.400000e+01 : f32
    %25 = vector.broadcast %cst_17 : f32 to vector<32x1xf32>
    %26 = arith.divf %24, %25 : vector<32x1xf32>
    %27 = vector.broadcast %26 : vector<32x1xf32> to vector<32x64xf32>
    %28 = arith.subf %3, %27 : vector<32x64xf32>
    %29 = arith.mulf %28, %28 : vector<32x64xf32>
    %cst_18 = arith.constant dense<0.000000e+00> : vector<32xf32>
    %30 = vector.multi_reduction <add>, %29, %cst_18 [1] : vector<32x64xf32> to vector<32xf32>
    %31 = vector.shape_cast %30 : vector<32xf32> to vector<32x1xf32>
    %cst_19 = arith.constant 6.400000e+01 : f32
    %32 = vector.broadcast %cst_19 : f32 to vector<32x1xf32>
    %33 = arith.divf %31, %32 : vector<32x1xf32>
    %cst_20 = arith.constant 9.99999974E-6 : f32
    %34 = vector.broadcast %cst_20 : f32 to vector<32x1xf32>
    %35 = arith.addf %33, %34 : vector<32x1xf32>
    %36 = math.rsqrt %35 : vector<32x1xf32>
    %37 = vector.broadcast %36 : vector<32x1xf32> to vector<32x64xf32>
    %38 = arith.mulf %28, %37 : vector<32x64xf32>
    %39 = vector.broadcast %9 : vector<1x64xf32> to vector<32x64xf32>
    %40 = arith.mulf %38, %39 : vector<32x64xf32>
    %41 = vector.broadcast %11 : vector<1x64xf32> to vector<32x64xf32>
    %42 = arith.addf %40, %41 : vector<32x64xf32>
    %43 = arith.truncf %42 : vector<32x64xf32> to vector<32x64xbf16>
    %c0_21 = arith.constant 0 : index
    %c0_22 = arith.constant 0 : index
    %c0_23 = arith.constant 0 : index
    %44 = vector.load %arg7[%c0_21, %c0_22, %c0_23] : memref<1x64x64xbf16, #tpu.memory_space<vmem>>, vector<1x64x64xbf16>
    %45 = vector.shape_cast %44 : vector<1x64x64xbf16> to vector<64x64xbf16>
    %c0_24 = arith.constant 0 : index
    %c0_25 = arith.constant 0 : index
    %c0_26 = arith.constant 0 : index
    %46 = vector.load %arg8[%c0_24, %c0_25, %c0_26] : memref<1x64x64xbf16, #tpu.memory_space<vmem>>, vector<1x64x64xbf16>
    %47 = vector.shape_cast %46 : vector<1x64x64xbf16> to vector<64x64xbf16>
    %c0_27 = arith.constant 0 : index
    %c0_28 = arith.constant 0 : index
    %c0_29 = arith.constant 0 : index
    %48 = vector.load %arg9[%c0_27, %c0_28, %c0_29] : memref<1x64x64xbf16, #tpu.memory_space<vmem>>, vector<1x64x64xbf16>
    %49 = vector.shape_cast %48 : vector<1x64x64xbf16> to vector<64x64xbf16>
    %cst_30 = arith.constant dense<0.000000e+00> : vector<32x64xf32>
    %50 = tpu.matmul %43, %45, %cst_30 {dimension_numbers = #tpu.dot_dimension_numbers<[1], [0], [0], [1], [0, 0, 1, 1], [], []>} : vector<32x64xbf16>, vector<64x64xbf16>, vector<32x64xf32> -> vector<32x64xf32>
    %51 = arith.truncf %50 : vector<32x64xf32> to vector<32x64xbf16>
    %cst_31 = arith.constant dense<0.000000e+00> : vector<32x64xf32>
    %52 = tpu.matmul %22, %47, %cst_31 {dimension_numbers = #tpu.dot_dimension_numbers<[1], [0], [0], [1], [0, 0, 1, 1], [], []>} : vector<32x64xbf16>, vector<64x64xbf16>, vector<32x64xf32> -> vector<32x64xf32>
    %53 = arith.truncf %52 : vector<32x64xf32> to vector<32x64xbf16>
    %cst_32 = arith.constant dense<0.000000e+00> : vector<32x64xf32>
    %54 = tpu.matmul %22, %49, %cst_32 {dimension_numbers = #tpu.dot_dimension_numbers<[1], [0], [0], [1], [0, 0, 1, 1], [], []>} : vector<32x64xbf16>, vector<64x64xbf16>, vector<32x64xf32> -> vector<32x64xf32>
    %55 = arith.truncf %54 : vector<32x64xf32> to vector<32x64xbf16>
    %cst_33 = arith.constant dense<0.000000e+00> : vector<32x64xf32>
    %56 = tpu.matmul %43, %47, %cst_33 {dimension_numbers = #tpu.dot_dimension_numbers<[1], [0], [0], [1], [0, 0, 1, 1], [], []>} : vector<32x64xbf16>, vector<64x64xbf16>, vector<32x64xf32> -> vector<32x64xf32>
    %57 = arith.truncf %56 : vector<32x64xf32> to vector<32x64xbf16>
    %cst_34 = arith.constant dense<0.000000e+00> : vector<32x64xf32>
    %58 = tpu.matmul %43, %49, %cst_34 {dimension_numbers = #tpu.dot_dimension_numbers<[1], [0], [0], [1], [0, 0, 1, 1], [], []>} : vector<32x64xbf16>, vector<64x64xbf16>, vector<32x64xf32> -> vector<32x64xf32>
    %59 = arith.truncf %58 : vector<32x64xf32> to vector<32x64xbf16>
    %60 = vector.extract_strided_slice %51 {offsets = [0, 0], sizes = [16, 64], strides = [1, 1]} : vector<32x64xbf16> to vector<16x64xbf16>
    %61 = vector.extract_strided_slice %53 {offsets = [0, 0], sizes = [16, 64], strides = [1, 1]} : vector<32x64xbf16> to vector<16x64xbf16>
    %62 = vector.extract_strided_slice %55 {offsets = [0, 0], sizes = [16, 64], strides = [1, 1]} : vector<32x64xbf16> to vector<16x64xbf16>
    %63 = vector.extract_strided_slice %57 {offsets = [0, 0], sizes = [16, 64], strides = [1, 1]} : vector<32x64xbf16> to vector<16x64xbf16>
    %64 = vector.extract_strided_slice %59 {offsets = [0, 0], sizes = [16, 64], strides = [1, 1]} : vector<32x64xbf16> to vector<16x64xbf16>
    %65 = vector.extract_strided_slice %60 {offsets = [0, 0], sizes = [16, 16], strides = [1, 1]} : vector<16x64xbf16> to vector<16x16xbf16>
    %66 = vector.extract_strided_slice %61 {offsets = [0, 0], sizes = [16, 16], strides = [1, 1]} : vector<16x64xbf16> to vector<16x16xbf16>
    %cst_35 = arith.constant dense<0.000000e+00> : vector<16x16xf32>
    %67 = tpu.matmul %65, %66, %cst_35 {dimension_numbers = #tpu.dot_dimension_numbers<[1], [1], [0], [0], [0, 0, 1, 0], [], []>} : vector<16x16xbf16>, vector<16x16xbf16>, vector<16x16xf32> -> vector<16x16xf32>
    %68 = vector.extract_strided_slice %63 {offsets = [0, 0], sizes = [16, 16], strides = [1, 1]} : vector<16x64xbf16> to vector<16x16xbf16>
    %cst_36 = arith.constant dense<0.000000e+00> : vector<16x16xf32>
    %69 = tpu.matmul %65, %68, %cst_36 {dimension_numbers = #tpu.dot_dimension_numbers<[1], [1], [0], [0], [0, 0, 1, 0], [], []>} : vector<16x16xbf16>, vector<16x16xbf16>, vector<16x16xf32> -> vector<16x16xf32>
    %cst_37 = arith.constant dense<0xFF800000> : vector<16xf32>
    %70 = vector.multi_reduction <maximumf>, %67, %cst_37 [1] : vector<16x16xf32> to vector<16xf32>
    %71 = vector.shape_cast %70 : vector<16xf32> to vector<16x1xf32>
    %cst_38 = arith.constant dense<0xFF800000> : vector<16xf32>
    %72 = vector.multi_reduction <maximumf>, %69, %cst_38 [1] : vector<16x16xf32> to vector<16xf32>
    %73 = vector.shape_cast %72 : vector<16xf32> to vector<16x1xf32>
    %74 = arith.maximumf %71, %73 : vector<16x1xf32>
    %75 = vector.broadcast %74 : vector<16x1xf32> to vector<16x16xf32>
    %76 = arith.subf %67, %75 : vector<16x16xf32>
    %77 = math.exp %76 : vector<16x16xf32>
    %78 = vector.broadcast %74 : vector<16x1xf32> to vector<16x16xf32>
    %79 = arith.subf %69, %78 : vector<16x16xf32>
    %80 = math.exp %79 : vector<16x16xf32>
    %cst_39 = arith.constant dense<0.000000e+00> : vector<16xf32>
    %81 = vector.multi_reduction <add>, %77, %cst_39 [1] : vector<16x16xf32> to vector<16xf32>
    %82 = vector.shape_cast %81 : vector<16xf32> to vector<16x1xf32>
    %cst_40 = arith.constant dense<0.000000e+00> : vector<16xf32>
    %83 = vector.multi_reduction <add>, %80, %cst_40 [1] : vector<16x16xf32> to vector<16xf32>
    %84 = vector.shape_cast %83 : vector<16xf32> to vector<16x1xf32>
    %85 = arith.addf %82, %84 : vector<16x1xf32>
    %86 = tpu.reciprocal %85 {approx = true} : vector<16x1xf32> -> vector<16x1xf32>
    %87 = arith.truncf %77 : vector<16x16xf32> to vector<16x16xbf16>
    %88 = vector.extract_strided_slice %62 {offsets = [0, 0], sizes = [16, 16], strides = [1, 1]} : vector<16x64xbf16> to vector<16x16xbf16>
    %cst_41 = arith.constant dense<0.000000e+00> : vector<16x16xf32>
    %89 = tpu.matmul %87, %88, %cst_41 {dimension_numbers = #tpu.dot_dimension_numbers<[1], [0], [0], [1], [0, 0, 1, 1], [], []>} : vector<16x16xbf16>, vector<16x16xbf16>, vector<16x16xf32> -> vector<16x16xf32>
    %90 = arith.truncf %80 : vector<16x16xf32> to vector<16x16xbf16>
    %91 = vector.extract_strided_slice %64 {offsets = [0, 0], sizes = [16, 16], strides = [1, 1]} : vector<16x64xbf16> to vector<16x16xbf16>
    %cst_42 = arith.constant dense<0.000000e+00> : vector<16x16xf32>
    %92 = tpu.matmul %90, %91, %cst_42 {dimension_numbers = #tpu.dot_dimension_numbers<[1], [0], [0], [1], [0, 0, 1, 1], [], []>} : vector<16x16xbf16>, vector<16x16xbf16>, vector<16x16xf32> -> vector<16x16xf32>
    %93 = arith.addf %89, %92 : vector<16x16xf32>
    %94 = vector.broadcast %86 : vector<16x1xf32> to vector<16x16xf32>
    %95 = arith.mulf %93, %94 : vector<16x16xf32>
    %c0_43 = arith.constant 0 : index
    %c0_44 = arith.constant 0 : index
    %96 = vector.load %arg20[%c0_43, %c0_44] : memref<32x64xf32, #tpu.memory_space<vmem>>, vector<16x16xf32>
    tpu.vector_store %arg20[%c0_43, %c0_44], %95 {strides = array<i32>} : memref<32x64xf32, #tpu.memory_space<vmem>>, vector<16x16xf32>,
    %97 = vector.extract_strided_slice %60 {offsets = [0, 16], sizes = [16, 16], strides = [1, 1]} : vector<16x64xbf16> to vector<16x16xbf16>
    %98 = vector.extract_strided_slice %61 {offsets = [0, 16], sizes = [16, 16], strides = [1, 1]} : vector<16x64xbf16> to vector<16x16xbf16>
    %cst_45 = arith.constant dense<0.000000e+00> : vector<16x16xf32>
    %99 = tpu.matmul %97, %98, %cst_45 {dimension_numbers = #tpu.dot_dimension_numbers<[1], [1], [0], [0], [0, 0, 1, 0], [], []>} : vector<16x16xbf16>, vector<16x16xbf16>, vector<16x16xf32> -> vector<16x16xf32>
    %100 = vector.extract_strided_slice %63 {offsets = [0, 16], sizes = [16, 16], strides = [1, 1]} : vector<16x64xbf16> to vector<16x16xbf16>
    %cst_46 = arith.constant dense<0.000000e+00> : vector<16x16xf32>
    %101 = tpu.matmul %97, %100, %cst_46 {dimension_numbers = #tpu.dot_dimension_numbers<[1], [1], [0], [0], [0, 0, 1, 0], [], []>} : vector<16x16xbf16>, vector<16x16xbf16>, vector<16x16xf32> -> vector<16x16xf32>
    %cst_47 = arith.constant dense<0xFF800000> : vector<16xf32>
    %102 = vector.multi_reduction <maximumf>, %99, %cst_47 [1] : vector<16x16xf32> to vector<16xf32>
    %103 = vector.shape_cast %102 : vector<16xf32> to vector<16x1xf32>
    %cst_48 = arith.constant dense<0xFF800000> : vector<16xf32>
    %104 = vector.multi_reduction <maximumf>, %101, %cst_48 [1] : vector<16x16xf32> to vector<16xf32>
    %105 = vector.shape_cast %104 : vector<16xf32> to vector<16x1xf32>
    %106 = arith.maximumf %103, %105 : vector<16x1xf32>
    %107 = vector.broadcast %106 : vector<16x1xf32> to vector<16x16xf32>
    %108 = arith.subf %99, %107 : vector<16x16xf32>
    %109 = math.exp %108 : vector<16x16xf32>
    %110 = vector.broadcast %106 : vector<16x1xf32> to vector<16x16xf32>
    %111 = arith.subf %101, %110 : vector<16x16xf32>
    %112 = math.exp %111 : vector<16x16xf32>
    %cst_49 = arith.constant dense<0.000000e+00> : vector<16xf32>
    %113 = vector.multi_reduction <add>, %109, %cst_49 [1] : vector<16x16xf32> to vector<16xf32>
    %114 = vector.shape_cast %113 : vector<16xf32> to vector<16x1xf32>
    %cst_50 = arith.constant dense<0.000000e+00> : vector<16xf32>
    %115 = vector.multi_reduction <add>, %112, %cst_50 [1] : vector<16x16xf32> to vector<16xf32>
    %116 = vector.shape_cast %115 : vector<16xf32> to vector<16x1xf32>
    %117 = arith.addf %114, %116 : vector<16x1xf32>
    %118 = tpu.reciprocal %117 {approx = true} : vector<16x1xf32> -> vector<16x1xf32>
    %119 = arith.truncf %109 : vector<16x16xf32> to vector<16x16xbf16>
    %120 = vector.extract_strided_slice %62 {offsets = [0, 16], sizes = [16, 16], strides = [1, 1]} : vector<16x64xbf16> to vector<16x16xbf16>
    %cst_51 = arith.constant dense<0.000000e+00> : vector<16x16xf32>
    %121 = tpu.matmul %119, %120, %cst_51 {dimension_numbers = #tpu.dot_dimension_numbers<[1], [0], [0], [1], [0, 0, 1, 1], [], []>} : vector<16x16xbf16>, vector<16x16xbf16>, vector<16x16xf32> -> vector<16x16xf32>
    %122 = arith.truncf %112 : vector<16x16xf32> to vector<16x16xbf16>
    %123 = vector.extract_strided_slice %64 {offsets = [0, 16], sizes = [16, 16], strides = [1, 1]} : vector<16x64xbf16> to vector<16x16xbf16>
    %cst_52 = arith.constant dense<0.000000e+00> : vector<16x16xf32>
    %124 = tpu.matmul %122, %123, %cst_52 {dimension_numbers = #tpu.dot_dimension_numbers<[1], [0], [0], [1], [0, 0, 1, 1], [], []>} : vector<16x16xbf16>, vector<16x16xbf16>, vector<16x16xf32> -> vector<16x16xf32>
    %125 = arith.addf %121, %124 : vector<16x16xf32>
    %126 = vector.broadcast %118 : vector<16x1xf32> to vector<16x16xf32>
    %127 = arith.mulf %125, %126 : vector<16x16xf32>
    %c0_53 = arith.constant 0 : index
    %c16 = arith.constant 16 : index
    %128 = vector.load %arg20[%c0_53, %c16] : memref<32x64xf32, #tpu.memory_space<vmem>>, vector<16x16xf32>
    tpu.vector_store %arg20[%c0_53, %c16], %127 {strides = array<i32>} : memref<32x64xf32, #tpu.memory_space<vmem>>, vector<16x16xf32>,
    %129 = vector.extract_strided_slice %60 {offsets = [0, 32], sizes = [16, 16], strides = [1, 1]} : vector<16x64xbf16> to vector<16x16xbf16>
    %130 = vector.extract_strided_slice %61 {offsets = [0, 32], sizes = [16, 16], strides = [1, 1]} : vector<16x64xbf16> to vector<16x16xbf16>
    %cst_54 = arith.constant dense<0.000000e+00> : vector<16x16xf32>
    %131 = tpu.matmul %129, %130, %cst_54 {dimension_numbers = #tpu.dot_dimension_numbers<[1], [1], [0], [0], [0, 0, 1, 0], [], []>} : vector<16x16xbf16>, vector<16x16xbf16>, vector<16x16xf32> -> vector<16x16xf32>
    %132 = vector.extract_strided_slice %63 {offsets = [0, 32], sizes = [16, 16], strides = [1, 1]} : vector<16x64xbf16> to vector<16x16xbf16>
    %cst_55 = arith.constant dense<0.000000e+00> : vector<16x16xf32>
    %133 = tpu.matmul %129, %132, %cst_55 {dimension_numbers = #tpu.dot_dimension_numbers<[1], [1], [0], [0], [0, 0, 1, 0], [], []>} : vector<16x16xbf16>, vector<16x16xbf16>, vector<16x16xf32> -> vector<16x16xf32>
    %cst_56 = arith.constant dense<0xFF800000> : vector<16xf32>
    %134 = vector.multi_reduction <maximumf>, %131, %cst_56 [1] : vector<16x16xf32> to vector<16xf32>
    %135 = vector.shape_cast %134 : vector<16xf32> to vector<16x1xf32>
    %cst_57 = arith.constant dense<0xFF800000> : vector<16xf32>
    %136 = vector.multi_reduction <maximumf>, %133, %cst_57 [1] : vector<16x16xf32> to vector<16xf32>
    %137 = vector.shape_cast %136 : vector<16xf32> to vector<16x1xf32>
    %138 = arith.maximumf %135, %137 : vector<16x1xf32>
    %139 = vector.broadcast %138 : vector<16x1xf32> to vector<16x16xf32>
    %140 = arith.subf %131, %139 : vector<16x16xf32>
    %141 = math.exp %140 : vector<16x16xf32>
    %142 = vector.broadcast %138 : vector<16x1xf32> to vector<16x16xf32>
    %143 = arith.subf %133, %142 : vector<16x16xf32>
    %144 = math.exp %143 : vector<16x16xf32>
    %cst_58 = arith.constant dense<0.000000e+00> : vector<16xf32>
    %145 = vector.multi_reduction <add>, %141, %cst_58 [1] : vector<16x16xf32> to vector<16xf32>
    %146 = vector.shape_cast %145 : vector<16xf32> to vector<16x1xf32>
    %cst_59 = arith.constant dense<0.000000e+00> : vector<16xf32>
    %147 = vector.multi_reduction <add>, %144, %cst_59 [1] : vector<16x16xf32> to vector<16xf32>
    %148 = vector.shape_cast %147 : vector<16xf32> to vector<16x1xf32>
    %149 = arith.addf %146, %148 : vector<16x1xf32>
    %150 = tpu.reciprocal %149 {approx = true} : vector<16x1xf32> -> vector<16x1xf32>
    %151 = arith.truncf %141 : vector<16x16xf32> to vector<16x16xbf16>
    %152 = vector.extract_strided_slice %62 {offsets = [0, 32], sizes = [16, 16], strides = [1, 1]} : vector<16x64xbf16> to vector<16x16xbf16>
    %cst_60 = arith.constant dense<0.000000e+00> : vector<16x16xf32>
    %153 = tpu.matmul %151, %152, %cst_60 {dimension_numbers = #tpu.dot_dimension_numbers<[1], [0], [0], [1], [0, 0, 1, 1], [], []>} : vector<16x16xbf16>, vector<16x16xbf16>, vector<16x16xf32> -> vector<16x16xf32>
    %154 = arith.truncf %144 : vector<16x16xf32> to vector<16x16xbf16>
    %155 = vector.extract_strided_slice %64 {offsets = [0, 32], sizes = [16, 16], strides = [1, 1]} : vector<16x64xbf16> to vector<16x16xbf16>
    %cst_61 = arith.constant dense<0.000000e+00> : vector<16x16xf32>
    %156 = tpu.matmul %154, %155, %cst_61 {dimension_numbers = #tpu.dot_dimension_numbers<[1], [0], [0], [1], [0, 0, 1, 1], [], []>} : vector<16x16xbf16>, vector<16x16xbf16>, vector<16x16xf32> -> vector<16x16xf32>
    %157 = arith.addf %153, %156 : vector<16x16xf32>
    %158 = vector.broadcast %150 : vector<16x1xf32> to vector<16x16xf32>
    %159 = arith.mulf %157, %158 : vector<16x16xf32>
    %c0_62 = arith.constant 0 : index
    %c32 = arith.constant 32 : index
    %160 = vector.load %arg20[%c0_62, %c32] : memref<32x64xf32, #tpu.memory_space<vmem>>, vector<16x16xf32>
    tpu.vector_store %arg20[%c0_62, %c32], %159 {strides = array<i32>} : memref<32x64xf32, #tpu.memory_space<vmem>>, vector<16x16xf32>,
    %161 = vector.extract_strided_slice %60 {offsets = [0, 48], sizes = [16, 16], strides = [1, 1]} : vector<16x64xbf16> to vector<16x16xbf16>
    %162 = vector.extract_strided_slice %61 {offsets = [0, 48], sizes = [16, 16], strides = [1, 1]} : vector<16x64xbf16> to vector<16x16xbf16>
    %cst_63 = arith.constant dense<0.000000e+00> : vector<16x16xf32>
    %163 = tpu.matmul %161, %162, %cst_63 {dimension_numbers = #tpu.dot_dimension_numbers<[1], [1], [0], [0], [0, 0, 1, 0], [], []>} : vector<16x16xbf16>, vector<16x16xbf16>, vector<16x16xf32> -> vector<16x16xf32>
    %164 = vector.extract_strided_slice %63 {offsets = [0, 48], sizes = [16, 16], strides = [1, 1]} : vector<16x64xbf16> to vector<16x16xbf16>
    %cst_64 = arith.constant dense<0.000000e+00> : vector<16x16xf32>
    %165 = tpu.matmul %161, %164, %cst_64 {dimension_numbers = #tpu.dot_dimension_numbers<[1], [1], [0], [0], [0, 0, 1, 0], [], []>} : vector<16x16xbf16>, vector<16x16xbf16>, vector<16x16xf32> -> vector<16x16xf32>
    %cst_65 = arith.constant dense<0xFF800000> : vector<16xf32>
    %166 = vector.multi_reduction <maximumf>, %163, %cst_65 [1] : vector<16x16xf32> to vector<16xf32>
    %167 = vector.shape_cast %166 : vector<16xf32> to vector<16x1xf32>
    %cst_66 = arith.constant dense<0xFF800000> : vector<16xf32>
    %168 = vector.multi_reduction <maximumf>, %165, %cst_66 [1] : vector<16x16xf32> to vector<16xf32>
    %169 = vector.shape_cast %168 : vector<16xf32> to vector<16x1xf32>
    %170 = arith.maximumf %167, %169 : vector<16x1xf32>
    %171 = vector.broadcast %170 : vector<16x1xf32> to vector<16x16xf32>
    %172 = arith.subf %163, %171 : vector<16x16xf32>
    %173 = math.exp %172 : vector<16x16xf32>
    %174 = vector.broadcast %170 : vector<16x1xf32> to vector<16x16xf32>
    %175 = arith.subf %165, %174 : vector<16x16xf32>
    %176 = math.exp %175 : vector<16x16xf32>
    %cst_67 = arith.constant dense<0.000000e+00> : vector<16xf32>
    %177 = vector.multi_reduction <add>, %173, %cst_67 [1] : vector<16x16xf32> to vector<16xf32>
    %178 = vector.shape_cast %177 : vector<16xf32> to vector<16x1xf32>
    %cst_68 = arith.constant dense<0.000000e+00> : vector<16xf32>
    %179 = vector.multi_reduction <add>, %176, %cst_68 [1] : vector<16x16xf32> to vector<16xf32>
    %180 = vector.shape_cast %179 : vector<16xf32> to vector<16x1xf32>
    %181 = arith.addf %178, %180 : vector<16x1xf32>
    %182 = tpu.reciprocal %181 {approx = true} : vector<16x1xf32> -> vector<16x1xf32>
    %183 = arith.truncf %173 : vector<16x16xf32> to vector<16x16xbf16>
    %184 = vector.extract_strided_slice %62 {offsets = [0, 48], sizes = [16, 16], strides = [1, 1]} : vector<16x64xbf16> to vector<16x16xbf16>
    %cst_69 = arith.constant dense<0.000000e+00> : vector<16x16xf32>
    %185 = tpu.matmul %183, %184, %cst_69 {dimension_numbers = #tpu.dot_dimension_numbers<[1], [0], [0], [1], [0, 0, 1, 1], [], []>} : vector<16x16xbf16>, vector<16x16xbf16>, vector<16x16xf32> -> vector<16x16xf32>
    %186 = arith.truncf %176 : vector<16x16xf32> to vector<16x16xbf16>
    %187 = vector.extract_strided_slice %64 {offsets = [0, 48], sizes = [16, 16], strides = [1, 1]} : vector<16x64xbf16> to vector<16x16xbf16>
    %cst_70 = arith.constant dense<0.000000e+00> : vector<16x16xf32>
    %188 = tpu.matmul %186, %187, %cst_70 {dimension_numbers = #tpu.dot_dimension_numbers<[1], [0], [0], [1], [0, 0, 1, 1], [], []>} : vector<16x16xbf16>, vector<16x16xbf16>, vector<16x16xf32> -> vector<16x16xf32>
    %189 = arith.addf %185, %188 : vector<16x16xf32>
    %190 = vector.broadcast %182 : vector<16x1xf32> to vector<16x16xf32>
    %191 = arith.mulf %189, %190 : vector<16x16xf32>
    %c0_71 = arith.constant 0 : index
    %c48 = arith.constant 48 : index
    %192 = vector.load %arg20[%c0_71, %c48] : memref<32x64xf32, #tpu.memory_space<vmem>>, vector<16x16xf32>
    tpu.vector_store %arg20[%c0_71, %c48], %191 {strides = array<i32>} : memref<32x64xf32, #tpu.memory_space<vmem>>, vector<16x16xf32>,
    %193 = vector.extract_strided_slice %51 {offsets = [16, 0], sizes = [16, 64], strides = [1, 1]} : vector<32x64xbf16> to vector<16x64xbf16>
    %194 = vector.extract_strided_slice %53 {offsets = [16, 0], sizes = [16, 64], strides = [1, 1]} : vector<32x64xbf16> to vector<16x64xbf16>
    %195 = vector.extract_strided_slice %55 {offsets = [16, 0], sizes = [16, 64], strides = [1, 1]} : vector<32x64xbf16> to vector<16x64xbf16>
    %196 = vector.extract_strided_slice %57 {offsets = [16, 0], sizes = [16, 64], strides = [1, 1]} : vector<32x64xbf16> to vector<16x64xbf16>
    %197 = vector.extract_strided_slice %59 {offsets = [16, 0], sizes = [16, 64], strides = [1, 1]} : vector<32x64xbf16> to vector<16x64xbf16>
    %198 = vector.extract_strided_slice %193 {offsets = [0, 0], sizes = [16, 16], strides = [1, 1]} : vector<16x64xbf16> to vector<16x16xbf16>
    %199 = vector.extract_strided_slice %194 {offsets = [0, 0], sizes = [16, 16], strides = [1, 1]} : vector<16x64xbf16> to vector<16x16xbf16>
    %cst_72 = arith.constant dense<0.000000e+00> : vector<16x16xf32>
    %200 = tpu.matmul %198, %199, %cst_72 {dimension_numbers = #tpu.dot_dimension_numbers<[1], [1], [0], [0], [0, 0, 1, 0], [], []>} : vector<16x16xbf16>, vector<16x16xbf16>, vector<16x16xf32> -> vector<16x16xf32>
    %201 = vector.extract_strided_slice %196 {offsets = [0, 0], sizes = [16, 16], strides = [1, 1]} : vector<16x64xbf16> to vector<16x16xbf16>
    %cst_73 = arith.constant dense<0.000000e+00> : vector<16x16xf32>
    %202 = tpu.matmul %198, %201, %cst_73 {dimension_numbers = #tpu.dot_dimension_numbers<[1], [1], [0], [0], [0, 0, 1, 0], [], []>} : vector<16x16xbf16>, vector<16x16xbf16>, vector<16x16xf32> -> vector<16x16xf32>
    %cst_74 = arith.constant dense<0xFF800000> : vector<16xf32>
    %203 = vector.multi_reduction <maximumf>, %200, %cst_74 [1] : vector<16x16xf32> to vector<16xf32>
    %204 = vector.shape_cast %203 : vector<16xf32> to vector<16x1xf32>
    %cst_75 = arith.constant dense<0xFF800000> : vector<16xf32>
    %205 = vector.multi_reduction <maximumf>, %202, %cst_75 [1] : vector<16x16xf32> to vector<16xf32>
    %206 = vector.shape_cast %205 : vector<16xf32> to vector<16x1xf32>
    %207 = arith.maximumf %204, %206 : vector<16x1xf32>
    %208 = vector.broadcast %207 : vector<16x1xf32> to vector<16x16xf32>
    %209 = arith.subf %200, %208 : vector<16x16xf32>
    %210 = math.exp %209 : vector<16x16xf32>
    %211 = vector.broadcast %207 : vector<16x1xf32> to vector<16x16xf32>
    %212 = arith.subf %202, %211 : vector<16x16xf32>
    %213 = math.exp %212 : vector<16x16xf32>
    %cst_76 = arith.constant dense<0.000000e+00> : vector<16xf32>
    %214 = vector.multi_reduction <add>, %210, %cst_76 [1] : vector<16x16xf32> to vector<16xf32>
    %215 = vector.shape_cast %214 : vector<16xf32> to vector<16x1xf32>
    %cst_77 = arith.constant dense<0.000000e+00> : vector<16xf32>
    %216 = vector.multi_reduction <add>, %213, %cst_77 [1] : vector<16x16xf32> to vector<16xf32>
    %217 = vector.shape_cast %216 : vector<16xf32> to vector<16x1xf32>
    %218 = arith.addf %215, %217 : vector<16x1xf32>
    %219 = tpu.reciprocal %218 {approx = true} : vector<16x1xf32> -> vector<16x1xf32>
    %220 = arith.truncf %210 : vector<16x16xf32> to vector<16x16xbf16>
    %221 = vector.extract_strided_slice %195 {offsets = [0, 0], sizes = [16, 16], strides = [1, 1]} : vector<16x64xbf16> to vector<16x16xbf16>
    %cst_78 = arith.constant dense<0.000000e+00> : vector<16x16xf32>
    %222 = tpu.matmul %220, %221, %cst_78 {dimension_numbers = #tpu.dot_dimension_numbers<[1], [0], [0], [1], [0, 0, 1, 1], [], []>} : vector<16x16xbf16>, vector<16x16xbf16>, vector<16x16xf32> -> vector<16x16xf32>
    %223 = arith.truncf %213 : vector<16x16xf32> to vector<16x16xbf16>
    %224 = vector.extract_strided_slice %197 {offsets = [0, 0], sizes = [16, 16], strides = [1, 1]} : vector<16x64xbf16> to vector<16x16xbf16>
    %cst_79 = arith.constant dense<0.000000e+00> : vector<16x16xf32>
    %225 = tpu.matmul %223, %224, %cst_79 {dimension_numbers = #tpu.dot_dimension_numbers<[1], [0], [0], [1], [0, 0, 1, 1], [], []>} : vector<16x16xbf16>, vector<16x16xbf16>, vector<16x16xf32> -> vector<16x16xf32>
    %226 = arith.addf %222, %225 : vector<16x16xf32>
    %227 = vector.broadcast %219 : vector<16x1xf32> to vector<16x16xf32>
    %228 = arith.mulf %226, %227 : vector<16x16xf32>
    %c16_80 = arith.constant 16 : index
    %c0_81 = arith.constant 0 : index
    %229 = vector.load %arg20[%c16_80, %c0_81] : memref<32x64xf32, #tpu.memory_space<vmem>>, vector<16x16xf32>
    tpu.vector_store %arg20[%c16_80, %c0_81], %228 {strides = array<i32>} : memref<32x64xf32, #tpu.memory_space<vmem>>, vector<16x16xf32>,
    %230 = vector.extract_strided_slice %193 {offsets = [0, 16], sizes = [16, 16], strides = [1, 1]} : vector<16x64xbf16> to vector<16x16xbf16>
    %231 = vector.extract_strided_slice %194 {offsets = [0, 16], sizes = [16, 16], strides = [1, 1]} : vector<16x64xbf16> to vector<16x16xbf16>
    %cst_82 = arith.constant dense<0.000000e+00> : vector<16x16xf32>
    %232 = tpu.matmul %230, %231, %cst_82 {dimension_numbers = #tpu.dot_dimension_numbers<[1], [1], [0], [0], [0, 0, 1, 0], [], []>} : vector<16x16xbf16>, vector<16x16xbf16>, vector<16x16xf32> -> vector<16x16xf32>
    %233 = vector.extract_strided_slice %196 {offsets = [0, 16], sizes = [16, 16], strides = [1, 1]} : vector<16x64xbf16> to vector<16x16xbf16>
    %cst_83 = arith.constant dense<0.000000e+00> : vector<16x16xf32>
    %234 = tpu.matmul %230, %233, %cst_83 {dimension_numbers = #tpu.dot_dimension_numbers<[1], [1], [0], [0], [0, 0, 1, 0], [], []>} : vector<16x16xbf16>, vector<16x16xbf16>, vector<16x16xf32> -> vector<16x16xf32>
    %cst_84 = arith.constant dense<0xFF800000> : vector<16xf32>
    %235 = vector.multi_reduction <maximumf>, %232, %cst_84 [1] : vector<16x16xf32> to vector<16xf32>
    %236 = vector.shape_cast %235 : vector<16xf32> to vector<16x1xf32>
    %cst_85 = arith.constant dense<0xFF800000> : vector<16xf32>
    %237 = vector.multi_reduction <maximumf>, %234, %cst_85 [1] : vector<16x16xf32> to vector<16xf32>
    %238 = vector.shape_cast %237 : vector<16xf32> to vector<16x1xf32>
    %239 = arith.maximumf %236, %238 : vector<16x1xf32>
    %240 = vector.broadcast %239 : vector<16x1xf32> to vector<16x16xf32>
    %241 = arith.subf %232, %240 : vector<16x16xf32>
    %242 = math.exp %241 : vector<16x16xf32>
    %243 = vector.broadcast %239 : vector<16x1xf32> to vector<16x16xf32>
    %244 = arith.subf %234, %243 : vector<16x16xf32>
    %245 = math.exp %244 : vector<16x16xf32>
    %cst_86 = arith.constant dense<0.000000e+00> : vector<16xf32>
    %246 = vector.multi_reduction <add>, %242, %cst_86 [1] : vector<16x16xf32> to vector<16xf32>
    %247 = vector.shape_cast %246 : vector<16xf32> to vector<16x1xf32>
    %cst_87 = arith.constant dense<0.000000e+00> : vector<16xf32>
    %248 = vector.multi_reduction <add>, %245, %cst_87 [1] : vector<16x16xf32> to vector<16xf32>
    %249 = vector.shape_cast %248 : vector<16xf32> to vector<16x1xf32>
    %250 = arith.addf %247, %249 : vector<16x1xf32>
    %251 = tpu.reciprocal %250 {approx = true} : vector<16x1xf32> -> vector<16x1xf32>
    %252 = arith.truncf %242 : vector<16x16xf32> to vector<16x16xbf16>
    %253 = vector.extract_strided_slice %195 {offsets = [0, 16], sizes = [16, 16], strides = [1, 1]} : vector<16x64xbf16> to vector<16x16xbf16>
    %cst_88 = arith.constant dense<0.000000e+00> : vector<16x16xf32>
    %254 = tpu.matmul %252, %253, %cst_88 {dimension_numbers = #tpu.dot_dimension_numbers<[1], [0], [0], [1], [0, 0, 1, 1], [], []>} : vector<16x16xbf16>, vector<16x16xbf16>, vector<16x16xf32> -> vector<16x16xf32>
    %255 = arith.truncf %245 : vector<16x16xf32> to vector<16x16xbf16>
    %256 = vector.extract_strided_slice %197 {offsets = [0, 16], sizes = [16, 16], strides = [1, 1]} : vector<16x64xbf16> to vector<16x16xbf16>
    %cst_89 = arith.constant dense<0.000000e+00> : vector<16x16xf32>
    %257 = tpu.matmul %255, %256, %cst_89 {dimension_numbers = #tpu.dot_dimension_numbers<[1], [0], [0], [1], [0, 0, 1, 1], [], []>} : vector<16x16xbf16>, vector<16x16xbf16>, vector<16x16xf32> -> vector<16x16xf32>
    %258 = arith.addf %254, %257 : vector<16x16xf32>
    %259 = vector.broadcast %251 : vector<16x1xf32> to vector<16x16xf32>
    %260 = arith.mulf %258, %259 : vector<16x16xf32>
    %c16_90 = arith.constant 16 : index
    %c16_91 = arith.constant 16 : index
    %261 = vector.load %arg20[%c16_90, %c16_91] : memref<32x64xf32, #tpu.memory_space<vmem>>, vector<16x16xf32>
    tpu.vector_store %arg20[%c16_90, %c16_91], %260 {strides = array<i32>} : memref<32x64xf32, #tpu.memory_space<vmem>>, vector<16x16xf32>,
    %262 = vector.extract_strided_slice %193 {offsets = [0, 32], sizes = [16, 16], strides = [1, 1]} : vector<16x64xbf16> to vector<16x16xbf16>
    %263 = vector.extract_strided_slice %194 {offsets = [0, 32], sizes = [16, 16], strides = [1, 1]} : vector<16x64xbf16> to vector<16x16xbf16>
    %cst_92 = arith.constant dense<0.000000e+00> : vector<16x16xf32>
    %264 = tpu.matmul %262, %263, %cst_92 {dimension_numbers = #tpu.dot_dimension_numbers<[1], [1], [0], [0], [0, 0, 1, 0], [], []>} : vector<16x16xbf16>, vector<16x16xbf16>, vector<16x16xf32> -> vector<16x16xf32>
    %265 = vector.extract_strided_slice %196 {offsets = [0, 32], sizes = [16, 16], strides = [1, 1]} : vector<16x64xbf16> to vector<16x16xbf16>
    %cst_93 = arith.constant dense<0.000000e+00> : vector<16x16xf32>
    %266 = tpu.matmul %262, %265, %cst_93 {dimension_numbers = #tpu.dot_dimension_numbers<[1], [1], [0], [0], [0, 0, 1, 0], [], []>} : vector<16x16xbf16>, vector<16x16xbf16>, vector<16x16xf32> -> vector<16x16xf32>
    %cst_94 = arith.constant dense<0xFF800000> : vector<16xf32>
    %267 = vector.multi_reduction <maximumf>, %264, %cst_94 [1] : vector<16x16xf32> to vector<16xf32>
    %268 = vector.shape_cast %267 : vector<16xf32> to vector<16x1xf32>
    %cst_95 = arith.constant dense<0xFF800000> : vector<16xf32>
    %269 = vector.multi_reduction <maximumf>, %266, %cst_95 [1] : vector<16x16xf32> to vector<16xf32>
    %270 = vector.shape_cast %269 : vector<16xf32> to vector<16x1xf32>
    %271 = arith.maximumf %268, %270 : vector<16x1xf32>
    %272 = vector.broadcast %271 : vector<16x1xf32> to vector<16x16xf32>
    %273 = arith.subf %264, %272 : vector<16x16xf32>
    %274 = math.exp %273 : vector<16x16xf32>
    %275 = vector.broadcast %271 : vector<16x1xf32> to vector<16x16xf32>
    %276 = arith.subf %266, %275 : vector<16x16xf32>
    %277 = math.exp %276 : vector<16x16xf32>
    %cst_96 = arith.constant dense<0.000000e+00> : vector<16xf32>
    %278 = vector.multi_reduction <add>, %274, %cst_96 [1] : vector<16x16xf32> to vector<16xf32>
    %279 = vector.shape_cast %278 : vector<16xf32> to vector<16x1xf32>
    %cst_97 = arith.constant dense<0.000000e+00> : vector<16xf32>
    %280 = vector.multi_reduction <add>, %277, %cst_97 [1] : vector<16x16xf32> to vector<16xf32>
    %281 = vector.shape_cast %280 : vector<16xf32> to vector<16x1xf32>
    %282 = arith.addf %279, %281 : vector<16x1xf32>
    %283 = tpu.reciprocal %282 {approx = true} : vector<16x1xf32> -> vector<16x1xf32>
    %284 = arith.truncf %274 : vector<16x16xf32> to vector<16x16xbf16>
    %285 = vector.extract_strided_slice %195 {offsets = [0, 32], sizes = [16, 16], strides = [1, 1]} : vector<16x64xbf16> to vector<16x16xbf16>
    %cst_98 = arith.constant dense<0.000000e+00> : vector<16x16xf32>
    %286 = tpu.matmul %284, %285, %cst_98 {dimension_numbers = #tpu.dot_dimension_numbers<[1], [0], [0], [1], [0, 0, 1, 1], [], []>} : vector<16x16xbf16>, vector<16x16xbf16>, vector<16x16xf32> -> vector<16x16xf32>
    %287 = arith.truncf %277 : vector<16x16xf32> to vector<16x16xbf16>
    %288 = vector.extract_strided_slice %197 {offsets = [0, 32], sizes = [16, 16], strides = [1, 1]} : vector<16x64xbf16> to vector<16x16xbf16>
    %cst_99 = arith.constant dense<0.000000e+00> : vector<16x16xf32>
    %289 = tpu.matmul %287, %288, %cst_99 {dimension_numbers = #tpu.dot_dimension_numbers<[1], [0], [0], [1], [0, 0, 1, 1], [], []>} : vector<16x16xbf16>, vector<16x16xbf16>, vector<16x16xf32> -> vector<16x16xf32>
    %290 = arith.addf %286, %289 : vector<16x16xf32>
    %291 = vector.broadcast %283 : vector<16x1xf32> to vector<16x16xf32>
    %292 = arith.mulf %290, %291 : vector<16x16xf32>
    %c16_100 = arith.constant 16 : index
    %c32_101 = arith.constant 32 : index
    %293 = vector.load %arg20[%c16_100, %c32_101] : memref<32x64xf32, #tpu.memory_space<vmem>>, vector<16x16xf32>
    tpu.vector_store %arg20[%c16_100, %c32_101], %292 {strides = array<i32>} : memref<32x64xf32, #tpu.memory_space<vmem>>, vector<16x16xf32>,
    %294 = vector.extract_strided_slice %193 {offsets = [0, 48], sizes = [16, 16], strides = [1, 1]} : vector<16x64xbf16> to vector<16x16xbf16>
    %295 = vector.extract_strided_slice %194 {offsets = [0, 48], sizes = [16, 16], strides = [1, 1]} : vector<16x64xbf16> to vector<16x16xbf16>
    %cst_102 = arith.constant dense<0.000000e+00> : vector<16x16xf32>
    %296 = tpu.matmul %294, %295, %cst_102 {dimension_numbers = #tpu.dot_dimension_numbers<[1], [1], [0], [0], [0, 0, 1, 0], [], []>} : vector<16x16xbf16>, vector<16x16xbf16>, vector<16x16xf32> -> vector<16x16xf32>
    %297 = vector.extract_strided_slice %196 {offsets = [0, 48], sizes = [16, 16], strides = [1, 1]} : vector<16x64xbf16> to vector<16x16xbf16>
    %cst_103 = arith.constant dense<0.000000e+00> : vector<16x16xf32>
    %298 = tpu.matmul %294, %297, %cst_103 {dimension_numbers = #tpu.dot_dimension_numbers<[1], [1], [0], [0], [0, 0, 1, 0], [], []>} : vector<16x16xbf16>, vector<16x16xbf16>, vector<16x16xf32> -> vector<16x16xf32>
    %cst_104 = arith.constant dense<0xFF800000> : vector<16xf32>
    %299 = vector.multi_reduction <maximumf>, %296, %cst_104 [1] : vector<16x16xf32> to vector<16xf32>
    %300 = vector.shape_cast %299 : vector<16xf32> to vector<16x1xf32>
    %cst_105 = arith.constant dense<0xFF800000> : vector<16xf32>
    %301 = vector.multi_reduction <maximumf>, %298, %cst_105 [1] : vector<16x16xf32> to vector<16xf32>
    %302 = vector.shape_cast %301 : vector<16xf32> to vector<16x1xf32>
    %303 = arith.maximumf %300, %302 : vector<16x1xf32>
    %304 = vector.broadcast %303 : vector<16x1xf32> to vector<16x16xf32>
    %305 = arith.subf %296, %304 : vector<16x16xf32>
    %306 = math.exp %305 : vector<16x16xf32>
    %307 = vector.broadcast %303 : vector<16x1xf32> to vector<16x16xf32>
    %308 = arith.subf %298, %307 : vector<16x16xf32>
    %309 = math.exp %308 : vector<16x16xf32>
    %cst_106 = arith.constant dense<0.000000e+00> : vector<16xf32>
    %310 = vector.multi_reduction <add>, %306, %cst_106 [1] : vector<16x16xf32> to vector<16xf32>
    %311 = vector.shape_cast %310 : vector<16xf32> to vector<16x1xf32>
    %cst_107 = arith.constant dense<0.000000e+00> : vector<16xf32>
    %312 = vector.multi_reduction <add>, %309, %cst_107 [1] : vector<16x16xf32> to vector<16xf32>
    %313 = vector.shape_cast %312 : vector<16xf32> to vector<16x1xf32>
    %314 = arith.addf %311, %313 : vector<16x1xf32>
    %315 = tpu.reciprocal %314 {approx = true} : vector<16x1xf32> -> vector<16x1xf32>
    %316 = arith.truncf %306 : vector<16x16xf32> to vector<16x16xbf16>
    %317 = vector.extract_strided_slice %195 {offsets = [0, 48], sizes = [16, 16], strides = [1, 1]} : vector<16x64xbf16> to vector<16x16xbf16>
    %cst_108 = arith.constant dense<0.000000e+00> : vector<16x16xf32>
    %318 = tpu.matmul %316, %317, %cst_108 {dimension_numbers = #tpu.dot_dimension_numbers<[1], [0], [0], [1], [0, 0, 1, 1], [], []>} : vector<16x16xbf16>, vector<16x16xbf16>, vector<16x16xf32> -> vector<16x16xf32>
    %319 = arith.truncf %309 : vector<16x16xf32> to vector<16x16xbf16>
    %320 = vector.extract_strided_slice %197 {offsets = [0, 48], sizes = [16, 16], strides = [1, 1]} : vector<16x64xbf16> to vector<16x16xbf16>
    %cst_109 = arith.constant dense<0.000000e+00> : vector<16x16xf32>
    %321 = tpu.matmul %319, %320, %cst_109 {dimension_numbers = #tpu.dot_dimension_numbers<[1], [0], [0], [1], [0, 0, 1, 1], [], []>} : vector<16x16xbf16>, vector<16x16xbf16>, vector<16x16xf32> -> vector<16x16xf32>
    %322 = arith.addf %318, %321 : vector<16x16xf32>
    %323 = vector.broadcast %315 : vector<16x1xf32> to vector<16x16xf32>
    %324 = arith.mulf %322, %323 : vector<16x16xf32>
    %c16_110 = arith.constant 16 : index
    %c48_111 = arith.constant 48 : index
    %325 = vector.load %arg20[%c16_110, %c48_111] : memref<32x64xf32, #tpu.memory_space<vmem>>, vector<16x16xf32>
    tpu.vector_store %arg20[%c16_110, %c48_111], %324 {strides = array<i32>} : memref<32x64xf32, #tpu.memory_space<vmem>>, vector<16x16xf32>,
    %c0_112 = arith.constant 0 : index
    %c0_113 = arith.constant 0 : index
    %326 = vector.load %arg20[%c0_112, %c0_113] : memref<32x64xf32, #tpu.memory_space<vmem>>, vector<32x64xf32>
    %327 = arith.truncf %326 : vector<32x64xf32> to vector<32x64xbf16>
    %c0_114 = arith.constant 0 : index
    %c0_115 = arith.constant 0 : index
    %c0_116 = arith.constant 0 : index
    %328 = vector.load %arg10[%c0_114, %c0_115, %c0_116] : memref<1x64x64xbf16, #tpu.memory_space<vmem>>, vector<1x64x64xbf16>
    %329 = vector.shape_cast %328 : vector<1x64x64xbf16> to vector<64x64xbf16>
    %cst_117 = arith.constant dense<0.000000e+00> : vector<32x64xf32>
    %330 = tpu.matmul %327, %329, %cst_117 {dimension_numbers = #tpu.dot_dimension_numbers<[1], [0], [0], [1], [0, 0, 1, 1], [], []>} : vector<32x64xbf16>, vector<64x64xbf16>, vector<32x64xf32> -> vector<32x64xf32>
    %331 = arith.addf %3, %330 : vector<32x64xf32>
    %cst_118 = arith.constant dense<0.000000e+00> : vector<32xf32>
    %332 = vector.multi_reduction <add>, %331, %cst_118 [1] : vector<32x64xf32> to vector<32xf32>
    %333 = vector.shape_cast %332 : vector<32xf32> to vector<32x1xf32>
    %cst_119 = arith.constant 6.400000e+01 : f32
    %334 = vector.broadcast %cst_119 : f32 to vector<32x1xf32>
    %335 = arith.divf %333, %334 : vector<32x1xf32>
    %336 = vector.broadcast %335 : vector<32x1xf32> to vector<32x64xf32>
    %337 = arith.subf %331, %336 : vector<32x64xf32>
    %338 = arith.mulf %337, %337 : vector<32x64xf32>
    %cst_120 = arith.constant dense<0.000000e+00> : vector<32xf32>
    %339 = vector.multi_reduction <add>, %338, %cst_120 [1] : vector<32x64xf32> to vector<32xf32>
    %340 = vector.shape_cast %339 : vector<32xf32> to vector<32x1xf32>
    %cst_121 = arith.constant 6.400000e+01 : f32
    %341 = vector.broadcast %cst_121 : f32 to vector<32x1xf32>
    %342 = arith.divf %340, %341 : vector<32x1xf32>
    %cst_122 = arith.constant 9.99999974E-6 : f32
    %343 = vector.broadcast %cst_122 : f32 to vector<32x1xf32>
    %344 = arith.addf %342, %343 : vector<32x1xf32>
    %345 = math.rsqrt %344 : vector<32x1xf32>
    %346 = vector.broadcast %345 : vector<32x1xf32> to vector<32x64xf32>
    %347 = arith.mulf %337, %346 : vector<32x64xf32>
    %348 = vector.broadcast %13 : vector<1x64xf32> to vector<32x64xf32>
    %349 = arith.mulf %347, %348 : vector<32x64xf32>
    %350 = vector.broadcast %15 : vector<1x64xf32> to vector<32x64xf32>
    %351 = arith.addf %349, %350 : vector<32x64xf32>
    %352 = arith.truncf %351 : vector<32x64xf32> to vector<32x64xbf16>
    %c0_123 = arith.constant 0 : index
    %c0_124 = arith.constant 0 : index
    %c0_125 = arith.constant 0 : index
    %353 = vector.load %arg11[%c0_123, %c0_124, %c0_125] : memref<1x64x256xbf16, #tpu.memory_space<vmem>>, vector<1x64x256xbf16>
    %354 = vector.shape_cast %353 : vector<1x64x256xbf16> to vector<64x256xbf16>
    %cst_126 = arith.constant dense<0.000000e+00> : vector<32x256xf32>
    %355 = tpu.matmul %352, %354, %cst_126 {dimension_numbers = #tpu.dot_dimension_numbers<[1], [0], [0], [1], [0, 0, 1, 1], [], []>} : vector<32x64xbf16>, vector<64x256xbf16>, vector<32x256xf32> -> vector<32x256xf32>
    %cst_127 = arith.constant 5.000000e-01 : f32
    %356 = vector.broadcast %cst_127 : f32 to vector<32x256xf32>
    %357 = arith.mulf %356, %355 : vector<32x256xf32>
    %cst_128 = arith.constant 0.707106769 : f32
    %358 = vector.broadcast %cst_128 : f32 to vector<32x256xf32>
    %359 = arith.mulf %355, %358 : vector<32x256xf32>
    %360 = math.erf %359 : vector<32x256xf32>
    %cst_129 = arith.constant 1.000000e+00 : f32
    %361 = vector.broadcast %cst_129 : f32 to vector<32x256xf32>
    %362 = arith.addf %361, %360 : vector<32x256xf32>
    %363 = arith.mulf %357, %362 : vector<32x256xf32>
    %364 = arith.truncf %363 : vector<32x256xf32> to vector<32x256xbf16>
    %c0_130 = arith.constant 0 : index
    %c0_131 = arith.constant 0 : index
    %c0_132 = arith.constant 0 : index
    %365 = vector.load %arg12[%c0_130, %c0_131, %c0_132] : memref<1x256x64xbf16, #tpu.memory_space<vmem>>, vector<1x256x64xbf16>
    %366 = vector.shape_cast %365 : vector<1x256x64xbf16> to vector<256x64xbf16>
    %cst_133 = arith.constant dense<0.000000e+00> : vector<32x64xf32>
    %367 = tpu.matmul %364, %366, %cst_133 {dimension_numbers = #tpu.dot_dimension_numbers<[1], [0], [0], [1], [0, 0, 1, 1], [], []>} : vector<32x256xbf16>, vector<256x64xbf16>, vector<32x64xf32> -> vector<32x64xf32>
    %368 = arith.addf %331, %367 : vector<32x64xf32>
    %c0_134 = arith.constant 0 : index
    %c0_135 = arith.constant 0 : index
    %369 = vector.load %arg19[%c0_134, %c0_135] : memref<32x64xf32, #tpu.memory_space<vmem>>, vector<32x64xf32>
    tpu.vector_store %arg19[%c0_134, %c0_135], %368 {strides = array<i32>} : memref<32x64xf32, #tpu.memory_space<vmem>>, vector<32x64xf32>,
    %c1_i32 = arith.constant 1 : i32
    %370 = arith.cmpi eq, %arg1, %c1_i32 : i32
    %371 = arith.extui %370 : i1 to i32
    %c0_i32_136 = arith.constant 0 : i32
    %372 = arith.cmpi ne, %371, %c0_i32_136 : i32
    scf.if %372 {
      %373 = arith.truncf %368 : vector<32x64xf32> to vector<32x64xbf16>
      %c0_137 = arith.constant 0 : index
      %c0_138 = arith.constant 0 : index
      %374 = vector.load %arg13[%c0_137, %c0_138] : memref<64x64xbf16, #tpu.memory_space<vmem>>, vector<64x64xbf16>
      %cst_139 = arith.constant dense<0.000000e+00> : vector<32x64xf32>
      %375 = tpu.matmul %373, %374, %cst_139 {dimension_numbers = #tpu.dot_dimension_numbers<[1], [0], [0], [1], [0, 0, 1, 1], [], []>} : vector<32x64xbf16>, vector<64x64xbf16>, vector<32x64xf32> -> vector<32x64xf32>
      %c0_140 = arith.constant 0 : index
      %c0_141 = arith.constant 0 : index
      %376 = vector.load %arg14[%c0_140, %c0_141] : memref<1x64xf32, #tpu.memory_space<vmem>>, vector<1x64xf32>
      %377 = vector.broadcast %376 : vector<1x64xf32> to vector<32x64xf32>
      %378 = arith.addf %375, %377 : vector<32x64xf32>
      %c0_142 = arith.constant 0 : index
      %c0_143 = arith.constant 0 : index
      %379 = vector.load %arg15[%c0_142, %c0_143] : memref<1x64xf32, #tpu.memory_space<vmem>>, vector<1x64xf32>
      %c0_144 = arith.constant 0 : index
      %c0_145 = arith.constant 0 : index
      %380 = vector.load %arg16[%c0_144, %c0_145] : memref<1x64xf32, #tpu.memory_space<vmem>>, vector<1x64xf32>
      %cst_146 = arith.constant dense<0.000000e+00> : vector<32xf32>
      %381 = vector.multi_reduction <add>, %378, %cst_146 [1] : vector<32x64xf32> to vector<32xf32>
      %382 = vector.shape_cast %381 : vector<32xf32> to vector<32x1xf32>
      %cst_147 = arith.constant 6.400000e+01 : f32
      %383 = vector.broadcast %cst_147 : f32 to vector<32x1xf32>
      %384 = arith.divf %382, %383 : vector<32x1xf32>
      %385 = vector.broadcast %384 : vector<32x1xf32> to vector<32x64xf32>
      %386 = arith.subf %378, %385 : vector<32x64xf32>
      %387 = arith.mulf %386, %386 : vector<32x64xf32>
      %cst_148 = arith.constant dense<0.000000e+00> : vector<32xf32>
      %388 = vector.multi_reduction <add>, %387, %cst_148 [1] : vector<32x64xf32> to vector<32xf32>
      %389 = vector.shape_cast %388 : vector<32xf32> to vector<32x1xf32>
      %cst_149 = arith.constant 6.400000e+01 : f32
      %390 = vector.broadcast %cst_149 : f32 to vector<32x1xf32>
      %391 = arith.divf %389, %390 : vector<32x1xf32>
      %cst_150 = arith.constant 9.99999974E-6 : f32
      %392 = vector.broadcast %cst_150 : f32 to vector<32x1xf32>
      %393 = arith.addf %391, %392 : vector<32x1xf32>
      %394 = math.rsqrt %393 : vector<32x1xf32>
      %395 = vector.broadcast %394 : vector<32x1xf32> to vector<32x64xf32>
      %396 = arith.mulf %386, %395 : vector<32x64xf32>
      %397 = vector.broadcast %379 : vector<1x64xf32> to vector<32x64xf32>
      %398 = arith.mulf %396, %397 : vector<32x64xf32>
      %399 = vector.broadcast %380 : vector<1x64xf32> to vector<32x64xf32>
      %400 = arith.addf %398, %399 : vector<32x64xf32>
      %401 = vector.shape_cast %400 : vector<32x64xf32> to vector<2x16x64xf32>
      %c0_151 = arith.constant 0 : index
      %c0_152 = arith.constant 0 : index
      %c0_153 = arith.constant 0 : index
      %402 = vector.load %arg17[%c0_151, %c0_152, %c0_153] : memref<2x16x64xf32, #tpu.memory_space<vmem>>, vector<2x16x64xf32>
      tpu.vector_store %arg17[%c0_151, %c0_152, %c0_153], %401 {strides = array<i32>} : memref<2x16x64xf32, #tpu.memory_space<vmem>>, vector<2x16x64xf32>,
    } else {
    }
    return
  }
  func.func @transform_0(%arg0: i32, %arg1: i32) -> (i32, i32, i32) {
    %c0_i32 = arith.constant 0 : i32
    %c0_i32_0 = arith.constant 0 : i32
    %c0_i32_1 = arith.constant 0 : i32
    return %arg0, %c0_i32, %c0_i32_0 : i32, i32, i32
  }
  func.func @transform_1(%arg0: i32, %arg1: i32) -> (i32, i32) {
    %c0_i32 = arith.constant 0 : i32
    %c0_i32_0 = arith.constant 0 : i32
    %c0_i32_1 = arith.constant 0 : i32
    return %c0_i32, %c0_i32_0 : i32, i32
  }
  func.func @transform_2(%arg0: i32, %arg1: i32) -> (i32, i32) {
    %c0_i32 = arith.constant 0 : i32
    %c0_i32_0 = arith.constant 0 : i32
    %c0_i32_1 = arith.constant 0 : i32
    return %c0_i32, %c0_i32_0 : i32, i32
  }
  func.func @transform_3(%arg0: i32, %arg1: i32) -> (i32, i32, i32) {
    %c0_i32 = arith.constant 0 : i32
    %c0_i32_0 = arith.constant 0 : i32
    %c0_i32_1 = arith.constant 0 : i32
    %c0_i32_2 = arith.constant 0 : i32
    return %c0_i32, %c0_i32_0, %c0_i32_1 : i32, i32, i32
  }
  func.func @transform_4(%arg0: i32, %arg1: i32) -> (i32, i32, i32) {
    %c0_i32 = arith.constant 0 : i32
    %c0_i32_0 = arith.constant 0 : i32
    %c0_i32_1 = arith.constant 0 : i32
    return %arg1, %c0_i32, %c0_i32_0 : i32, i32, i32
  }
  func.func @transform_5(%arg0: i32, %arg1: i32) -> (i32, i32, i32) {
    %c0_i32 = arith.constant 0 : i32
    %c0_i32_0 = arith.constant 0 : i32
    %c0_i32_1 = arith.constant 0 : i32
    return %arg1, %c0_i32, %c0_i32_0 : i32, i32, i32
  }
  func.func @transform_6(%arg0: i32, %arg1: i32) -> (i32, i32, i32) {
    %c0_i32 = arith.constant 0 : i32
    %c0_i32_0 = arith.constant 0 : i32
    %c0_i32_1 = arith.constant 0 : i32
    return %arg1, %c0_i32, %c0_i32_0 : i32, i32, i32
  }
  func.func @transform_7(%arg0: i32, %arg1: i32) -> (i32, i32, i32) {
    %c0_i32 = arith.constant 0 : i32
    %c0_i32_0 = arith.constant 0 : i32
    %c0_i32_1 = arith.constant 0 : i32
    return %arg1, %c0_i32, %c0_i32_0 : i32, i32, i32
  }
  func.func @transform_8(%arg0: i32, %arg1: i32) -> (i32, i32, i32) {
    %c0_i32 = arith.constant 0 : i32
    %c0_i32_0 = arith.constant 0 : i32
    %c0_i32_1 = arith.constant 0 : i32
    return %arg1, %c0_i32, %c0_i32_0 : i32, i32, i32
  }
  func.func @transform_9(%arg0: i32, %arg1: i32) -> (i32, i32, i32) {
    %c0_i32 = arith.constant 0 : i32
    %c0_i32_0 = arith.constant 0 : i32
    %c0_i32_1 = arith.constant 0 : i32
    return %arg1, %c0_i32, %c0_i32_0 : i32, i32, i32
  }
  func.func @transform_10(%arg0: i32, %arg1: i32) -> (i32, i32, i32) {
    %c0_i32 = arith.constant 0 : i32
    %c0_i32_0 = arith.constant 0 : i32
    %c0_i32_1 = arith.constant 0 : i32
    return %arg1, %c0_i32, %c0_i32_0 : i32, i32, i32
  }
  func.func @transform_11(%arg0: i32, %arg1: i32) -> (i32, i32) {
    %c0_i32 = arith.constant 0 : i32
    %c0_i32_0 = arith.constant 0 : i32
    %c0_i32_1 = arith.constant 0 : i32
    return %c0_i32, %c0_i32_0 : i32, i32
  }
  func.func @transform_12(%arg0: i32, %arg1: i32) -> (i32, i32) {
    %c0_i32 = arith.constant 0 : i32
    %c0_i32_0 = arith.constant 0 : i32
    %c0_i32_1 = arith.constant 0 : i32
    return %c0_i32, %c0_i32_0 : i32, i32
  }
  func.func @transform_13(%arg0: i32, %arg1: i32) -> (i32, i32) {
    %c0_i32 = arith.constant 0 : i32
    %c0_i32_0 = arith.constant 0 : i32
    %c0_i32_1 = arith.constant 0 : i32
    return %c0_i32, %c0_i32_0 : i32, i32
  }
  func.func @transform_14(%arg0: i32, %arg1: i32) -> (i32, i32) {
    %c0_i32 = arith.constant 0 : i32
    %c0_i32_0 = arith.constant 0 : i32
    %c0_i32_1 = arith.constant 0 : i32
    return %c0_i32, %c0_i32_0 : i32, i32
  }
  func.func @transform_15(%arg0: i32, %arg1: i32) -> (i32, i32, i32) {
    %c0_i32 = arith.constant 0 : i32
    %c0_i32_0 = arith.constant 0 : i32
    %c0_i32_1 = arith.constant 0 : i32
    return %arg0, %c0_i32, %c0_i32_0 : i32, i32, i32
  }
}

module attributes {stable_mosaic.version = 11 : i64} {
  func.func @_resampler_kernel(%arg0: i32, %arg1: i32, %arg2: memref<2x16x48xf32, #tpu.memory_space<vmem>>, %arg3: memref<48x64xbf16, #tpu.memory_space<vmem>>, %arg4: memref<1x64xf32, #tpu.memory_space<vmem>>, %arg5: memref<1x8x64xf32, #tpu.memory_space<vmem>>, %arg6: memref<1x6x64xf32, #tpu.memory_space<vmem>>, %arg7: memref<1x64x64xbf16, #tpu.memory_space<vmem>>, %arg8: memref<1x64x64xbf16, #tpu.memory_space<vmem>>, %arg9: memref<1x64x64xbf16, #tpu.memory_space<vmem>>, %arg10: memref<1x64x64xbf16, #tpu.memory_space<vmem>>, %arg11: memref<1x64x256xbf16, #tpu.memory_space<vmem>>, %arg12: memref<1x256x64xbf16, #tpu.memory_space<vmem>>, %arg13: memref<64x64xbf16, #tpu.memory_space<vmem>>, %arg14: memref<1x64xf32, #tpu.memory_space<vmem>>, %arg15: memref<1x64xf32, #tpu.memory_space<vmem>>, %arg16: memref<1x64xf32, #tpu.memory_space<vmem>>, %arg17: memref<2x8x64xf32, #tpu.memory_space<vmem>>, %arg18: memref<32x64xbf16, #tpu.memory_space<vmem>>, %arg19: memref<16x64xf32, #tpu.memory_space<vmem>>, %arg20: memref<16x64xf32, #tpu.memory_space<vmem>>) attributes {dimension_semantics = [#tpu.dimension_semantics<parallel>, #tpu.dimension_semantics<arbitrary>], iteration_bounds = array<i64: 1, 2>, scalar_prefetch = 0 : i64, scratch_operands = 3 : i64, tpu.core_type = #tpu.core_type<tc>, window_params = [{transform_indices = @transform_0, window_bounds = array<i64: 2, 16, 48>}, {pipeline_mode = #tpu.pipeline_mode<synchronous>, transform_indices = @transform_1, window_bounds = array<i64: 48, 64>}, {pipeline_mode = #tpu.pipeline_mode<synchronous>, transform_indices = @transform_2, window_bounds = array<i64: 1, 64>}, {pipeline_mode = #tpu.pipeline_mode<synchronous>, transform_indices = @transform_3, window_bounds = array<i64: 1, 8, 64>}, {transform_indices = @transform_4, window_bounds = array<i64: 1, 6, 64>}, {transform_indices = @transform_5, window_bounds = array<i64: 1, 64, 64>}, {transform_indices = @transform_6, window_bounds = array<i64: 1, 64, 64>}, {transform_indices = @transform_7, window_bounds = array<i64: 1, 64, 64>}, {transform_indices = @transform_8, window_bounds = array<i64: 1, 64, 64>}, {transform_indices = @transform_9, window_bounds = array<i64: 1, 64, 256>}, {transform_indices = @transform_10, window_bounds = array<i64: 1, 256, 64>}, {pipeline_mode = #tpu.pipeline_mode<synchronous>, transform_indices = @transform_11, window_bounds = array<i64: 64, 64>}, {pipeline_mode = #tpu.pipeline_mode<synchronous>, transform_indices = @transform_12, window_bounds = array<i64: 1, 64>}, {pipeline_mode = #tpu.pipeline_mode<synchronous>, transform_indices = @transform_13, window_bounds = array<i64: 1, 64>}, {pipeline_mode = #tpu.pipeline_mode<synchronous>, transform_indices = @transform_14, window_bounds = array<i64: 1, 64>}, {transform_indices = @transform_15, window_bounds = array<i64: 2, 8, 64>}]} {
    %c0_i32 = arith.constant 0 : i32
    %0 = arith.cmpi eq, %arg1, %c0_i32 : i32
    %1 = arith.extui %0 : i1 to i32
    %c0_i32_0 = arith.constant 0 : i32
    %2 = arith.cmpi ne, %1, %c0_i32_0 : i32
    scf.if %2 {
      %c0_136 = arith.constant 0 : index
      %c0_137 = arith.constant 0 : index
      %c0_138 = arith.constant 0 : index
      %373 = vector.load %arg2[%c0_136, %c0_137, %c0_138] : memref<2x16x48xf32, #tpu.memory_space<vmem>>, vector<2x16x48xf32>
      %374 = vector.shape_cast %373 : vector<2x16x48xf32> to vector<32x48xf32>
      %375 = arith.truncf %374 : vector<32x48xf32> to vector<32x48xbf16>
      %c0_139 = arith.constant 0 : index
      %c0_140 = arith.constant 0 : index
      %376 = vector.load %arg3[%c0_139, %c0_140] : memref<48x64xbf16, #tpu.memory_space<vmem>>, vector<48x64xbf16>
      %cst_141 = arith.constant dense<0.000000e+00> : vector<32x64xf32>
      %377 = tpu.matmul %375, %376, %cst_141 {dimension_numbers = #tpu.dot_dimension_numbers<[1], [0], [0], [1], [0, 0, 1, 1], [], []>} : vector<32x48xbf16>, vector<48x64xbf16>, vector<32x64xf32> -> vector<32x64xf32>
      %c0_142 = arith.constant 0 : index
      %c0_143 = arith.constant 0 : index
      %378 = vector.load %arg4[%c0_142, %c0_143] : memref<1x64xf32, #tpu.memory_space<vmem>>, vector<1x64xf32>
      %379 = vector.broadcast %378 : vector<1x64xf32> to vector<32x64xf32>
      %380 = arith.addf %377, %379 : vector<32x64xf32>
      %cst_144 = arith.constant dense<0.000000e+00> : vector<32xf32>
      %381 = vector.multi_reduction <add>, %380, %cst_144 [1] : vector<32x64xf32> to vector<32xf32>
      %382 = vector.shape_cast %381 : vector<32xf32> to vector<32x1xf32>
      %cst_145 = arith.constant 6.400000e+01 : f32
      %383 = vector.broadcast %cst_145 : f32 to vector<32x1xf32>
      %384 = arith.divf %382, %383 : vector<32x1xf32>
      %385 = vector.broadcast %384 : vector<32x1xf32> to vector<32x64xf32>
      %386 = arith.subf %380, %385 : vector<32x64xf32>
      %387 = arith.mulf %386, %386 : vector<32x64xf32>
      %cst_146 = arith.constant dense<0.000000e+00> : vector<32xf32>
      %388 = vector.multi_reduction <add>, %387, %cst_146 [1] : vector<32x64xf32> to vector<32xf32>
      %389 = vector.shape_cast %388 : vector<32xf32> to vector<32x1xf32>
      %cst_147 = arith.constant 6.400000e+01 : f32
      %390 = vector.broadcast %cst_147 : f32 to vector<32x1xf32>
      %391 = arith.divf %389, %390 : vector<32x1xf32>
      %cst_148 = arith.constant 9.99999974E-6 : f32
      %392 = vector.broadcast %cst_148 : f32 to vector<32x1xf32>
      %393 = arith.addf %391, %392 : vector<32x1xf32>
      %394 = math.rsqrt %393 : vector<32x1xf32>
      %395 = vector.broadcast %394 : vector<32x1xf32> to vector<32x64xf32>
      %396 = arith.mulf %386, %395 : vector<32x64xf32>
      %397 = arith.truncf %396 : vector<32x64xf32> to vector<32x64xbf16>
      %c0_149 = arith.constant 0 : index
      %c0_150 = arith.constant 0 : index
      %398 = vector.load %arg18[%c0_149, %c0_150] : memref<32x64xbf16, #tpu.memory_space<vmem>>, vector<32x64xbf16>
      tpu.vector_store %arg18[%c0_149, %c0_150], %397 {strides = array<i32>} : memref<32x64xbf16, #tpu.memory_space<vmem>>, vector<32x64xbf16>,
      %c0_151 = arith.constant 0 : index
      %c0_152 = arith.constant 0 : index
      %c0_153 = arith.constant 0 : index
      %399 = vector.load %arg5[%c0_151, %c0_152, %c0_153] : memref<1x8x64xf32, #tpu.memory_space<vmem>>, vector<1x8x64xf32>
      %400 = vector.shape_cast %399 : vector<1x8x64xf32> to vector<8x64xf32>
      %401 = tpu.concatenate %400, %400 in 0 : vector<8x64xf32>, vector<8x64xf32> -> vector<16x64xf32>
      %c0_154 = arith.constant 0 : index
      %c0_155 = arith.constant 0 : index
      %402 = vector.load %arg19[%c0_154, %c0_155] : memref<16x64xf32, #tpu.memory_space<vmem>>, vector<16x64xf32>
      tpu.vector_store %arg19[%c0_154, %c0_155], %401 {strides = array<i32>} : memref<16x64xf32, #tpu.memory_space<vmem>>, vector<16x64xf32>,
    } else {
    }
    %c0 = arith.constant 0 : index
    %c0_1 = arith.constant 0 : index
    %3 = vector.load %arg19[%c0, %c0_1] : memref<16x64xf32, #tpu.memory_space<vmem>>, vector<16x64xf32>
    %c0_2 = arith.constant 0 : index
    %c0_3 = arith.constant 0 : index
    %c0_4 = arith.constant 0 : index
    %4 = vector.load %arg6[%c0_2, %c0_3, %c0_4] : memref<1x6x64xf32, #tpu.memory_space<vmem>>, vector<1x1x64xf32>
    %5 = vector.shape_cast %4 : vector<1x1x64xf32> to vector<1x64xf32>
    %c0_5 = arith.constant 0 : index
    %c1 = arith.constant 1 : index
    %c0_6 = arith.constant 0 : index
    %6 = vector.load %arg6[%c0_5, %c1, %c0_6] : memref<1x6x64xf32, #tpu.memory_space<vmem>>, vector<1x1x64xf32>
    %7 = vector.shape_cast %6 : vector<1x1x64xf32> to vector<1x64xf32>
    %c0_7 = arith.constant 0 : index
    %c2 = arith.constant 2 : index
    %c0_8 = arith.constant 0 : index
    %8 = vector.load %arg6[%c0_7, %c2, %c0_8] : memref<1x6x64xf32, #tpu.memory_space<vmem>>, vector<1x1x64xf32>
    %9 = vector.shape_cast %8 : vector<1x1x64xf32> to vector<1x64xf32>
    %c0_9 = arith.constant 0 : index
    %c3 = arith.constant 3 : index
    %c0_10 = arith.constant 0 : index
    %10 = vector.load %arg6[%c0_9, %c3, %c0_10] : memref<1x6x64xf32, #tpu.memory_space<vmem>>, vector<1x1x64xf32>
    %11 = vector.shape_cast %10 : vector<1x1x64xf32> to vector<1x64xf32>
    %c0_11 = arith.constant 0 : index
    %c4 = arith.constant 4 : index
    %c0_12 = arith.constant 0 : index
    %12 = vector.load %arg6[%c0_11, %c4, %c0_12] : memref<1x6x64xf32, #tpu.memory_space<vmem>>, vector<1x1x64xf32>
    %13 = vector.shape_cast %12 : vector<1x1x64xf32> to vector<1x64xf32>
    %c0_13 = arith.constant 0 : index
    %c5 = arith.constant 5 : index
    %c0_14 = arith.constant 0 : index
    %14 = vector.load %arg6[%c0_13, %c5, %c0_14] : memref<1x6x64xf32, #tpu.memory_space<vmem>>, vector<1x1x64xf32>
    %15 = vector.shape_cast %14 : vector<1x1x64xf32> to vector<1x64xf32>
    %c0_15 = arith.constant 0 : index
    %c0_16 = arith.constant 0 : index
    %16 = vector.load %arg18[%c0_15, %c0_16] : memref<32x64xbf16, #tpu.memory_space<vmem>>, vector<32x64xbf16>
    %17 = arith.extf %16 : vector<32x64xbf16> to vector<32x64xf32>
    %18 = vector.broadcast %5 : vector<1x64xf32> to vector<32x64xf32>
    %19 = arith.mulf %17, %18 : vector<32x64xf32>
    %20 = vector.broadcast %7 : vector<1x64xf32> to vector<32x64xf32>
    %21 = arith.addf %19, %20 : vector<32x64xf32>
    %22 = arith.truncf %21 : vector<32x64xf32> to vector<32x64xbf16>
    %cst = arith.constant dense<0.000000e+00> : vector<16xf32>
    %23 = vector.multi_reduction <add>, %3, %cst [1] : vector<16x64xf32> to vector<16xf32>
    %24 = vector.shape_cast %23 : vector<16xf32> to vector<16x1xf32>
    %cst_17 = arith.constant 6.400000e+01 : f32
    %25 = vector.broadcast %cst_17 : f32 to vector<16x1xf32>
    %26 = arith.divf %24, %25 : vector<16x1xf32>
    %27 = vector.broadcast %26 : vector<16x1xf32> to vector<16x64xf32>
    %28 = arith.subf %3, %27 : vector<16x64xf32>
    %29 = arith.mulf %28, %28 : vector<16x64xf32>
    %cst_18 = arith.constant dense<0.000000e+00> : vector<16xf32>
    %30 = vector.multi_reduction <add>, %29, %cst_18 [1] : vector<16x64xf32> to vector<16xf32>
    %31 = vector.shape_cast %30 : vector<16xf32> to vector<16x1xf32>
    %cst_19 = arith.constant 6.400000e+01 : f32
    %32 = vector.broadcast %cst_19 : f32 to vector<16x1xf32>
    %33 = arith.divf %31, %32 : vector<16x1xf32>
    %cst_20 = arith.constant 9.99999974E-6 : f32
    %34 = vector.broadcast %cst_20 : f32 to vector<16x1xf32>
    %35 = arith.addf %33, %34 : vector<16x1xf32>
    %36 = math.rsqrt %35 : vector<16x1xf32>
    %37 = vector.broadcast %36 : vector<16x1xf32> to vector<16x64xf32>
    %38 = arith.mulf %28, %37 : vector<16x64xf32>
    %39 = vector.broadcast %9 : vector<1x64xf32> to vector<16x64xf32>
    %40 = arith.mulf %38, %39 : vector<16x64xf32>
    %41 = vector.broadcast %11 : vector<1x64xf32> to vector<16x64xf32>
    %42 = arith.addf %40, %41 : vector<16x64xf32>
    %43 = arith.truncf %42 : vector<16x64xf32> to vector<16x64xbf16>
    %c0_21 = arith.constant 0 : index
    %c0_22 = arith.constant 0 : index
    %c0_23 = arith.constant 0 : index
    %44 = vector.load %arg7[%c0_21, %c0_22, %c0_23] : memref<1x64x64xbf16, #tpu.memory_space<vmem>>, vector<1x64x64xbf16>
    %45 = vector.shape_cast %44 : vector<1x64x64xbf16> to vector<64x64xbf16>
    %c0_24 = arith.constant 0 : index
    %c0_25 = arith.constant 0 : index
    %c0_26 = arith.constant 0 : index
    %46 = vector.load %arg8[%c0_24, %c0_25, %c0_26] : memref<1x64x64xbf16, #tpu.memory_space<vmem>>, vector<1x64x64xbf16>
    %47 = vector.shape_cast %46 : vector<1x64x64xbf16> to vector<64x64xbf16>
    %c0_27 = arith.constant 0 : index
    %c0_28 = arith.constant 0 : index
    %c0_29 = arith.constant 0 : index
    %48 = vector.load %arg9[%c0_27, %c0_28, %c0_29] : memref<1x64x64xbf16, #tpu.memory_space<vmem>>, vector<1x64x64xbf16>
    %49 = vector.shape_cast %48 : vector<1x64x64xbf16> to vector<64x64xbf16>
    %cst_30 = arith.constant dense<0.000000e+00> : vector<16x64xf32>
    %50 = tpu.matmul %43, %45, %cst_30 {dimension_numbers = #tpu.dot_dimension_numbers<[1], [0], [0], [1], [0, 0, 1, 1], [], []>} : vector<16x64xbf16>, vector<64x64xbf16>, vector<16x64xf32> -> vector<16x64xf32>
    %51 = arith.truncf %50 : vector<16x64xf32> to vector<16x64xbf16>
    %cst_31 = arith.constant dense<0.000000e+00> : vector<32x64xf32>
    %52 = tpu.matmul %22, %47, %cst_31 {dimension_numbers = #tpu.dot_dimension_numbers<[1], [0], [0], [1], [0, 0, 1, 1], [], []>} : vector<32x64xbf16>, vector<64x64xbf16>, vector<32x64xf32> -> vector<32x64xf32>
    %53 = arith.truncf %52 : vector<32x64xf32> to vector<32x64xbf16>
    %cst_32 = arith.constant dense<0.000000e+00> : vector<32x64xf32>
    %54 = tpu.matmul %22, %49, %cst_32 {dimension_numbers = #tpu.dot_dimension_numbers<[1], [0], [0], [1], [0, 0, 1, 1], [], []>} : vector<32x64xbf16>, vector<64x64xbf16>, vector<32x64xf32> -> vector<32x64xf32>
    %55 = arith.truncf %54 : vector<32x64xf32> to vector<32x64xbf16>
    %cst_33 = arith.constant dense<0.000000e+00> : vector<16x64xf32>
    %56 = tpu.matmul %43, %47, %cst_33 {dimension_numbers = #tpu.dot_dimension_numbers<[1], [0], [0], [1], [0, 0, 1, 1], [], []>} : vector<16x64xbf16>, vector<64x64xbf16>, vector<16x64xf32> -> vector<16x64xf32>
    %57 = arith.truncf %56 : vector<16x64xf32> to vector<16x64xbf16>
    %cst_34 = arith.constant dense<0.000000e+00> : vector<16x64xf32>
    %58 = tpu.matmul %43, %49, %cst_34 {dimension_numbers = #tpu.dot_dimension_numbers<[1], [0], [0], [1], [0, 0, 1, 1], [], []>} : vector<16x64xbf16>, vector<64x64xbf16>, vector<16x64xf32> -> vector<16x64xf32>
    %59 = arith.truncf %58 : vector<16x64xf32> to vector<16x64xbf16>
    %60 = vector.extract_strided_slice %51 {offsets = [0, 0], sizes = [8, 64], strides = [1, 1]} : vector<16x64xbf16> to vector<8x64xbf16>
    %61 = vector.extract_strided_slice %53 {offsets = [0, 0], sizes = [16, 64], strides = [1, 1]} : vector<32x64xbf16> to vector<16x64xbf16>
    %62 = vector.extract_strided_slice %55 {offsets = [0, 0], sizes = [16, 64], strides = [1, 1]} : vector<32x64xbf16> to vector<16x64xbf16>
    %63 = vector.extract_strided_slice %57 {offsets = [0, 0], sizes = [8, 64], strides = [1, 1]} : vector<16x64xbf16> to vector<8x64xbf16>
    %64 = vector.extract_strided_slice %59 {offsets = [0, 0], sizes = [8, 64], strides = [1, 1]} : vector<16x64xbf16> to vector<8x64xbf16>
    %65 = vector.extract_strided_slice %60 {offsets = [0, 0], sizes = [8, 16], strides = [1, 1]} : vector<8x64xbf16> to vector<8x16xbf16>
    %66 = vector.extract_strided_slice %61 {offsets = [0, 0], sizes = [16, 16], strides = [1, 1]} : vector<16x64xbf16> to vector<16x16xbf16>
    %cst_35 = arith.constant dense<0.000000e+00> : vector<8x16xf32>
    %67 = tpu.matmul %65, %66, %cst_35 {dimension_numbers = #tpu.dot_dimension_numbers<[1], [1], [0], [0], [0, 0, 1, 0], [], []>} : vector<8x16xbf16>, vector<16x16xbf16>, vector<8x16xf32> -> vector<8x16xf32>
    %68 = vector.extract_strided_slice %63 {offsets = [0, 0], sizes = [8, 16], strides = [1, 1]} : vector<8x64xbf16> to vector<8x16xbf16>
    %cst_36 = arith.constant dense<0.000000e+00> : vector<8x8xf32>
    %69 = tpu.matmul %65, %68, %cst_36 {dimension_numbers = #tpu.dot_dimension_numbers<[1], [1], [0], [0], [0, 0, 1, 0], [], []>} : vector<8x16xbf16>, vector<8x16xbf16>, vector<8x8xf32> -> vector<8x8xf32>
    %cst_37 = arith.constant dense<0xFF800000> : vector<8xf32>
    %70 = vector.multi_reduction <maximumf>, %67, %cst_37 [1] : vector<8x16xf32> to vector<8xf32>
    %71 = vector.shape_cast %70 : vector<8xf32> to vector<8x1xf32>
    %cst_38 = arith.constant dense<0xFF800000> : vector<8xf32>
    %72 = vector.multi_reduction <maximumf>, %69, %cst_38 [1] : vector<8x8xf32> to vector<8xf32>
    %73 = vector.shape_cast %72 : vector<8xf32> to vector<8x1xf32>
    %74 = arith.maximumf %71, %73 : vector<8x1xf32>
    %75 = vector.broadcast %74 : vector<8x1xf32> to vector<8x16xf32>
    %76 = arith.subf %67, %75 : vector<8x16xf32>
    %77 = math.exp %76 : vector<8x16xf32>
    %78 = vector.broadcast %74 : vector<8x1xf32> to vector<8x8xf32>
    %79 = arith.subf %69, %78 : vector<8x8xf32>
    %80 = math.exp %79 : vector<8x8xf32>
    %cst_39 = arith.constant dense<0.000000e+00> : vector<8xf32>
    %81 = vector.multi_reduction <add>, %77, %cst_39 [1] : vector<8x16xf32> to vector<8xf32>
    %82 = vector.shape_cast %81 : vector<8xf32> to vector<8x1xf32>
    %cst_40 = arith.constant dense<0.000000e+00> : vector<8xf32>
    %83 = vector.multi_reduction <add>, %80, %cst_40 [1] : vector<8x8xf32> to vector<8xf32>
    %84 = vector.shape_cast %83 : vector<8xf32> to vector<8x1xf32>
    %85 = arith.addf %82, %84 : vector<8x1xf32>
    %86 = tpu.reciprocal %85 {approx = true} : vector<8x1xf32> -> vector<8x1xf32>
    %87 = arith.truncf %77 : vector<8x16xf32> to vector<8x16xbf16>
    %88 = vector.extract_strided_slice %62 {offsets = [0, 0], sizes = [16, 16], strides = [1, 1]} : vector<16x64xbf16> to vector<16x16xbf16>
    %cst_41 = arith.constant dense<0.000000e+00> : vector<8x16xf32>
    %89 = tpu.matmul %87, %88, %cst_41 {dimension_numbers = #tpu.dot_dimension_numbers<[1], [0], [0], [1], [0, 0, 1, 1], [], []>} : vector<8x16xbf16>, vector<16x16xbf16>, vector<8x16xf32> -> vector<8x16xf32>
    %90 = arith.truncf %80 : vector<8x8xf32> to vector<8x8xbf16>
    %91 = vector.extract_strided_slice %64 {offsets = [0, 0], sizes = [8, 16], strides = [1, 1]} : vector<8x64xbf16> to vector<8x16xbf16>
    %cst_42 = arith.constant dense<0.000000e+00> : vector<8x16xf32>
    %92 = tpu.matmul %90, %91, %cst_42 {dimension_numbers = #tpu.dot_dimension_numbers<[1], [0], [0], [1], [0, 0, 1, 1], [], []>} : vector<8x8xbf16>, vector<8x16xbf16>, vector<8x16xf32> -> vector<8x16xf32>
    %93 = arith.addf %89, %92 : vector<8x16xf32>
    %94 = vector.broadcast %86 : vector<8x1xf32> to vector<8x16xf32>
    %95 = arith.mulf %93, %94 : vector<8x16xf32>
    %c0_43 = arith.constant 0 : index
    %c0_44 = arith.constant 0 : index
    %96 = vector.load %arg20[%c0_43, %c0_44] : memref<16x64xf32, #tpu.memory_space<vmem>>, vector<8x16xf32>
    tpu.vector_store %arg20[%c0_43, %c0_44], %95 {strides = array<i32>} : memref<16x64xf32, #tpu.memory_space<vmem>>, vector<8x16xf32>,
    %97 = vector.extract_strided_slice %60 {offsets = [0, 16], sizes = [8, 16], strides = [1, 1]} : vector<8x64xbf16> to vector<8x16xbf16>
    %98 = vector.extract_strided_slice %61 {offsets = [0, 16], sizes = [16, 16], strides = [1, 1]} : vector<16x64xbf16> to vector<16x16xbf16>
    %cst_45 = arith.constant dense<0.000000e+00> : vector<8x16xf32>
    %99 = tpu.matmul %97, %98, %cst_45 {dimension_numbers = #tpu.dot_dimension_numbers<[1], [1], [0], [0], [0, 0, 1, 0], [], []>} : vector<8x16xbf16>, vector<16x16xbf16>, vector<8x16xf32> -> vector<8x16xf32>
    %100 = vector.extract_strided_slice %63 {offsets = [0, 16], sizes = [8, 16], strides = [1, 1]} : vector<8x64xbf16> to vector<8x16xbf16>
    %cst_46 = arith.constant dense<0.000000e+00> : vector<8x8xf32>
    %101 = tpu.matmul %97, %100, %cst_46 {dimension_numbers = #tpu.dot_dimension_numbers<[1], [1], [0], [0], [0, 0, 1, 0], [], []>} : vector<8x16xbf16>, vector<8x16xbf16>, vector<8x8xf32> -> vector<8x8xf32>
    %cst_47 = arith.constant dense<0xFF800000> : vector<8xf32>
    %102 = vector.multi_reduction <maximumf>, %99, %cst_47 [1] : vector<8x16xf32> to vector<8xf32>
    %103 = vector.shape_cast %102 : vector<8xf32> to vector<8x1xf32>
    %cst_48 = arith.constant dense<0xFF800000> : vector<8xf32>
    %104 = vector.multi_reduction <maximumf>, %101, %cst_48 [1] : vector<8x8xf32> to vector<8xf32>
    %105 = vector.shape_cast %104 : vector<8xf32> to vector<8x1xf32>
    %106 = arith.maximumf %103, %105 : vector<8x1xf32>
    %107 = vector.broadcast %106 : vector<8x1xf32> to vector<8x16xf32>
    %108 = arith.subf %99, %107 : vector<8x16xf32>
    %109 = math.exp %108 : vector<8x16xf32>
    %110 = vector.broadcast %106 : vector<8x1xf32> to vector<8x8xf32>
    %111 = arith.subf %101, %110 : vector<8x8xf32>
    %112 = math.exp %111 : vector<8x8xf32>
    %cst_49 = arith.constant dense<0.000000e+00> : vector<8xf32>
    %113 = vector.multi_reduction <add>, %109, %cst_49 [1] : vector<8x16xf32> to vector<8xf32>
    %114 = vector.shape_cast %113 : vector<8xf32> to vector<8x1xf32>
    %cst_50 = arith.constant dense<0.000000e+00> : vector<8xf32>
    %115 = vector.multi_reduction <add>, %112, %cst_50 [1] : vector<8x8xf32> to vector<8xf32>
    %116 = vector.shape_cast %115 : vector<8xf32> to vector<8x1xf32>
    %117 = arith.addf %114, %116 : vector<8x1xf32>
    %118 = tpu.reciprocal %117 {approx = true} : vector<8x1xf32> -> vector<8x1xf32>
    %119 = arith.truncf %109 : vector<8x16xf32> to vector<8x16xbf16>
    %120 = vector.extract_strided_slice %62 {offsets = [0, 16], sizes = [16, 16], strides = [1, 1]} : vector<16x64xbf16> to vector<16x16xbf16>
    %cst_51 = arith.constant dense<0.000000e+00> : vector<8x16xf32>
    %121 = tpu.matmul %119, %120, %cst_51 {dimension_numbers = #tpu.dot_dimension_numbers<[1], [0], [0], [1], [0, 0, 1, 1], [], []>} : vector<8x16xbf16>, vector<16x16xbf16>, vector<8x16xf32> -> vector<8x16xf32>
    %122 = arith.truncf %112 : vector<8x8xf32> to vector<8x8xbf16>
    %123 = vector.extract_strided_slice %64 {offsets = [0, 16], sizes = [8, 16], strides = [1, 1]} : vector<8x64xbf16> to vector<8x16xbf16>
    %cst_52 = arith.constant dense<0.000000e+00> : vector<8x16xf32>
    %124 = tpu.matmul %122, %123, %cst_52 {dimension_numbers = #tpu.dot_dimension_numbers<[1], [0], [0], [1], [0, 0, 1, 1], [], []>} : vector<8x8xbf16>, vector<8x16xbf16>, vector<8x16xf32> -> vector<8x16xf32>
    %125 = arith.addf %121, %124 : vector<8x16xf32>
    %126 = vector.broadcast %118 : vector<8x1xf32> to vector<8x16xf32>
    %127 = arith.mulf %125, %126 : vector<8x16xf32>
    %c0_53 = arith.constant 0 : index
    %c16 = arith.constant 16 : index
    %128 = vector.load %arg20[%c0_53, %c16] : memref<16x64xf32, #tpu.memory_space<vmem>>, vector<8x16xf32>
    tpu.vector_store %arg20[%c0_53, %c16], %127 {strides = array<i32>} : memref<16x64xf32, #tpu.memory_space<vmem>>, vector<8x16xf32>,
    %129 = vector.extract_strided_slice %60 {offsets = [0, 32], sizes = [8, 16], strides = [1, 1]} : vector<8x64xbf16> to vector<8x16xbf16>
    %130 = vector.extract_strided_slice %61 {offsets = [0, 32], sizes = [16, 16], strides = [1, 1]} : vector<16x64xbf16> to vector<16x16xbf16>
    %cst_54 = arith.constant dense<0.000000e+00> : vector<8x16xf32>
    %131 = tpu.matmul %129, %130, %cst_54 {dimension_numbers = #tpu.dot_dimension_numbers<[1], [1], [0], [0], [0, 0, 1, 0], [], []>} : vector<8x16xbf16>, vector<16x16xbf16>, vector<8x16xf32> -> vector<8x16xf32>
    %132 = vector.extract_strided_slice %63 {offsets = [0, 32], sizes = [8, 16], strides = [1, 1]} : vector<8x64xbf16> to vector<8x16xbf16>
    %cst_55 = arith.constant dense<0.000000e+00> : vector<8x8xf32>
    %133 = tpu.matmul %129, %132, %cst_55 {dimension_numbers = #tpu.dot_dimension_numbers<[1], [1], [0], [0], [0, 0, 1, 0], [], []>} : vector<8x16xbf16>, vector<8x16xbf16>, vector<8x8xf32> -> vector<8x8xf32>
    %cst_56 = arith.constant dense<0xFF800000> : vector<8xf32>
    %134 = vector.multi_reduction <maximumf>, %131, %cst_56 [1] : vector<8x16xf32> to vector<8xf32>
    %135 = vector.shape_cast %134 : vector<8xf32> to vector<8x1xf32>
    %cst_57 = arith.constant dense<0xFF800000> : vector<8xf32>
    %136 = vector.multi_reduction <maximumf>, %133, %cst_57 [1] : vector<8x8xf32> to vector<8xf32>
    %137 = vector.shape_cast %136 : vector<8xf32> to vector<8x1xf32>
    %138 = arith.maximumf %135, %137 : vector<8x1xf32>
    %139 = vector.broadcast %138 : vector<8x1xf32> to vector<8x16xf32>
    %140 = arith.subf %131, %139 : vector<8x16xf32>
    %141 = math.exp %140 : vector<8x16xf32>
    %142 = vector.broadcast %138 : vector<8x1xf32> to vector<8x8xf32>
    %143 = arith.subf %133, %142 : vector<8x8xf32>
    %144 = math.exp %143 : vector<8x8xf32>
    %cst_58 = arith.constant dense<0.000000e+00> : vector<8xf32>
    %145 = vector.multi_reduction <add>, %141, %cst_58 [1] : vector<8x16xf32> to vector<8xf32>
    %146 = vector.shape_cast %145 : vector<8xf32> to vector<8x1xf32>
    %cst_59 = arith.constant dense<0.000000e+00> : vector<8xf32>
    %147 = vector.multi_reduction <add>, %144, %cst_59 [1] : vector<8x8xf32> to vector<8xf32>
    %148 = vector.shape_cast %147 : vector<8xf32> to vector<8x1xf32>
    %149 = arith.addf %146, %148 : vector<8x1xf32>
    %150 = tpu.reciprocal %149 {approx = true} : vector<8x1xf32> -> vector<8x1xf32>
    %151 = arith.truncf %141 : vector<8x16xf32> to vector<8x16xbf16>
    %152 = vector.extract_strided_slice %62 {offsets = [0, 32], sizes = [16, 16], strides = [1, 1]} : vector<16x64xbf16> to vector<16x16xbf16>
    %cst_60 = arith.constant dense<0.000000e+00> : vector<8x16xf32>
    %153 = tpu.matmul %151, %152, %cst_60 {dimension_numbers = #tpu.dot_dimension_numbers<[1], [0], [0], [1], [0, 0, 1, 1], [], []>} : vector<8x16xbf16>, vector<16x16xbf16>, vector<8x16xf32> -> vector<8x16xf32>
    %154 = arith.truncf %144 : vector<8x8xf32> to vector<8x8xbf16>
    %155 = vector.extract_strided_slice %64 {offsets = [0, 32], sizes = [8, 16], strides = [1, 1]} : vector<8x64xbf16> to vector<8x16xbf16>
    %cst_61 = arith.constant dense<0.000000e+00> : vector<8x16xf32>
    %156 = tpu.matmul %154, %155, %cst_61 {dimension_numbers = #tpu.dot_dimension_numbers<[1], [0], [0], [1], [0, 0, 1, 1], [], []>} : vector<8x8xbf16>, vector<8x16xbf16>, vector<8x16xf32> -> vector<8x16xf32>
    %157 = arith.addf %153, %156 : vector<8x16xf32>
    %158 = vector.broadcast %150 : vector<8x1xf32> to vector<8x16xf32>
    %159 = arith.mulf %157, %158 : vector<8x16xf32>
    %c0_62 = arith.constant 0 : index
    %c32 = arith.constant 32 : index
    %160 = vector.load %arg20[%c0_62, %c32] : memref<16x64xf32, #tpu.memory_space<vmem>>, vector<8x16xf32>
    tpu.vector_store %arg20[%c0_62, %c32], %159 {strides = array<i32>} : memref<16x64xf32, #tpu.memory_space<vmem>>, vector<8x16xf32>,
    %161 = vector.extract_strided_slice %60 {offsets = [0, 48], sizes = [8, 16], strides = [1, 1]} : vector<8x64xbf16> to vector<8x16xbf16>
    %162 = vector.extract_strided_slice %61 {offsets = [0, 48], sizes = [16, 16], strides = [1, 1]} : vector<16x64xbf16> to vector<16x16xbf16>
    %cst_63 = arith.constant dense<0.000000e+00> : vector<8x16xf32>
    %163 = tpu.matmul %161, %162, %cst_63 {dimension_numbers = #tpu.dot_dimension_numbers<[1], [1], [0], [0], [0, 0, 1, 0], [], []>} : vector<8x16xbf16>, vector<16x16xbf16>, vector<8x16xf32> -> vector<8x16xf32>
    %164 = vector.extract_strided_slice %63 {offsets = [0, 48], sizes = [8, 16], strides = [1, 1]} : vector<8x64xbf16> to vector<8x16xbf16>
    %cst_64 = arith.constant dense<0.000000e+00> : vector<8x8xf32>
    %165 = tpu.matmul %161, %164, %cst_64 {dimension_numbers = #tpu.dot_dimension_numbers<[1], [1], [0], [0], [0, 0, 1, 0], [], []>} : vector<8x16xbf16>, vector<8x16xbf16>, vector<8x8xf32> -> vector<8x8xf32>
    %cst_65 = arith.constant dense<0xFF800000> : vector<8xf32>
    %166 = vector.multi_reduction <maximumf>, %163, %cst_65 [1] : vector<8x16xf32> to vector<8xf32>
    %167 = vector.shape_cast %166 : vector<8xf32> to vector<8x1xf32>
    %cst_66 = arith.constant dense<0xFF800000> : vector<8xf32>
    %168 = vector.multi_reduction <maximumf>, %165, %cst_66 [1] : vector<8x8xf32> to vector<8xf32>
    %169 = vector.shape_cast %168 : vector<8xf32> to vector<8x1xf32>
    %170 = arith.maximumf %167, %169 : vector<8x1xf32>
    %171 = vector.broadcast %170 : vector<8x1xf32> to vector<8x16xf32>
    %172 = arith.subf %163, %171 : vector<8x16xf32>
    %173 = math.exp %172 : vector<8x16xf32>
    %174 = vector.broadcast %170 : vector<8x1xf32> to vector<8x8xf32>
    %175 = arith.subf %165, %174 : vector<8x8xf32>
    %176 = math.exp %175 : vector<8x8xf32>
    %cst_67 = arith.constant dense<0.000000e+00> : vector<8xf32>
    %177 = vector.multi_reduction <add>, %173, %cst_67 [1] : vector<8x16xf32> to vector<8xf32>
    %178 = vector.shape_cast %177 : vector<8xf32> to vector<8x1xf32>
    %cst_68 = arith.constant dense<0.000000e+00> : vector<8xf32>
    %179 = vector.multi_reduction <add>, %176, %cst_68 [1] : vector<8x8xf32> to vector<8xf32>
    %180 = vector.shape_cast %179 : vector<8xf32> to vector<8x1xf32>
    %181 = arith.addf %178, %180 : vector<8x1xf32>
    %182 = tpu.reciprocal %181 {approx = true} : vector<8x1xf32> -> vector<8x1xf32>
    %183 = arith.truncf %173 : vector<8x16xf32> to vector<8x16xbf16>
    %184 = vector.extract_strided_slice %62 {offsets = [0, 48], sizes = [16, 16], strides = [1, 1]} : vector<16x64xbf16> to vector<16x16xbf16>
    %cst_69 = arith.constant dense<0.000000e+00> : vector<8x16xf32>
    %185 = tpu.matmul %183, %184, %cst_69 {dimension_numbers = #tpu.dot_dimension_numbers<[1], [0], [0], [1], [0, 0, 1, 1], [], []>} : vector<8x16xbf16>, vector<16x16xbf16>, vector<8x16xf32> -> vector<8x16xf32>
    %186 = arith.truncf %176 : vector<8x8xf32> to vector<8x8xbf16>
    %187 = vector.extract_strided_slice %64 {offsets = [0, 48], sizes = [8, 16], strides = [1, 1]} : vector<8x64xbf16> to vector<8x16xbf16>
    %cst_70 = arith.constant dense<0.000000e+00> : vector<8x16xf32>
    %188 = tpu.matmul %186, %187, %cst_70 {dimension_numbers = #tpu.dot_dimension_numbers<[1], [0], [0], [1], [0, 0, 1, 1], [], []>} : vector<8x8xbf16>, vector<8x16xbf16>, vector<8x16xf32> -> vector<8x16xf32>
    %189 = arith.addf %185, %188 : vector<8x16xf32>
    %190 = vector.broadcast %182 : vector<8x1xf32> to vector<8x16xf32>
    %191 = arith.mulf %189, %190 : vector<8x16xf32>
    %c0_71 = arith.constant 0 : index
    %c48 = arith.constant 48 : index
    %192 = vector.load %arg20[%c0_71, %c48] : memref<16x64xf32, #tpu.memory_space<vmem>>, vector<8x16xf32>
    tpu.vector_store %arg20[%c0_71, %c48], %191 {strides = array<i32>} : memref<16x64xf32, #tpu.memory_space<vmem>>, vector<8x16xf32>,
    %193 = vector.extract_strided_slice %51 {offsets = [8, 0], sizes = [8, 64], strides = [1, 1]} : vector<16x64xbf16> to vector<8x64xbf16>
    %194 = vector.extract_strided_slice %53 {offsets = [16, 0], sizes = [16, 64], strides = [1, 1]} : vector<32x64xbf16> to vector<16x64xbf16>
    %195 = vector.extract_strided_slice %55 {offsets = [16, 0], sizes = [16, 64], strides = [1, 1]} : vector<32x64xbf16> to vector<16x64xbf16>
    %196 = vector.extract_strided_slice %57 {offsets = [8, 0], sizes = [8, 64], strides = [1, 1]} : vector<16x64xbf16> to vector<8x64xbf16>
    %197 = vector.extract_strided_slice %59 {offsets = [8, 0], sizes = [8, 64], strides = [1, 1]} : vector<16x64xbf16> to vector<8x64xbf16>
    %198 = vector.extract_strided_slice %193 {offsets = [0, 0], sizes = [8, 16], strides = [1, 1]} : vector<8x64xbf16> to vector<8x16xbf16>
    %199 = vector.extract_strided_slice %194 {offsets = [0, 0], sizes = [16, 16], strides = [1, 1]} : vector<16x64xbf16> to vector<16x16xbf16>
    %cst_72 = arith.constant dense<0.000000e+00> : vector<8x16xf32>
    %200 = tpu.matmul %198, %199, %cst_72 {dimension_numbers = #tpu.dot_dimension_numbers<[1], [1], [0], [0], [0, 0, 1, 0], [], []>} : vector<8x16xbf16>, vector<16x16xbf16>, vector<8x16xf32> -> vector<8x16xf32>
    %201 = vector.extract_strided_slice %196 {offsets = [0, 0], sizes = [8, 16], strides = [1, 1]} : vector<8x64xbf16> to vector<8x16xbf16>
    %cst_73 = arith.constant dense<0.000000e+00> : vector<8x8xf32>
    %202 = tpu.matmul %198, %201, %cst_73 {dimension_numbers = #tpu.dot_dimension_numbers<[1], [1], [0], [0], [0, 0, 1, 0], [], []>} : vector<8x16xbf16>, vector<8x16xbf16>, vector<8x8xf32> -> vector<8x8xf32>
    %cst_74 = arith.constant dense<0xFF800000> : vector<8xf32>
    %203 = vector.multi_reduction <maximumf>, %200, %cst_74 [1] : vector<8x16xf32> to vector<8xf32>
    %204 = vector.shape_cast %203 : vector<8xf32> to vector<8x1xf32>
    %cst_75 = arith.constant dense<0xFF800000> : vector<8xf32>
    %205 = vector.multi_reduction <maximumf>, %202, %cst_75 [1] : vector<8x8xf32> to vector<8xf32>
    %206 = vector.shape_cast %205 : vector<8xf32> to vector<8x1xf32>
    %207 = arith.maximumf %204, %206 : vector<8x1xf32>
    %208 = vector.broadcast %207 : vector<8x1xf32> to vector<8x16xf32>
    %209 = arith.subf %200, %208 : vector<8x16xf32>
    %210 = math.exp %209 : vector<8x16xf32>
    %211 = vector.broadcast %207 : vector<8x1xf32> to vector<8x8xf32>
    %212 = arith.subf %202, %211 : vector<8x8xf32>
    %213 = math.exp %212 : vector<8x8xf32>
    %cst_76 = arith.constant dense<0.000000e+00> : vector<8xf32>
    %214 = vector.multi_reduction <add>, %210, %cst_76 [1] : vector<8x16xf32> to vector<8xf32>
    %215 = vector.shape_cast %214 : vector<8xf32> to vector<8x1xf32>
    %cst_77 = arith.constant dense<0.000000e+00> : vector<8xf32>
    %216 = vector.multi_reduction <add>, %213, %cst_77 [1] : vector<8x8xf32> to vector<8xf32>
    %217 = vector.shape_cast %216 : vector<8xf32> to vector<8x1xf32>
    %218 = arith.addf %215, %217 : vector<8x1xf32>
    %219 = tpu.reciprocal %218 {approx = true} : vector<8x1xf32> -> vector<8x1xf32>
    %220 = arith.truncf %210 : vector<8x16xf32> to vector<8x16xbf16>
    %221 = vector.extract_strided_slice %195 {offsets = [0, 0], sizes = [16, 16], strides = [1, 1]} : vector<16x64xbf16> to vector<16x16xbf16>
    %cst_78 = arith.constant dense<0.000000e+00> : vector<8x16xf32>
    %222 = tpu.matmul %220, %221, %cst_78 {dimension_numbers = #tpu.dot_dimension_numbers<[1], [0], [0], [1], [0, 0, 1, 1], [], []>} : vector<8x16xbf16>, vector<16x16xbf16>, vector<8x16xf32> -> vector<8x16xf32>
    %223 = arith.truncf %213 : vector<8x8xf32> to vector<8x8xbf16>
    %224 = vector.extract_strided_slice %197 {offsets = [0, 0], sizes = [8, 16], strides = [1, 1]} : vector<8x64xbf16> to vector<8x16xbf16>
    %cst_79 = arith.constant dense<0.000000e+00> : vector<8x16xf32>
    %225 = tpu.matmul %223, %224, %cst_79 {dimension_numbers = #tpu.dot_dimension_numbers<[1], [0], [0], [1], [0, 0, 1, 1], [], []>} : vector<8x8xbf16>, vector<8x16xbf16>, vector<8x16xf32> -> vector<8x16xf32>
    %226 = arith.addf %222, %225 : vector<8x16xf32>
    %227 = vector.broadcast %219 : vector<8x1xf32> to vector<8x16xf32>
    %228 = arith.mulf %226, %227 : vector<8x16xf32>
    %c8 = arith.constant 8 : index
    %c0_80 = arith.constant 0 : index
    %229 = vector.load %arg20[%c8, %c0_80] : memref<16x64xf32, #tpu.memory_space<vmem>>, vector<8x16xf32>
    tpu.vector_store %arg20[%c8, %c0_80], %228 {strides = array<i32>} : memref<16x64xf32, #tpu.memory_space<vmem>>, vector<8x16xf32>,
    %230 = vector.extract_strided_slice %193 {offsets = [0, 16], sizes = [8, 16], strides = [1, 1]} : vector<8x64xbf16> to vector<8x16xbf16>
    %231 = vector.extract_strided_slice %194 {offsets = [0, 16], sizes = [16, 16], strides = [1, 1]} : vector<16x64xbf16> to vector<16x16xbf16>
    %cst_81 = arith.constant dense<0.000000e+00> : vector<8x16xf32>
    %232 = tpu.matmul %230, %231, %cst_81 {dimension_numbers = #tpu.dot_dimension_numbers<[1], [1], [0], [0], [0, 0, 1, 0], [], []>} : vector<8x16xbf16>, vector<16x16xbf16>, vector<8x16xf32> -> vector<8x16xf32>
    %233 = vector.extract_strided_slice %196 {offsets = [0, 16], sizes = [8, 16], strides = [1, 1]} : vector<8x64xbf16> to vector<8x16xbf16>
    %cst_82 = arith.constant dense<0.000000e+00> : vector<8x8xf32>
    %234 = tpu.matmul %230, %233, %cst_82 {dimension_numbers = #tpu.dot_dimension_numbers<[1], [1], [0], [0], [0, 0, 1, 0], [], []>} : vector<8x16xbf16>, vector<8x16xbf16>, vector<8x8xf32> -> vector<8x8xf32>
    %cst_83 = arith.constant dense<0xFF800000> : vector<8xf32>
    %235 = vector.multi_reduction <maximumf>, %232, %cst_83 [1] : vector<8x16xf32> to vector<8xf32>
    %236 = vector.shape_cast %235 : vector<8xf32> to vector<8x1xf32>
    %cst_84 = arith.constant dense<0xFF800000> : vector<8xf32>
    %237 = vector.multi_reduction <maximumf>, %234, %cst_84 [1] : vector<8x8xf32> to vector<8xf32>
    %238 = vector.shape_cast %237 : vector<8xf32> to vector<8x1xf32>
    %239 = arith.maximumf %236, %238 : vector<8x1xf32>
    %240 = vector.broadcast %239 : vector<8x1xf32> to vector<8x16xf32>
    %241 = arith.subf %232, %240 : vector<8x16xf32>
    %242 = math.exp %241 : vector<8x16xf32>
    %243 = vector.broadcast %239 : vector<8x1xf32> to vector<8x8xf32>
    %244 = arith.subf %234, %243 : vector<8x8xf32>
    %245 = math.exp %244 : vector<8x8xf32>
    %cst_85 = arith.constant dense<0.000000e+00> : vector<8xf32>
    %246 = vector.multi_reduction <add>, %242, %cst_85 [1] : vector<8x16xf32> to vector<8xf32>
    %247 = vector.shape_cast %246 : vector<8xf32> to vector<8x1xf32>
    %cst_86 = arith.constant dense<0.000000e+00> : vector<8xf32>
    %248 = vector.multi_reduction <add>, %245, %cst_86 [1] : vector<8x8xf32> to vector<8xf32>
    %249 = vector.shape_cast %248 : vector<8xf32> to vector<8x1xf32>
    %250 = arith.addf %247, %249 : vector<8x1xf32>
    %251 = tpu.reciprocal %250 {approx = true} : vector<8x1xf32> -> vector<8x1xf32>
    %252 = arith.truncf %242 : vector<8x16xf32> to vector<8x16xbf16>
    %253 = vector.extract_strided_slice %195 {offsets = [0, 16], sizes = [16, 16], strides = [1, 1]} : vector<16x64xbf16> to vector<16x16xbf16>
    %cst_87 = arith.constant dense<0.000000e+00> : vector<8x16xf32>
    %254 = tpu.matmul %252, %253, %cst_87 {dimension_numbers = #tpu.dot_dimension_numbers<[1], [0], [0], [1], [0, 0, 1, 1], [], []>} : vector<8x16xbf16>, vector<16x16xbf16>, vector<8x16xf32> -> vector<8x16xf32>
    %255 = arith.truncf %245 : vector<8x8xf32> to vector<8x8xbf16>
    %256 = vector.extract_strided_slice %197 {offsets = [0, 16], sizes = [8, 16], strides = [1, 1]} : vector<8x64xbf16> to vector<8x16xbf16>
    %cst_88 = arith.constant dense<0.000000e+00> : vector<8x16xf32>
    %257 = tpu.matmul %255, %256, %cst_88 {dimension_numbers = #tpu.dot_dimension_numbers<[1], [0], [0], [1], [0, 0, 1, 1], [], []>} : vector<8x8xbf16>, vector<8x16xbf16>, vector<8x16xf32> -> vector<8x16xf32>
    %258 = arith.addf %254, %257 : vector<8x16xf32>
    %259 = vector.broadcast %251 : vector<8x1xf32> to vector<8x16xf32>
    %260 = arith.mulf %258, %259 : vector<8x16xf32>
    %c8_89 = arith.constant 8 : index
    %c16_90 = arith.constant 16 : index
    %261 = vector.load %arg20[%c8_89, %c16_90] : memref<16x64xf32, #tpu.memory_space<vmem>>, vector<8x16xf32>
    tpu.vector_store %arg20[%c8_89, %c16_90], %260 {strides = array<i32>} : memref<16x64xf32, #tpu.memory_space<vmem>>, vector<8x16xf32>,
    %262 = vector.extract_strided_slice %193 {offsets = [0, 32], sizes = [8, 16], strides = [1, 1]} : vector<8x64xbf16> to vector<8x16xbf16>
    %263 = vector.extract_strided_slice %194 {offsets = [0, 32], sizes = [16, 16], strides = [1, 1]} : vector<16x64xbf16> to vector<16x16xbf16>
    %cst_91 = arith.constant dense<0.000000e+00> : vector<8x16xf32>
    %264 = tpu.matmul %262, %263, %cst_91 {dimension_numbers = #tpu.dot_dimension_numbers<[1], [1], [0], [0], [0, 0, 1, 0], [], []>} : vector<8x16xbf16>, vector<16x16xbf16>, vector<8x16xf32> -> vector<8x16xf32>
    %265 = vector.extract_strided_slice %196 {offsets = [0, 32], sizes = [8, 16], strides = [1, 1]} : vector<8x64xbf16> to vector<8x16xbf16>
    %cst_92 = arith.constant dense<0.000000e+00> : vector<8x8xf32>
    %266 = tpu.matmul %262, %265, %cst_92 {dimension_numbers = #tpu.dot_dimension_numbers<[1], [1], [0], [0], [0, 0, 1, 0], [], []>} : vector<8x16xbf16>, vector<8x16xbf16>, vector<8x8xf32> -> vector<8x8xf32>
    %cst_93 = arith.constant dense<0xFF800000> : vector<8xf32>
    %267 = vector.multi_reduction <maximumf>, %264, %cst_93 [1] : vector<8x16xf32> to vector<8xf32>
    %268 = vector.shape_cast %267 : vector<8xf32> to vector<8x1xf32>
    %cst_94 = arith.constant dense<0xFF800000> : vector<8xf32>
    %269 = vector.multi_reduction <maximumf>, %266, %cst_94 [1] : vector<8x8xf32> to vector<8xf32>
    %270 = vector.shape_cast %269 : vector<8xf32> to vector<8x1xf32>
    %271 = arith.maximumf %268, %270 : vector<8x1xf32>
    %272 = vector.broadcast %271 : vector<8x1xf32> to vector<8x16xf32>
    %273 = arith.subf %264, %272 : vector<8x16xf32>
    %274 = math.exp %273 : vector<8x16xf32>
    %275 = vector.broadcast %271 : vector<8x1xf32> to vector<8x8xf32>
    %276 = arith.subf %266, %275 : vector<8x8xf32>
    %277 = math.exp %276 : vector<8x8xf32>
    %cst_95 = arith.constant dense<0.000000e+00> : vector<8xf32>
    %278 = vector.multi_reduction <add>, %274, %cst_95 [1] : vector<8x16xf32> to vector<8xf32>
    %279 = vector.shape_cast %278 : vector<8xf32> to vector<8x1xf32>
    %cst_96 = arith.constant dense<0.000000e+00> : vector<8xf32>
    %280 = vector.multi_reduction <add>, %277, %cst_96 [1] : vector<8x8xf32> to vector<8xf32>
    %281 = vector.shape_cast %280 : vector<8xf32> to vector<8x1xf32>
    %282 = arith.addf %279, %281 : vector<8x1xf32>
    %283 = tpu.reciprocal %282 {approx = true} : vector<8x1xf32> -> vector<8x1xf32>
    %284 = arith.truncf %274 : vector<8x16xf32> to vector<8x16xbf16>
    %285 = vector.extract_strided_slice %195 {offsets = [0, 32], sizes = [16, 16], strides = [1, 1]} : vector<16x64xbf16> to vector<16x16xbf16>
    %cst_97 = arith.constant dense<0.000000e+00> : vector<8x16xf32>
    %286 = tpu.matmul %284, %285, %cst_97 {dimension_numbers = #tpu.dot_dimension_numbers<[1], [0], [0], [1], [0, 0, 1, 1], [], []>} : vector<8x16xbf16>, vector<16x16xbf16>, vector<8x16xf32> -> vector<8x16xf32>
    %287 = arith.truncf %277 : vector<8x8xf32> to vector<8x8xbf16>
    %288 = vector.extract_strided_slice %197 {offsets = [0, 32], sizes = [8, 16], strides = [1, 1]} : vector<8x64xbf16> to vector<8x16xbf16>
    %cst_98 = arith.constant dense<0.000000e+00> : vector<8x16xf32>
    %289 = tpu.matmul %287, %288, %cst_98 {dimension_numbers = #tpu.dot_dimension_numbers<[1], [0], [0], [1], [0, 0, 1, 1], [], []>} : vector<8x8xbf16>, vector<8x16xbf16>, vector<8x16xf32> -> vector<8x16xf32>
    %290 = arith.addf %286, %289 : vector<8x16xf32>
    %291 = vector.broadcast %283 : vector<8x1xf32> to vector<8x16xf32>
    %292 = arith.mulf %290, %291 : vector<8x16xf32>
    %c8_99 = arith.constant 8 : index
    %c32_100 = arith.constant 32 : index
    %293 = vector.load %arg20[%c8_99, %c32_100] : memref<16x64xf32, #tpu.memory_space<vmem>>, vector<8x16xf32>
    tpu.vector_store %arg20[%c8_99, %c32_100], %292 {strides = array<i32>} : memref<16x64xf32, #tpu.memory_space<vmem>>, vector<8x16xf32>,
    %294 = vector.extract_strided_slice %193 {offsets = [0, 48], sizes = [8, 16], strides = [1, 1]} : vector<8x64xbf16> to vector<8x16xbf16>
    %295 = vector.extract_strided_slice %194 {offsets = [0, 48], sizes = [16, 16], strides = [1, 1]} : vector<16x64xbf16> to vector<16x16xbf16>
    %cst_101 = arith.constant dense<0.000000e+00> : vector<8x16xf32>
    %296 = tpu.matmul %294, %295, %cst_101 {dimension_numbers = #tpu.dot_dimension_numbers<[1], [1], [0], [0], [0, 0, 1, 0], [], []>} : vector<8x16xbf16>, vector<16x16xbf16>, vector<8x16xf32> -> vector<8x16xf32>
    %297 = vector.extract_strided_slice %196 {offsets = [0, 48], sizes = [8, 16], strides = [1, 1]} : vector<8x64xbf16> to vector<8x16xbf16>
    %cst_102 = arith.constant dense<0.000000e+00> : vector<8x8xf32>
    %298 = tpu.matmul %294, %297, %cst_102 {dimension_numbers = #tpu.dot_dimension_numbers<[1], [1], [0], [0], [0, 0, 1, 0], [], []>} : vector<8x16xbf16>, vector<8x16xbf16>, vector<8x8xf32> -> vector<8x8xf32>
    %cst_103 = arith.constant dense<0xFF800000> : vector<8xf32>
    %299 = vector.multi_reduction <maximumf>, %296, %cst_103 [1] : vector<8x16xf32> to vector<8xf32>
    %300 = vector.shape_cast %299 : vector<8xf32> to vector<8x1xf32>
    %cst_104 = arith.constant dense<0xFF800000> : vector<8xf32>
    %301 = vector.multi_reduction <maximumf>, %298, %cst_104 [1] : vector<8x8xf32> to vector<8xf32>
    %302 = vector.shape_cast %301 : vector<8xf32> to vector<8x1xf32>
    %303 = arith.maximumf %300, %302 : vector<8x1xf32>
    %304 = vector.broadcast %303 : vector<8x1xf32> to vector<8x16xf32>
    %305 = arith.subf %296, %304 : vector<8x16xf32>
    %306 = math.exp %305 : vector<8x16xf32>
    %307 = vector.broadcast %303 : vector<8x1xf32> to vector<8x8xf32>
    %308 = arith.subf %298, %307 : vector<8x8xf32>
    %309 = math.exp %308 : vector<8x8xf32>
    %cst_105 = arith.constant dense<0.000000e+00> : vector<8xf32>
    %310 = vector.multi_reduction <add>, %306, %cst_105 [1] : vector<8x16xf32> to vector<8xf32>
    %311 = vector.shape_cast %310 : vector<8xf32> to vector<8x1xf32>
    %cst_106 = arith.constant dense<0.000000e+00> : vector<8xf32>
    %312 = vector.multi_reduction <add>, %309, %cst_106 [1] : vector<8x8xf32> to vector<8xf32>
    %313 = vector.shape_cast %312 : vector<8xf32> to vector<8x1xf32>
    %314 = arith.addf %311, %313 : vector<8x1xf32>
    %315 = tpu.reciprocal %314 {approx = true} : vector<8x1xf32> -> vector<8x1xf32>
    %316 = arith.truncf %306 : vector<8x16xf32> to vector<8x16xbf16>
    %317 = vector.extract_strided_slice %195 {offsets = [0, 48], sizes = [16, 16], strides = [1, 1]} : vector<16x64xbf16> to vector<16x16xbf16>
    %cst_107 = arith.constant dense<0.000000e+00> : vector<8x16xf32>
    %318 = tpu.matmul %316, %317, %cst_107 {dimension_numbers = #tpu.dot_dimension_numbers<[1], [0], [0], [1], [0, 0, 1, 1], [], []>} : vector<8x16xbf16>, vector<16x16xbf16>, vector<8x16xf32> -> vector<8x16xf32>
    %319 = arith.truncf %309 : vector<8x8xf32> to vector<8x8xbf16>
    %320 = vector.extract_strided_slice %197 {offsets = [0, 48], sizes = [8, 16], strides = [1, 1]} : vector<8x64xbf16> to vector<8x16xbf16>
    %cst_108 = arith.constant dense<0.000000e+00> : vector<8x16xf32>
    %321 = tpu.matmul %319, %320, %cst_108 {dimension_numbers = #tpu.dot_dimension_numbers<[1], [0], [0], [1], [0, 0, 1, 1], [], []>} : vector<8x8xbf16>, vector<8x16xbf16>, vector<8x16xf32> -> vector<8x16xf32>
    %322 = arith.addf %318, %321 : vector<8x16xf32>
    %323 = vector.broadcast %315 : vector<8x1xf32> to vector<8x16xf32>
    %324 = arith.mulf %322, %323 : vector<8x16xf32>
    %c8_109 = arith.constant 8 : index
    %c48_110 = arith.constant 48 : index
    %325 = vector.load %arg20[%c8_109, %c48_110] : memref<16x64xf32, #tpu.memory_space<vmem>>, vector<8x16xf32>
    tpu.vector_store %arg20[%c8_109, %c48_110], %324 {strides = array<i32>} : memref<16x64xf32, #tpu.memory_space<vmem>>, vector<8x16xf32>,
    %c0_111 = arith.constant 0 : index
    %c0_112 = arith.constant 0 : index
    %326 = vector.load %arg20[%c0_111, %c0_112] : memref<16x64xf32, #tpu.memory_space<vmem>>, vector<16x64xf32>
    %327 = arith.truncf %326 : vector<16x64xf32> to vector<16x64xbf16>
    %c0_113 = arith.constant 0 : index
    %c0_114 = arith.constant 0 : index
    %c0_115 = arith.constant 0 : index
    %328 = vector.load %arg10[%c0_113, %c0_114, %c0_115] : memref<1x64x64xbf16, #tpu.memory_space<vmem>>, vector<1x64x64xbf16>
    %329 = vector.shape_cast %328 : vector<1x64x64xbf16> to vector<64x64xbf16>
    %cst_116 = arith.constant dense<0.000000e+00> : vector<16x64xf32>
    %330 = tpu.matmul %327, %329, %cst_116 {dimension_numbers = #tpu.dot_dimension_numbers<[1], [0], [0], [1], [0, 0, 1, 1], [], []>} : vector<16x64xbf16>, vector<64x64xbf16>, vector<16x64xf32> -> vector<16x64xf32>
    %331 = arith.addf %3, %330 : vector<16x64xf32>
    %cst_117 = arith.constant dense<0.000000e+00> : vector<16xf32>
    %332 = vector.multi_reduction <add>, %331, %cst_117 [1] : vector<16x64xf32> to vector<16xf32>
    %333 = vector.shape_cast %332 : vector<16xf32> to vector<16x1xf32>
    %cst_118 = arith.constant 6.400000e+01 : f32
    %334 = vector.broadcast %cst_118 : f32 to vector<16x1xf32>
    %335 = arith.divf %333, %334 : vector<16x1xf32>
    %336 = vector.broadcast %335 : vector<16x1xf32> to vector<16x64xf32>
    %337 = arith.subf %331, %336 : vector<16x64xf32>
    %338 = arith.mulf %337, %337 : vector<16x64xf32>
    %cst_119 = arith.constant dense<0.000000e+00> : vector<16xf32>
    %339 = vector.multi_reduction <add>, %338, %cst_119 [1] : vector<16x64xf32> to vector<16xf32>
    %340 = vector.shape_cast %339 : vector<16xf32> to vector<16x1xf32>
    %cst_120 = arith.constant 6.400000e+01 : f32
    %341 = vector.broadcast %cst_120 : f32 to vector<16x1xf32>
    %342 = arith.divf %340, %341 : vector<16x1xf32>
    %cst_121 = arith.constant 9.99999974E-6 : f32
    %343 = vector.broadcast %cst_121 : f32 to vector<16x1xf32>
    %344 = arith.addf %342, %343 : vector<16x1xf32>
    %345 = math.rsqrt %344 : vector<16x1xf32>
    %346 = vector.broadcast %345 : vector<16x1xf32> to vector<16x64xf32>
    %347 = arith.mulf %337, %346 : vector<16x64xf32>
    %348 = vector.broadcast %13 : vector<1x64xf32> to vector<16x64xf32>
    %349 = arith.mulf %347, %348 : vector<16x64xf32>
    %350 = vector.broadcast %15 : vector<1x64xf32> to vector<16x64xf32>
    %351 = arith.addf %349, %350 : vector<16x64xf32>
    %352 = arith.truncf %351 : vector<16x64xf32> to vector<16x64xbf16>
    %c0_122 = arith.constant 0 : index
    %c0_123 = arith.constant 0 : index
    %c0_124 = arith.constant 0 : index
    %353 = vector.load %arg11[%c0_122, %c0_123, %c0_124] : memref<1x64x256xbf16, #tpu.memory_space<vmem>>, vector<1x64x256xbf16>
    %354 = vector.shape_cast %353 : vector<1x64x256xbf16> to vector<64x256xbf16>
    %cst_125 = arith.constant dense<0.000000e+00> : vector<16x256xf32>
    %355 = tpu.matmul %352, %354, %cst_125 {dimension_numbers = #tpu.dot_dimension_numbers<[1], [0], [0], [1], [0, 0, 1, 1], [], []>} : vector<16x64xbf16>, vector<64x256xbf16>, vector<16x256xf32> -> vector<16x256xf32>
    %cst_126 = arith.constant 5.000000e-01 : f32
    %356 = vector.broadcast %cst_126 : f32 to vector<16x256xf32>
    %357 = arith.mulf %356, %355 : vector<16x256xf32>
    %cst_127 = arith.constant 0.707106769 : f32
    %358 = vector.broadcast %cst_127 : f32 to vector<16x256xf32>
    %359 = arith.mulf %355, %358 : vector<16x256xf32>
    %360 = math.erf %359 : vector<16x256xf32>
    %cst_128 = arith.constant 1.000000e+00 : f32
    %361 = vector.broadcast %cst_128 : f32 to vector<16x256xf32>
    %362 = arith.addf %361, %360 : vector<16x256xf32>
    %363 = arith.mulf %357, %362 : vector<16x256xf32>
    %364 = arith.truncf %363 : vector<16x256xf32> to vector<16x256xbf16>
    %c0_129 = arith.constant 0 : index
    %c0_130 = arith.constant 0 : index
    %c0_131 = arith.constant 0 : index
    %365 = vector.load %arg12[%c0_129, %c0_130, %c0_131] : memref<1x256x64xbf16, #tpu.memory_space<vmem>>, vector<1x256x64xbf16>
    %366 = vector.shape_cast %365 : vector<1x256x64xbf16> to vector<256x64xbf16>
    %cst_132 = arith.constant dense<0.000000e+00> : vector<16x64xf32>
    %367 = tpu.matmul %364, %366, %cst_132 {dimension_numbers = #tpu.dot_dimension_numbers<[1], [0], [0], [1], [0, 0, 1, 1], [], []>} : vector<16x256xbf16>, vector<256x64xbf16>, vector<16x64xf32> -> vector<16x64xf32>
    %368 = arith.addf %331, %367 : vector<16x64xf32>
    %c0_133 = arith.constant 0 : index
    %c0_134 = arith.constant 0 : index
    %369 = vector.load %arg19[%c0_133, %c0_134] : memref<16x64xf32, #tpu.memory_space<vmem>>, vector<16x64xf32>
    tpu.vector_store %arg19[%c0_133, %c0_134], %368 {strides = array<i32>} : memref<16x64xf32, #tpu.memory_space<vmem>>, vector<16x64xf32>,
    %c1_i32 = arith.constant 1 : i32
    %370 = arith.cmpi eq, %arg1, %c1_i32 : i32
    %371 = arith.extui %370 : i1 to i32
    %c0_i32_135 = arith.constant 0 : i32
    %372 = arith.cmpi ne, %371, %c0_i32_135 : i32
    scf.if %372 {
      %373 = arith.truncf %368 : vector<16x64xf32> to vector<16x64xbf16>
      %c0_136 = arith.constant 0 : index
      %c0_137 = arith.constant 0 : index
      %374 = vector.load %arg13[%c0_136, %c0_137] : memref<64x64xbf16, #tpu.memory_space<vmem>>, vector<64x64xbf16>
      %cst_138 = arith.constant dense<0.000000e+00> : vector<16x64xf32>
      %375 = tpu.matmul %373, %374, %cst_138 {dimension_numbers = #tpu.dot_dimension_numbers<[1], [0], [0], [1], [0, 0, 1, 1], [], []>} : vector<16x64xbf16>, vector<64x64xbf16>, vector<16x64xf32> -> vector<16x64xf32>
      %c0_139 = arith.constant 0 : index
      %c0_140 = arith.constant 0 : index
      %376 = vector.load %arg14[%c0_139, %c0_140] : memref<1x64xf32, #tpu.memory_space<vmem>>, vector<1x64xf32>
      %377 = vector.broadcast %376 : vector<1x64xf32> to vector<16x64xf32>
      %378 = arith.addf %375, %377 : vector<16x64xf32>
      %c0_141 = arith.constant 0 : index
      %c0_142 = arith.constant 0 : index
      %379 = vector.load %arg15[%c0_141, %c0_142] : memref<1x64xf32, #tpu.memory_space<vmem>>, vector<1x64xf32>
      %c0_143 = arith.constant 0 : index
      %c0_144 = arith.constant 0 : index
      %380 = vector.load %arg16[%c0_143, %c0_144] : memref<1x64xf32, #tpu.memory_space<vmem>>, vector<1x64xf32>
      %cst_145 = arith.constant dense<0.000000e+00> : vector<16xf32>
      %381 = vector.multi_reduction <add>, %378, %cst_145 [1] : vector<16x64xf32> to vector<16xf32>
      %382 = vector.shape_cast %381 : vector<16xf32> to vector<16x1xf32>
      %cst_146 = arith.constant 6.400000e+01 : f32
      %383 = vector.broadcast %cst_146 : f32 to vector<16x1xf32>
      %384 = arith.divf %382, %383 : vector<16x1xf32>
      %385 = vector.broadcast %384 : vector<16x1xf32> to vector<16x64xf32>
      %386 = arith.subf %378, %385 : vector<16x64xf32>
      %387 = arith.mulf %386, %386 : vector<16x64xf32>
      %cst_147 = arith.constant dense<0.000000e+00> : vector<16xf32>
      %388 = vector.multi_reduction <add>, %387, %cst_147 [1] : vector<16x64xf32> to vector<16xf32>
      %389 = vector.shape_cast %388 : vector<16xf32> to vector<16x1xf32>
      %cst_148 = arith.constant 6.400000e+01 : f32
      %390 = vector.broadcast %cst_148 : f32 to vector<16x1xf32>
      %391 = arith.divf %389, %390 : vector<16x1xf32>
      %cst_149 = arith.constant 9.99999974E-6 : f32
      %392 = vector.broadcast %cst_149 : f32 to vector<16x1xf32>
      %393 = arith.addf %391, %392 : vector<16x1xf32>
      %394 = math.rsqrt %393 : vector<16x1xf32>
      %395 = vector.broadcast %394 : vector<16x1xf32> to vector<16x64xf32>
      %396 = arith.mulf %386, %395 : vector<16x64xf32>
      %397 = vector.broadcast %379 : vector<1x64xf32> to vector<16x64xf32>
      %398 = arith.mulf %396, %397 : vector<16x64xf32>
      %399 = vector.broadcast %380 : vector<1x64xf32> to vector<16x64xf32>
      %400 = arith.addf %398, %399 : vector<16x64xf32>
      %401 = vector.shape_cast %400 : vector<16x64xf32> to vector<2x8x64xf32>
      %c0_150 = arith.constant 0 : index
      %c0_151 = arith.constant 0 : index
      %c0_152 = arith.constant 0 : index
      %402 = vector.load %arg17[%c0_150, %c0_151, %c0_152] : memref<2x8x64xf32, #tpu.memory_space<vmem>>, vector<2x8x64xf32>
      tpu.vector_store %arg17[%c0_150, %c0_151, %c0_152], %401 {strides = array<i32>} : memref<2x8x64xf32, #tpu.memory_space<vmem>>, vector<2x8x64xf32>,
    } else {
    }
    return
  }
  func.func @transform_0(%arg0: i32, %arg1: i32) -> (i32, i32, i32) {
    %c0_i32 = arith.constant 0 : i32
    %c0_i32_0 = arith.constant 0 : i32
    %c0_i32_1 = arith.constant 0 : i32
    return %arg0, %c0_i32, %c0_i32_0 : i32, i32, i32
  }
  func.func @transform_1(%arg0: i32, %arg1: i32) -> (i32, i32) {
    %c0_i32 = arith.constant 0 : i32
    %c0_i32_0 = arith.constant 0 : i32
    %c0_i32_1 = arith.constant 0 : i32
    return %c0_i32, %c0_i32_0 : i32, i32
  }
  func.func @transform_2(%arg0: i32, %arg1: i32) -> (i32, i32) {
    %c0_i32 = arith.constant 0 : i32
    %c0_i32_0 = arith.constant 0 : i32
    %c0_i32_1 = arith.constant 0 : i32
    return %c0_i32, %c0_i32_0 : i32, i32
  }
  func.func @transform_3(%arg0: i32, %arg1: i32) -> (i32, i32, i32) {
    %c0_i32 = arith.constant 0 : i32
    %c0_i32_0 = arith.constant 0 : i32
    %c0_i32_1 = arith.constant 0 : i32
    %c0_i32_2 = arith.constant 0 : i32
    return %c0_i32, %c0_i32_0, %c0_i32_1 : i32, i32, i32
  }
  func.func @transform_4(%arg0: i32, %arg1: i32) -> (i32, i32, i32) {
    %c0_i32 = arith.constant 0 : i32
    %c0_i32_0 = arith.constant 0 : i32
    %c0_i32_1 = arith.constant 0 : i32
    return %arg1, %c0_i32, %c0_i32_0 : i32, i32, i32
  }
  func.func @transform_5(%arg0: i32, %arg1: i32) -> (i32, i32, i32) {
    %c0_i32 = arith.constant 0 : i32
    %c0_i32_0 = arith.constant 0 : i32
    %c0_i32_1 = arith.constant 0 : i32
    return %arg1, %c0_i32, %c0_i32_0 : i32, i32, i32
  }
  func.func @transform_6(%arg0: i32, %arg1: i32) -> (i32, i32, i32) {
    %c0_i32 = arith.constant 0 : i32
    %c0_i32_0 = arith.constant 0 : i32
    %c0_i32_1 = arith.constant 0 : i32
    return %arg1, %c0_i32, %c0_i32_0 : i32, i32, i32
  }
  func.func @transform_7(%arg0: i32, %arg1: i32) -> (i32, i32, i32) {
    %c0_i32 = arith.constant 0 : i32
    %c0_i32_0 = arith.constant 0 : i32
    %c0_i32_1 = arith.constant 0 : i32
    return %arg1, %c0_i32, %c0_i32_0 : i32, i32, i32
  }
  func.func @transform_8(%arg0: i32, %arg1: i32) -> (i32, i32, i32) {
    %c0_i32 = arith.constant 0 : i32
    %c0_i32_0 = arith.constant 0 : i32
    %c0_i32_1 = arith.constant 0 : i32
    return %arg1, %c0_i32, %c0_i32_0 : i32, i32, i32
  }
  func.func @transform_9(%arg0: i32, %arg1: i32) -> (i32, i32, i32) {
    %c0_i32 = arith.constant 0 : i32
    %c0_i32_0 = arith.constant 0 : i32
    %c0_i32_1 = arith.constant 0 : i32
    return %arg1, %c0_i32, %c0_i32_0 : i32, i32, i32
  }
  func.func @transform_10(%arg0: i32, %arg1: i32) -> (i32, i32, i32) {
    %c0_i32 = arith.constant 0 : i32
    %c0_i32_0 = arith.constant 0 : i32
    %c0_i32_1 = arith.constant 0 : i32
    return %arg1, %c0_i32, %c0_i32_0 : i32, i32, i32
  }
  func.func @transform_11(%arg0: i32, %arg1: i32) -> (i32, i32) {
    %c0_i32 = arith.constant 0 : i32
    %c0_i32_0 = arith.constant 0 : i32
    %c0_i32_1 = arith.constant 0 : i32
    return %c0_i32, %c0_i32_0 : i32, i32
  }
  func.func @transform_12(%arg0: i32, %arg1: i32) -> (i32, i32) {
    %c0_i32 = arith.constant 0 : i32
    %c0_i32_0 = arith.constant 0 : i32
    %c0_i32_1 = arith.constant 0 : i32
    return %c0_i32, %c0_i32_0 : i32, i32
  }
  func.func @transform_13(%arg0: i32, %arg1: i32) -> (i32, i32) {
    %c0_i32 = arith.constant 0 : i32
    %c0_i32_0 = arith.constant 0 : i32
    %c0_i32_1 = arith.constant 0 : i32
    return %c0_i32, %c0_i32_0 : i32, i32
  }
  func.func @transform_14(%arg0: i32, %arg1: i32) -> (i32, i32) {
    %c0_i32 = arith.constant 0 : i32
    %c0_i32_0 = arith.constant 0 : i32
    %c0_i32_1 = arith.constant 0 : i32
    return %c0_i32, %c0_i32_0 : i32, i32
  }
  func.func @transform_15(%arg0: i32, %arg1: i32) -> (i32, i32, i32) {
    %c0_i32 = arith.constant 0 : i32
    %c0_i32_0 = arith.constant 0 : i32
    %c0_i32_1 = arith.constant 0 : i32
    return %arg0, %c0_i32, %c0_i32_0 : i32, i32, i32
  }
}

</mosaic_0001>

<bundles_post_ra>
// kernel: serial_sampler_forward.2
= control target key start
LH: loop header
LB: loop body
LE: loop exit
PB: predicated region body
PF: predicated region fallthrough
CT: control target
= control target key end

     0   :  { %s5150_s0 = inlined_call_operand.vmem [shape: f32[2,16,48], index: 0, kind: input, shape index: {}]   ;;  %s5151_s1 = inlined_call_operand.vmem [shape: bf16[48,64], index: 1, kind: input, shape index: {}]   ;;  %s5152_s2 = inlined_call_operand.vmem [shape: f32[1,64], index: 2, kind: input, shape index: {}]   ;;  %s5153_s3 = inlined_call_operand.vmem [shape: f32[1,8,64], index: 3, kind: input, shape index: {}]   ;;  %s5154_s4 = inlined_call_operand.vmem [shape: f32[2,6,64], index: 4, kind: input, shape index: {}]   ;;  %s5155_s5 = inlined_call_operand.vmem [shape: bf16[2,64,64], index: 5, kind: input, shape index: {}]   ;;  %s5156_s6 = inlined_call_operand.vmem [shape: bf16[2,64,64], index: 6, kind: input, shape index: {}]   ;;  %s5157_s7 = inlined_call_operand.vmem [shape: bf16[2,64,64], index: 7, kind: input, shape index: {}]   ;;  %s5158_s8 = inlined_call_operand.vmem [shape: bf16[2,64,64], index: 8, kind: input, shape index: {}]   ;;  %s5159_s9 = inlined_call_operand.vmem [shape: bf16[2,64,256], index: 9, kind: input, shape index: {}]   ;;  %s5160_s10 = inlined_call_operand.vmem [shape: bf16[2,256,64], index: 10, kind: input, shape index: {}]   ;;  %s5161_s11 = inlined_call_operand.vmem [shape: bf16[64,64], index: 11, kind: input, shape index: {}]   ;;  %s5162_s12 = inlined_call_operand.vmem [shape: f32[1,64], index: 12, kind: input, shape index: {}]   ;;  %s5163_s13 = inlined_call_operand.vmem [shape: f32[1,64], index: 13, kind: input, shape index: {}]   ;;  %s5164_s14 = inlined_call_operand.vmem [shape: f32[1,64], index: 14, kind: input, shape index: {}]   ;;  %s5165_s15 = inlined_call_operand.hbm [shape: f32[2,8,64], index: 15, kind: output, shape index: {}]  }
   0x1   :  { %5169 = sst [smem:[#allocation11_spill]] %s5154_s4 }
   0x2   :  { %5170 = sst [smem:[#allocation12_spill]] %s5155_s5 }
   0x3   :  { %5171 = sst [smem:[#allocation13_spill]] %s5163_s13 }
   0x4   :  { %5172 = sst [smem:[#allocation14_spill]] %s5164_s14 }
   0x5   :  { %5173 = sst [smem:[#allocation15_spill]] %s5165_s15 }
   0x6   :  { %20 = vsyncpa [#allocation6], 0  ;;  %s4526_s18 = smov 0   ;;  %s4528_s19 = smov 0  }
   0x7   :  { %s4530_s20 = smov 0  }
   0x8 LB: > { %5174 = sst [smem:[#allocation8_spill]] %s4426_s19  ;;  %s35_s22 = sadd.s32 1, %s4426_s19  ;;  %s4430_s20 = sphi %s4530_s20, %s26_s20   ;;  %s4426_s19 = sphi %s4528_s19, %s5187_s19   ;;  %s4422_s18 = sphi %s4526_s18, %s5186_s18  }
   0x9   : > { %5175 = sst [smem:[#allocation9_spill]] %s4430_s20  ;;  %p36_p0 = scmp.ge.s32.totalorder %s35_s22, 2 }
   0xa   : > { %p3632_p1 = scmp.ge.s32.totalorder %s4430_s20, 1  ;;  %p521_p2 = scmp.lt.s32.totalorder %s4430_s20, 3 }
   0xb   : > { %s5189_s22 = smov (%p36_p0, %s35_s22), 0 }
   0xc   : > { %5176 = sst [smem:[#allocation10_spill]] %s5189_s22  ;;  %p522_p3 = pnand %p3632_p1, %p521_p2 }
   0xd   : > { %p606_p4 = scmp.lt.s32.totalorder (!%p522_p3), %s4422_s18, 1  ;;  %s5177_s4 = sld [smem:[#allocation11_spill]] (!%p522_p3) }
   0xe   : > { %525 = sbr.rel (%p522_p3) target bundleno = 3658 (0xe4a), region = 80  ;;  %s5178_s5 = sld [smem:[#allocation12_spill]] (!%p522_p3) }
   0xf   : > { %p3646_p5 = scmp.ne.s32.totalorder (!%p522_p3), %s4422_s18, 0 }
  0x15   : > { %s607_s23 = scalar_select %p606_p4, %s4422_s18, 1 }
  0x16   : > { %645 = sbr.rel (%p3646_p5) target bundleno = 570 (0x23a), region = 84  ;;  %v4249_v0 = vld [vmem:[%s5151_s1] sm:$0xff] (!%p3646_p5)   ;;  %v4250_v1 = vld [vmem:[%s5151_s1 + $0x8] sm:$0xff] (!%p3646_p5)   ;;  %vm683_vm0 = vcmask (!%p3646_p5), 392192   ;;  %v4251_v4 = vld [vmem:[%s5151_s1 + $0x10] sm:$0xff] (!%p3646_p5)   ;;  %vm739_vm1 = vcmask (!%p3646_p5), 523264  }
  0x17   : > { %s3633_s24 = sshll.u32 %s607_s23, 3  ;;  %s3753_s25 = sshll.u32 %s607_s23, 5  ;;  %3887 = vmatprep.subr.bf16.mxu0 (!%p3646_p5), %v4249_v0  ;;  %v646_v2 = vld [vmem:[%s5150_s0] sm:$0xff] (!%p3646_p5)  ;;  %v647_v3 = vld [vmem:[%s5150_s0 + $0x8] sm:$0xff] (!%p3646_p5)  ;;  %v648_v6 = vld [vmem:[%s5150_s0 + $0x10] sm:$0xff] (!%p3646_p5) }
  0x18   : > { %s4552_s28 = scalar_lea.vmem %s5177_s4, %s3633_s24  ;;  %s4557_s16 = scalar_lea.vmem %s5178_s5, %s3753_s25  ;;  %3888 = vmatpush3.bf16.msra.mxu0 (!%p3646_p5), %v4249_v0  ;;  %v650_v5 = vpack.c.bf16 (!%p3646_p5), %v647_v3, %v646_v2  ;;  %v649_v7 = vld [vmem:[%s5150_s0 + $0x18] sm:$0xff] (!%p3646_p5)  ;;  %v797_v9 = vld [vmem:[%s5153_s3] sm:$0xff] (!%p3646_p5) }
  0x19   : > { %s4562_s22 = scalar_lea.vmem %s5156_s6, %s3753_s25  ;;  %s4567_s20 = scalar_lea.vmem %s5157_s7, %s3753_s25  ;;  %3889 = vmatprep.subr.bf16.mxu0 (!%p3646_p5), %v4250_v1  ;;  %v651_v8 = vpack.c.bf16 (!%p3646_p5), %v649_v7, %v648_v6  ;;  %798 = vst.msk [vmem:[#allocation3] sm:$0xff] (!%p3646_p5), %vm739_vm1, %v797_v9  ;;  %799 = vst.msk [vmem:[#allocation3 + $0x8] sm:$0xff] (!%p3646_p5), %vm739_vm1, %v797_v9  ;;  %v3647_v10 = vld [vmem:[%s5152_s2] ss:$0 sm:$0xff] (!%p3646_p5) }
  0x1a   : > { %s4572_s24 = scalar_lea.vmem %s5158_s8, %s3753_s25  ;;  %s3757_s26 = sshll.u32 %s607_s23, 6  ;;  %3893 = vmatprep.mubr.msk.bf16.mxu0 (!%p3646_p5), %vm683_vm0, %v650_v5 }
  0x1b   : > { %s4577_s30 = scalar_lea.vmem %s5159_s9, %s3757_s26  ;;  %s3758_s4 = sshll.u32 %s607_s23, 7 }
  0x1c   : > { %s4582_s5 = scalar_lea.vmem %s5160_s10, %s3758_s4  ;;  %3890 = vmatpush3.bf16.msra.mxu0 (!%p3646_p5), %v4250_v1 }
  0x1d   : > { %3891 = vmatprep.subr.bf16.mxu0 %v4251_v4 }
  0x20   : > { %3892 = vmatpush3.bf16.msra.mxu0 %v4251_v4 }
  0x23   : > { %3894 = vmatmul.mubr.msk.bf16.vlgmr.msra.gmra.mrb[0].mxu0 %vm683_vm0, %v651_v8 }
  0xf6   : > { %v3895_v11 = vpop.f32.mrb[0].mxu0 }
  0xf7   : > { %v733_v12 = vadd.f32 %v3895_v11, %v3647_v10  ;;  %v724_v13 = vpop.f32.mrb[1].mxu0 }
  0xf8   : > { %v725_v14 = vadd.f32 %v3647_v10, %v724_v13  ;;  %v3896_v15 = vpop.f32.mrb[2].mxu0 }
  0xf9   : > { %v736_v16 = vadd.f32 %v3896_v15, %v3647_v10  ;;  %v727_v17 = vpop.f32.mrb[3].mxu0  ;;  %v746_v18 = vsel %vm739_vm1, %v733_v12, 0.0 }
  0xfa   : > { %v728_v19 = vadd.f32 %v3647_v10, %v727_v17  ;;  %747 = vadd.xlane.f32.xlu1 %v746_v18  ;;  %v740_v20 = vsel %vm739_vm1, %v725_v14, 0.0 }
  0xfb   : > { %741 = vadd.xlane.f32.xlu0 %v740_v20  ;;  %v749_v21 = vsel %vm739_vm1, %v736_v16, 0.0 }
  0xfc   : > { %v743_v22 = vsel %vm739_vm1, %v728_v19, 0.0 }
  0xfe   : > { %750 = vadd.xlane.f32.xlu1 %v749_v21 }
  0xff   : > { %744 = vadd.xlane.f32.xlu0 %v743_v22 }
 0x187   : > { %v748_v23 = vpop.xlane.xlu1 %747 }
 0x188   : > { %v755_v24 = vmul.f32 0.015625, %v748_v23  ;;  %v742_v25 = vpop.xlane.xlu0 %741 }
 0x189   : > { %v753_v26 = vmul.f32 0.015625, %v742_v25 }
 0x18a   : > { %v759_v27 = vsub.f32 %v733_v12, %v755_v24 }
 0x18b   : > { %v757_v28 = vsub.f32 %v725_v14, %v753_v26  ;;  %v751_v29 = vpop.xlane.xlu1 %750 }
 0x18c   : > { %v756_v30 = vmul.f32 0.015625, %v751_v29  ;;  %v745_v31 = vpop.xlane.xlu0 %744  ;;  %v763_v37 = vmul.f32 %v759_v27, %v759_v27 }
 0x18d   : > { %v754_v32 = vmul.f32 0.015625, %v745_v31  ;;  %v761_v33 = vmul.f32 %v757_v28, %v757_v28 }
 0x18e   : > { %v760_v34 = vsub.f32 %v736_v16, %v756_v30  ;;  %v771_v39 = vsel %vm739_vm1, %v763_v37, 0.0 }
 0x18f   : > { %v758_v35 = vsub.f32 %v728_v19, %v754_v32  ;;  %v765_v36 = vsel %vm739_vm1, %v761_v33, 0.0 }
 0x190   : > { %766 = vadd.xlane.f32.xlu0 %v765_v36  ;;  %v764_v41 = vmul.f32 %v760_v34, %v760_v34 }
 0x191   : > { %v762_v38 = vmul.f32 %v758_v35, %v758_v35 }
 0x192   : > { %v774_v42 = vsel %vm739_vm1, %v764_v41, 0.0 }
 0x193   : > { %v768_v40 = vsel %vm739_vm1, %v762_v38, 0.0 }
 0x194   : > { %772 = vadd.xlane.f32.xlu0 %v771_v39  ;;  %769 = vadd.xlane.f32.xlu1 %v768_v40 }
 0x198   : > { %775 = vadd.xlane.f32.xlu1 %v774_v42 }
 0x21d   : > { %v767_v43 = vpop.xlane.xlu0 %766 }
 0x21e   : > { %v777_v44 = vmul.f32 0.015625, %v767_v43 }
 0x220   : > { %v781_v45 = vadd.f32 1e-05, %v777_v44 }
 0x221   : > { %v770_v46 = vpop.xlane.xlu1 %769  ;;  %v773_v47 = vpop.xlane.xlu0 %772 }
 0x222   : > { %v778_v48 = vmul.f32 0.015625, %v770_v46  ;;  %v779_v49 = vmul.f32 0.015625, %v773_v47  ;;  %4252 = vrsqrt.f32 %v781_v45 }
 0x224   : > { %v782_v50 = vadd.f32 1e-05, %v778_v48  ;;  %v783_v51 = vadd.f32 1e-05, %v779_v49 }
 0x225   : > { %v776_v52 = vpop.xlane.xlu1 %775 }
 0x226   : > { %4254 = vrsqrt.f32 %v782_v50  ;;  %v780_v53 = vmul.f32 0.015625, %v776_v52 }
 0x227   : > { %4256 = vrsqrt.f32 %v783_v51 }
 0x228   : > { %v784_v54 = vadd.f32 1e-05, %v780_v53 }
 0x22a   : > { %4258 = vrsqrt.f32 %v784_v54 }
 0x22c   : > { %v4253_v55 = vpop.eup %4252 }
 0x22d   : > { %v789_v57 = vmul.f32 %v4253_v55, %v757_v28 }
 0x230   : > { %v4255_v56 = vpop.eup %4254 }
 0x231   : > { %v790_v58 = vmul.f32 %v4255_v56, %v758_v35  ;;  %v4257_v59 = vpop.eup %4256 }
 0x232   : > { %v791_v62 = vmul.f32 %v4257_v59, %v759_v27 }
 0x233   : > { %v793_v60 = vpack.c.bf16 %v790_v58, %v789_v57 }
 0x234   : > { %v4259_v61 = vpop.eup %4258 }
 0x235   : > { %795 = vst.msk [vmem:[#allocation2] sm:$0xff] %vm739_vm1, %v793_v60  ;;  %v792_v63 = vmul.f32 %v4259_v61, %v760_v34 }
 0x237   : > { %v794_v0 = vpack.c.bf16 %v792_v63, %v791_v62 }
 0x239   : > { %796 = vst.msk [vmem:[#allocation2 + $0x8] sm:$0xff] %vm739_vm1, %v794_v0 }
 0x23a PF: > { %vm832_vm2 = vcmask 523264   ;;  %v4260_v5 = vld [vmem:[%s4562_s22] sm:$0xff]   ;;  %v4261_v6 = vld [vmem:[%s4562_s22 + $0x8] sm:$0xff]   ;;  %v4262_v17 = vld [vmem:[%s4562_s22 + $0x10] sm:$0xff]   ;;  %v4432_v37 = vmov 0.0   ;;  %vm4433_vm3 = vmmov 0  }
 0x23b   : > { %3909 = vmatprep.subr.bf16.mxu1 %v4260_v5  ;;  %v3653_v22 = vld [vmem:[%s4552_s28] ss:$0 sm:$0xff]  ;;  %v4263_v25 = vld [vmem:[%s4562_s22 + $0x18] sm:$0xff]   ;;  %v3654_v28 = vld [vmem:[%s4552_s28 + $0x1] ss:$0 sm:$0xff]  ;;  %3897 = vmatprep.subr.bf16.mxu0 %v4432_v37  ;;  %vm1206_vm4 = vcmask 130048  }
 0x23c   : > { %3910 = vmatpush3.bf16.msra.mxu1 %v4260_v5  ;;  %v808_v18 = vld [vmem:[#allocation2] sm:$0xff]  ;;  %v4265_v39 = vld [vmem:[%s4557_s16 + $0x8] sm:$0xff]   ;;  %v4266_v40 = vld [vmem:[%s4557_s16 + $0x10] sm:$0xff]   ;;  %3905 = vmatprep.mubr.msk.bf16.mxu0 %vm4433_vm3, %v4432_v37  ;;  %s4435_s22 = smov 96   ;;  %vm1323_vm5 = vcmask 1043456   ;;  %vm1299_vm6 = vcmask 64512  }
 0x23d   : > { %v800_v1 = vld [vmem:[#allocation3] sm:$0xff]  ;;  %v801_v2 = vld [vmem:[#allocation3 + $0x8] sm:$0xff]  ;;  %3911 = vmatprep.subr.bf16.mxu1 %v4261_v6  ;;  %v810_v19 = vunpack.c.l.bf16 %v808_v18  ;;  %v811_v20 = vunpack.c.h.bf16 %v808_v18  ;;  %v4264_v35 = vld [vmem:[%s4557_s16] sm:$0xff]   ;;  %s4437_s26 = smov 16   ;;  %s4438_s4 = smov 32   ;;  %vm1634_vm7 = vcmask 261248  }
 0x23e   : > { %v833_v3 = vsel %vm832_vm2, %v800_v1, 0.0  ;;  %v836_v4 = vsel %vm832_vm2, %v801_v2, 0.0  ;;  %3898 = vmatpush3.bf16.msra.mxu0 %v4264_v35  ;;  %v4267_v41 = vld [vmem:[%s4557_s16 + $0x18] sm:$0xff]   ;;  %v4268_v42 = vld [vmem:[%s4567_s20] sm:$0xff]   ;;  %v4269_v60 = vld [vmem:[%s4567_s20 + $0x8] sm:$0xff]   ;;  %s4436_s16 = smov 80  }
 0x23f   : > { %834 = vadd.xlane.f32.xlu0 %v833_v3  ;;  %v818_v26 = vmul.f32 %v3653_v22, %v810_v19  ;;  %v819_v27 = vmul.f32 %v3653_v22, %v811_v20  ;;  %3899 = vmatprep.subr.bf16.mxu0 %v4432_v37  ;;  %v3655_v51 = vld [vmem:[%s4552_s28 + $0x2] ss:$0 sm:$0xff]  ;;  %v3656_v55 = vld [vmem:[%s4552_s28 + $0x3] ss:$0 sm:$0xff]  ;;  %v4270_v61 = vld [vmem:[%s4567_s20 + $0x10] sm:$0xff]   ;;  %s4439_s27 = smov 48  }
 0x240   : > { %3912 = vmatpush3.bf16.msra.mxu1 %v4261_v6  ;;  %v809_v21 = vld [vmem:[#allocation2 + $0x8] sm:$0xff]  ;;  %v4271_v62 = vld [vmem:[%s4567_s20 + $0x18] sm:$0xff]   ;;  %s4434_s20 = smov 112   ;;  %vm1853_vm8 = vcmask 392448   ;;  %vm2072_vm9 = vcmask 523648   ;;  %p3740_p6 = scmp.ne.s32.totalorder %s4422_s18, 1 }
 0x241   : > { %3913 = vmatprep.subr.bf16.mxu1 %v4262_v17  ;;  %v812_v23 = vunpack.c.l.bf16 %v809_v21  ;;  %v813_v24 = vunpack.c.h.bf16 %v809_v21  ;;  %v826_v31 = vadd.f32 %v3654_v28, %v818_v26  ;;  %v827_v32 = vadd.f32 %v3654_v28, %v819_v27  ;;  %s5179_s25 = sld [smem:[#allocation13_spill]] (!%p3740_p6) }
 0x242   : > { %3900 = vmatpush3.bf16.msra.mxu0 %v4265_v39  ;;  %vm4442_vm10 = vmmov (!%p3740_p6), 0  }
 0x243   : > { %837 = vadd.xlane.f32.xlu0 %v836_v4  ;;  %v820_v29 = vmul.f32 %v3653_v22, %v812_v23  ;;  %v821_v30 = vmul.f32 %v3653_v22, %v813_v24  ;;  %v830_v36 = vpack.c.bf16 %v827_v32, %v826_v31  ;;  %3901 = vmatprep.subr.bf16.mxu0 %v4432_v37 }
 0x244   : > { %3914 = vmatpush3.bf16.msra.mxu1 %v4262_v17 }
 0x245   : > { %3915 = vmatprep.subr.bf16.mxu1 %v4263_v25  ;;  %v828_v33 = vadd.f32 %v3654_v28, %v820_v29  ;;  %v829_v34 = vadd.f32 %v3654_v28, %v821_v30  ;;  %3917 = vmatprep.mubr.msk.bf16.mxu1 %vm832_vm2, %v830_v36 }
 0x246   : > { %3902 = vmatpush3.bf16.msra.mxu0 %v4266_v40 }
 0x247   : > { %v831_v38 = vpack.c.bf16 %v829_v34, %v828_v33  ;;  %3903 = vmatprep.subr.bf16.mxu0 %v4432_v37 }
 0x248   : > { %3916 = vmatpush3.bf16.msra.mxu1 %v4263_v25 }
 0x249   : > { %3933 = vmatprep.subr.bf16.mxu1 %v4432_v37 }
 0x24a   : > { %3904 = vmatpush3.bf16.msra.mxu0 %v4267_v41 }
 0x24b   : > { %3918 = vmatmul.mubr.msk.bf16.vlgmr.msra.gmra.mrb[0].mxu1 %vm832_vm2, %v831_v38  ;;  %3921 = vmatprep.subr.bf16.mxu0 %v4268_v42 }
 0x24c   : > { %3934 = vmatpush3.bf16.msra.mxu1 %v4260_v5  ;;  %3941 = vmatprep.mubr.msk.bf16.mxu1 %vm4433_vm3, %v4432_v37 }
 0x24d   : > { %3935 = vmatprep.subr.bf16.mxu1 %v4432_v37 }
 0x250   : > { %3936 = vmatpush3.bf16.msra.mxu1 %v4261_v6 }
 0x251   : > { %3937 = vmatprep.subr.bf16.mxu1 %v4432_v37 }
 0x254   : > { %3938 = vmatpush3.bf16.msra.mxu1 %v4262_v17 }
 0x255   : > { %3939 = vmatprep.subr.bf16.mxu1 %v4432_v37 }
 0x258   : > { %3940 = vmatpush3.bf16.msra.mxu1 %v4263_v25 }
 0x259   : > { %3963 = vmatprep.subr.bf16.mxu1 %v4432_v37 }
 0x2cc   : > { %v835_v7 = vpop.xlane.xlu0 %834 }
 0x2cd   : > { %v840_v8 = vmul.f32 0.015625, %v835_v7 }
 0x2cf   : > { %v4628_v9 = vsub.f32 %v800_v1, %v840_v8 }
 0x2d0   : > { %v838_v10 = vpop.xlane.xlu0 %837 }
 0x2d1   : > { %v841_v11 = vmul.f32 0.015625, %v838_v10  ;;  %v844_v12 = vmul.f32 %v4628_v9, %v4628_v9 }
 0x2d3   : > { %v4632_v13 = vsub.f32 %v801_v2, %v841_v11  ;;  %v846_v14 = vsel %vm832_vm2, %v844_v12, 0.0 }
 0x2d4   : > { %847 = vadd.xlane.f32.xlu1 %v846_v14 }
 0x2d5   : > { %v845_v15 = vmul.f32 %v4632_v13, %v4632_v13 }
 0x2d7   : > { %v849_v16 = vsel %vm832_vm2, %v845_v15, 0.0 }
 0x2d8   : > { %850 = vadd.xlane.f32.xlu1 %v849_v16 }
 0x31e   : > { %v3919_v63 = vpop.f32.mrb[0].mxu1 }
 0x31f   : > { %v1030_v0 = vpop.f32.mrb[1].mxu1 }
 0x320   : > { %v3920_v1 = vpop.f32.mrb[2].mxu1 }
 0x321   : > { %v4685_v2 = vpack.c.bf16 %v3920_v1, %v3919_v63  ;;  %v1033_v3 = vpop.f32.mrb[3].mxu1 }
 0x322   : > { %v1045_v4 = vpack.c.bf16 %v1033_v3, %v1030_v0 }
 0x324   : > { %1416 = vrot.lane.b32.xlu0 %v1045_v4, %s4434_s20  ;;  %v1211_v5 = vsel %vm1206_vm4, %v1045_v4, 0 }
 0x361   : > { %v848_v43 = vpop.xlane.xlu1 %847 }
 0x362   : > { %v852_v44 = vmul.f32 0.015625, %v848_v43 }
 0x364   : > { %v854_v45 = vadd.f32 1e-05, %v852_v44 }
 0x365   : > { %v851_v46 = vpop.xlane.xlu1 %850 }
 0x366   : > { %4304 = vrsqrt.f32 %v854_v45  ;;  %v853_v47 = vmul.f32 0.015625, %v851_v46 }
 0x368   : > { %v855_v48 = vadd.f32 1e-05, %v853_v47  ;;  %v2079_v47 = vsel %vm1206_vm4, %v4685_v2, 0 }
 0x36a   : > { %4306 = vrsqrt.f32 %v855_v48 }
 0x370   : > { %v4305_v49 = vpop.eup %4304 }
 0x371   : > { %v858_v50 = vmul.f32 %v4305_v49, %v4628_v9 }
 0x373   : > { %v864_v54 = vmul.f32 %v3655_v51, %v858_v50 }
 0x374   : > { %v4307_v52 = vpop.eup %4306 }
 0x375   : > { %v859_v53 = vmul.f32 %v4307_v52, %v4632_v13  ;;  %v870_v57 = vadd.f32 %v3656_v55, %v864_v54 }
 0x377   : > { %v865_v56 = vmul.f32 %v3655_v51, %v859_v53 }
 0x379   : > { %v871_v58 = vadd.f32 %v3656_v55, %v865_v56 }
 0x37b   : > { %v872_v59 = vpack.c.bf16 %v871_v58, %v870_v57 }
 0x37d   : > { %3906 = vmatmul.mubr.msk.bf16.vlgmr.msra.gmra.mrb[0].mxu0 %vm832_vm2, %v872_v59  ;;  %3942 = vmatmul.mubr.msk.bf16.vlgmr.msra.gmra.mrb[4].mxu1 %vm832_vm2, %v872_v59 }
 0x37e   : > { %3922 = vmatpush3.bf16.msra.mxu0 %v4268_v42  ;;  %3929 = vmatprep.mubr.msk.bf16.mxu0 %vm832_vm2, %v830_v36 }
 0x37f   : > { %3923 = vmatprep.subr.bf16.mxu0 %v4269_v60  ;;  %3965 = vmatprep.mubr.msk.bf16.mxu1 %vm4433_vm3, %v4432_v37 }
 0x382   : > { %3924 = vmatpush3.bf16.msra.mxu0 %v4269_v60 }
 0x383   : > { %3925 = vmatprep.subr.bf16.mxu0 %v4270_v61 }
 0x386   : > { %3926 = vmatpush3.bf16.msra.mxu0 %v4270_v61 }
 0x387   : > { %3927 = vmatprep.subr.bf16.mxu0 %v4271_v62 }
 0x38a   : > { %3928 = vmatpush3.bf16.msra.mxu0 %v4271_v62 }
 0x38b   : > { %3945 = vmatprep.subr.bf16.mxu0 %v4432_v37 }
 0x38d   : > { %3930 = vmatmul.mubr.msk.bf16.vlgmr.msra.gmra.mrb[4].mxu0 %vm832_vm2, %v831_v38 }
 0x38e   : > { %3946 = vmatpush3.bf16.msra.mxu0 %v4268_v42  ;;  %3953 = vmatprep.mubr.msk.bf16.mxu0 %vm4433_vm3, %v4432_v37 }
 0x38f   : > { %3947 = vmatprep.subr.bf16.mxu0 %v4432_v37 }
 0x392   : > { %3948 = vmatpush3.bf16.msra.mxu0 %v4269_v60 }
 0x393   : > { %3949 = vmatprep.subr.bf16.mxu0 %v4432_v37 }
 0x396   : > { %3950 = vmatpush3.bf16.msra.mxu0 %v4270_v61  ;;  %v1417_v17 = vpop.permute.xlu0 %1416 }
 0x397   : > { %3951 = vmatprep.subr.bf16.mxu0 %v4432_v37  ;;  %v1422_v18 = vsel %vm1206_vm4, %v1417_v17, 0 }
 0x39a   : > { %3952 = vmatpush3.bf16.msra.mxu0 %v4271_v62 }
 0x39b   : > { %3957 = vmatprep.subr.bf16.mxu0 %v4432_v37 }
 0x39d   : > { %3954 = vmatmul.mubr.msk.bf16.vlgmr.msra.gmra.mrb[8].mxu0 %vm832_vm2, %v872_v59 }
 0x39e   : > { %3959 = vmatprep.mubr.msk.bf16.mxu0 %vm4433_vm3, %v4432_v37 }
 0x3a3   : > { %3958 = vmatpush3.bf16.xpose.msra.mxu0 %v1211_v5 }
 0x3a4   : > { %3969 = vmatprep.subr.bf16.mxu0 %v4432_v37 }
 0x450   : > { %v958_v6 = vpop.f32.mrb[0].mxu0  ;;  %v1156_v7 = vpop.f32.mrb[4].mxu1 }
 0x451   : > { %v3907_v8 = vpop.f32.mrb[1].mxu0  ;;  %v3943_v9 = vpop.f32.mrb[5].mxu1 }
 0x452   : > { %v961_v10 = vpop.f32.mrb[2].mxu0  ;;  %v1159_v11 = vpop.f32.mrb[6].mxu1 }
 0x453   : > { %v965_v12 = vpack.c.bf16 %v961_v10, %v958_v6  ;;  %v1163_v13 = vpack.c.bf16 %v1159_v11, %v1156_v7  ;;  %v3908_v14 = vpop.f32.mrb[3].mxu0  ;;  %v3944_v15 = vpop.f32.mrb[7].mxu1 }
 0x455   : > { %1636 = vrot.lane.b32.xlu0 %v965_v12, %s4435_s22  ;;  %1413 = vrot.lane.b32.xlu1 %v965_v12, %s4434_s20  ;;  %v1254_v16 = vsel %vm1206_vm4, %v1163_v13, 0  ;;  %v4703_v19 = vrot.slane %v965_v12, 4  ;;  %v2121_v26 = vrot.slane %v1163_v13, 4 }
 0x456   : > { %3960 = vmatmul.mubr.msk.bf16.vlgmr.msra.gmra.mrb[12].mxu0 %vm1206_vm4, %v965_v12  ;;  %3964 = vmatpush3.bf16.xpose.msra.mxu1 %v1254_v16 }
 0x457   : > { %3981 = vmatprep.subr.bf16.mxu1 %v4432_v37  ;;  %3971 = vmatprep.mubr.msk.bf16.mxu0 %vm4433_vm3, %v4432_v37  ;;  %v2123_v48 = vsel %vm1206_vm4, %v2121_v26, 0 }
 0x459   : > { %1857 = vrot.lane.b32.xlu0 %v1045_v4, %s4436_s16  ;;  %1465 = vrot.lane.b32.xlu1 %v1163_v13, %s4434_s20 }
 0x45d   : > { %1905 = vrot.lane.b32.xlu0 %v1163_v13, %s4436_s16  ;;  %1638 = vrot.lane.b32.xlu1 %v1045_v4, %s4435_s22 }
 0x45e   : > { %3966 = vmatmul.mubr.msk.bf16.vlgmr.msra.gmra.mrb[8].mxu1 %vm1206_vm4, %v965_v12 }
 0x45f   : > { %3982 = vmatpush3.bf16.xpose.msra.mxu1 %v1422_v18  ;;  %3983 = vmatprep.mubr.msk.bf16.mxu1 %vm4433_vm3, %v4432_v37 }
 0x460   : > { %v3931_v20 = vpop.f32.mrb[4].mxu0  ;;  %3987 = vmatprep.subr.bf16.mxu1 %v4432_v37 }
 0x461   : > { %1686 = vrot.lane.b32.xlu1 %v1163_v13, %s4435_s22  ;;  %2280 = vrot.lane.b32.xlu0 %v4703_v19, %s4434_s20  ;;  %v1105_v21 = vpop.f32.mrb[5].mxu0 }
 0x462   : > { %v3932_v22 = vpop.f32.mrb[6].mxu0 }
 0x463   : > { %v4711_v23 = vpack.c.bf16 %v3932_v22, %v3931_v20  ;;  %v1108_v24 = vpop.f32.mrb[7].mxu0 }
 0x464   : > { %v4713_v25 = vpack.c.bf16 %v1108_v24, %v1105_v21 }
 0x465   : > { %1855 = vrot.lane.b32.xlu1 %v965_v12, %s4436_s16  ;;  %2502 = vrot.lane.b32.xlu0 %v4685_v2, %s4435_s22 }
 0x469   : > { %2283 = vrot.lane.b32.xlu1 %v4685_v2, %s4434_s20  ;;  %2550 = vrot.lane.b32.xlu0 %v2121_v26, %s4435_s22 }
 0x46d   : > { %2331 = vrot.lane.b32.xlu1 %v2121_v26, %s4434_s20  ;;  %2718 = vrot.lane.b32.xlu0 %v4703_v19, %s4436_s16 }
 0x470   : > { %v1198_v27 = vpop.f32.mrb[8].mxu0 }
 0x471   : > { %v3955_v28 = vpop.f32.mrb[9].mxu0  ;;  %2500 = vrot.lane.b32.xlu1 %v4703_v19, %s4435_s22 }
 0x472   : > { %v1201_v29 = vpop.f32.mrb[10].mxu0 }
 0x473   : > { %v4726_v30 = vpack.c.bf16 %v1201_v29, %v1198_v27  ;;  %v3956_v31 = vpop.f32.mrb[11].mxu0 }
 0x475   : > { %1534 = vrot.lane.b32.xlu0 %v4726_v30, %s4434_s20  ;;  %2720 = vrot.lane.b32.xlu1 %v4685_v2, %s4436_s16  ;;  %v1325_v32 = vsel %vm1323_vm5, %v4726_v30, 0 }
 0x476   : > { %3970 = vmatpush3.bf16.msra.mxu0 %v1325_v32 }
 0x477   : > { %3975 = vmatprep.subr.bf16.mxu0 %v4432_v37 }
 0x479   : > { %1754 = vrot.lane.b32.xlu0 %v4726_v30, %s4435_s22  ;;  %2768 = vrot.lane.b32.xlu1 %v2121_v26, %s4436_s16 }
 0x47d   : > { %1583 = vrot.lane.b32.xlu1 %v4713_v25, %s4434_s20 }
 0x4c7   : > { %v1414_v33 = vpop.permute.xlu1 %1413  ;;  %v1637_v40 = vpop.permute.xlu0 %1636 }
 0x4c8   : > { %3984 = vmatmul.mubr.msk.bf16.vlgmr.msra.gmra.mrb[12].mxu1 %vm1206_vm4, %v1414_v33 }
 0x4c9   : > { %3989 = vmatprep.mubr.msk.bf16.mxu1 %vm4433_vm3, %v4432_v37 }
 0x4cb   : > { %v1466_v34 = vpop.permute.xlu1 %1465  ;;  %v1858_v42 = vpop.permute.xlu0 %1857 }
 0x4cc   : > { %v1468_v35 = vsel %vm1206_vm4, %v1466_v34, 0  ;;  %v1863_v43 = vsel %vm1206_vm4, %v1858_v42, 0 }
 0x4cd   : > { %3988 = vmatpush3.bf16.xpose.msra.mxu1 %v1468_v35 }
 0x4ce   : > { %4005 = vmatprep.subr.bf16.mxu1 %v4432_v37 }
 0x4cf   : > { %v1639_v36 = vpop.permute.xlu1 %1638  ;;  %v1906_v44 = vpop.permute.xlu0 %1905 }
 0x4d0   : > { %v1644_v38 = vsel %vm1206_vm4, %v1639_v36, 0  ;;  %v1908_v46 = vsel %vm1206_vm4, %v1906_v44, 0 }
 0x4d3   : > { %v1687_v39 = vpop.permute.xlu1 %1686  ;;  %v2281_v52 = vpop.permute.xlu0 %2280 }
 0x4d4   : > { %3990 = vmatmul.mubr.msk.bf16.vlgmr.msra.gmra.mrb[16].mxu1 %vm1206_vm4, %v1414_v33  ;;  %v1689_v41 = vsel %vm1206_vm4, %v1687_v39, 0 }
 0x4d5   : > { %4006 = vmatpush3.bf16.xpose.msra.mxu1 %v1644_v38  ;;  %4007 = vmatprep.mubr.msk.bf16.mxu1 %vm4433_vm3, %v4432_v37 }
 0x4d6   : > { %4011 = vmatprep.subr.bf16.mxu1 %v4432_v37 }
 0x4d7   : > { %v1856_v45 = vpop.permute.xlu1 %1855  ;;  %v2503_v54 = vpop.permute.xlu0 %2502 }
 0x4d8   : > { %v2508_v55 = vsel %vm1206_vm4, %v2503_v54, 0 }
 0x4db   : > { %v2284_v49 = vpop.permute.xlu1 %2283  ;;  %v2551_v56 = vpop.permute.xlu0 %2550 }
 0x4dc   : > { %4008 = vmatmul.mubr.msk.bf16.vlgmr.msra.gmra.mrb[20].mxu1 %vm1206_vm4, %v1637_v40  ;;  %v2289_v50 = vsel %vm1206_vm4, %v2284_v49, 0  ;;  %v2553_v58 = vsel %vm1206_vm4, %v2551_v56, 0 }
 0x4dd   : > { %4012 = vmatpush3.bf16.xpose.msra.mxu1 %v1689_v41  ;;  %4013 = vmatprep.mubr.msk.bf16.mxu1 %vm4433_vm3, %v4432_v37 }
 0x4de   : > { %4029 = vmatprep.subr.bf16.mxu1 %v4432_v37 }
 0x4df   : > { %v2332_v51 = vpop.permute.xlu1 %2331  ;;  %v2719_v1 = vpop.permute.xlu0 %2718 }
 0x4e0   : > { %v2334_v53 = vsel %vm1206_vm4, %v2332_v51, 0 }
 0x4e3   : > { %v2501_v57 = vpop.permute.xlu1 %2500 }
 0x4e4   : > { %4014 = vmatmul.mubr.msk.bf16.vlgmr.msra.gmra.mrb[24].mxu1 %vm1206_vm4, %v1637_v40 }
 0x4e5   : > { %4030 = vmatpush3.bf16.xpose.msra.mxu1 %v1863_v43  ;;  %4031 = vmatprep.mubr.msk.bf16.mxu1 %vm4433_vm3, %v4432_v37 }
 0x4e6   : > { %4035 = vmatprep.subr.bf16.mxu1 %v4432_v37 }
 0x4e7   : > { %v2721_v59 = vpop.permute.xlu1 %2720  ;;  %v1535_v27 = vpop.permute.xlu0 %1534 }
 0x4e8   : > { %v2726_v60 = vsel %vm1206_vm4, %v2721_v59, 0 }
 0x4eb   : > { %v2769_v61 = vpop.permute.xlu1 %2768  ;;  %v4838_v35 = vpop.permute.xlu0 %1754 }
 0x4ec   : > { %4032 = vmatmul.mubr.msk.bf16.vlgmr.msra.gmra.mrb[28].mxu1 %vm1206_vm4, %v1856_v45  ;;  %v2771_v3 = vsel %vm1206_vm4, %v2769_v61, 0 }
 0x4ed   : > { %4036 = vmatpush3.bf16.xpose.msra.mxu1 %v1908_v46  ;;  %4037 = vmatprep.mubr.msk.bf16.mxu1 %vm4433_vm3, %v4432_v37 }
 0x4ee   : > { %4053 = vmatprep.subr.bf16.mxu1 %v4432_v37 }
 0x4ef   : > { %v4836_v34 = vpop.permute.xlu1 %1583 }
 0x4f4   : > { %4038 = vmatmul.mubr.msk.bf16.vlgmr.msra.gmra.mrb[32].mxu1 %vm1206_vm4, %v1856_v45 }
 0x4f5   : > { %4054 = vmatpush3.bf16.xpose.msra.mxu1 %v2079_v47  ;;  %4055 = vmatprep.mubr.msk.bf16.mxu1 %vm4433_vm3, %v4432_v37 }
 0x4f6   : > { %4059 = vmatprep.subr.bf16.mxu1 %v4432_v37 }
 0x4fc   : > { %4056 = vmatmul.mubr.msk.bf16.vlgmr.msra.gmra.mrb[36].mxu1 %vm1206_vm4, %v4703_v19 }
 0x4fd   : > { %4060 = vmatpush3.bf16.xpose.msra.mxu1 %v2123_v48  ;;  %4061 = vmatprep.mubr.msk.bf16.mxu1 %vm4433_vm3, %v4432_v37 }
 0x4fe   : > { %4077 = vmatprep.subr.bf16.mxu1 %v4432_v37 }
 0x504   : > { %4062 = vmatmul.mubr.msk.bf16.vlgmr.msra.gmra.mrb[40].mxu1 %vm1206_vm4, %v4703_v19 }
 0x505   : > { %4078 = vmatpush3.bf16.xpose.msra.mxu1 %v2289_v50  ;;  %4079 = vmatprep.mubr.msk.bf16.mxu1 %vm4433_vm3, %v4432_v37 }
 0x506   : > { %4083 = vmatprep.subr.bf16.mxu1 %v4432_v37 }
 0x50c   : > { %4080 = vmatmul.mubr.msk.bf16.vlgmr.msra.gmra.mrb[44].mxu1 %vm1206_vm4, %v2281_v52 }
 0x50d   : > { %4084 = vmatpush3.bf16.xpose.msra.mxu1 %v2334_v53  ;;  %4085 = vmatprep.mubr.msk.bf16.mxu1 %vm4433_vm3, %v4432_v37 }
 0x50e   : > { %4101 = vmatprep.subr.bf16.mxu1 %v4432_v37 }
 0x514   : > { %4086 = vmatmul.mubr.msk.bf16.vlgmr.msra.gmra.mrb[48].mxu1 %vm1206_vm4, %v2281_v52 }
 0x515   : > { %4102 = vmatpush3.bf16.xpose.msra.mxu1 %v2508_v55  ;;  %4103 = vmatprep.mubr.msk.bf16.mxu1 %vm4433_vm3, %v4432_v37 }
 0x516   : > { %4107 = vmatprep.subr.bf16.mxu1 %v4432_v37 }
 0x51c   : > { %4104 = vmatmul.mubr.msk.bf16.vlgmr.msra.gmra.mrb[52].mxu1 %vm1206_vm4, %v2501_v57 }
 0x51d   : > { %4108 = vmatpush3.bf16.xpose.msra.mxu1 %v2553_v58  ;;  %4109 = vmatprep.mubr.msk.bf16.mxu1 %vm4433_vm3, %v4432_v37 }
 0x51e   : > { %4125 = vmatprep.subr.bf16.mxu1 %v4432_v37 }
 0x524   : > { %4110 = vmatmul.mubr.msk.bf16.vlgmr.msra.gmra.mrb[56].mxu1 %vm1206_vm4, %v2501_v57 }
 0x525   : > { %4126 = vmatpush3.bf16.xpose.msra.mxu1 %v2726_v60  ;;  %4127 = vmatprep.mubr.msk.bf16.mxu1 %vm4433_vm3, %v4432_v37 }
 0x526   : > { %4131 = vmatprep.subr.bf16.mxu1 %v4432_v37 }
 0x529   : > { %v4803_v62 = vpop.f32.mrb[12].mxu0 }
 0x52a   : > { %v3961_v63 = vpop.f32.mrb[13].mxu0  ;;  %v1296_v0 = vsel %vm1206_vm4, %v4803_v62, -inf }
 0x52b   : > { %1297 = vmax.xlane.f32.xlu0 %v1296_v0  ;;  %v1250_v2 = vpop.f32.mrb[14].mxu0 }
 0x52c   : > { %v3962_v4 = vpop.f32.mrb[15].mxu0  ;;  %4128 = vmatmul.mubr.msk.bf16.vlgmr.msra.gmra.mrb[60].mxu1 %vm1206_vm4, %v2719_v1 }
 0x52d   : > { %4132 = vmatpush3.bf16.xpose.msra.mxu1 %v2771_v3  ;;  %4133 = vmatprep.mubr.msk.bf16.mxu1 %vm4433_vm3, %v4432_v37 }
 0x52e   : > { %4149 = vmatprep.subr.bf16.mxu1 %v4432_v37 }
 0x531   : > { %v1290_v5 = vpop.f32.mrb[8].mxu1 }
 0x532   : > { %v3967_v6 = vpop.f32.mrb[9].mxu1  ;;  %v1300_v7 = vsel %vm1299_vm6, %v1290_v5, -inf }
 0x533   : > { %v1293_v8 = vpop.f32.mrb[10].mxu1  ;;  %1301 = vmax.xlane.f32.xlu1 %v1300_v7 }
 0x534   : > { %v3968_v9 = vpop.f32.mrb[11].mxu1  ;;  %4134 = vmatmul.mubr.msk.bf16.vlgmr.msra.gmra.mrb[64].mxu1 %vm1206_vm4, %v2719_v1 }
 0x535   : > { %4157 = vmatprep.mubr.msk.bf16.mxu1 %vm4433_vm3, %v4432_v37 }
 0x541   : > { %1802 = vrot.lane.b32.xlu0 %v4713_v25, %s4435_s22 }
 0x544   : > { %1973 = vrot.lane.b32.xlu1 %v4726_v30, %s4436_s16 }
 0x59b   : > { %v4820_v10 = vpop.f32.mrb[12].mxu1 }
 0x59c   : > { %v3985_v11 = vpop.f32.mrb[13].mxu1  ;;  %v1510_v12 = vsel %vm1206_vm4, %v4820_v10, -inf }
 0x59d   : > { %1511 = vmax.xlane.f32.xlu0 %v1510_v12  ;;  %v1461_v13 = vpop.f32.mrb[14].mxu1 }
 0x59e   : > { %v3986_v14 = vpop.f32.mrb[15].mxu1 }
 0x5a7   : > { %v4824_v15 = vpop.f32.mrb[16].mxu1 }
 0x5a8   : > { %v3991_v16 = vpop.f32.mrb[17].mxu1  ;;  %v1513_v17 = vsel %vm1299_vm6, %v4824_v15, -inf }
 0x5a9   : > { %1514 = vmax.xlane.f32.xlu0 %v1513_v17  ;;  %v1507_v18 = vpop.f32.mrb[18].mxu1 }
 0x5aa   : > { %v3992_v19 = vpop.f32.mrb[19].mxu1  ;;  %v4888_v18 = vrot.slane %v4726_v30, 4 }
 0x5af   : > { %v4828_v20 = vpop.f32.mrb[20].mxu1 }
 0x5b0   : > { %v4009_v21 = vpop.f32.mrb[21].mxu1  ;;  %v1731_v22 = vsel %vm1206_vm4, %v4828_v20, -inf }
 0x5b1   : > { %1732 = vmax.xlane.f32.xlu0 %v1731_v22  ;;  %v1683_v24 = vpop.f32.mrb[22].mxu1 }
 0x5b2   : > { %v4010_v26 = vpop.f32.mrb[23].mxu1 }
 0x5b7   : > { %v4832_v28 = vpop.f32.mrb[24].mxu1 }
 0x5b8   : > { %v4015_v29 = vpop.f32.mrb[25].mxu1  ;;  %v1734_v31 = vsel %vm1299_vm6, %v4832_v28, -inf  ;;  %v1298_v36 = vpop.xlane.xlu0 %1297 }
 0x5b9   : > { %1735 = vmax.xlane.f32.xlu1 %v1734_v31  ;;  %v1728_v32 = vpop.f32.mrb[26].mxu1 }
 0x5ba   : > { %v4016_v33 = vpop.f32.mrb[27].mxu1 }
 0x5bf   : > { %v4840_v38 = vpop.f32.mrb[28].mxu1 }
 0x5c0   : > { %v1302_v39 = vpop.xlane.xlu1 %1301  ;;  %v4033_v40 = vpop.f32.mrb[29].mxu1  ;;  %v1950_v41 = vsel %vm1206_vm4, %v4840_v38, -inf }
 0x5c1   : > { %v1303_v42 = vmax.f32 %v1298_v36, %v1302_v39  ;;  %1951 = vmax.xlane.f32.xlu1 %v1950_v41  ;;  %v1902_v43 = vpop.f32.mrb[30].mxu1 }
 0x5c2   : > { %v4034_v44 = vpop.f32.mrb[31].mxu1 }
 0x5c3   : > { %v1307_v45 = vsub.f32 %v1290_v5, %v1303_v42  ;;  %v1304_v51 = vsub.f32 %v4803_v62, %v1303_v42  ;;  %v1540_v5 = vsel %vm1323_vm5, %v1535_v27, 0 }
 0x5c5   : > { %v1308_v46 = vmul.f32 1.442695, %v1307_v45  ;;  %v1305_v53 = vmul.f32 1.442695, %v1304_v51  ;;  %v1803_v45 = vpop.permute.xlu0 %1802 }
 0x5c7   : > { %2021 = vrot.lane.b32.xlu0 %v4713_v25, %s4436_s16  ;;  %v4846_v47 = vpop.f32.mrb[32].mxu1  ;;  %4308 = vpow2.f32 %v1308_v46 }
 0x5c8   : > { %v4039_v48 = vpop.f32.mrb[33].mxu1  ;;  %v1953_v49 = vsel %vm1299_vm6, %v4846_v47, -inf  ;;  %4310 = vpow2.f32 %v1305_v53  ;;  %v1974_v53 = vpop.permute.xlu1 %1973 }
 0x5c9   : > { %1954 = vmax.xlane.f32.xlu1 %v1953_v49  ;;  %v1947_v50 = vpop.f32.mrb[34].mxu1 }
 0x5ca   : > { %v4040_v52 = vpop.f32.mrb[35].mxu1 }
 0x5cf   : > { %v4851_v54 = vpop.f32.mrb[36].mxu1 }
 0x5d0   : > { %v4057_v55 = vpop.f32.mrb[37].mxu1  ;;  %v2165_v56 = vsel %vm1206_vm4, %v4851_v54, -inf }
 0x5d1   : > { %2166 = vmax.xlane.f32.xlu1 %v2165_v56  ;;  %v2118_v57 = vpop.f32.mrb[38].mxu1  ;;  %v4855_v58 = vpop.eup %4308 }
 0x5d2   : > { %v4058_v59 = vpop.f32.mrb[39].mxu1  ;;  %v1319_v60 = vpack.c.bf16 %v4855_v58, %v4855_v58  ;;  %v4866_v1 = vpop.eup %4310 }
 0x5d3   : > { %v1318_v2 = vpack.c.bf16 %v4866_v1, %v4866_v1 }
 0x5d4   : > { %3972 = vmatmul.mubr.msk.bf16.vlgmr.msra.gmra.mrb[16].mxu0 %vm1299_vm6, %v1319_v60 }
 0x5d5   : > { %3976 = vmatpush3.bf16.msra.mxu0 %v4713_v25  ;;  %3977 = vmatprep.mubr.msk.bf16.mxu0 %vm4433_vm3, %v4432_v37 }
 0x5d6   : > { %3993 = vmatprep.subr.bf16.mxu0 %v4432_v37 }
 0x5d7   : > { %v4863_v61 = vpop.f32.mrb[40].mxu1 }
 0x5d8   : > { %v4063_v62 = vpop.f32.mrb[41].mxu1  ;;  %v2168_v8 = vsel %vm1299_vm6, %v4863_v61, -inf }
 0x5d9   : > { %v2162_v63 = vpop.f32.mrb[42].mxu1 }
 0x5da   : > { %v4064_v0 = vpop.f32.mrb[43].mxu1 }
 0x5df   : > { %v4870_v3 = vpop.f32.mrb[44].mxu1 }
 0x5e0   : > { %v4081_v4 = vpop.f32.mrb[45].mxu1  ;;  %v2376_v25 = vsel %vm1206_vm4, %v4870_v3, -inf  ;;  %3978 = vmatmul.mubr.msk.bf16.vlgmr.msra.gmra.mrb[16].mxu0 %vm1206_vm4, %v1318_v2 }
 0x5e1   : > { %2377 = vmax.xlane.f32.xlu1 %v2376_v25  ;;  %v2328_v6 = vpop.f32.mrb[46].mxu1  ;;  %3994 = vmatpush3.bf16.msra.mxu0 %v1540_v5 }
 0x5e2   : > { %v4082_v7 = vpop.f32.mrb[47].mxu1  ;;  %3995 = vmatprep.mubr.msk.bf16.mxu0 %vm4433_vm3, %v4432_v37  ;;  %3999 = vmatprep.subr.bf16.mxu0 %v4432_v37  ;;  %v1760_v6 = vsel %vm1323_vm5, %v4838_v35, 0 }
 0x5e6   : > { %2169 = vmax.xlane.f32.xlu0 %v2168_v8 }
 0x5e7   : > { %v4881_v9 = vpop.f32.mrb[48].mxu1 }
 0x5e8   : > { %v4087_v11 = vpop.f32.mrb[49].mxu1  ;;  %v2379_v12 = vsel %vm1299_vm6, %v4881_v9, -inf }
 0x5e9   : > { %v2373_v13 = vpop.f32.mrb[50].mxu1 }
 0x5ea   : > { %2380 = vmax.xlane.f32.xlu0 %v2379_v12  ;;  %v4088_v14 = vpop.f32.mrb[51].mxu1 }
 0x5ef   : > { %v4885_v16 = vpop.f32.mrb[52].mxu1 }
 0x5f0   : > { %v4105_v17 = vpop.f32.mrb[53].mxu1  ;;  %v2595_v41 = vsel %vm1206_vm4, %v4885_v16, -inf }
 0x5f1   : > { %v2547_v19 = vpop.f32.mrb[54].mxu1 }
 0x5f2   : > { %2399 = vrot.lane.b32.xlu1 %v4888_v18, %s4434_s20  ;;  %v4106_v21 = vpop.f32.mrb[55].mxu1 }
 0x5f7   : > { %v4892_v22 = vpop.f32.mrb[56].mxu1 }
 0x5f8   : > { %v4111_v24 = vpop.f32.mrb[57].mxu1  ;;  %v2598_v42 = vsel %vm1299_vm6, %v4892_v22, -inf }
 0x5f9   : > { %v2592_v26 = vpop.f32.mrb[58].mxu1 }
 0x5fa   : > { %v4112_v27 = vpop.f32.mrb[59].mxu1 }
 0x5fb   : > { %v1979_v27 = vsel %vm1323_vm5, %v1974_v53, 0 }
 0x5ff   : > { %v4894_v29 = vpop.f32.mrb[60].mxu1 }
 0x600   : > { %2448 = vrot.lane.b32.xlu0 %v4711_v23, %s4434_s20  ;;  %v4129_v31 = vpop.f32.mrb[61].mxu1  ;;  %v2813_v44 = vsel %vm1206_vm4, %v4894_v29, -inf }
 0x601   : > { %v2765_v32 = vpop.f32.mrb[62].mxu1 }
 0x602   : > { %v4130_v33 = vpop.f32.mrb[63].mxu1 }
 0x607   : > { %v4898_v30 = vpop.f32.mrb[64].mxu1 }
 0x608   : > { %v4135_v36 = vpop.f32.mrb[65].mxu1  ;;  %v2816_v43 = vsel %vm1299_vm6, %v4898_v30, -inf }
 0x609   : > { %v2810_v39 = vpop.f32.mrb[66].mxu1 }
 0x60a   : > { %v4136_v40 = vpop.f32.mrb[67].mxu1 }
 0x616   : > { %2596 = vmax.xlane.f32.xlu1 %v2595_v41 }
 0x61a   : > { %2599 = vmax.xlane.f32.xlu1 %v2598_v42 }
 0x61e   : > { %2817 = vmax.xlane.f32.xlu1 %v2816_v43 }
 0x61f   : > { %2814 = vmax.xlane.f32.xlu0 %v2813_v44 }
 0x62a   : > { %v1512_v46 = vpop.xlane.xlu0 %1511 }
 0x62f   : > { %2618 = vrot.lane.b32.xlu1 %v4888_v18, %s4435_s22 }
 0x633   : > { %2884 = vrot.lane.b32.xlu1 %v4711_v23, %s4436_s16 }
 0x635   : > { %2666 = vrot.lane.b32.xlu0 %v4711_v23, %s4435_s22  ;;  %s5180_s22 = sld [smem:[#allocation14_spill]] (!%p3740_p6) }
 0x636   : > { %v1515_v48 = vpop.xlane.xlu0 %1514 }
 0x637   : > { %v1516_v49 = vmax.f32 %v1512_v46, %v1515_v48 }
 0x639   : > { %v1520_v50 = vsub.f32 %v4824_v15, %v1516_v49  ;;  %2836 = vrot.lane.b32.xlu0 %v4888_v18, %s4436_s16  ;;  %v1517_v52 = vsub.f32 %v4820_v10, %v1516_v49 }
 0x63b   : > { %v1521_v51 = vmul.f32 1.442695, %v1520_v50  ;;  %v1518_v55 = vmul.f32 1.442695, %v1517_v52 }
 0x63d   : > { %4312 = vpow2.f32 %v1521_v51 }
 0x63e   : > { %v1733_v56 = vpop.xlane.xlu0 %1732  ;;  %4314 = vpow2.f32 %v1518_v55 }
 0x642   : > { %v2022_v31 = vpop.permute.xlu0 %2021 }
 0x646   : > { %v1736_v57 = vpop.xlane.xlu1 %1735 }
 0x647   : > { %v1737_v59 = vmax.f32 %v1733_v56, %v1736_v57  ;;  %v4313_v60 = vpop.eup %4312 }
 0x648   : > { %v1532_v0 = vpack.c.bf16 %v4313_v60, %v4313_v60  ;;  %v4315_v10 = vpop.eup %4314 }
 0x649   : > { %v1738_v62 = vsub.f32 %v4828_v20, %v1737_v59  ;;  %v1741_v63 = vsub.f32 %v4832_v28, %v1737_v59  ;;  %v1531_v25 = vpack.c.bf16 %v4315_v10, %v4315_v10  ;;  %v1526_v28 = vsel %vm1299_vm6, %v4313_v60, 0.0 }
 0x64a   : > { %3996 = vmatmul.mubr.msk.bf16.vlgmr.msra.gmra.mrb[20].mxu0 %vm1299_vm6, %v1532_v0 }
 0x64b   : > { %v1739_v15 = vmul.f32 1.442695, %v1738_v62  ;;  %v1742_v2 = vmul.f32 1.442695, %v1741_v63  ;;  %4000 = vmatpush3.bf16.msra.mxu0 %v4836_v34  ;;  %4001 = vmatprep.mubr.msk.bf16.mxu0 %vm4433_vm3, %v4432_v37  ;;  %v1523_v34 = vsel %vm1206_vm4, %v4315_v10, 0.0 }
 0x64c   : > { %4017 = vmatprep.subr.bf16.mxu0 %v4432_v37 }
 0x64d   : > { %4316 = vpow2.f32 %v1739_v15 }
 0x64e   : > { %4318 = vpow2.f32 %v1742_v2  ;;  %v1952_v4 = vpop.xlane.xlu1 %1951 }
 0x656   : > { %v1955_v20 = vpop.xlane.xlu1 %1954  ;;  %4002 = vmatmul.mubr.msk.bf16.vlgmr.msra.gmra.mrb[20].mxu0 %vm1206_vm4, %v1531_v25 }
 0x657   : > { %v4317_v5 = vpop.eup %4316  ;;  %v1956_v7 = vmax.f32 %v1952_v4, %v1955_v20  ;;  %1527 = vadd.xlane.f32.xlu1 %v1526_v28  ;;  %4018 = vmatpush3.bf16.msra.mxu0 %v1760_v6 }
 0x658   : > { %v4319_v8 = vpop.eup %4318  ;;  %1524 = vadd.xlane.f32.xlu0 %v1523_v34  ;;  %4019 = vmatprep.mubr.msk.bf16.mxu0 %vm4433_vm3, %v4432_v37  ;;  %v1744_v17 = vsel %vm1206_vm4, %v4317_v5, 0.0  ;;  %v1752_v26 = vpack.c.bf16 %v4317_v5, %v4317_v5 }
 0x659   : > { %v1957_v11 = vsub.f32 %v4840_v38, %v1956_v7  ;;  %v1960_v12 = vsub.f32 %v4846_v47, %v1956_v7  ;;  %4023 = vmatprep.subr.bf16.mxu0 %v4432_v37  ;;  %v1747_v35 = vsel %vm1299_vm6, %v4319_v8, 0.0  ;;  %v1753_v19 = vpack.c.bf16 %v4319_v8, %v4319_v8 }
 0x65b   : > { %v1958_v13 = vmul.f32 1.442695, %v1957_v11  ;;  %v1961_v14 = vmul.f32 1.442695, %v1960_v12  ;;  %1748 = vadd.xlane.f32.xlu1 %v1747_v35 }
 0x65c   : > { %1745 = vadd.xlane.f32.xlu0 %v1744_v17 }
 0x65d   : > { %4320 = vpow2.f32 %v1958_v13 }
 0x65e   : > { %4322 = vpow2.f32 %v1961_v14  ;;  %4020 = vmatmul.mubr.msk.bf16.vlgmr.msra.gmra.mrb[24].mxu0 %vm1299_vm6, %v1753_v19  ;;  %v2167_v33 = vpop.xlane.xlu1 %2166 }
 0x65f   : > { %4024 = vmatpush3.bf16.msra.mxu0 %v1803_v45  ;;  %4025 = vmatprep.mubr.msk.bf16.mxu0 %vm4433_vm3, %v4432_v37 }
 0x660   : > { %4041 = vmatprep.subr.bf16.mxu0 %v4432_v37 }
 0x667   : > { %v4321_v38 = vpop.eup %4320 }
 0x668   : > { %v4323_v47 = vpop.eup %4322  ;;  %v1963_v21 = vsel %vm1206_vm4, %v4321_v38, 0.0  ;;  %v1971_v51 = vpack.c.bf16 %v4321_v38, %v4321_v38 }
 0x669   : > { %v1966_v24 = vsel %vm1299_vm6, %v4323_v47, 0.0  ;;  %1964 = vadd.xlane.f32.xlu0 %v1963_v21  ;;  %v1972_v32 = vpack.c.bf16 %v4323_v47, %v4323_v47 }
 0x66a   : > { %1967 = vadd.xlane.f32.xlu1 %v1966_v24  ;;  %4026 = vmatmul.mubr.msk.bf16.vlgmr.msra.gmra.mrb[24].mxu0 %vm1206_vm4, %v1752_v26 }
 0x66b   : > { %4042 = vmatpush3.bf16.msra.mxu0 %v1979_v27  ;;  %4043 = vmatprep.mubr.msk.bf16.mxu0 %vm4433_vm3, %v4432_v37 }
 0x66c   : > { %4047 = vmatprep.subr.bf16.mxu0 %v4432_v37 }
 0x66e   : > { %v2378_v41 = vpop.xlane.xlu1 %2377 }
 0x672   : > { %4044 = vmatmul.mubr.msk.bf16.vlgmr.msra.gmra.mrb[28].mxu0 %vm1299_vm6, %v1972_v32  ;;  %v2400_v57 = vpop.permute.xlu1 %2399  ;;  %v1313_v32 = vsel %vm1299_vm6, %v4855_v58, 0.0 }
 0x673   : > { %v2170_v36 = vpop.xlane.xlu0 %2169  ;;  %4048 = vmatpush3.bf16.msra.mxu0 %v2022_v31  ;;  %4049 = vmatprep.mubr.msk.bf16.mxu0 %vm4433_vm3, %v4432_v37  ;;  %v1310_v31 = vsel %vm1206_vm4, %v4866_v1, 0.0 }
 0x674   : > { %v2171_v39 = vmax.f32 %v2167_v33, %v2170_v36  ;;  %4065 = vmatprep.subr.bf16.mxu0 %v4432_v37 }
 0x676   : > { %v2175_v40 = vsub.f32 %v4863_v61, %v2171_v39  ;;  %v2172_v50 = vsub.f32 %v4851_v54, %v2171_v39  ;;  %v2193_v61 = vsel %vm1323_vm5, %v4888_v18, 0 }
 0x677   : > { %v2381_v42 = vpop.xlane.xlu0 %2380 }
 0x678   : > { %v2176_v43 = vmul.f32 1.442695, %v2175_v40  ;;  %v2382_v44 = vmax.f32 %v2378_v41, %v2381_v42 }
 0x67a   : > { %v2383_v45 = vsub.f32 %v4870_v3, %v2382_v44  ;;  %v2386_v46 = vsub.f32 %v4881_v9, %v2382_v44  ;;  %4324 = vpow2.f32 %v2176_v43  ;;  %v2173_v3 = vmul.f32 1.442695, %v2172_v50 }
 0x67b   : > { %v2449_v62 = vpop.permute.xlu0 %2448 }
 0x67c   : > { %v2384_v48 = vmul.f32 1.442695, %v2383_v45  ;;  %v2387_v49 = vmul.f32 1.442695, %v2386_v46 }
 0x67e   : > { %4326 = vpow2.f32 %v2384_v48  ;;  %4050 = vmatmul.mubr.msk.bf16.vlgmr.msra.gmra.mrb[28].mxu0 %vm1206_vm4, %v1971_v51 }
 0x67f   : > { %4328 = vpow2.f32 %v2387_v49  ;;  %4066 = vmatpush3.bf16.msra.mxu0 %v2193_v61  ;;  %4067 = vmatprep.mubr.msk.bf16.mxu0 %vm4433_vm3, %v4432_v37 }
 0x680   : > { %4071 = vmatprep.subr.bf16.mxu0 %v4432_v37  ;;  %4330 = vpow2.f32 %v2173_v3 }
 0x684   : > { %v4962_v9 = vpop.eup %4324 }
 0x685   : > { %v2187_v54 = vpack.c.bf16 %v4962_v9, %v4962_v9  ;;  %v2181_v40 = vsel %vm1299_vm6, %v4962_v9, 0.0 }
 0x687   : > { %4068 = vmatmul.mubr.msk.bf16.vlgmr.msra.gmra.mrb[32].mxu0 %vm1299_vm6, %v2187_v54 }
 0x688   : > { %v4327_v52 = vpop.eup %4326  ;;  %4072 = vmatpush3.bf16.msra.mxu0 %v4711_v23  ;;  %4073 = vmatprep.mubr.msk.bf16.mxu0 %vm4433_vm3, %v4432_v37  ;;  %v2405_v23 = vsel %vm1323_vm5, %v2400_v57, 0 }
 0x689   : > { %v2389_v18 = vsel %vm1206_vm4, %v4327_v52, 0.0  ;;  %v4329_v53 = vpop.eup %4328  ;;  %4089 = vmatprep.subr.bf16.mxu0 %v4432_v37  ;;  %v2397_v0 = vpack.c.bf16 %v4327_v52, %v4327_v52 }
 0x68a   : > { %2390 = vadd.xlane.f32.xlu0 %v2389_v18  ;;  %v2392_v55 = vsel %vm1299_vm6, %v4329_v53, 0.0  ;;  %v4973_v56 = vpop.eup %4330  ;;  %v2398_v60 = vpack.c.bf16 %v4329_v53, %v4329_v53 }
 0x68b   : > { %v2186_v59 = vpack.c.bf16 %v4973_v56, %v4973_v56  ;;  %v2178_v36 = vsel %vm1206_vm4, %v4973_v56, 0.0 }
 0x68e   : > { %2393 = vadd.xlane.f32.xlu0 %v2392_v55 }
 0x693   : > { %4074 = vmatmul.mubr.msk.bf16.vlgmr.msra.gmra.mrb[32].mxu0 %vm1206_vm4, %v2186_v59 }
 0x694   : > { %4090 = vmatpush3.bf16.msra.mxu0 %v2405_v23  ;;  %4091 = vmatprep.mubr.msk.bf16.mxu0 %vm4433_vm3, %v4432_v37 }
 0x695   : > { %4095 = vmatprep.subr.bf16.mxu0 %v4432_v37 }
 0x69b   : > { %4092 = vmatmul.mubr.msk.bf16.vlgmr.msra.gmra.mrb[36].mxu0 %vm1299_vm6, %v2398_v60 }
 0x69c   : > { %4096 = vmatpush3.bf16.msra.mxu0 %v2449_v62  ;;  %4097 = vmatprep.mubr.msk.bf16.mxu0 %vm4433_vm3, %v4432_v37 }
 0x69d   : > { %4113 = vmatprep.subr.bf16.mxu0 %v4432_v37 }
 0x6a3   : > { %v2597_v63 = vpop.xlane.xlu1 %2596 }
 0x6a7   : > { %v2600_v15 = vpop.xlane.xlu1 %2599  ;;  %4098 = vmatmul.mubr.msk.bf16.vlgmr.msra.gmra.mrb[36].mxu0 %vm1206_vm4, %v2397_v0 }
 0x6a8   : > { %v2601_v2 = vmax.f32 %v2597_v63, %v2600_v15  ;;  %4115 = vmatprep.mubr.msk.bf16.mxu0 %vm4433_vm3, %v4432_v37 }
 0x6aa   : > { %v2602_v10 = vsub.f32 %v4885_v16, %v2601_v2  ;;  %v2605_v4 = vsub.f32 %v4892_v22, %v2601_v2 }
 0x6ab   : > { %v2818_v25 = vpop.xlane.xlu1 %2817 }
 0x6ac   : > { %v2603_v20 = vmul.f32 1.442695, %v2602_v10  ;;  %v2606_v28 = vmul.f32 1.442695, %v2605_v4  ;;  %v2815_v5 = vpop.xlane.xlu0 %2814 }
 0x6ad   : > { %v2819_v6 = vmax.f32 %v2815_v5, %v2818_v25 }
 0x6ae   : > { %4332 = vpow2.f32 %v2603_v20 }
 0x6af   : > { %4334 = vpow2.f32 %v2606_v28  ;;  %v2820_v7 = vsub.f32 %v4894_v29, %v2819_v6  ;;  %v2823_v34 = vsub.f32 %v4898_v30, %v2819_v6  ;;  %v2619_v8 = vpop.permute.xlu1 %2618 }
 0x6b0   : > { %v2624_v11 = vsel %vm1323_vm5, %v2619_v8, 0  ;;  %v2667_v47 = vpop.permute.xlu0 %2666 }
 0x6b1   : > { %v2821_v12 = vmul.f32 1.442695, %v2820_v7  ;;  %v2824_v35 = vmul.f32 1.442695, %v2823_v34  ;;  %4114 = vmatpush3.bf16.msra.mxu0 %v2624_v11 }
 0x6b2   : > { %4119 = vmatprep.subr.bf16.mxu0 %v4432_v37 }
 0x6b3   : > { %4336 = vpow2.f32 %v2821_v12  ;;  %v4995_v16 = vpop.f32.mrb[16].mxu0  ;;  %v2885_v1 = vpop.permute.xlu1 %2884 }
 0x6b4   : > { %4338 = vpow2.f32 %v2824_v35  ;;  %v3979_v22 = vpop.f32.mrb[17].mxu0  ;;  %v2837_v33 = vpop.permute.xlu0 %2836 }
 0x6b5   : > { %v1407_v13 = vpop.f32.mrb[18].mxu0  ;;  %v2842_v41 = vsel %vm1323_vm5, %v2837_v33, 0 }
 0x6b6   : > { %v3980_v14 = vpop.f32.mrb[19].mxu0 }
 0x6b8   : > { %v4333_v17 = vpop.eup %4332 }
 0x6b9   : > { %v4335_v19 = vpop.eup %4334  ;;  %v2608_v29 = vsel %vm1206_vm4, %v4333_v17, 0.0  ;;  %v2616_v39 = vpack.c.bf16 %v4333_v17, %v4333_v17 }
 0x6ba   : > { %v2611_v30 = vsel %vm1299_vm6, %v4335_v19, 0.0  ;;  %2609 = vadd.xlane.f32.xlu0 %v2608_v29  ;;  %v2617_v38 = vpack.c.bf16 %v4335_v19, %v4335_v19 }
 0x6bb   : > { %2612 = vadd.xlane.f32.xlu1 %v2611_v30 }
 0x6bc   : > { %4116 = vmatmul.mubr.msk.bf16.vlgmr.msra.gmra.mrb[40].mxu0 %vm1299_vm6, %v2617_v38 }
 0x6bd   : > { %v4337_v21 = vpop.eup %4336  ;;  %4120 = vmatpush3.bf16.msra.mxu0 %v2667_v47  ;;  %4121 = vmatprep.mubr.msk.bf16.mxu0 %vm4433_vm3, %v4432_v37 }
 0x6be   : > { %v4339_v24 = vpop.eup %4338  ;;  %v2826_v26 = vsel %vm1206_vm4, %v4337_v21, 0.0  ;;  %4137 = vmatprep.subr.bf16.mxu0 %v4432_v37  ;;  %v2834_v42 = vpack.c.bf16 %v4337_v21, %v4337_v21 }
 0x6bf   : > { %v2829_v27 = vsel %vm1299_vm6, %v4339_v24, 0.0  ;;  %2827 = vadd.xlane.f32.xlu0 %v2826_v26  ;;  %v2835_v58 = vpack.c.bf16 %v4339_v24, %v4339_v24 }
 0x6c0   : > { %2830 = vadd.xlane.f32.xlu1 %v2829_v27 }
 0x6c3   : > { %1311 = vadd.xlane.f32.xlu0 %v1310_v31 }
 0x6c4   : > { %1314 = vadd.xlane.f32.xlu1 %v1313_v32 }
 0x6c7   : > { %2179 = vadd.xlane.f32.xlu0 %v2178_v36  ;;  %v4272_v36 = vld [vmem:[%s4572_s24] sm:$0xff]  }
 0x6c8   : > { %2182 = vadd.xlane.f32.xlu1 %v2181_v40  ;;  %4122 = vmatmul.mubr.msk.bf16.vlgmr.msra.gmra.mrb[40].mxu0 %vm1206_vm4, %v2616_v39  ;;  %v4273_v39 = vld [vmem:[%s4572_s24 + $0x8] sm:$0xff]  }
 0x6c9   : > { %4138 = vmatpush3.bf16.msra.mxu0 %v2842_v41  ;;  %4139 = vmatprep.mubr.msk.bf16.mxu0 %vm4433_vm3, %v4432_v37 }
 0x6ca   : > { %4143 = vmatprep.subr.bf16.mxu0 %v4432_v37  ;;  %4150 = vmatpush3.bf16.msra.mxu1 %v4272_v36 }
 0x6cb   : > { %4151 = vmatprep.subr.bf16.mxu1 %v4432_v37 }
 0x6ce   : > { %4152 = vmatpush3.bf16.msra.mxu1 %v4273_v39 }
 0x6cf   : > { %4153 = vmatprep.subr.bf16.mxu1 %v4432_v37 }
 0x6d0   : > { %4140 = vmatmul.mubr.msk.bf16.vlgmr.msra.gmra.mrb[44].mxu0 %vm1299_vm6, %v2835_v58 }
 0x6d1   : > { %4144 = vmatpush3.bf16.msra.mxu0 %v2885_v1  ;;  %4145 = vmatprep.mubr.msk.bf16.mxu0 %vm4433_vm3, %v4432_v37 }
 0x6dc   : > { %4146 = vmatmul.mubr.msk.bf16.vlgmr.msra.gmra.mrb[44].mxu0 %vm1206_vm4, %v2834_v42 }
 0x6e4   : > { %v1528_v43 = vpop.xlane.xlu1 %1527 }
 0x6e5   : > { %v1525_v44 = vpop.xlane.xlu0 %1524 }
 0x6e6   : > { %v1529_v45 = vadd.f32 %v1528_v43, %v1525_v44 }
 0x6e8   : > { %4340 = vrcp.f32 %v1529_v45  ;;  %v1749_v51 = vpop.xlane.xlu1 %1748  ;;  %v4274_v45 = vld [vmem:[%s4572_s24 + $0x10] sm:$0xff]  }
 0x6e9   : > { %v1746_v3 = vpop.xlane.xlu0 %1745  ;;  %4154 = vmatpush3.bf16.msra.mxu1 %v4274_v45 }
 0x6ea   : > { %v1750_v54 = vadd.f32 %v1749_v51, %v1746_v3  ;;  %4155 = vmatprep.subr.bf16.mxu1 %v4432_v37 }
 0x6ec   : > { %4342 = vrcp.f32 %v1750_v54 }
 0x6f2   : > { %v4341_v46 = vpop.eup %4340 }
 0x6f6   : > { %v1965_v52 = vpop.xlane.xlu0 %1964  ;;  %v4343_v53 = vpop.eup %4342 }
 0x6f7   : > { %v1968_v23 = vpop.xlane.xlu1 %1967 }
 0x6f8   : > { %v1969_v63 = vadd.f32 %v1968_v23, %v1965_v52 }
 0x6fa   : > { %4344 = vrcp.f32 %v1969_v63  ;;  %v4369_v63 = vld [vmem:[#allocation3 + $0x8] sm:$0xff] }
 0x704   : > { %v4345_v5 = vpop.eup %4344 }
 0x717   : > { %v2391_v18 = vpop.xlane.xlu0 %2390 }
 0x71b   : > { %v2394_v62 = vpop.xlane.xlu0 %2393 }
 0x71c   : > { %v2395_v24 = vadd.f32 %v2394_v62, %v2391_v18 }
 0x729   : > { %v1623_v48 = vpop.f32.mrb[20].mxu0 }
 0x72a   : > { %v1629_v49 = vmul.f32 %v4341_v46, %v1623_v48  ;;  %v4003_v50 = vpop.f32.mrb[21].mxu0  ;;  %v4275_v46 = vld [vmem:[%s4572_s24 + $0x18] sm:$0xff]  }
 0x72b   : > { %v1626_v61 = vpop.f32.mrb[22].mxu0  ;;  %4156 = vmatpush3.bf16.msra.mxu1 %v4275_v46 }
 0x72c   : > { %v4004_v9 = vpop.f32.mrb[23].mxu0  ;;  %1631 = vrot.lane.b32.xlu0 %v1629_v49, %s4437_s26 }
 0x73d   : > { %v1842_v55 = vpop.f32.mrb[24].mxu0 }
 0x73e   : > { %v1848_v56 = vmul.f32 %v4343_v53, %v1842_v55  ;;  %v4027_v57 = vpop.f32.mrb[25].mxu0 }
 0x73f   : > { %v1845_v59 = vpop.f32.mrb[26].mxu0 }
 0x740   : > { %v4028_v60 = vpop.f32.mrb[27].mxu0  ;;  %1850 = vrot.lane.b32.xlu1 %v1848_v56, %s4438_s4  ;;  %v4368_v59 = vld [vmem:[#allocation3] sm:$0xff] }
 0x747   : > { %v2610_v0 = vpop.xlane.xlu0 %2609 }
 0x748   : > { %v2613_v15 = vpop.xlane.xlu1 %2612 }
 0x749   : > { %v2614_v2 = vadd.f32 %v2613_v15, %v2610_v0 }
 0x74c   : > { %v2828_v10 = vpop.xlane.xlu0 %2827 }
 0x74d   : > { %v2831_v4 = vpop.xlane.xlu1 %2830 }
 0x74e   : > { %v2832_v25 = vadd.f32 %v2831_v4, %v2828_v10 }
 0x750   : > { %v1312_v20 = vpop.xlane.xlu0 %1311 }
 0x751   : > { %v1315_v28 = vpop.xlane.xlu1 %1314  ;;  %v2061_v7 = vpop.f32.mrb[28].mxu0 }
 0x752   : > { %v1316_v6 = vadd.f32 %v1315_v28, %v1312_v20  ;;  %v2067_v34 = vmul.f32 %v4345_v5, %v2061_v7  ;;  %v4051_v8 = vpop.f32.mrb[29].mxu0 }
 0x753   : > { %v2064_v11 = vpop.f32.mrb[30].mxu0 }
 0x754   : > { %4346 = vrcp.f32 %v1316_v6  ;;  %v4052_v12 = vpop.f32.mrb[31].mxu0  ;;  %2069 = vrot.lane.b32.xlu0 %v2067_v34, %s4439_s27  ;;  %v2180_v22 = vpop.xlane.xlu0 %2179 }
 0x755   : > { %v2183_v35 = vpop.xlane.xlu1 %2182  ;;  %v4278_v12 = vld [vmem:[%s4577_s30 + $0x4] ss:$8 sps:$4 sm:$0xff]  }
 0x756   : > { %v2184_v13 = vadd.f32 %v2183_v35, %v2180_v22  ;;  %v4276_v35 = vld [vmem:[%s4577_s30] ss:$8 sps:$4 sm:$0xff]   ;;  %3107 = vmatprep.subr.bf16.mxu0 %v4278_v12  ;;  %v4281_v22 = vld [vmem:[%s4577_s30 + $0x14] ss:$8 sps:$4 sm:$0xff]  }
 0x757   : > { %3108 = vmatpush1.bf16.msra.mxu0 %v4276_v35 }
 0x758   : > { %4348 = vrcp.f32 %v2184_v13  ;;  %v4279_v13 = vld [vmem:[%s4577_s30 + $0x10] ss:$8 sps:$4 sm:$0xff]   ;;  %3109 = vmatprep.subr.bf16.mxu0 %v4281_v22 }
 0x759   : > { %4350 = vrcp.f32 %v2395_v24  ;;  %v4291_v24 = vld [vmem:[%s4582_s5 + $0x8] sm:$0xff]  }
 0x75a   : > { %4352 = vrcp.f32 %v2614_v2 }
 0x75b   : > { %4354 = vrcp.f32 %v2832_v25  ;;  %3110 = vmatpush1.bf16.msra.mxu0 %v4279_v13 }
 0x75e   : > { %v4347_v14 = vpop.eup %4346 }
 0x75f   : > { %v1410_v17 = vmul.f32 %v4347_v14, %v4995_v16  ;;  %v4284_v14 = vld [vmem:[%s4577_s30 + $0x24] ss:$8 sps:$4 sm:$0xff]  }
 0x760   : > { %3111 = vmatprep.subr.bf16.mxu0 %v4284_v14 }
 0x761   : > { %1411 = vst.msk [vmem:[#allocation4] sm:$0xff] %vm1206_vm4, %v1410_v17  ;;  %v4282_v17 = vld [vmem:[%s4577_s30 + $0x20] ss:$8 sps:$4 sm:$0xff]  }
 0x762   : > { %v4349_v19 = vpop.eup %4348  ;;  %3112 = vmatpush1.bf16.msra.mxu0 %v4282_v17 }
 0x763   : > { %v4351_v26 = vpop.eup %4350 }
 0x764   : > { %v4353_v40 = vpop.eup %4352 }
 0x765   : > { %v4355_v48 = vpop.eup %4354 }
 0x766   : > { %v2272_v29 = vpop.f32.mrb[32].mxu0 }
 0x767   : > { %v2278_v30 = vmul.f32 %v4349_v19, %v2272_v29  ;;  %v4075_v38 = vpop.f32.mrb[33].mxu0  ;;  %v4287_v19 = vld [vmem:[%s4577_s30 + $0x34] ss:$8 sps:$4 sm:$0xff]   ;;  %v4285_v29 = vld [vmem:[%s4577_s30 + $0x30] ss:$8 sps:$4 sm:$0xff]  }
 0x768   : > { %v2275_v47 = vpop.f32.mrb[34].mxu0  ;;  %3113 = vmatprep.subr.bf16.mxu0 %v4287_v19  ;;  %v4288_v38 = vld [vmem:[%s4582_s5 + $0x40] sm:$0xff]  }
 0x769   : > { %2279 = vst.msk [vmem:[#allocation4 + $0x8] sm:$0xff] %vm1206_vm4, %v2278_v30  ;;  %v4076_v21 = vpop.f32.mrb[35].mxu0  ;;  %v4440_v30 = vmov 0   ;;  %3114 = vmatpush1.bf16.msra.mxu0 %v4285_v29  ;;  %v4289_v47 = vld [vmem:[%s4582_s5] sm:$0xff]   ;;  %3860 = vmatprep.subr.bf16.mxu1 %v4288_v38 }
 0x76a   : > { %3139 = vmatprep.mubr.bf16.mxu0 %v4440_v30  ;;  %v4290_v21 = vld [vmem:[%s4582_s5 + $0x48] sm:$0xff]  }
 0x77a   : > { %v2488_v27 = vpop.f32.mrb[36].mxu0 }
 0x77b   : > { %v2494_v31 = vmul.f32 %v4351_v26, %v2488_v27  ;;  %v4099_v32 = vpop.f32.mrb[37].mxu0 }
 0x77c   : > { %v2491_v33 = vpop.f32.mrb[38].mxu0 }
 0x77d   : > { %v4100_v16 = vpop.f32.mrb[39].mxu0  ;;  %2496 = vrot.lane.b32.xlu1 %v2494_v31, %s4437_s26 }
 0x79b   : > { %v2706_v41 = vpop.f32.mrb[40].mxu0 }
 0x79c   : > { %v2712_v58 = vmul.f32 %v4353_v40, %v2706_v41  ;;  %v4123_v1 = vpop.f32.mrb[41].mxu0  ;;  %v3713_v40 = vld [vmem:[%s4552_s28 + $0x4] ss:$0 sm:$0xff] }
 0x79d   : > { %v2709_v42 = vpop.f32.mrb[42].mxu0 }
 0x79e   : > { %v4124_v43 = vpop.f32.mrb[43].mxu0  ;;  %2714 = vrot.lane.b32.xlu1 %v2712_v58, %s4438_s4  ;;  %v1632_v44 = vpop.permute.xlu0 %1631  ;;  %v3714_v42 = vld [vmem:[%s4552_s28 + $0x5] ss:$0 sm:$0xff] }
 0x79f   : > { %1635 = vst.msk [vmem:[#allocation4] sm:$0xff] %vm1634_vm7, %v1632_v44 }
 0x7af   : > { %v2924_v49 = vpop.f32.mrb[44].mxu0 }
 0x7b0   : > { %v2930_v50 = vmul.f32 %v4355_v48, %v2924_v49  ;;  %v4147_v51 = vpop.f32.mrb[45].mxu0  ;;  %v4292_v48 = vld [vmem:[%s4582_s5 + $0x50] sm:$0xff]  }
 0x7b1   : > { %v2927_v61 = vpop.f32.mrb[46].mxu0  ;;  %v4293_v49 = vld [vmem:[%s4582_s5 + $0x10] sm:$0xff]   ;;  %v4295_v51 = vld [vmem:[%s4582_s5 + $0x18] sm:$0xff]  }
 0x7b2   : > { %v4148_v3 = vpop.f32.mrb[47].mxu0  ;;  %2932 = vrot.lane.b32.xlu1 %v2930_v50, %s4439_s27  ;;  %v1851_v9 = vpop.permute.xlu1 %1850  ;;  %v4294_v50 = vld [vmem:[%s4582_s5 + $0x58] sm:$0xff]   ;;  %v4296_v61 = vld [vmem:[%s4582_s5 + $0x60] sm:$0xff]  }
 0x7b3   : > { %1854 = vst.msk [vmem:[#allocation4] sm:$0xff] %vm1853_vm8, %v1851_v9  ;;  %v4297_v3 = vld [vmem:[%s4582_s5 + $0x20] sm:$0xff]   ;;  %v4298_v9 = vld [vmem:[%s4582_s5 + $0x68] sm:$0xff]  }
 0x7c6   : > { %v2070_v54 = vpop.permute.xlu0 %2069 }
 0x7c7   : > { %2073 = vst.msk [vmem:[#allocation4] sm:$0xff] %vm2072_vm9, %v2070_v54  ;;  %v4299_v54 = vld [vmem:[%s4582_s5 + $0x28] sm:$0xff]  }
 0x7ce   : > { %v2936_v53 = vld [vmem:[#allocation4] sm:$0xff] }
 0x7ef   : > { %v2497_v52 = vpop.permute.xlu1 %2496 }
 0x7f0   : > { %2499 = vst.msk [vmem:[#allocation4 + $0x8] sm:$0xff] %vm1634_vm7, %v2497_v52  ;;  %v4300_v52 = vld [vmem:[%s4582_s5 + $0x70] sm:$0xff]  }
 0x810   : > { %v2715_v18 = vpop.permute.xlu1 %2714 }
 0x811   : > { %2717 = vst.msk [vmem:[#allocation4 + $0x8] sm:$0xff] %vm1853_vm8, %v2715_v18  ;;  %v4301_v18 = vld [vmem:[%s4582_s5 + $0x30] sm:$0xff]  }
 0x824   : > { %v2933_v37 = vpop.permute.xlu1 %2932 }
 0x825   : > { %2935 = vst.msk [vmem:[#allocation4 + $0x8] sm:$0xff] %vm2072_vm9, %v2933_v37  ;;  %v4302_v37 = vld [vmem:[%s4582_s5 + $0x78] sm:$0xff]  }
 0x82c   : > { %v2937_v55 = vld [vmem:[#allocation4 + $0x8] sm:$0xff] }
 0x82d   : > { %v2938_v56 = vpack.c.bf16 %v2937_v55, %v2936_v53  ;;  %v4303_v53 = vld [vmem:[%s4582_s5 + $0x38] sm:$0xff]  }
 0x82f   : > { %4158 = vmatmul.mubr.msk.bf16.vlgmr.msra.gmra.mrb[68].mxu1 %vm832_vm2, %v2938_v56 }
 0x830   : > { %3861 = vmatpush3.bf16.msra.mxu1 %v4289_v47 }
 0x831   : > { %3862 = vmatprep.subr.bf16.mxu1 %v4290_v21 }
 0x834   : > { %3863 = vmatpush3.bf16.msra.mxu1 %v4291_v24 }
 0x835   : > { %3864 = vmatprep.subr.bf16.mxu1 %v4292_v48 }
 0x838   : > { %3865 = vmatpush3.bf16.msra.mxu1 %v4293_v49 }
 0x839   : > { %3866 = vmatprep.subr.bf16.mxu1 %v4294_v50 }
 0x83c   : > { %3867 = vmatpush3.bf16.msra.mxu1 %v4295_v51 }
 0x83d   : > { %3868 = vmatprep.subr.bf16.mxu1 %v4296_v61 }
 0x840   : > { %3869 = vmatpush3.bf16.msra.mxu1 %v4297_v3 }
 0x841   : > { %3870 = vmatprep.subr.bf16.mxu1 %v4298_v9 }
 0x844   : > { %3871 = vmatpush3.bf16.msra.mxu1 %v4299_v54 }
 0x845   : > { %3872 = vmatprep.subr.bf16.mxu1 %v4300_v52 }
 0x848   : > { %3873 = vmatpush3.bf16.msra.mxu1 %v4301_v18 }
 0x849   : > { %3874 = vmatprep.subr.bf16.mxu1 %v4302_v37 }
 0x84c   : > { %3875 = vmatpush3.bf16.msra.mxu1 %v4303_v53 }
 0x902   : > { %v3008_v57 = vpop.f32.mrb[68].mxu1 }
 0x903   : > { %v5041_v23 = vadd.f32 %v4368_v59, %v3008_v57  ;;  %v4159_v60 = vpop.f32.mrb[69].mxu1 }
 0x904   : > { %v3011_v62 = vpop.f32.mrb[70].mxu1 }
 0x905   : > { %v5043_v0 = vadd.f32 %v4369_v63, %v3011_v62  ;;  %v4160_v15 = vpop.f32.mrb[71].mxu1  ;;  %v3017_v2 = vsel %vm832_vm2, %v5041_v23, 0.0 }
 0x906   : > { %3018 = vadd.xlane.f32.xlu0 %v3017_v2 }
 0x907   : > { %v3020_v10 = vsel %vm832_vm2, %v5043_v0, 0.0 }
 0x908   : > { %3021 = vadd.xlane.f32.xlu1 %v3020_v10 }
 0x993   : > { %v3019_v4 = vpop.xlane.xlu0 %3018 }
 0x994   : > { %v3023_v25 = vmul.f32 0.015625, %v3019_v4 }
 0x995   : > { %v3022_v20 = vpop.xlane.xlu1 %3021 }
 0x996   : > { %v3025_v28 = vsub.f32 %v5041_v23, %v3023_v25  ;;  %v3024_v5 = vmul.f32 0.015625, %v3022_v20 }
 0x998   : > { %v3026_v6 = vsub.f32 %v5043_v0, %v3024_v5  ;;  %v3027_v7 = vmul.f32 %v3025_v28, %v3025_v28 }
 0x99a   : > { %v3029_v34 = vsel %vm832_vm2, %v3027_v7, 0.0  ;;  %v3028_v8 = vmul.f32 %v3026_v6, %v3026_v6 }
 0x99b   : > { %3030 = vadd.xlane.f32.xlu0 %v3029_v34 }
 0x99c   : > { %v3032_v11 = vsel %vm832_vm2, %v3028_v8, 0.0 }
 0x99f   : > { %3033 = vadd.xlane.f32.xlu0 %v3032_v11 }
 0xa28   : > { %v3031_v26 = vpop.xlane.xlu0 %3030 }
 0xa29   : > { %v3035_v27 = vmul.f32 0.015625, %v3031_v26 }
 0xa2b   : > { %v3037_v31 = vadd.f32 1e-05, %v3035_v27  ;;  %v4370_v27 = vld [vmem:[%s5161_s11] sm:$0xff] (!%p3740_p6)  }
 0xa2c   : > { %v3034_v32 = vpop.xlane.xlu0 %3033 }
 0xa2d   : > { %4356 = vrsqrt.f32 %v3037_v31  ;;  %v3036_v33 = vmul.f32 0.015625, %v3034_v32  ;;  %v4441_v31 = vmov (!%p3740_p6), 0.0   ;;  %v4373_v32 = vld [vmem:[%s5161_s11 + $0x18] sm:$0xff] (!%p3740_p6)  }
 0xa2e   : > { %4161 = vmatprep.subr.bf16.mxu0 (!%p3740_p6), %v4441_v31 }
 0xa2f   : > { %v3038_v16 = vadd.f32 1e-05, %v3036_v33 }
 0xa31   : > { %4358 = vrsqrt.f32 %v3038_v16  ;;  %v3741_v16 = vld [vmem:[%s5162_s12] ss:$0 sm:$0xff] (!%p3740_p6) }
 0xa37   : > { %v4357_v36 = vpop.eup %4356 }
 0xa38   : > { %v3041_v39 = vmul.f32 %v4357_v36, %v3025_v28 }
 0xa3a   : > { %v3047_v58 = vmul.f32 %v3713_v40, %v3041_v39 }
 0xa3b   : > { %v4359_v41 = vpop.eup %4358 }
 0xa3c   : > { %v3042_v1 = vmul.f32 %v4359_v41, %v3026_v6  ;;  %v3053_v44 = vadd.f32 %v3714_v42, %v3047_v58 }
 0xa3e   : > { %v3048_v43 = vmul.f32 %v3713_v40, %v3042_v1 }
 0xa40   : > { %v3054_v45 = vadd.f32 %v3714_v42, %v3048_v43 }
 0xa42   : > { %v3055_v46 = vpack.c.bf16 %v3054_v45, %v3053_v44 }
 0xa44   : > { %3723 = vmatmul.mubr.msk.bf16.vlgmr.msra.gmra.mrb[48].mxu0 %vm832_vm2, %v3055_v46 }
 0xa45   : > { %4162 = vmatpush3.bf16.msra.mxu0 (!%p3740_p6), %v4370_v27  ;;  %4169 = vmatprep.mubr.msk.bf16.mxu0 (!%p3740_p6), %vm4442_vm10, %v4441_v31 }
 0xa46   : > { %4163 = vmatprep.subr.bf16.mxu0 (!%p3740_p6), %v4441_v31 }
 0xb17   : > { %v3141_v55 = vpop.f32.mrb[48].mxu0 }
 0xb18   : > { %v3154_v56 = vmul.f32 0.70710677, %v3141_v55  ;;  %v3143_v57 = vpop.f32.mrb[49].mxu0  ;;  %v3150_v5 = vmul.f32 0.5, %v3141_v55 }
 0xb19   : > { %v3155_v59 = vmul.f32 0.70710677, %v3143_v57  ;;  %v3145_v60 = vpop.f32.mrb[50].mxu0  ;;  %v3151_v34 = vmul.f32 0.5, %v3143_v57  ;;  %v3747_v57 = vld [vmem:[%s5179_s25] ss:$0 sm:$0xff] (!%p3740_p6) }
 0xb1a   : > { %4360 = verf.f32 %v3154_v56  ;;  %v3156_v62 = vmul.f32 0.70710677, %v3145_v60  ;;  %v3147_v63 = vpop.f32.mrb[51].mxu0  ;;  %v3152_v6 = vmul.f32 0.5, %v3145_v60  ;;  %v3748_v60 = vld [vmem:[%s5180_s22] ss:$0 sm:$0xff] (!%p3740_p6) }
 0xb1b   : > { %4362 = verf.f32 %v3155_v59  ;;  %v3157_v15 = vmul.f32 0.70710677, %v3147_v63  ;;  %v3153_v8 = vmul.f32 0.5, %v3147_v63 }
 0xb1c   : > { %4364 = verf.f32 %v3156_v62 }
 0xb1d   : > { %4366 = verf.f32 %v3157_v15 }
 0xb24   : > { %v4361_v2 = vpop.eup %4360 }
 0xb25   : > { %v4363_v10 = vpop.eup %4362  ;;  %v3162_v4 = vadd.f32 1.0, %v4361_v2 }
 0xb26   : > { %v4365_v25 = vpop.eup %4364  ;;  %v3163_v20 = vadd.f32 1.0, %v4363_v10 }
 0xb27   : > { %v4367_v28 = vpop.eup %4366  ;;  %v3164_v7 = vadd.f32 1.0, %v4365_v25  ;;  %v3166_v12 = vmul.f32 %v3162_v4, %v3150_v5 }
 0xb28   : > { %v3165_v11 = vadd.f32 1.0, %v4367_v28  ;;  %v3167_v22 = vmul.f32 %v3163_v20, %v3151_v34 }
 0xb29   : > { %v3168_v35 = vmul.f32 %v3164_v7, %v3152_v6 }
 0xb2a   : > { %v3169_v13 = vmul.f32 %v3165_v11, %v3153_v8 }
 0xb2b   : > { %v3170_v14 = vpack.c.bf16 %v3168_v35, %v3166_v12 }
 0xb2c   : > { %v3171_v17 = vpack.c.bf16 %v3169_v13, %v3167_v22 }
 0xb2e   : > { %3332 = vmatprep.mubr.bf16.mxu1 %v3171_v17 }
 0xb2f   : > { %3333 = vmatmul.mubr.bf16.vlgmr.msra.gmra.mrb[72].mxu1 %v3170_v14 }
 0xc02   : > { %v3876_v19 = vpop.f32.mrb[72].mxu1 }
 0xc03   : > { %v3877_v29 = vpop.f32.mrb[73].mxu1 }
 0xc04   : > { %v3878_v30 = vadd.f32 %v3877_v29, %v3876_v19  ;;  %v3879_v38 = vpop.f32.mrb[74].mxu1  ;;  %3348 = sbr.rel (%p3740_p6) target bundleno = 3622 (0xe26), region = 88 }
 0xc05   : > { %v3880_v47 = vpop.f32.mrb[75].mxu1 }
 0xc06   : > { %v3341_v21 = vadd.f32 %v3878_v30, %v5041_v23  ;;  %v3881_v24 = vadd.f32 %v3880_v47, %v3879_v38  ;;  %v4371_v23 = vld [vmem:[%s5161_s11 + $0x8] sm:$0xff] (!%p3740_p6)  }
 0xc07   : > { %4164 = vmatpush3.bf16.msra.mxu0 (!%p3740_p6), %v4371_v23 }
 0xc08   : > { %3343 = vst.msk [vmem:[#allocation3] sm:$0xff] %vm832_vm2, %v3341_v21  ;;  %v3342_v26 = vadd.f32 %v3881_v24, %v5043_v0  ;;  %v4372_v0 = vld [vmem:[%s5161_s11 + $0x10] sm:$0xff] (!%p3740_p6)   ;;  %4165 = vmatprep.subr.bf16.mxu0 (!%p3740_p6), %v4441_v31 }
 0xc0a   : > { %3344 = vst.msk [vmem:[#allocation3 + $0x8] sm:$0xff] %vm832_vm2, %v3342_v26  ;;  %v3349_v33 = vpack.c.bf16 (!%p3740_p6), %v3342_v26, %v3341_v21 }
 0xc0b   : > { %4166 = vmatpush3.bf16.msra.mxu0 %v4372_v0 }
 0xc0c   : > { %4167 = vmatprep.subr.bf16.mxu0 %v4441_v31 }
 0xc0f   : > { %4168 = vmatpush3.bf16.msra.mxu0 %v4373_v32 }
 0xc12   : > { %4170 = vmatmul.mubr.msk.bf16.vlgmr.msra.gmra.mrb[0].mxu0 %vm832_vm2, %v3349_v33 }
 0xce5   : > { %v3426_v36 = vpop.f32.mrb[0].mxu0 }
 0xce6   : > { %v3427_v39 = vadd.f32 %v3741_v16, %v3426_v36  ;;  %v4171_v40 = vpop.f32.mrb[1].mxu0 }
 0xce7   : > { %v3429_v41 = vpop.f32.mrb[2].mxu0 }
 0xce8   : > { %v3430_v58 = vadd.f32 %v3741_v16, %v3429_v41  ;;  %v4172_v1 = vpop.f32.mrb[3].mxu0  ;;  %v3435_v42 = vsel %vm832_vm2, %v3427_v39, 0.0 }
 0xce9   : > { %3436 = vadd.xlane.f32.xlu0 %v3435_v42 }
 0xcea   : > { %v3438_v43 = vsel %vm832_vm2, %v3430_v58, 0.0 }
 0xced   : > { %3439 = vadd.xlane.f32.xlu0 %v3438_v43 }
 0xd76   : > { %v3437_v44 = vpop.xlane.xlu0 %3436 }
 0xd77   : > { %v3441_v45 = vmul.f32 0.015625, %v3437_v44 }
 0xd79   : > { %v3443_v46 = vsub.f32 %v3427_v39, %v3441_v45 }
 0xd7a   : > { %v3440_v48 = vpop.xlane.xlu0 %3439 }
 0xd7b   : > { %v3442_v49 = vmul.f32 0.015625, %v3440_v48  ;;  %v3445_v50 = vmul.f32 %v3443_v46, %v3443_v46 }
 0xd7d   : > { %v3444_v51 = vsub.f32 %v3430_v58, %v3442_v49  ;;  %v3447_v61 = vsel %vm832_vm2, %v3445_v50, 0.0 }
 0xd7e   : > { %3448 = vadd.xlane.f32.xlu1 %v3447_v61 }
 0xd7f   : > { %v3446_v3 = vmul.f32 %v3444_v51, %v3444_v51 }
 0xd81   : > { %v3450_v9 = vsel %vm832_vm2, %v3446_v3, 0.0 }
 0xd82   : > { %3451 = vadd.xlane.f32.xlu1 %v3450_v9 }
 0xe0b   : > { %v3449_v54 = vpop.xlane.xlu1 %3448 }
 0xe0c   : > { %v3453_v52 = vmul.f32 0.015625, %v3449_v54 }
 0xe0e   : > { %v3455_v18 = vadd.f32 1e-05, %v3453_v52 }
 0xe0f   : > { %v3452_v37 = vpop.xlane.xlu1 %3451 }
 0xe10   : > { %4374 = vrsqrt.f32 %v3455_v18  ;;  %v3454_v53 = vmul.f32 0.015625, %v3452_v37 }
 0xe12   : > { %v3456_v55 = vadd.f32 1e-05, %v3454_v53 }
 0xe14   : > { %4376 = vrsqrt.f32 %v3456_v55 }
 0xe1a   : > { %v4375_v56 = vpop.eup %4374 }
 0xe1b   : > { %v3459_v59 = vmul.f32 %v4375_v56, %v3443_v46 }
 0xe1d   : > { %v3467_v62 = vmul.f32 %v3747_v57, %v3459_v59 }
 0xe1e   : > { %v4377_v63 = vpop.eup %4376 }
 0xe1f   : > { %v3475_v15 = vadd.f32 %v3748_v60, %v3467_v62  ;;  %v3460_v2 = vmul.f32 %v4377_v63, %v3444_v51 }
 0xe21   : > { %3477 = vst.msk [vmem:[#allocation5] sm:$0xff] %vm832_vm2, %v3475_v15  ;;  %v3468_v10 = vmul.f32 %v3747_v57, %v3460_v2 }
 0xe23   : > { %v3476_v4 = vadd.f32 %v3748_v60, %v3468_v10 }
 0xe25   : > { %3478 = vst.msk [vmem:[#allocation5 + $0x8] sm:$0xff] %vm832_vm2, %v3476_v4 }
 0xe26 PF: > { %s5181_s16 = sld [smem:[#allocation9_spill]]  ;;  %s4443_s27 = smov [#allocation5]  }
 0xe27   : > { %s3488_s5 = sshll.u32 %s4443_s27, 4  ;;  %s3489_s5 = int_to_ptr.vmem [resolvable:$true] %s3488_s5 }
 0xe28   : > { %s4378_s28 = scalar_lea.vmem %s3489_s5, 256  ;;  %p4385_p11 = scmp.lt.s32.totalorder %s3489_s5, %s3489_s5 }
 0xe29   : > { %p4379_p8 = scmp.ne.s32.totalorder %s3489_s5, %s4378_s28  ;;  %p4386_p12 = scmp.lt.s32.totalorder %s4378_s28, %s4378_s28 }
 0xe2b   : > { %p4387_p13 = por %p4386_p12, %p4385_p11 }
 0xe2c   : > { %s5182_s26 = sadd.s32 4294967295, %s5181_s16  }
 0xe2d   : > { %p5115_p7 = scmp.eq.s32.totalorder %s5182_s26, 1 }
 0xe2f   : > { %p4380_p9 = pnand %p4379_p8, %p5115_p7 }
 0xe31   : > { %p4381_p10 = pneg %p4380_p9 }
 0xe33   : > { %p4388_p0 = pnand %p4387_p13, %p4381_p10 }
 0xe35   : > { %4391 = shalt.err (!%p4388_p0)
}
 0xe36   : > { %s5184_s29 = sld [smem:[#allocation15_spill]] }
 0xe3c   : > { %s4392_s21 = scalar_lea.hbm %s5184_s29, 256 }
 0xe3d   : > { %p4393_p1 = scmp.ne.s32.totalorder %s5184_s29, %s4392_s21  ;;  %p4398_p4 = scmp.lt.u32.totalorder %s4392_s21, %s5184_s29 }
 0xe3f   : > { %p4394_p2 = pnand %p4393_p1, %p5115_p7 }
 0xe41   : > { %p4395_p3 = pneg %p4394_p2 }
 0xe43   : > { %p4400_p5 = pnand %p4398_p4, %p4395_p3 }
 0xe45   : > { %4403 = shalt.err (!%p4400_p5)
}
 0xe46   : > { %s4444_s13 = smov 128   ;;  %s4445_s14 = smov 8  }
 0xe47   : > { %4206 = dma.vmem_to_hbm [thread:$0]  (%p5115_p7), %s3489_s5, 256, %s5184_s29, [#allocation6], %s4444_s13, %s4444_s13, %s4445_s14  }
 0xe48   : > { %4417 = dma.done.wait (%p5115_p7), [#allocation6], 256  }
 0xe49   : > { %4419 = vsyncadd (%p5115_p7), [#allocation6], 4294967040 }
 0xe4a PF: > { %s5185_s20 = sld [smem:[#allocation9_spill]]  ;;  %s5186_s18 = sld [smem:[#allocation8_spill]] }
 0xe4b   : > { %s5187_s19 = sld [smem:[#allocation10_spill]] }
 0xe50   : > { %s26_s20 = sadd.s32 1, %s5185_s20  }
 0xe51   : > { %p23_p6 = scmp.ge.s32.totalorder %s26_s20, 4  }
 0xe53   :  { %25 = sbr.rel (!%p23_p6) target bundleno = 8 (0x8), region = 137 }
 0xe5a   :  { %3504 = vsyncpa [#allocation6], 1 }
 0xe5b   :  { %3506 = vsyncpa [#allocation6 + $0x1], 1 }

// kernel: serial_sampler_forward.3
= control target key start
LH: loop header
LB: loop body
LE: loop exit
PB: predicated region body
PF: predicated region fallthrough
CT: control target
= control target key end

     0   :  { %s5894_s0 = inlined_call_operand.vmem [shape: f32[2,16,48], index: 0, kind: input, shape index: {}]   ;;  %s5895_s1 = inlined_call_operand.vmem [shape: bf16[48,64], index: 1, kind: input, shape index: {}]   ;;  %s5896_s2 = inlined_call_operand.vmem [shape: f32[1,64], index: 2, kind: input, shape index: {}]   ;;  %s5897_s3 = inlined_call_operand.vmem [shape: f32[1,16,64], index: 3, kind: input, shape index: {}]   ;;  %s5898_s4 = inlined_call_operand.vmem [shape: f32[2,6,64], index: 4, kind: input, shape index: {}]   ;;  %s5899_s5 = inlined_call_operand.vmem [shape: bf16[2,64,64], index: 5, kind: input, shape index: {}]   ;;  %s5900_s6 = inlined_call_operand.vmem [shape: bf16[2,64,64], index: 6, kind: input, shape index: {}]   ;;  %s5901_s7 = inlined_call_operand.vmem [shape: bf16[2,64,64], index: 7, kind: input, shape index: {}]   ;;  %s5902_s8 = inlined_call_operand.vmem [shape: bf16[2,64,64], index: 8, kind: input, shape index: {}]   ;;  %s5903_s9 = inlined_call_operand.vmem [shape: bf16[2,64,256], index: 9, kind: input, shape index: {}]   ;;  %s5904_s10 = inlined_call_operand.vmem [shape: bf16[2,256,64], index: 10, kind: input, shape index: {}]   ;;  %s5905_s11 = inlined_call_operand.vmem [shape: bf16[64,64], index: 11, kind: input, shape index: {}]   ;;  %s5906_s12 = inlined_call_operand.vmem [shape: f32[1,64], index: 12, kind: input, shape index: {}]   ;;  %s5907_s13 = inlined_call_operand.vmem [shape: f32[1,64], index: 13, kind: input, shape index: {}]   ;;  %s5908_s14 = inlined_call_operand.vmem [shape: f32[1,64], index: 14, kind: input, shape index: {}]   ;;  %s5909_s15 = inlined_call_operand.hbm [shape: f32[2,16,64], index: 15, kind: output, shape index: {}]  }
   0x1   :  { %5913 = sst [smem:[#allocation11_spill]] %s5898_s4 }
   0x2   :  { %5914 = sst [smem:[#allocation12_spill]] %s5899_s5 }
   0x3   :  { %5915 = sst [smem:[#allocation13_spill]] %s5907_s13 }
   0x4   :  { %5916 = sst [smem:[#allocation14_spill]] %s5908_s14 }
   0x5   :  { %5917 = sst [smem:[#allocation15_spill]] %s5909_s15 }
   0x6   :  { %20 = vsyncpa [#allocation6], 0  ;;  %s5034_s18 = smov 0   ;;  %s5036_s19 = smov 0  }
   0x7   :  { %s5038_s20 = smov 0  }
   0x8 LB: > { %5918 = sst [smem:[#allocation8_spill]] %s4936_s19  ;;  %s35_s22 = sadd.s32 1, %s4936_s19  ;;  %s4940_s20 = sphi %s5038_s20, %s26_s20   ;;  %s4936_s19 = sphi %s5036_s19, %s5931_s19   ;;  %s4932_s18 = sphi %s5034_s18, %s5930_s18  }
   0x9   : > { %5919 = sst [smem:[#allocation9_spill]] %s4940_s20  ;;  %p36_p0 = scmp.ge.s32.totalorder %s35_s22, 2 }
   0xa   : > { %p4057_p1 = scmp.ge.s32.totalorder %s4940_s20, 1  ;;  %p521_p2 = scmp.lt.s32.totalorder %s4940_s20, 3 }
   0xb   : > { %s5933_s22 = smov (%p36_p0, %s35_s22), 0 }
   0xc   : > { %5920 = sst [smem:[#allocation10_spill]] %s5933_s22  ;;  %p522_p3 = pnand %p4057_p1, %p521_p2 }
   0xd   : > { %p606_p4 = scmp.lt.s32.totalorder (!%p522_p3), %s4932_s18, 1  ;;  %s5921_s4 = sld [smem:[#allocation11_spill]] (!%p522_p3) }
   0xe   : > { %525 = sbr.rel (%p522_p3) target bundleno = 3731 (0xe93), region = 80  ;;  %s5922_s5 = sld [smem:[#allocation12_spill]] (!%p522_p3) }
   0xf   : > { %p4071_p5 = scmp.ne.s32.totalorder (!%p522_p3), %s4932_s18, 0 }
  0x15   : > { %s607_s23 = scalar_select %p606_p4, %s4932_s18, 1 }
  0x16   : > { %645 = sbr.rel (%p4071_p5) target bundleno = 570 (0x23a), region = 84  ;;  %v4689_v0 = vld [vmem:[%s5895_s1] sm:$0xff] (!%p4071_p5)   ;;  %v4690_v1 = vld [vmem:[%s5895_s1 + $0x8] sm:$0xff] (!%p4071_p5)   ;;  %vm683_vm0 = vcmask (!%p4071_p5), 392192   ;;  %v4691_v4 = vld [vmem:[%s5895_s1 + $0x10] sm:$0xff] (!%p4071_p5)   ;;  %vm739_vm1 = vcmask (!%p4071_p5), 523264  }
  0x17   : > { %s4058_s24 = sshll.u32 %s607_s23, 3  ;;  %s4184_s25 = sshll.u32 %s607_s23, 5  ;;  %4329 = vmatprep.subr.bf16.mxu0 (!%p4071_p5), %v4689_v0  ;;  %v646_v2 = vld [vmem:[%s5894_s0] sm:$0xff] (!%p4071_p5)  ;;  %v647_v3 = vld [vmem:[%s5894_s0 + $0x8] sm:$0xff] (!%p4071_p5)  ;;  %v648_v6 = vld [vmem:[%s5894_s0 + $0x10] sm:$0xff] (!%p4071_p5) }
  0x18   : > { %s5060_s28 = scalar_lea.vmem %s5921_s4, %s4058_s24  ;;  %s5065_s16 = scalar_lea.vmem %s5922_s5, %s4184_s25  ;;  %4330 = vmatpush3.bf16.msra.mxu0 (!%p4071_p5), %v4689_v0  ;;  %v650_v5 = vpack.c.bf16 (!%p4071_p5), %v647_v3, %v646_v2  ;;  %v649_v7 = vld [vmem:[%s5894_s0 + $0x18] sm:$0xff] (!%p4071_p5)  ;;  %v797_v9 = vld [vmem:[%s5897_s3] sm:$0xff] (!%p4071_p5)  ;;  %v798_v10 = vld [vmem:[%s5897_s3 + $0x8] sm:$0xff] (!%p4071_p5) }
  0x19   : > { %s5070_s22 = scalar_lea.vmem %s5900_s6, %s4184_s25  ;;  %s5075_s20 = scalar_lea.vmem %s5901_s7, %s4184_s25  ;;  %4331 = vmatprep.subr.bf16.mxu0 (!%p4071_p5), %v4690_v1  ;;  %v651_v8 = vpack.c.bf16 (!%p4071_p5), %v649_v7, %v648_v6  ;;  %799 = vst.msk [vmem:[#allocation3] sm:$0xff] (!%p4071_p5), %vm739_vm1, %v797_v9  ;;  %800 = vst.msk [vmem:[#allocation3 + $0x8] sm:$0xff] (!%p4071_p5), %vm739_vm1, %v798_v10  ;;  %v4072_v11 = vld [vmem:[%s5896_s2] ss:$0 sm:$0xff] (!%p4071_p5) }
  0x1a   : > { %s5080_s24 = scalar_lea.vmem %s5902_s8, %s4184_s25  ;;  %s4188_s26 = sshll.u32 %s607_s23, 6  ;;  %4335 = vmatprep.mubr.msk.bf16.mxu0 (!%p4071_p5), %vm683_vm0, %v650_v5  ;;  %801 = vst.msk [vmem:[#allocation3 + $0x10] sm:$0xff] (!%p4071_p5), %vm739_vm1, %v797_v9  ;;  %802 = vst.msk [vmem:[#allocation3 + $0x18] sm:$0xff] (!%p4071_p5), %vm739_vm1, %v798_v10 }
  0x1b   : > { %s5085_s30 = scalar_lea.vmem %s5903_s9, %s4188_s26  ;;  %s4189_s4 = sshll.u32 %s607_s23, 7 }
  0x1c   : > { %s5090_s5 = scalar_lea.vmem %s5904_s10, %s4189_s4  ;;  %4332 = vmatpush3.bf16.msra.mxu0 (!%p4071_p5), %v4690_v1 }
  0x1d   : > { %4333 = vmatprep.subr.bf16.mxu0 %v4691_v4 }
  0x20   : > { %4334 = vmatpush3.bf16.msra.mxu0 %v4691_v4 }
  0x23   : > { %4336 = vmatmul.mubr.msk.bf16.vlgmr.msra.gmra.mrb[0].mxu0 %vm683_vm0, %v651_v8 }
  0xf6   : > { %v4337_v12 = vpop.f32.mrb[0].mxu0 }
  0xf7   : > { %v733_v13 = vadd.f32 %v4337_v12, %v4072_v11  ;;  %v724_v14 = vpop.f32.mrb[1].mxu0 }
  0xf8   : > { %v725_v15 = vadd.f32 %v4072_v11, %v724_v14  ;;  %v4338_v16 = vpop.f32.mrb[2].mxu0 }
  0xf9   : > { %v736_v17 = vadd.f32 %v4338_v16, %v4072_v11  ;;  %v727_v18 = vpop.f32.mrb[3].mxu0  ;;  %v746_v19 = vsel %vm739_vm1, %v733_v13, 0.0 }
  0xfa   : > { %v728_v20 = vadd.f32 %v4072_v11, %v727_v18  ;;  %747 = vadd.xlane.f32.xlu1 %v746_v19  ;;  %v740_v21 = vsel %vm739_vm1, %v725_v15, 0.0 }
  0xfb   : > { %741 = vadd.xlane.f32.xlu0 %v740_v21  ;;  %v749_v22 = vsel %vm739_vm1, %v736_v17, 0.0 }
  0xfc   : > { %v743_v23 = vsel %vm739_vm1, %v728_v20, 0.0 }
  0xfe   : > { %750 = vadd.xlane.f32.xlu1 %v749_v22 }
  0xff   : > { %744 = vadd.xlane.f32.xlu0 %v743_v23 }
 0x187   : > { %v748_v24 = vpop.xlane.xlu1 %747 }
 0x188   : > { %v755_v25 = vmul.f32 0.015625, %v748_v24  ;;  %v742_v26 = vpop.xlane.xlu0 %741 }
 0x189   : > { %v753_v27 = vmul.f32 0.015625, %v742_v26 }
 0x18a   : > { %v759_v28 = vsub.f32 %v733_v13, %v755_v25 }
 0x18b   : > { %v757_v29 = vsub.f32 %v725_v15, %v753_v27  ;;  %v751_v30 = vpop.xlane.xlu1 %750 }
 0x18c   : > { %v756_v31 = vmul.f32 0.015625, %v751_v30  ;;  %v745_v32 = vpop.xlane.xlu0 %744  ;;  %v763_v38 = vmul.f32 %v759_v28, %v759_v28 }
 0x18d   : > { %v754_v33 = vmul.f32 0.015625, %v745_v32  ;;  %v761_v34 = vmul.f32 %v757_v29, %v757_v29 }
 0x18e   : > { %v760_v35 = vsub.f32 %v736_v17, %v756_v31  ;;  %v771_v40 = vsel %vm739_vm1, %v763_v38, 0.0 }
 0x18f   : > { %v758_v36 = vsub.f32 %v728_v20, %v754_v33  ;;  %v765_v37 = vsel %vm739_vm1, %v761_v34, 0.0 }
 0x190   : > { %766 = vadd.xlane.f32.xlu0 %v765_v37  ;;  %v764_v42 = vmul.f32 %v760_v35, %v760_v35 }
 0x191   : > { %v762_v39 = vmul.f32 %v758_v36, %v758_v36 }
 0x192   : > { %v774_v43 = vsel %vm739_vm1, %v764_v42, 0.0 }
 0x193   : > { %v768_v41 = vsel %vm739_vm1, %v762_v39, 0.0 }
 0x194   : > { %772 = vadd.xlane.f32.xlu0 %v771_v40  ;;  %769 = vadd.xlane.f32.xlu1 %v768_v41 }
 0x198   : > { %775 = vadd.xlane.f32.xlu1 %v774_v43 }
 0x21d   : > { %v767_v44 = vpop.xlane.xlu0 %766 }
 0x21e   : > { %v777_v45 = vmul.f32 0.015625, %v767_v44 }
 0x220   : > { %v781_v46 = vadd.f32 1e-05, %v777_v45 }
 0x221   : > { %v770_v47 = vpop.xlane.xlu1 %769  ;;  %v773_v48 = vpop.xlane.xlu0 %772 }
 0x222   : > { %v778_v49 = vmul.f32 0.015625, %v770_v47  ;;  %v779_v50 = vmul.f32 0.015625, %v773_v48  ;;  %4692 = vrsqrt.f32 %v781_v46 }
 0x224   : > { %v782_v51 = vadd.f32 1e-05, %v778_v49  ;;  %v783_v52 = vadd.f32 1e-05, %v779_v50 }
 0x225   : > { %v776_v53 = vpop.xlane.xlu1 %775 }
 0x226   : > { %4694 = vrsqrt.f32 %v782_v51  ;;  %v780_v54 = vmul.f32 0.015625, %v776_v53 }
 0x227   : > { %4696 = vrsqrt.f32 %v783_v52 }
 0x228   : > { %v784_v55 = vadd.f32 1e-05, %v780_v54 }
 0x22a   : > { %4698 = vrsqrt.f32 %v784_v55 }
 0x22c   : > { %v4693_v56 = vpop.eup %4692 }
 0x22d   : > { %v789_v58 = vmul.f32 %v4693_v56, %v757_v29 }
 0x230   : > { %v4695_v57 = vpop.eup %4694 }
 0x231   : > { %v790_v59 = vmul.f32 %v4695_v57, %v758_v36  ;;  %v4697_v60 = vpop.eup %4696 }
 0x232   : > { %v791_v63 = vmul.f32 %v4697_v60, %v759_v28 }
 0x233   : > { %v793_v61 = vpack.c.bf16 %v790_v59, %v789_v58 }
 0x234   : > { %v4699_v62 = vpop.eup %4698 }
 0x235   : > { %795 = vst.msk [vmem:[#allocation2] sm:$0xff] %vm739_vm1, %v793_v61  ;;  %v792_v0 = vmul.f32 %v4699_v62, %v760_v35 }
 0x237   : > { %v794_v1 = vpack.c.bf16 %v792_v0, %v791_v63 }
 0x239   : > { %796 = vst.msk [vmem:[#allocation2 + $0x8] sm:$0xff] %vm739_vm1, %v794_v1 }
 0x23a PF: > { %vm837_vm2 = vcmask 523264   ;;  %v5142_v10 = vld [vmem:[%s5070_s22] sm:$0xff]   ;;  %v4701_v31 = vld [vmem:[%s5070_s22 + $0x8] sm:$0xff]   ;;  %v4702_v32 = vld [vmem:[%s5070_s22 + $0x10] sm:$0xff]   ;;  %v4942_v57 = vmov 0.0   ;;  %vm1272_vm3 = vcmask 130048  }
 0x23b   : > { %4351 = vmatprep.subr.bf16.mxu1 %v5142_v10  ;;  %v4078_v37 = vld [vmem:[%s5060_s28] ss:$0 sm:$0xff]  ;;  %v4703_v40 = vld [vmem:[%s5070_s22 + $0x18] sm:$0xff]   ;;  %v4079_v43 = vld [vmem:[%s5060_s28 + $0x1] ss:$0 sm:$0xff]  ;;  %vm4944_vm4 = vmmov 0  }
 0x23c   : > { %4352 = vmatpush3.bf16.msra.mxu1 %v5142_v10  ;;  %v813_v33 = vld [vmem:[#allocation2] sm:$0xff]  ;;  %v4705_v49 = vld [vmem:[%s5065_s16 + $0x8] sm:$0xff]   ;;  %v4706_v54 = vld [vmem:[%s5065_s16 + $0x10] sm:$0xff]   ;;  %s4945_s22 = smov 96   ;;  %s4947_s27 = smov 16   ;;  %vm1750_vm5 = vcmask 261248  }
 0x23d   : > { %v803_v2 = vld [vmem:[#allocation3] sm:$0xff]  ;;  %v804_v4 = vld [vmem:[#allocation3 + $0x8] sm:$0xff]  ;;  %4353 = vmatprep.subr.bf16.mxu1 %v4701_v31  ;;  %v815_v34 = vunpack.c.l.bf16 %v813_v33  ;;  %v816_v35 = vunpack.c.h.bf16 %v813_v33  ;;  %v4704_v46 = vld [vmem:[%s5065_s16] sm:$0xff]   ;;  %s4948_s29 = smov 32   ;;  %s4949_s21 = smov 48   ;;  %vm1998_vm6 = vcmask 392448  }
 0x23e   : > { %v805_v3 = vld [vmem:[#allocation3 + $0x10] sm:$0xff]  ;;  %v838_v5 = vsel %vm837_vm2, %v803_v2, 0.0  ;;  %v841_v7 = vsel %vm837_vm2, %v804_v4, 0.0  ;;  %v806_v8 = vld [vmem:[#allocation3 + $0x18] sm:$0xff]  ;;  %4339 = vmatprep.subr.bf16.mxu0 %v4704_v46  ;;  %v4707_v55 = vld [vmem:[%s5065_s16 + $0x18] sm:$0xff]   ;;  %s4946_s16 = smov 80  }
 0x23f   : > { %v844_v6 = vsel %vm837_vm2, %v805_v3, 0.0  ;;  %839 = vadd.xlane.f32.xlu0 %v838_v5  ;;  %v847_v9 = vsel %vm837_vm2, %v806_v8, 0.0  ;;  %v823_v41 = vmul.f32 %v4078_v37, %v815_v34  ;;  %v824_v42 = vmul.f32 %v4078_v37, %v816_v35  ;;  %4340 = vmatpush3.bf16.msra.mxu0 %v4704_v46  ;;  %v4708_v56 = vld [vmem:[%s5075_s20] sm:$0xff]   ;;  %p4170_p6 = scmp.ne.s32.totalorder %s4932_s18, 1 }
 0x240   : > { %845 = vadd.xlane.f32.xlu1 %v844_v6  ;;  %4354 = vmatpush3.bf16.msra.mxu1 %v4701_v31  ;;  %v814_v36 = vld [vmem:[#allocation2 + $0x8] sm:$0xff]  ;;  %vm2246_vm7 = vcmask 523648   ;;  %s5923_s26 = sld [smem:[#allocation13_spill]] (!%p4170_p6) }
 0x241   : > { %4355 = vmatprep.subr.bf16.mxu1 %v4702_v32  ;;  %v817_v38 = vunpack.c.l.bf16 %v814_v36  ;;  %v818_v39 = vunpack.c.h.bf16 %v814_v36  ;;  %v831_v47 = vadd.f32 %v4079_v43, %v823_v41  ;;  %v832_v48 = vadd.f32 %v4079_v43, %v824_v42  ;;  %4341 = vmatprep.subr.bf16.mxu0 %v4705_v49 }
 0x243   : > { %842 = vadd.xlane.f32.xlu0 %v841_v7  ;;  %v825_v44 = vmul.f32 %v4078_v37, %v817_v38  ;;  %v826_v45 = vmul.f32 %v4078_v37, %v818_v39  ;;  %v5173_v52 = vpack.c.bf16 %v832_v48, %v831_v47  ;;  %4342 = vmatpush3.bf16.msra.mxu0 %v4705_v49 }
 0x244   : > { %848 = vadd.xlane.f32.xlu1 %v847_v9  ;;  %4356 = vmatpush3.bf16.msra.mxu1 %v4702_v32 }
 0x245   : > { %4357 = vmatprep.subr.bf16.mxu1 %v4703_v40  ;;  %v833_v50 = vadd.f32 %v4079_v43, %v825_v44  ;;  %v834_v51 = vadd.f32 %v4079_v43, %v826_v45  ;;  %4359 = vmatprep.mubr.msk.bf16.mxu1 %vm837_vm2, %v5173_v52 }
 0x246   : > { %4343 = vmatprep.subr.bf16.mxu0 %v4706_v54 }
 0x247   : > { %v5176_v53 = vpack.c.bf16 %v834_v51, %v833_v50  ;;  %4344 = vmatpush3.bf16.msra.mxu0 %v4706_v54 }
 0x248   : > { %4358 = vmatpush3.bf16.msra.mxu1 %v4703_v40  ;;  %4345 = vmatprep.subr.bf16.mxu0 %v4707_v55 }
 0x249   : > { %4375 = vmatprep.subr.bf16.mxu1 %v5142_v10 }
 0x24b   : > { %4360 = vmatmul.mubr.msk.bf16.vlgmr.msra.gmra.mrb[0].mxu1 %vm837_vm2, %v5176_v53  ;;  %4346 = vmatpush3.bf16.msra.mxu0 %v4707_v55 }
 0x24c   : > { %4376 = vmatpush3.bf16.msra.mxu1 %v5142_v10  ;;  %4363 = vmatprep.subr.bf16.mxu0 %v4708_v56 }
 0x24d   : > { %4377 = vmatprep.subr.bf16.mxu1 %v4701_v31 }
 0x250   : > { %4378 = vmatpush3.bf16.msra.mxu1 %v4701_v31 }
 0x251   : > { %4379 = vmatprep.subr.bf16.mxu1 %v4702_v32 }
 0x254   : > { %4380 = vmatpush3.bf16.msra.mxu1 %v4702_v32 }
 0x255   : > { %4381 = vmatprep.subr.bf16.mxu1 %v4703_v40 }
 0x258   : > { %4382 = vmatpush3.bf16.msra.mxu1 %v4703_v40 }
 0x259   : > { %4405 = vmatprep.subr.bf16.mxu1 %v4942_v57 }
 0x2cc   : > { %v840_v11 = vpop.xlane.xlu0 %839 }
 0x2cd   : > { %v846_v12 = vpop.xlane.xlu1 %845  ;;  %v851_v13 = vmul.f32 0.015625, %v840_v11 }
 0x2ce   : > { %v853_v14 = vmul.f32 0.015625, %v846_v12 }
 0x2cf   : > { %v5146_v15 = vsub.f32 %v803_v2, %v851_v13  ;;  %v4081_v13 = vld [vmem:[%s5060_s28 + $0x3] ss:$0 sm:$0xff] }
 0x2d0   : > { %v5148_v16 = vsub.f32 %v805_v3, %v853_v14  ;;  %v843_v17 = vpop.xlane.xlu0 %842 }
 0x2d1   : > { %v849_v18 = vpop.xlane.xlu1 %848  ;;  %v852_v19 = vmul.f32 0.015625, %v843_v17  ;;  %v859_v21 = vmul.f32 %v5146_v15, %v5146_v15 }
 0x2d2   : > { %v854_v20 = vmul.f32 0.015625, %v849_v18  ;;  %v861_v22 = vmul.f32 %v5148_v16, %v5148_v16 }
 0x2d3   : > { %v5154_v23 = vsub.f32 %v804_v4, %v852_v19  ;;  %v863_v25 = vsel %vm837_vm2, %v859_v21, 0.0 }
 0x2d4   : > { %v5156_v24 = vsub.f32 %v806_v8, %v854_v20  ;;  %864 = vadd.xlane.f32.xlu0 %v863_v25  ;;  %v869_v26 = vsel %vm837_vm2, %v861_v22, 0.0  ;;  %v4080_v8 = vld [vmem:[%s5060_s28 + $0x2] ss:$0 sm:$0xff] }
 0x2d5   : > { %v860_v27 = vmul.f32 %v5154_v23, %v5154_v23 }
 0x2d6   : > { %v862_v28 = vmul.f32 %v5156_v24, %v5156_v24 }
 0x2d7   : > { %v866_v29 = vsel %vm837_vm2, %v860_v27, 0.0 }
 0x2d8   : > { %870 = vadd.xlane.f32.xlu0 %v869_v26  ;;  %867 = vadd.xlane.f32.xlu1 %v866_v29  ;;  %v872_v30 = vsel %vm837_vm2, %v862_v28, 0.0  ;;  %v4709_v28 = vld [vmem:[%s5075_s20 + $0x8] sm:$0xff]  }
 0x2dc   : > { %873 = vadd.xlane.f32.xlu1 %v872_v30 }
 0x31e   : > { %v4361_v29 = vpop.f32.mrb[0].mxu1 }
 0x31f   : > { %v1078_v30 = vpop.f32.mrb[1].mxu1 }
 0x320   : > { %v4362_v31 = vpop.f32.mrb[2].mxu1 }
 0x321   : > { %v5207_v32 = vpack.c.bf16 %v4362_v31, %v4361_v29  ;;  %v1081_v33 = vpop.f32.mrb[3].mxu1 }
 0x322   : > { %v1093_v34 = vpack.c.bf16 %v1081_v33, %v1078_v30 }
 0x324   : > { %v1277_v35 = vsel %vm1272_vm3, %v1093_v34, 0 }
 0x361   : > { %v865_v58 = vpop.xlane.xlu0 %864 }
 0x362   : > { %v875_v59 = vmul.f32 0.015625, %v865_v58 }
 0x364   : > { %v879_v60 = vadd.f32 1e-05, %v875_v59 }
 0x365   : > { %v868_v61 = vpop.xlane.xlu1 %867  ;;  %v871_v62 = vpop.xlane.xlu0 %870 }
 0x366   : > { %4744 = vrsqrt.f32 %v879_v60  ;;  %v876_v63 = vmul.f32 0.015625, %v868_v61  ;;  %v877_v0 = vmul.f32 0.015625, %v871_v62 }
 0x368   : > { %v880_v1 = vadd.f32 1e-05, %v876_v63  ;;  %v881_v2 = vadd.f32 1e-05, %v877_v0 }
 0x369   : > { %v874_v3 = vpop.xlane.xlu1 %873 }
 0x36a   : > { %4746 = vrsqrt.f32 %v880_v1  ;;  %v878_v4 = vmul.f32 0.015625, %v874_v3 }
 0x36b   : > { %4748 = vrsqrt.f32 %v881_v2 }
 0x36c   : > { %v882_v5 = vadd.f32 1e-05, %v878_v4 }
 0x36e   : > { %4750 = vrsqrt.f32 %v882_v5 }
 0x370   : > { %v4745_v6 = vpop.eup %4744 }
 0x371   : > { %v887_v7 = vmul.f32 %v4745_v6, %v5146_v15 }
 0x373   : > { %v895_v12 = vmul.f32 %v4080_v8, %v887_v7 }
 0x374   : > { %v4747_v9 = vpop.eup %4746 }
 0x375   : > { %v4749_v10 = vpop.eup %4748  ;;  %v888_v11 = vmul.f32 %v4747_v9, %v5154_v23  ;;  %v903_v19 = vadd.f32 %v4081_v13, %v895_v12 }
 0x376   : > { %v889_v14 = vmul.f32 %v4749_v10, %v5148_v16  ;;  %v4710_v16 = vld [vmem:[%s5075_s20 + $0x10] sm:$0xff]  }
 0x377   : > { %v896_v17 = vmul.f32 %v4080_v8, %v888_v11 }
 0x378   : > { %v4751_v18 = vpop.eup %4750  ;;  %v897_v22 = vmul.f32 %v4080_v8, %v889_v14 }
 0x379   : > { %v904_v20 = vadd.f32 %v4081_v13, %v896_v17  ;;  %v890_v21 = vmul.f32 %v4751_v18, %v5156_v24  ;;  %v4711_v24 = vld [vmem:[%s5075_s20 + $0x18] sm:$0xff]   ;;  %s4943_s20 = smov 112  }
 0x37a   : > { %v905_v23 = vadd.f32 %v4081_v13, %v897_v22  ;;  %1504 = vrot.lane.b32.xlu0 %v1093_v34, %s4943_s20 }
 0x37b   : > { %v907_v25 = vpack.c.bf16 %v904_v20, %v903_v19  ;;  %v898_v15 = vmul.f32 %v4080_v8, %v890_v21 }
 0x37d   : > { %4347 = vmatprep.mubr.msk.bf16.mxu0 %vm837_vm2, %v907_v25  ;;  %4383 = vmatprep.mubr.msk.bf16.mxu1 %vm837_vm2, %v907_v25  ;;  %v906_v26 = vadd.f32 %v4081_v13, %v898_v15  ;;  %v2253_v13 = vsel %vm1272_vm3, %v5207_v32, 0 }
 0x37f   : > { %v908_v27 = vpack.c.bf16 %v906_v26, %v905_v23 }
 0x381   : > { %4348 = vmatmul.mubr.msk.bf16.vlgmr.msra.gmra.mrb[0].mxu0 %vm837_vm2, %v908_v27  ;;  %4384 = vmatmul.mubr.msk.bf16.vlgmr.msra.gmra.mrb[4].mxu1 %vm837_vm2, %v908_v27 }
 0x382   : > { %4364 = vmatpush3.bf16.msra.mxu0 %v4708_v56  ;;  %4371 = vmatprep.mubr.msk.bf16.mxu0 %vm837_vm2, %v5173_v52 }
 0x383   : > { %4365 = vmatprep.subr.bf16.mxu0 %v4709_v28  ;;  %4407 = vmatprep.mubr.msk.bf16.mxu1 %vm4944_vm4, %v4942_v57 }
 0x386   : > { %4366 = vmatpush3.bf16.msra.mxu0 %v4709_v28 }
 0x387   : > { %4367 = vmatprep.subr.bf16.mxu0 %v4710_v16 }
 0x38a   : > { %4368 = vmatpush3.bf16.msra.mxu0 %v4710_v16 }
 0x38b   : > { %4369 = vmatprep.subr.bf16.mxu0 %v4711_v24 }
 0x38e   : > { %4370 = vmatpush3.bf16.msra.mxu0 %v4711_v24 }
 0x38f   : > { %4387 = vmatprep.subr.bf16.mxu0 %v4708_v56 }
 0x391   : > { %4372 = vmatmul.mubr.msk.bf16.vlgmr.msra.gmra.mrb[4].mxu0 %vm837_vm2, %v5176_v53 }
 0x392   : > { %4388 = vmatpush3.bf16.msra.mxu0 %v4708_v56  ;;  %4395 = vmatprep.mubr.msk.bf16.mxu0 %vm837_vm2, %v907_v25 }
 0x393   : > { %4389 = vmatprep.subr.bf16.mxu0 %v4709_v28 }
 0x396   : > { %4390 = vmatpush3.bf16.msra.mxu0 %v4709_v28 }
 0x397   : > { %4391 = vmatprep.subr.bf16.mxu0 %v4710_v16 }
 0x39a   : > { %4392 = vmatpush3.bf16.msra.mxu0 %v4710_v16 }
 0x39b   : > { %4393 = vmatprep.subr.bf16.mxu0 %v4711_v24 }
 0x39e   : > { %4394 = vmatpush3.bf16.msra.mxu0 %v4711_v24 }
 0x39f   : > { %4399 = vmatprep.subr.bf16.mxu0 %v4942_v57 }
 0x3a1   : > { %4396 = vmatmul.mubr.msk.bf16.vlgmr.msra.gmra.mrb[8].mxu0 %vm837_vm2, %v908_v27 }
 0x3a2   : > { %4401 = vmatprep.mubr.msk.bf16.mxu0 %vm4944_vm4, %v4942_v57 }
 0x3a7   : > { %4400 = vmatpush3.bf16.xpose.msra.mxu0 %v1277_v35 }
 0x3a8   : > { %4411 = vmatprep.subr.bf16.mxu0 %v4942_v57 }
 0x3ec   : > { %v1505_v49 = vpop.permute.xlu0 %1504 }
 0x3ed   : > { %v1510_v50 = vsel %vm1272_vm3, %v1505_v49, 0 }
 0x454   : > { %v4349_v36 = vpop.f32.mrb[0].mxu0  ;;  %v4385_v37 = vpop.f32.mrb[4].mxu1 }
 0x455   : > { %v997_v38 = vpop.f32.mrb[1].mxu0  ;;  %v1204_v39 = vpop.f32.mrb[5].mxu1 }
 0x456   : > { %v4350_v40 = vpop.f32.mrb[2].mxu0  ;;  %v4386_v41 = vpop.f32.mrb[6].mxu1 }
 0x457   : > { %v5216_v42 = vpack.c.bf16 %v4350_v40, %v4349_v36  ;;  %v5218_v43 = vpack.c.bf16 %v4386_v41, %v4385_v37  ;;  %v1000_v44 = vpop.f32.mrb[3].mxu0  ;;  %v1207_v45 = vpop.f32.mrb[7].mxu1 }
 0x458   : > { %v1012_v46 = vpack.c.bf16 %v1000_v44, %v997_v38  ;;  %v1219_v47 = vpack.c.bf16 %v1207_v45, %v1204_v39 }
 0x459   : > { %v2297_v14 = vsel %vm1272_vm3, %v5218_v43, 0 }
 0x45a   : > { %1753 = vrot.lane.b32.xlu0 %v1012_v46, %s4945_s22  ;;  %1501 = vrot.lane.b32.xlu1 %v1012_v46, %s4943_s20  ;;  %v1321_v48 = vsel %vm1272_vm3, %v1219_v47, 0 }
 0x45b   : > { %4402 = vmatmul.mubr.msk.bf16.vlgmr.msra.gmra.mrb[12].mxu0 %vm1272_vm3, %v1012_v46  ;;  %4406 = vmatpush3.bf16.xpose.msra.mxu1 %v1321_v48 }
 0x45c   : > { %4423 = vmatprep.subr.bf16.mxu1 %v4942_v57  ;;  %4413 = vmatprep.mubr.msk.bf16.mxu0 %vm4944_vm4, %v4942_v57 }
 0x45e   : > { %2003 = vrot.lane.b32.xlu0 %v1093_v34, %s4946_s16  ;;  %1554 = vrot.lane.b32.xlu1 %v1219_v47, %s4943_s20 }
 0x462   : > { %2052 = vrot.lane.b32.xlu0 %v1219_v47, %s4946_s16  ;;  %1755 = vrot.lane.b32.xlu1 %v1093_v34, %s4945_s22 }
 0x463   : > { %4408 = vmatmul.mubr.msk.bf16.vlgmr.msra.gmra.mrb[8].mxu1 %vm1272_vm3, %v1012_v46 }
 0x464   : > { %v4373_v51 = vpop.f32.mrb[4].mxu0  ;;  %4424 = vmatpush3.bf16.xpose.msra.mxu1 %v1510_v50  ;;  %4425 = vmatprep.mubr.msk.bf16.mxu1 %vm4944_vm4, %v4942_v57 }
 0x465   : > { %v1153_v52 = vpop.f32.mrb[5].mxu0  ;;  %4429 = vmatprep.subr.bf16.mxu1 %v4942_v57 }
 0x466   : > { %2477 = vrot.lane.b32.xlu0 %v5216_v42, %s4943_s20  ;;  %1804 = vrot.lane.b32.xlu1 %v1219_v47, %s4945_s22  ;;  %v4374_v53 = vpop.f32.mrb[6].mxu0 }
 0x467   : > { %v5239_v54 = vpack.c.bf16 %v4374_v53, %v4373_v51  ;;  %v1156_v55 = vpop.f32.mrb[7].mxu0 }
 0x468   : > { %v5241_v56 = vpack.c.bf16 %v1156_v55, %v1153_v52 }
 0x46a   : > { %2730 = vrot.lane.b32.xlu0 %v5207_v32, %s4945_s22  ;;  %2001 = vrot.lane.b32.xlu1 %v1012_v46, %s4946_s16 }
 0x46e   : > { %2779 = vrot.lane.b32.xlu0 %v5218_v43, %s4945_s22  ;;  %2480 = vrot.lane.b32.xlu1 %v5207_v32, %s4943_s20 }
 0x472   : > { %2975 = vrot.lane.b32.xlu0 %v5216_v42, %s4946_s16  ;;  %2530 = vrot.lane.b32.xlu1 %v5218_v43, %s4943_s20 }
 0x474   : > { %v4397_v58 = vpop.f32.mrb[8].mxu0 }
 0x475   : > { %v1255_v59 = vpop.f32.mrb[9].mxu0 }
 0x476   : > { %v4398_v60 = vpop.f32.mrb[10].mxu0  ;;  %1941 = vrot.lane.b32.xlu0 %v5241_v56, %s4945_s22  ;;  %2728 = vrot.lane.b32.xlu1 %v5216_v42, %s4945_s22 }
 0x477   : > { %v5258_v61 = vpack.c.bf16 %v4398_v60, %v4397_v58  ;;  %v1258_v62 = vpop.f32.mrb[11].mxu0 }
 0x478   : > { %v1270_v63 = vpack.c.bf16 %v1258_v62, %v1255_v59 }
 0x47a   : > { %4412 = vmatpush3.bf16.msra.mxu0 %v1270_v63  ;;  %1645 = vrot.lane.b32.xlu0 %v1270_v63, %s4943_s20 }
 0x47b   : > { %2977 = vrot.lane.b32.xlu1 %v5207_v32, %s4946_s16  ;;  %4417 = vmatprep.subr.bf16.mxu0 %v4942_v57 }
 0x47e   : > { %1894 = vrot.lane.b32.xlu0 %v1270_v63, %s4945_s22 }
 0x47f   : > { %3026 = vrot.lane.b32.xlu1 %v5218_v43, %s4946_s16 }
 0x483   : > { %1693 = vrot.lane.b32.xlu1 %v5241_v56, %s4943_s20 }
 0x487   : > { %2142 = vrot.lane.b32.xlu1 %v1270_v63, %s4946_s16 }
 0x4cc   : > { %v1502_v0 = vpop.permute.xlu1 %1501  ;;  %v1754_v6 = vpop.permute.xlu0 %1753 }
 0x4cd   : > { %4426 = vmatmul.mubr.msk.bf16.vlgmr.msra.gmra.mrb[12].mxu1 %vm1272_vm3, %v1502_v0 }
 0x4ce   : > { %4431 = vmatprep.mubr.msk.bf16.mxu1 %vm4944_vm4, %v4942_v57 }
 0x4d0   : > { %v1555_v1 = vpop.permute.xlu1 %1554  ;;  %v2004_v8 = vpop.permute.xlu0 %2003 }
 0x4d1   : > { %v1557_v2 = vsel %vm1272_vm3, %v1555_v1, 0  ;;  %v2009_v9 = vsel %vm1272_vm3, %v2004_v8, 0 }
 0x4d2   : > { %4430 = vmatpush3.bf16.xpose.msra.mxu1 %v1557_v2 }
 0x4d3   : > { %4447 = vmatprep.subr.bf16.mxu1 %v4942_v57 }
 0x4d4   : > { %v1756_v3 = vpop.permute.xlu1 %1755  ;;  %v2053_v10 = vpop.permute.xlu0 %2052 }
 0x4d5   : > { %v1761_v4 = vsel %vm1272_vm3, %v1756_v3, 0  ;;  %v2055_v12 = vsel %vm1272_vm3, %v2053_v10, 0 }
 0x4d8   : > { %v1805_v5 = vpop.permute.xlu1 %1804  ;;  %v2478_v20 = vpop.permute.xlu0 %2477 }
 0x4d9   : > { %4432 = vmatmul.mubr.msk.bf16.vlgmr.msra.gmra.mrb[16].mxu1 %vm1272_vm3, %v1502_v0  ;;  %v1807_v7 = vsel %vm1272_vm3, %v1805_v5, 0 }
 0x4da   : > { %4448 = vmatpush3.bf16.xpose.msra.mxu1 %v1761_v4  ;;  %4449 = vmatprep.mubr.msk.bf16.mxu1 %vm4944_vm4, %v4942_v57 }
 0x4db   : > { %4453 = vmatprep.subr.bf16.mxu1 %v4942_v57 }
 0x4dc   : > { %v2002_v11 = vpop.permute.xlu1 %2001  ;;  %v2731_v22 = vpop.permute.xlu0 %2730 }
 0x4dd   : > { %v2736_v25 = vsel %vm1272_vm3, %v2731_v22, 0 }
 0x4e0   : > { %v2481_v17 = vpop.permute.xlu1 %2480  ;;  %v2780_v15 = vpop.permute.xlu0 %2779 }
 0x4e1   : > { %4450 = vmatmul.mubr.msk.bf16.vlgmr.msra.gmra.mrb[20].mxu1 %vm1272_vm3, %v1754_v6  ;;  %v2486_v18 = vsel %vm1272_vm3, %v2481_v17, 0  ;;  %v2782_v26 = vsel %vm1272_vm3, %v2780_v15, 0 }
 0x4e2   : > { %4454 = vmatpush3.bf16.xpose.msra.mxu1 %v1807_v7  ;;  %4455 = vmatprep.mubr.msk.bf16.mxu1 %vm4944_vm4, %v4942_v57 }
 0x4e3   : > { %4471 = vmatprep.subr.bf16.mxu1 %v4942_v57 }
 0x4e4   : > { %v2531_v19 = vpop.permute.xlu1 %2530  ;;  %v2976_v31 = vpop.permute.xlu0 %2975 }
 0x4e5   : > { %v2533_v21 = vsel %vm1272_vm3, %v2531_v19, 0 }
 0x4e8   : > { %v2729_v23 = vpop.permute.xlu1 %2728  ;;  %v5371_v55 = vpop.permute.xlu0 %1941 }
 0x4e9   : > { %4456 = vmatmul.mubr.msk.bf16.vlgmr.msra.gmra.mrb[24].mxu1 %vm1272_vm3, %v1754_v6 }
 0x4ea   : > { %4472 = vmatpush3.bf16.xpose.msra.mxu1 %v2009_v9  ;;  %4473 = vmatprep.mubr.msk.bf16.mxu1 %vm4944_vm4, %v4942_v57 }
 0x4eb   : > { %4477 = vmatprep.subr.bf16.mxu1 %v4942_v57 }
 0x4ec   : > { %v5379_v63 = vpop.permute.xlu0 %1645 }
 0x4ed   : > { %v2978_v27 = vpop.permute.xlu1 %2977 }
 0x4ee   : > { %v2983_v28 = vsel %vm1272_vm3, %v2978_v27, 0 }
 0x4f0   : > { %v5385_v3 = vpop.permute.xlu0 %1894 }
 0x4f1   : > { %4474 = vmatmul.mubr.msk.bf16.vlgmr.msra.gmra.mrb[28].mxu1 %vm1272_vm3, %v2002_v11  ;;  %v3027_v16 = vpop.permute.xlu1 %3026 }
 0x4f2   : > { %4478 = vmatpush3.bf16.xpose.msra.mxu1 %v2055_v12  ;;  %4479 = vmatprep.mubr.msk.bf16.mxu1 %vm4944_vm4, %v4942_v57  ;;  %v3029_v33 = vsel %vm1272_vm3, %v3027_v16, 0 }
 0x4f3   : > { %4495 = vmatprep.subr.bf16.mxu1 %v4942_v57 }
 0x4f5   : > { %v5389_v6 = vpop.permute.xlu1 %1693 }
 0x4f9   : > { %4480 = vmatmul.mubr.msk.bf16.vlgmr.msra.gmra.mrb[32].mxu1 %vm1272_vm3, %v2002_v11  ;;  %v5395_v11 = vpop.permute.xlu1 %2142 }
 0x4fa   : > { %4496 = vmatpush3.bf16.xpose.msra.mxu1 %v2253_v13  ;;  %4497 = vmatprep.mubr.msk.bf16.mxu1 %vm4944_vm4, %v4942_v57 }
 0x4fb   : > { %4501 = vmatprep.subr.bf16.mxu1 %v4942_v57 }
 0x501   : > { %4498 = vmatmul.mubr.msk.bf16.vlgmr.msra.gmra.mrb[36].mxu1 %vm1272_vm3, %v5216_v42 }
 0x502   : > { %4502 = vmatpush3.bf16.xpose.msra.mxu1 %v2297_v14  ;;  %4503 = vmatprep.mubr.msk.bf16.mxu1 %vm4944_vm4, %v4942_v57 }
 0x503   : > { %4519 = vmatprep.subr.bf16.mxu1 %v4942_v57 }
 0x509   : > { %4504 = vmatmul.mubr.msk.bf16.vlgmr.msra.gmra.mrb[40].mxu1 %vm1272_vm3, %v5216_v42 }
 0x50a   : > { %4520 = vmatpush3.bf16.xpose.msra.mxu1 %v2486_v18  ;;  %4521 = vmatprep.mubr.msk.bf16.mxu1 %vm4944_vm4, %v4942_v57 }
 0x50b   : > { %4525 = vmatprep.subr.bf16.mxu1 %v4942_v57 }
 0x511   : > { %4522 = vmatmul.mubr.msk.bf16.vlgmr.msra.gmra.mrb[44].mxu1 %vm1272_vm3, %v2478_v20 }
 0x512   : > { %4526 = vmatpush3.bf16.xpose.msra.mxu1 %v2533_v21  ;;  %4527 = vmatprep.mubr.msk.bf16.mxu1 %vm4944_vm4, %v4942_v57 }
 0x513   : > { %4543 = vmatprep.subr.bf16.mxu1 %v4942_v57 }
 0x519   : > { %4528 = vmatmul.mubr.msk.bf16.vlgmr.msra.gmra.mrb[48].mxu1 %vm1272_vm3, %v2478_v20 }
 0x51a   : > { %4544 = vmatpush3.bf16.xpose.msra.mxu1 %v2736_v25  ;;  %4545 = vmatprep.mubr.msk.bf16.mxu1 %vm4944_vm4, %v4942_v57 }
 0x51b   : > { %4549 = vmatprep.subr.bf16.mxu1 %v4942_v57 }
 0x521   : > { %4546 = vmatmul.mubr.msk.bf16.vlgmr.msra.gmra.mrb[52].mxu1 %vm1272_vm3, %v2729_v23 }
 0x522   : > { %4550 = vmatpush3.bf16.xpose.msra.mxu1 %v2782_v26  ;;  %4551 = vmatprep.mubr.msk.bf16.mxu1 %vm4944_vm4, %v4942_v57 }
 0x523   : > { %4567 = vmatprep.subr.bf16.mxu1 %v4942_v57 }
 0x529   : > { %4552 = vmatmul.mubr.msk.bf16.vlgmr.msra.gmra.mrb[56].mxu1 %vm1272_vm3, %v2729_v23 }
 0x52a   : > { %4568 = vmatpush3.bf16.xpose.msra.mxu1 %v2983_v28  ;;  %4569 = vmatprep.mubr.msk.bf16.mxu1 %vm4944_vm4, %v4942_v57 }
 0x52b   : > { %4573 = vmatprep.subr.bf16.mxu1 %v4942_v57 }
 0x52e   : > { %v5334_v24 = vpop.f32.mrb[12].mxu0 }
 0x52f   : > { %v4403_v29 = vpop.f32.mrb[13].mxu0  ;;  %v1364_v30 = vsel %vm1272_vm3, %v5334_v24, -inf }
 0x530   : > { %1365 = vmax.xlane.f32.xlu0 %v1364_v30  ;;  %v5338_v32 = vpop.f32.mrb[14].mxu0 }
 0x531   : > { %v4404_v34 = vpop.f32.mrb[15].mxu0  ;;  %v1367_v35 = vsel %vm1272_vm3, %v5338_v32, -inf  ;;  %4570 = vmatmul.mubr.msk.bf16.vlgmr.msra.gmra.mrb[60].mxu1 %vm1272_vm3, %v2976_v31 }
 0x532   : > { %1368 = vmax.xlane.f32.xlu1 %v1367_v35  ;;  %4574 = vmatpush3.bf16.xpose.msra.mxu1 %v3029_v33 }
 0x533   : > { %4575 = vmatprep.mubr.msk.bf16.mxu1 %vm4944_vm4, %v4942_v57 }
 0x536   : > { %v5346_v36 = vpop.f32.mrb[8].mxu1 }
 0x537   : > { %v4409_v37 = vpop.f32.mrb[9].mxu1  ;;  %v1370_v38 = vsel %vm1272_vm3, %v5346_v36, -inf }
 0x538   : > { %v5350_v39 = vpop.f32.mrb[10].mxu1  ;;  %1371 = vmax.xlane.f32.xlu0 %v1370_v38 }
 0x539   : > { %v4410_v40 = vpop.f32.mrb[11].mxu1  ;;  %4576 = vmatmul.mubr.msk.bf16.vlgmr.msra.gmra.mrb[64].mxu1 %vm1272_vm3, %v2976_v31  ;;  %v1373_v41 = vsel %vm1272_vm3, %v5350_v39, -inf }
 0x53c   : > { %1374 = vmax.xlane.f32.xlu0 %v1373_v41 }
 0x5a0   : > { %v5355_v42 = vpop.f32.mrb[12].mxu1 }
 0x5a1   : > { %v4427_v43 = vpop.f32.mrb[13].mxu1  ;;  %v1600_v44 = vsel %vm1272_vm3, %v5355_v42, -inf }
 0x5a2   : > { %1601 = vmax.xlane.f32.xlu0 %v1600_v44  ;;  %v5359_v45 = vpop.f32.mrb[14].mxu1 }
 0x5a3   : > { %v4428_v46 = vpop.f32.mrb[15].mxu1  ;;  %v1603_v47 = vsel %vm1272_vm3, %v5359_v45, -inf }
 0x5a4   : > { %1604 = vmax.xlane.f32.xlu1 %v1603_v47 }
 0x5ac   : > { %v5363_v48 = vpop.f32.mrb[16].mxu1 }
 0x5ad   : > { %v4433_v49 = vpop.f32.mrb[17].mxu1  ;;  %v1606_v50 = vsel %vm1272_vm3, %v5363_v48, -inf }
 0x5ae   : > { %1607 = vmax.xlane.f32.xlu0 %v1606_v50  ;;  %v5367_v51 = vpop.f32.mrb[18].mxu1 }
 0x5af   : > { %v4434_v52 = vpop.f32.mrb[19].mxu1  ;;  %v1609_v53 = vsel %vm1272_vm3, %v5367_v51, -inf }
 0x5b0   : > { %1610 = vmax.xlane.f32.xlu1 %v1609_v53 }
 0x5b4   : > { %v5373_v58 = vpop.f32.mrb[20].mxu1 }
 0x5b5   : > { %v4451_v59 = vpop.f32.mrb[21].mxu1  ;;  %v1850_v60 = vsel %vm1272_vm3, %v5373_v58, -inf }
 0x5b6   : > { %1851 = vmax.xlane.f32.xlu0 %v1850_v60  ;;  %v5377_v62 = vpop.f32.mrb[22].mxu1 }
 0x5b7   : > { %v4452_v0 = vpop.f32.mrb[23].mxu1  ;;  %v1853_v1 = vsel %vm1272_vm3, %v5377_v62, -inf }
 0x5b8   : > { %1854 = vmax.xlane.f32.xlu1 %v1853_v1 }
 0x5bc   : > { %v5383_v2 = vpop.f32.mrb[24].mxu1 }
 0x5bd   : > { %v4457_v4 = vpop.f32.mrb[25].mxu1  ;;  %v1856_v5 = vsel %vm1272_vm3, %v5383_v2, -inf  ;;  %v1366_v10 = vpop.xlane.xlu0 %1365 }
 0x5be   : > { %1857 = vmax.xlane.f32.xlu0 %v1856_v5  ;;  %v5391_v7 = vpop.f32.mrb[26].mxu1 }
 0x5bf   : > { %v4458_v8 = vpop.f32.mrb[27].mxu1  ;;  %v1859_v9 = vsel %vm1272_vm3, %v5391_v7, -inf  ;;  %v1369_v25 = vpop.xlane.xlu1 %1368 }
 0x5c0   : > { %1860 = vmax.xlane.f32.xlu1 %v1859_v9 }
 0x5c4   : > { %v5397_v12 = vpop.f32.mrb[28].mxu1 }
 0x5c5   : > { %v1372_v13 = vpop.xlane.xlu0 %1371  ;;  %v4475_v14 = vpop.f32.mrb[29].mxu1  ;;  %v2098_v17 = vsel %vm1272_vm3, %v5397_v12, -inf }
 0x5c6   : > { %v1376_v18 = vmax.f32 %v1366_v10, %v1372_v13  ;;  %2099 = vmax.xlane.f32.xlu1 %v2098_v17  ;;  %v5401_v19 = vpop.f32.mrb[30].mxu1 }
 0x5c7   : > { %v4476_v20 = vpop.f32.mrb[31].mxu1  ;;  %v2101_v23 = vsel %vm1272_vm3, %v5401_v19, -inf }
 0x5c8   : > { %v1378_v21 = vsub.f32 %v5334_v24, %v1376_v18  ;;  %v1384_v22 = vsub.f32 %v5346_v36, %v1376_v18 }
 0x5c9   : > { %v1375_v15 = vpop.xlane.xlu0 %1374 }
 0x5ca   : > { %v1380_v26 = vmul.f32 1.442695, %v1378_v21  ;;  %v1377_v27 = vmax.f32 %v1369_v25, %v1375_v15  ;;  %2102 = vmax.xlane.f32.xlu1 %v2101_v23  ;;  %v1386_v28 = vmul.f32 1.442695, %v1384_v22 }
 0x5cc   : > { %v1379_v16 = vsub.f32 %v5338_v32, %v1377_v27  ;;  %v1385_v29 = vsub.f32 %v5350_v39, %v1377_v27  ;;  %v5409_v30 = vpop.f32.mrb[32].mxu1  ;;  %4752 = vpow2.f32 %v1380_v26 }
 0x5cd   : > { %v4481_v31 = vpop.f32.mrb[33].mxu1  ;;  %v2104_v24 = vsel %vm1272_vm3, %v5409_v30, -inf  ;;  %4754 = vpow2.f32 %v1386_v28 }
 0x5ce   : > { %v1382_v33 = vmul.f32 1.442695, %v1379_v16  ;;  %v1388_v34 = vmul.f32 1.442695, %v1385_v29  ;;  %2105 = vmax.xlane.f32.xlu1 %v2104_v24  ;;  %v5413_v35 = vpop.f32.mrb[34].mxu1 }
 0x5cf   : > { %v4482_v36 = vpop.f32.mrb[35].mxu1  ;;  %v2107_v32 = vsel %vm1272_vm3, %v5413_v35, -inf }
 0x5d0   : > { %4756 = vpow2.f32 %v1382_v33 }
 0x5d1   : > { %4758 = vpow2.f32 %v1388_v34 }
 0x5d2   : > { %2108 = vmax.xlane.f32.xlu1 %v2107_v32 }
 0x5d4   : > { %v5417_v37 = vpop.f32.mrb[36].mxu1 }
 0x5d5   : > { %v4499_v38 = vpop.f32.mrb[37].mxu1  ;;  %v2340_v39 = vsel %vm1272_vm3, %v5417_v37, -inf }
 0x5d6   : > { %2341 = vmax.xlane.f32.xlu0 %v2340_v39  ;;  %v5421_v40 = vpop.f32.mrb[38].mxu1  ;;  %v5423_v43 = vpop.eup %4752 }
 0x5d7   : > { %v4500_v41 = vpop.f32.mrb[39].mxu1  ;;  %v5425_v44 = vpop.eup %4754  ;;  %v2343_v28 = vsel %vm1272_vm3, %v5421_v40, -inf }
 0x5da   : > { %v5427_v46 = vpop.eup %4756 }
 0x5db   : > { %v5429_v47 = vpop.eup %4758  ;;  %v1406_v49 = vpack.c.bf16 %v5427_v46, %v5423_v43 }
 0x5dc   : > { %v1407_v50 = vpack.c.bf16 %v5429_v47, %v5425_v44  ;;  %v5435_v52 = vpop.f32.mrb[40].mxu1 }
 0x5dd   : > { %v4505_v53 = vpop.f32.mrb[41].mxu1  ;;  %v2346_v59 = vsel %vm1272_vm3, %v5435_v52, -inf }
 0x5de   : > { %4414 = vmatmul.mubr.msk.bf16.vlgmr.msra.gmra.mrb[16].mxu0 %vm1272_vm3, %v1407_v50  ;;  %2347 = vmax.xlane.f32.xlu0 %v2346_v59  ;;  %v5440_v60 = vpop.f32.mrb[42].mxu1 }
 0x5df   : > { %4418 = vmatpush3.bf16.msra.mxu0 %v5241_v56  ;;  %v4506_v0 = vpop.f32.mrb[43].mxu1  ;;  %4419 = vmatprep.mubr.msk.bf16.mxu0 %vm4944_vm4, %v4942_v57  ;;  %v2349_v1 = vsel %vm1272_vm3, %v5440_v60, -inf }
 0x5e0   : > { %4435 = vmatprep.subr.bf16.mxu0 %v4942_v57 }
 0x5e2   : > { %2350 = vmax.xlane.f32.xlu0 %v2349_v1 }
 0x5e3   : > { %2189 = vrot.lane.b32.xlu1 %v5241_v56, %s4946_s16 }
 0x5e4   : > { %v5450_v4 = vpop.f32.mrb[44].mxu1 }
 0x5e5   : > { %v4523_v5 = vpop.f32.mrb[45].mxu1  ;;  %v2576_v29 = vsel %vm1272_vm3, %v5450_v4, -inf }
 0x5e6   : > { %v5452_v8 = vpop.f32.mrb[46].mxu1 }
 0x5e7   : > { %v4524_v9 = vpop.f32.mrb[47].mxu1  ;;  %v2579_v36 = vsel %vm1272_vm3, %v5452_v8, -inf }
 0x5ea   : > { %4420 = vmatmul.mubr.msk.bf16.vlgmr.msra.gmra.mrb[16].mxu0 %vm1272_vm3, %v1406_v49 }
 0x5eb   : > { %4436 = vmatpush3.bf16.msra.mxu0 %v5379_v63  ;;  %4437 = vmatprep.mubr.msk.bf16.mxu0 %vm4944_vm4, %v4942_v57 }
 0x5ec   : > { %v5458_v10 = vpop.f32.mrb[48].mxu1  ;;  %4441 = vmatprep.subr.bf16.mxu0 %v4942_v57 }
 0x5ed   : > { %v4529_v13 = vpop.f32.mrb[49].mxu1  ;;  %v2582_v32 = vsel %vm1272_vm3, %v5458_v10, -inf }
 0x5ee   : > { %v5461_v14 = vpop.f32.mrb[50].mxu1 }
 0x5ef   : > { %v4530_v56 = vpop.f32.mrb[51].mxu1  ;;  %v2585_v38 = vsel %vm1272_vm3, %v5461_v14, -inf }
 0x5f4   : > { %v5463_v17 = vpop.f32.mrb[52].mxu1 }
 0x5f5   : > { %v4547_v18 = vpop.f32.mrb[53].mxu1  ;;  %v2825_v39 = vsel %vm1272_vm3, %v5463_v17, -inf }
 0x5f6   : > { %v5465_v20 = vpop.f32.mrb[54].mxu1 }
 0x5f7   : > { %v4548_v21 = vpop.f32.mrb[55].mxu1  ;;  %v2828_v41 = vsel %vm1272_vm3, %v5465_v20, -inf }
 0x5f8   : > { %2669 = vrot.lane.b32.xlu0 %v5239_v54, %s4943_s20 }
 0x5fc   : > { %v5469_v63 = vpop.f32.mrb[56].mxu1 }
 0x5fd   : > { %v4553_v22 = vpop.f32.mrb[57].mxu1  ;;  %v2831_v49 = vsel %vm1272_vm3, %v5469_v63, -inf }
 0x5fe   : > { %v5471_v25 = vpop.f32.mrb[58].mxu1 }
 0x5ff   : > { %v4554_v15 = vpop.f32.mrb[59].mxu1  ;;  %v2834_v50 = vsel %vm1272_vm3, %v5471_v25, -inf }
 0x604   : > { %v5473_v23 = vpop.f32.mrb[60].mxu1 }
 0x605   : > { %v4571_v26 = vpop.f32.mrb[61].mxu1 }
 0x606   : > { %v5475_v27 = vpop.f32.mrb[62].mxu1 }
 0x607   : > { %2344 = vmax.xlane.f32.xlu1 %v2343_v28  ;;  %v4572_v16 = vpop.f32.mrb[63].mxu1  ;;  %v3075_v18 = vsel %vm1272_vm3, %v5475_v27, -inf }
 0x60b   : > { %2577 = vmax.xlane.f32.xlu1 %v2576_v29 }
 0x60c   : > { %v5481_v31 = vpop.f32.mrb[64].mxu1 }
 0x60d   : > { %v4577_v24 = vpop.f32.mrb[65].mxu1 }
 0x60e   : > { %v5483_v33 = vpop.f32.mrb[66].mxu1 }
 0x60f   : > { %v4578_v34 = vpop.f32.mrb[67].mxu1 }
 0x617   : > { %2580 = vmax.xlane.f32.xlu0 %v2579_v36 }
 0x61b   : > { %2583 = vmax.xlane.f32.xlu0 %v2582_v32 }
 0x61c   : > { %2621 = vrot.lane.b32.xlu1 %v5258_v61, %s4943_s20 }
 0x61f   : > { %2586 = vmax.xlane.f32.xlu0 %v2585_v38 }
 0x623   : > { %2826 = vmax.xlane.f32.xlu0 %v2825_v39 }
 0x627   : > { %2829 = vmax.xlane.f32.xlu0 %v2828_v41 }
 0x62b   : > { %2832 = vmax.xlane.f32.xlu0 %v2831_v49 }
 0x62f   : > { %2835 = vmax.xlane.f32.xlu0 %v2834_v50  ;;  %v1602_v53 = vpop.xlane.xlu0 %1601 }
 0x631   : > { %v1605_v59 = vpop.xlane.xlu1 %1604 }
 0x63b   : > { %v1608_v0 = vpop.xlane.xlu0 %1607 }
 0x63c   : > { %v1612_v1 = vmax.f32 %v1602_v53, %v1608_v0 }
 0x63d   : > { %v1611_v5 = vpop.xlane.xlu1 %1610 }
 0x63e   : > { %v1614_v9 = vsub.f32 %v5355_v42, %v1612_v1  ;;  %v1620_v13 = vsub.f32 %v5363_v48, %v1612_v1  ;;  %v1613_v56 = vmax.f32 %v1605_v59, %v1611_v5 }
 0x640   : > { %v1616_v21 = vmul.f32 1.442695, %v1614_v9  ;;  %v1615_v22 = vsub.f32 %v5359_v45, %v1613_v56  ;;  %v1621_v15 = vsub.f32 %v5367_v51, %v1613_v56  ;;  %3076 = vmax.xlane.f32.xlu1 %v3075_v18  ;;  %v1622_v26 = vmul.f32 1.442695, %v1620_v13 }
 0x642   : > { %v1618_v28 = vmul.f32 1.442695, %v1615_v22  ;;  %v1624_v16 = vmul.f32 1.442695, %v1621_v15  ;;  %4760 = vpow2.f32 %v1616_v21 }
 0x643   : > { %v1852_v42 = vpop.xlane.xlu0 %1851 }
 0x644   : > { %4762 = vpow2.f32 %v1618_v28 }
 0x645   : > { %4764 = vpow2.f32 %v1624_v16  ;;  %2869 = vrot.lane.b32.xlu0 %v5258_v61, %s4945_s22  ;;  %v1855_v48 = vpop.xlane.xlu1 %1854 }
 0x646   : > { %4766 = vpow2.f32 %v1622_v26 }
 0x64b   : > { %v1858_v29 = vpop.xlane.xlu0 %1857 }
 0x64c   : > { %v1862_v24 = vmax.f32 %v1852_v42, %v1858_v29  ;;  %v5509_v34 = vpop.eup %4760  ;;  %v3072_v29 = vsel %vm1272_vm3, %v5473_v23, -inf }
 0x64d   : > { %v1861_v45 = vpop.xlane.xlu1 %1860 }
 0x64e   : > { %v5511_v36 = vpop.eup %4762  ;;  %v1864_v51 = vsub.f32 %v5373_v58, %v1862_v24  ;;  %v1870_v32 = vsub.f32 %v5383_v2, %v1862_v24  ;;  %v1863_v38 = vmax.f32 %v1855_v48, %v1861_v45 }
 0x64f   : > { %v5515_v39 = vpop.eup %4764  ;;  %v1642_v41 = vpack.c.bf16 %v5511_v36, %v5509_v34 }
 0x650   : > { %v5519_v49 = vpop.eup %4766  ;;  %v1866_v50 = vmul.f32 1.442695, %v1864_v51  ;;  %v1872_v53 = vmul.f32 1.442695, %v1870_v32  ;;  %v1865_v59 = vsub.f32 %v5377_v62, %v1863_v38  ;;  %v1871_v0 = vsub.f32 %v5391_v7, %v1863_v38 }
 0x651   : > { %2916 = vrot.lane.b32.xlu1 %v5239_v54, %s4945_s22  ;;  %v1643_v58 = vpack.c.bf16 %v5515_v39, %v5519_v49  ;;  %s5924_s22 = sld [smem:[#allocation14_spill]] (!%p4170_p6) }
 0x652   : > { %4768 = vpow2.f32 %v1866_v50  ;;  %v1868_v2 = vmul.f32 1.442695, %v1865_v59  ;;  %v1874_v1 = vmul.f32 1.442695, %v1871_v0  ;;  %v1629_v50 = vsel %vm1272_vm3, %v5511_v36, 0.0 }
 0x653   : > { %4770 = vpow2.f32 %v1872_v53  ;;  %4438 = vmatmul.mubr.msk.bf16.vlgmr.msra.gmra.mrb[20].mxu0 %vm1272_vm3, %v1643_v58  ;;  %v2100_v5 = vpop.xlane.xlu1 %2099 }
 0x654   : > { %4772 = vpow2.f32 %v1868_v2  ;;  %4442 = vmatpush3.bf16.msra.mxu0 %v5389_v6  ;;  %4443 = vmatprep.mubr.msk.bf16.mxu0 %vm4944_vm4, %v4942_v57 }
 0x655   : > { %4774 = vpow2.f32 %v1874_v1  ;;  %4459 = vmatprep.subr.bf16.mxu0 %v4942_v57 }
 0x657   : > { %v2103_v62 = vpop.xlane.xlu1 %2102 }
 0x65b   : > { %v2106_v7 = vpop.xlane.xlu1 %2105 }
 0x65c   : > { %v5532_v9 = vpop.eup %4768  ;;  %v2110_v13 = vmax.f32 %v2100_v5, %v2106_v7 }
 0x65d   : > { %v4771_v56 = vpop.eup %4770 }
 0x65e   : > { %v5534_v18 = vpop.eup %4772  ;;  %v2112_v21 = vsub.f32 %v5397_v12, %v2110_v13  ;;  %v2118_v22 = vsub.f32 %v5409_v30, %v2110_v13  ;;  %v1882_v53 = vsel %vm1272_vm3, %v4771_v56, 0.0 }
 0x65f   : > { %v5538_v15 = vpop.eup %4774  ;;  %4444 = vmatmul.mubr.msk.bf16.vlgmr.msra.gmra.mrb[20].mxu0 %vm1272_vm3, %v1642_v41  ;;  %v2109_v6 = vpop.xlane.xlu1 %2108  ;;  %v1892_v26 = vpack.c.bf16 %v5534_v18, %v5532_v9 }
 0x660   : > { %v2114_v28 = vmul.f32 1.442695, %v2112_v21  ;;  %4460 = vmatpush3.bf16.msra.mxu0 %v5385_v3  ;;  %v2111_v16 = vmax.f32 %v2103_v62, %v2109_v6  ;;  %4461 = vmatprep.mubr.msk.bf16.mxu0 %vm4944_vm4, %v4942_v57  ;;  %v1893_v42 = vpack.c.bf16 %v5538_v15, %v4771_v56  ;;  %v2120_v12 = vmul.f32 1.442695, %v2118_v22 }
 0x661   : > { %4465 = vmatprep.subr.bf16.mxu0 %v4942_v57  ;;  %v3078_v3 = vsel %vm1272_vm3, %v5481_v31, -inf }
 0x662   : > { %v2113_v30 = vsub.f32 %v5401_v19, %v2111_v16  ;;  %v2119_v48 = vsub.f32 %v5413_v35, %v2111_v16  ;;  %4776 = vpow2.f32 %v2114_v28  ;;  %v3081_v19 = vsel %vm1272_vm3, %v5483_v33, -inf }
 0x663   : > { %4778 = vpow2.f32 %v2120_v12  ;;  %v2190_v59 = vpop.permute.xlu1 %2189  ;;  %v2342_v36 = vpop.xlane.xlu0 %2341 }
 0x664   : > { %v2116_v24 = vmul.f32 1.442695, %v2113_v30  ;;  %v2122_v45 = vmul.f32 1.442695, %v2119_v48  ;;  %3073 = vmax.xlane.f32.xlu0 %v3072_v29 }
 0x666   : > { %4780 = vpow2.f32 %v2116_v24  ;;  %v1632_v24 = vsel %vm1272_vm3, %v5519_v49, 0.0 }
 0x667   : > { %4782 = vpow2.f32 %v2122_v45  ;;  %4462 = vmatmul.mubr.msk.bf16.vlgmr.msra.gmra.mrb[24].mxu0 %vm1272_vm3, %v1893_v42  ;;  %v1626_v42 = vsel %vm1272_vm3, %v5509_v34, 0.0 }
 0x668   : > { %4466 = vmatpush3.bf16.msra.mxu0 %v5371_v55  ;;  %3079 = vmax.xlane.f32.xlu0 %v3078_v3 }
 0x669   : > { %4467 = vmatprep.mubr.msk.bf16.mxu0 %vm4944_vm4, %v4942_v57  ;;  %4483 = vmatprep.subr.bf16.mxu0 %v4942_v57 }
 0x66b   : > { %v2348_v58 = vpop.xlane.xlu0 %2347 }
 0x66c   : > { %3082 = vmax.xlane.f32.xlu0 %v3081_v19  ;;  %v4777_v35 = vpop.eup %4776  ;;  %v2352_v2 = vmax.f32 %v2342_v36, %v2348_v58 }
 0x66d   : > { %v4779_v51 = vpop.eup %4778  ;;  %v2124_v0 = vsel %vm1272_vm3, %v4777_v35, 0.0 }
 0x66e   : > { %v2354_v1 = vsub.f32 %v5417_v37, %v2352_v2  ;;  %v2360_v5 = vsub.f32 %v5435_v52, %v2352_v2 }
 0x66f   : > { %v2351_v62 = vpop.xlane.xlu0 %2350 }
 0x670   : > { %v5561_v32 = vpop.eup %4780  ;;  %v2356_v13 = vmul.f32 1.442695, %v2354_v1  ;;  %v2362_v21 = vmul.f32 1.442695, %v2360_v5 }
 0x671   : > { %v5563_v38 = vpop.eup %4782  ;;  %v2140_v41 = vpack.c.bf16 %v5561_v32, %v4777_v35  ;;  %v1635_v35 = vsel %vm1272_vm3, %v5515_v39, 0.0  ;;  %v2127_v5 = vsel %vm1272_vm3, %v5561_v32, 0.0 }
 0x672   : > { %v2141_v55 = vpack.c.bf16 %v5563_v38, %v4779_v51  ;;  %4784 = vpow2.f32 %v2356_v13 }
 0x673   : > { %4468 = vmatmul.mubr.msk.bf16.vlgmr.msra.gmra.mrb[24].mxu0 %vm1272_vm3, %v1892_v26  ;;  %4786 = vpow2.f32 %v2362_v21  ;;  %v5594_v28 = vpop.permute.xlu0 %2669 }
 0x674   : > { %4484 = vmatpush3.bf16.msra.mxu0 %v5395_v11  ;;  %4485 = vmatprep.mubr.msk.bf16.mxu0 %vm4944_vm4, %v4942_v57  ;;  %v2130_v11 = vsel %vm1272_vm3, %v4779_v51, 0.0 }
 0x675   : > { %1630 = vadd.xlane.f32.xlu1 %v1629_v50  ;;  %4489 = vmatprep.subr.bf16.mxu0 %v4942_v57 }
 0x679   : > { %1883 = vadd.xlane.f32.xlu1 %v1882_v53 }
 0x67b   : > { %4486 = vmatmul.mubr.msk.bf16.vlgmr.msra.gmra.mrb[28].mxu0 %vm1272_vm3, %v2141_v55 }
 0x67c   : > { %4490 = vmatpush3.bf16.msra.mxu0 %v2190_v59  ;;  %4491 = vmatprep.mubr.msk.bf16.mxu0 %vm4944_vm4, %v4942_v57  ;;  %v5596_v37 = vpop.eup %4784  ;;  %v1879_v59 = vsel %vm1272_vm3, %v5534_v18, 0.0 }
 0x67d   : > { %2125 = vadd.xlane.f32.xlu1 %v2124_v0  ;;  %4507 = vmatprep.subr.bf16.mxu0 %v4942_v57  ;;  %v5598_v52 = vpop.eup %4786 }
 0x681   : > { %2131 = vadd.xlane.f32.xlu1 %v2130_v11 }
 0x682   : > { %3116 = vrot.lane.b32.xlu0 %v5258_v61, %s4946_s16 }
 0x686   : > { %3163 = vrot.lane.b32.xlu0 %v5239_v54, %s4946_s16 }
 0x687   : > { %4492 = vmatmul.mubr.msk.bf16.vlgmr.msra.gmra.mrb[28].mxu0 %vm1272_vm3, %v2140_v41 }
 0x688   : > { %4508 = vmatpush3.bf16.msra.mxu0 %v5258_v61  ;;  %4509 = vmatprep.mubr.msk.bf16.mxu0 %vm4944_vm4, %v4942_v57 }
 0x689   : > { %4513 = vmatprep.subr.bf16.mxu0 %v4942_v57 }
 0x694   : > { %v2345_v7 = vpop.xlane.xlu1 %2344 }
 0x695   : > { %v2353_v56 = vmax.f32 %v2345_v7, %v2351_v62 }
 0x697   : > { %v2355_v22 = vsub.f32 %v5421_v40, %v2353_v56  ;;  %v2361_v61 = vsub.f32 %v5440_v60, %v2353_v56 }
 0x698   : > { %v2578_v48 = vpop.xlane.xlu1 %2577 }
 0x699   : > { %v2358_v6 = vmul.f32 1.442695, %v2355_v22  ;;  %v2364_v26 = vmul.f32 1.442695, %v2361_v61 }
 0x69b   : > { %4788 = vpow2.f32 %v2358_v6 }
 0x69c   : > { %4790 = vpow2.f32 %v2364_v26  ;;  %v2622_v0 = vpop.permute.xlu1 %2621 }
 0x6a4   : > { %v2581_v16 = vpop.xlane.xlu0 %2580 }
 0x6a5   : > { %v5602_v12 = vpop.eup %4788  ;;  %1627 = vadd.xlane.f32.xlu0 %v1626_v42  ;;  %v2133_v42 = vsel %vm1272_vm3, %v5563_v38, 0.0 }
 0x6a6   : > { %v5604_v40 = vpop.eup %4790  ;;  %v2382_v60 = vpack.c.bf16 %v5602_v12, %v5596_v37 }
 0x6a7   : > { %v2383_v30 = vpack.c.bf16 %v5604_v40, %v5598_v52 }
 0x6a8   : > { %v2584_v29 = vpop.xlane.xlu0 %2583 }
 0x6a9   : > { %4510 = vmatmul.mubr.msk.bf16.vlgmr.msra.gmra.mrb[32].mxu0 %vm1272_vm3, %v2383_v30  ;;  %v2588_v45 = vmax.f32 %v2578_v48, %v2584_v29  ;;  %1633 = vadd.xlane.f32.xlu0 %v1632_v24 }
 0x6aa   : > { %4514 = vmatpush3.bf16.msra.mxu0 %v5239_v54  ;;  %4515 = vmatprep.mubr.msk.bf16.mxu0 %vm4944_vm4, %v4942_v57 }
 0x6ab   : > { %v2590_v34 = vsub.f32 %v5450_v4, %v2588_v45  ;;  %v2596_v3 = vsub.f32 %v5458_v10, %v2588_v45  ;;  %4531 = vmatprep.subr.bf16.mxu0 %v4942_v57  ;;  %v1876_v4 = vsel %vm1272_vm3, %v5532_v9, 0.0 }
 0x6ac   : > { %v2587_v19 = vpop.xlane.xlu0 %2586 }
 0x6ad   : > { %v2592_v49 = vmul.f32 1.442695, %v2590_v34  ;;  %v2598_v51 = vmul.f32 1.442695, %v2596_v3  ;;  %v2589_v41 = vmax.f32 %v2581_v16, %v2587_v19  ;;  %1636 = vadd.xlane.f32.xlu0 %v1635_v35 }
 0x6af   : > { %4792 = vpow2.f32 %v2592_v49  ;;  %v2591_v54 = vsub.f32 %v5452_v8, %v2589_v41  ;;  %v2597_v55 = vsub.f32 %v5461_v14, %v2589_v41  ;;  %v1885_v14 = vsel %vm1272_vm3, %v5538_v15, 0.0 }
 0x6b0   : > { %v2827_v50 = vpop.xlane.xlu0 %2826  ;;  %4794 = vpow2.f32 %v2598_v51 }
 0x6b1   : > { %v2594_v10 = vmul.f32 1.442695, %v2591_v54  ;;  %v2600_v53 = vmul.f32 1.442695, %v2597_v55  ;;  %1877 = vadd.xlane.f32.xlu0 %v1876_v4 }
 0x6b3   : > { %4796 = vpow2.f32 %v2594_v10 }
 0x6b4   : > { %4798 = vpow2.f32 %v2600_v53  ;;  %v2830_v39 = vpop.xlane.xlu0 %2829 }
 0x6b5   : > { %4516 = vmatmul.mubr.msk.bf16.vlgmr.msra.gmra.mrb[32].mxu0 %vm1272_vm3, %v2382_v60  ;;  %1880 = vadd.xlane.f32.xlu0 %v1879_v59 }
 0x6b6   : > { %4532 = vmatpush3.bf16.msra.mxu0 %v2622_v0  ;;  %4533 = vmatprep.mubr.msk.bf16.mxu0 %vm4944_vm4, %v4942_v57 }
 0x6b7   : > { %4537 = vmatprep.subr.bf16.mxu0 %v4942_v57 }
 0x6b8   : > { %v2833_v8 = vpop.xlane.xlu0 %2832 }
 0x6b9   : > { %v4793_v9 = vpop.eup %4792  ;;  %v2837_v11 = vmax.f32 %v2827_v50, %v2833_v8  ;;  %1886 = vadd.xlane.f32.xlu0 %v1885_v14 }
 0x6ba   : > { %v2602_v36 = vsel %vm1272_vm3, %v4793_v9, 0.0  ;;  %v4795_v18 = vpop.eup %4794 }
 0x6bb   : > { %v2839_v58 = vsub.f32 %v5463_v17, %v2837_v11  ;;  %v2845_v2 = vsub.f32 %v5469_v63, %v2837_v11  ;;  %2603 = vadd.xlane.f32.xlu1 %v2602_v36  ;;  %v2608_v61 = vsel %vm1272_vm3, %v4795_v18, 0.0 }
 0x6bc   : > { %v2836_v1 = vpop.xlane.xlu0 %2835 }
 0x6bd   : > { %v4797_v62 = vpop.eup %4796  ;;  %v2841_v7 = vmul.f32 1.442695, %v2839_v58  ;;  %v2847_v13 = vmul.f32 1.442695, %v2845_v2  ;;  %v5638_v56 = vpop.f32.mrb[16].mxu0  ;;  %v2838_v15 = vmax.f32 %v2830_v39, %v2836_v1  ;;  %2128 = vadd.xlane.f32.xlu0 %v2127_v5 }
 0x6be   : > { %v4799_v21 = vpop.eup %4798  ;;  %v4421_v22 = vpop.f32.mrb[17].mxu0  ;;  %v2618_v6 = vpack.c.bf16 %v4797_v62, %v4793_v9 }
 0x6bf   : > { %4800 = vpow2.f32 %v2841_v7  ;;  %v2840_v17 = vsub.f32 %v5465_v20, %v2838_v15  ;;  %v2846_v63 = vsub.f32 %v5471_v25, %v2838_v15  ;;  %v5643_v26 = vpop.f32.mrb[18].mxu0  ;;  %2609 = vadd.xlane.f32.xlu1 %v2608_v61  ;;  %v2619_v32 = vpack.c.bf16 %v4799_v21, %v4795_v18 }
 0x6c0   : > { %v4422_v16 = vpop.f32.mrb[19].mxu0  ;;  %4802 = vpow2.f32 %v2847_v13  ;;  %v2605_v20 = vsel %vm1272_vm3, %v4797_v62, 0.0  ;;  %v2611_v25 = vsel %vm1272_vm3, %v4799_v21, 0.0  ;;  %v1390_v7 = vsel %vm1272_vm3, %v5423_v43, 0.0 }
 0x6c1   : > { %v2843_v60 = vmul.f32 1.442695, %v2840_v17  ;;  %v2849_v30 = vmul.f32 1.442695, %v2846_v63  ;;  %4534 = vmatmul.mubr.msk.bf16.vlgmr.msra.gmra.mrb[36].mxu0 %vm1272_vm3, %v2619_v32  ;;  %2134 = vadd.xlane.f32.xlu0 %v2133_v42  ;;  %v1396_v15 = vsel %vm1272_vm3, %v5425_v44, 0.0  ;;  %v1393_v21 = vsel %vm1272_vm3, %v5427_v46, 0.0 }
 0x6c2   : > { %4538 = vmatpush3.bf16.msra.mxu0 %v5594_v28  ;;  %4539 = vmatprep.mubr.msk.bf16.mxu0 %vm4944_vm4, %v4942_v57  ;;  %v2870_v28 = vpop.permute.xlu0 %2869  ;;  %v2366_v22 = vsel %vm1272_vm3, %v5596_v37, 0.0  ;;  %v1399_v43 = vsel %vm1272_vm3, %v5429_v47, 0.0  ;;  %v2369_v44 = vsel %vm1272_vm3, %v5602_v12, 0.0  ;;  %v2375_v46 = vsel %vm1272_vm3, %v5604_v40, 0.0 }
 0x6c3   : > { %4804 = vpow2.f32 %v2843_v60  ;;  %4555 = vmatprep.subr.bf16.mxu0 %v4942_v57 }
 0x6c4   : > { %4806 = vpow2.f32 %v2849_v30 }
 0x6c5   : > { %2606 = vadd.xlane.f32.xlu0 %v2605_v20 }
 0x6c9   : > { %v4801_v38 = vpop.eup %4800  ;;  %2612 = vadd.xlane.f32.xlu0 %v2611_v25 }
 0x6ca   : > { %v2851_v48 = vsel %vm1272_vm3, %v4801_v38, 0.0  ;;  %v4803_v29 = vpop.eup %4802 }
 0x6cb   : > { %2852 = vadd.xlane.f32.xlu1 %v2851_v48  ;;  %v2857_v34 = vsel %vm1272_vm3, %v4803_v29, 0.0 }
 0x6cd   : > { %v4805_v24 = vpop.eup %4804  ;;  %4540 = vmatmul.mubr.msk.bf16.vlgmr.msra.gmra.mrb[36].mxu0 %vm1272_vm3, %v2618_v6  ;;  %v3077_v35 = vpop.xlane.xlu1 %3076 }
 0x6ce   : > { %v4807_v45 = vpop.eup %4806  ;;  %4556 = vmatpush3.bf16.msra.mxu0 %v2870_v28  ;;  %v2854_v3 = vsel %vm1272_vm3, %v4805_v24, 0.0  ;;  %4557 = vmatprep.mubr.msk.bf16.mxu0 %vm4944_vm4, %v4942_v57  ;;  %v2867_v19 = vpack.c.bf16 %v4805_v24, %v4801_v38 }
 0x6cf   : > { %2858 = vadd.xlane.f32.xlu1 %v2857_v34  ;;  %2855 = vadd.xlane.f32.xlu0 %v2854_v3  ;;  %v2868_v49 = vpack.c.bf16 %v4807_v45, %v4803_v29  ;;  %v2860_v51 = vsel %vm1272_vm3, %v4807_v45, 0.0 }
 0x6d0   : > { %4561 = vmatprep.subr.bf16.mxu0 %v4942_v57 }
 0x6d1   : > { %v2917_v41 = vpop.permute.xlu1 %2916 }
 0x6d3   : > { %2861 = vadd.xlane.f32.xlu0 %v2860_v51 }
 0x6d5   : > { %4558 = vmatmul.mubr.msk.bf16.vlgmr.msra.gmra.mrb[40].mxu0 %vm1272_vm3, %v2868_v49 }
 0x6d6   : > { %4562 = vmatpush3.bf16.msra.mxu0 %v2917_v41  ;;  %4563 = vmatprep.mubr.msk.bf16.mxu0 %vm4944_vm4, %v4942_v57 }
 0x6d7   : > { %4579 = vmatprep.subr.bf16.mxu0 %v4942_v57 }
 0x6e1   : > { %4564 = vmatmul.mubr.msk.bf16.vlgmr.msra.gmra.mrb[40].mxu0 %vm1272_vm3, %v2867_v19 }
 0x6e2   : > { %4581 = vmatprep.mubr.msk.bf16.mxu0 %vm4944_vm4, %v4942_v57 }
 0x6f1   : > { %v3074_v54 = vpop.xlane.xlu0 %3073 }
 0x6f5   : > { %v3080_v55 = vpop.xlane.xlu0 %3079 }
 0x6f6   : > { %v3084_v50 = vmax.f32 %v3074_v54, %v3080_v55 }
 0x6f8   : > { %v3086_v4 = vsub.f32 %v5473_v23, %v3084_v50  ;;  %v3092_v10 = vsub.f32 %v5481_v31, %v3084_v50 }
 0x6f9   : > { %v3083_v53 = vpop.xlane.xlu0 %3082 }
 0x6fa   : > { %v3088_v39 = vmul.f32 1.442695, %v3086_v4  ;;  %v3094_v59 = vmul.f32 1.442695, %v3092_v10  ;;  %v3085_v0 = vmax.f32 %v3077_v35, %v3083_v53 }
 0x6fc   : > { %4808 = vpow2.f32 %v3088_v39  ;;  %v3087_v8 = vsub.f32 %v5475_v27, %v3085_v0  ;;  %v3093_v14 = vsub.f32 %v5483_v33, %v3085_v0 }
 0x6fd   : > { %v3117_v9 = vpop.permute.xlu0 %3116  ;;  %4810 = vpow2.f32 %v3094_v59 }
 0x6fe   : > { %v3090_v11 = vmul.f32 1.442695, %v3087_v8  ;;  %v3096_v36 = vmul.f32 1.442695, %v3093_v14  ;;  %4580 = vmatpush3.bf16.msra.mxu0 %v3117_v9 }
 0x6ff   : > { %4585 = vmatprep.subr.bf16.mxu0 %v4942_v57 }
 0x700   : > { %4812 = vpow2.f32 %v3090_v11 }
 0x701   : > { %4814 = vpow2.f32 %v3096_v36  ;;  %v3164_v62 = vpop.permute.xlu0 %3163 }
 0x702   : > { %v1631_v32 = vpop.xlane.xlu1 %1630 }
 0x706   : > { %v4809_v23 = vpop.eup %4808  ;;  %v1884_v60 = vpop.xlane.xlu1 %1883 }
 0x707   : > { %v3098_v31 = vsel %vm1272_vm3, %v4809_v23, 0.0  ;;  %v4811_v18 = vpop.eup %4810 }
 0x708   : > { %3099 = vadd.xlane.f32.xlu1 %v3098_v31  ;;  %v3104_v27 = vsel %vm1272_vm3, %v4811_v18, 0.0 }
 0x70a   : > { %v4813_v58 = vpop.eup %4812  ;;  %v2126_v40 = vpop.xlane.xlu1 %2125 }
 0x70b   : > { %v4815_v2 = vpop.eup %4814  ;;  %v3101_v33 = vsel %vm1272_vm3, %v4813_v58, 0.0  ;;  %v3114_v1 = vpack.c.bf16 %v4813_v58, %v4809_v23 }
 0x70c   : > { %3105 = vadd.xlane.f32.xlu1 %v3104_v27  ;;  %3102 = vadd.xlane.f32.xlu0 %v3101_v33  ;;  %v3115_v5 = vpack.c.bf16 %v4815_v2, %v4811_v18  ;;  %v3107_v13 = vsel %vm1272_vm3, %v4815_v2, 0.0 }
 0x70e   : > { %4582 = vmatmul.mubr.msk.bf16.vlgmr.msra.gmra.mrb[44].mxu0 %vm1272_vm3, %v3115_v5  ;;  %v2132_v19 = vpop.xlane.xlu1 %2131 }
 0x70f   : > { %4586 = vmatpush3.bf16.msra.mxu0 %v3164_v62  ;;  %4587 = vmatprep.mubr.msk.bf16.mxu0 %vm4944_vm4, %v4942_v57  ;;  %v2372_v57 = vsel %vm1272_vm3, %v5598_v52, 0.0  ;;  %v2136_v41 = vadd.f32 %v2132_v19, %v2126_v40 }
 0x710   : > { %1391 = vadd.xlane.f32.xlu1 %v1390_v7  ;;  %3108 = vadd.xlane.f32.xlu0 %v3107_v13 }
 0x714   : > { %1397 = vadd.xlane.f32.xlu1 %v1396_v15  ;;  %1394 = vadd.xlane.f32.xlu0 %v1393_v21 }
 0x718   : > { %2367 = vadd.xlane.f32.xlu1 %v2366_v22  ;;  %1400 = vadd.xlane.f32.xlu0 %v1399_v43 }
 0x71a   : > { %4588 = vmatmul.mubr.msk.bf16.vlgmr.msra.gmra.mrb[44].mxu0 %vm1272_vm3, %v3114_v1 }
 0x71c   : > { %2373 = vadd.xlane.f32.xlu1 %v2372_v57  ;;  %2370 = vadd.xlane.f32.xlu0 %v2369_v44 }
 0x720   : > { %2376 = vadd.xlane.f32.xlu0 %v2375_v46 }
 0x732   : > { %v1733_v37 = vpop.f32.mrb[20].mxu0  ;;  %v1628_v61 = vpop.xlane.xlu0 %1627 }
 0x733   : > { %v4445_v6 = vpop.f32.mrb[21].mxu0 }
 0x734   : > { %v1736_v47 = vpop.f32.mrb[22].mxu0 }
 0x735   : > { %v4446_v17 = vpop.f32.mrb[23].mxu0 }
 0x736   : > { %v1634_v63 = vpop.xlane.xlu0 %1633 }
 0x737   : > { %v1638_v16 = vadd.f32 %v1634_v63, %v1628_v61 }
 0x739   : > { %4816 = vrcp.f32 %v1638_v16 }
 0x73a   : > { %v1637_v42 = vpop.xlane.xlu0 %1636 }
 0x73b   : > { %v1639_v52 = vadd.f32 %v1637_v42, %v1631_v32 }
 0x73d   : > { %4818 = vrcp.f32 %v1639_v52 }
 0x73e   : > { %v1878_v12 = vpop.xlane.xlu0 %1877 }
 0x73f   : > { %v1888_v30 = vadd.f32 %v1884_v60, %v1878_v12 }
 0x741   : > { %4820 = vrcp.f32 %v1888_v30 }
 0x742   : > { %v1881_v20 = vpop.xlane.xlu0 %1880 }
 0x743   : > { %v4817_v25 = vpop.eup %4816 }
 0x744   : > { %v1740_v38 = vmul.f32 %v4817_v25, %v1733_v37 }
 0x746   : > { %v1981_v48 = vpop.f32.mrb[24].mxu0  ;;  %1744 = vrot.lane.b32.xlu1 %v1740_v38, %s4947_s27  ;;  %v1887_v29 = vpop.xlane.xlu0 %1886 }
 0x747   : > { %v4819_v24 = vpop.eup %4818  ;;  %v4469_v28 = vpop.f32.mrb[25].mxu0  ;;  %v1889_v45 = vadd.f32 %v1887_v29, %v1881_v20 }
 0x748   : > { %v1984_v34 = vpop.f32.mrb[26].mxu0  ;;  %v1741_v3 = vmul.f32 %v4819_v24, %v1736_v47  ;;  %v2604_v36 = vpop.xlane.xlu1 %2603  ;;  %v4712_v28 = vld [vmem:[%s5080_s24] sm:$0xff]  }
 0x749   : > { %4822 = vrcp.f32 %v1889_v45  ;;  %v4470_v35 = vpop.f32.mrb[27].mxu0  ;;  %4591 = vmatprep.subr.bf16.mxu1 %v4712_v28 }
 0x74a   : > { %1746 = vrot.lane.b32.xlu0 %v1741_v3, %s4947_s27  ;;  %v2129_v49 = vpop.xlane.xlu0 %2128  ;;  %4824 = vrcp.f32 %v2136_v41  ;;  %4592 = vmatpush3.bf16.msra.mxu1 %v4712_v28 }
 0x74b   : > { %v4821_v51 = vpop.eup %4820 }
 0x74c   : > { %v1988_v54 = vmul.f32 %v4821_v51, %v1981_v48  ;;  %v2610_v31 = vpop.xlane.xlu1 %2609 }
 0x74d   : > { %v2614_v7 = vadd.f32 %v2610_v31, %v2604_v36 }
 0x74e   : > { %1992 = vrot.lane.b32.xlu1 %v1988_v54, %s4948_s29  ;;  %v2135_v55 = vpop.xlane.xlu0 %2134 }
 0x74f   : > { %v2137_v50 = vadd.f32 %v2135_v55, %v2129_v49 }
 0x751   : > { %4826 = vrcp.f32 %v2137_v50 }
 0x752   : > { %v2607_v23 = vpop.xlane.xlu0 %2606  ;;  %4828 = vrcp.f32 %v2614_v7 }
 0x753   : > { %v4823_v4 = vpop.eup %4822 }
 0x754   : > { %v1989_v10 = vmul.f32 %v4823_v4, %v1984_v34  ;;  %v4825_v53 = vpop.eup %4824 }
 0x756   : > { %1994 = vrot.lane.b32.xlu1 %v1989_v10, %s4948_s29  ;;  %v2613_v2 = vpop.xlane.xlu0 %2612 }
 0x757   : > { %v2615_v13 = vadd.f32 %v2613_v2, %v2607_v23  ;;  %v4714_v2 = vld [vmem:[%s5080_s24 + $0x10] sm:$0xff]  }
 0x758   : > { %v2853_v33 = vpop.xlane.xlu1 %2852 }
 0x759   : > { %4830 = vrcp.f32 %v2615_v13 }
 0x75a   : > { %v2229_v39 = vpop.f32.mrb[28].mxu0 }
 0x75b   : > { %v4827_v59 = vpop.eup %4826  ;;  %v2236_v0 = vmul.f32 %v4825_v53, %v2229_v39  ;;  %v4493_v8 = vpop.f32.mrb[29].mxu0 }
 0x75c   : > { %v2232_v14 = vpop.f32.mrb[30].mxu0  ;;  %v2856_v5 = vpop.xlane.xlu0 %2855 }
 0x75d   : > { %v2237_v9 = vmul.f32 %v4827_v59, %v2232_v14  ;;  %v4494_v11 = vpop.f32.mrb[31].mxu0  ;;  %2240 = vrot.lane.b32.xlu0 %v2236_v0, %s4949_s21  ;;  %v2859_v62 = vpop.xlane.xlu1 %2858 }
 0x75e   : > { %v4829_v61 = vpop.eup %4828  ;;  %v2863_v20 = vadd.f32 %v2859_v62, %v2853_v33 }
 0x75f   : > { %2242 = vrot.lane.b32.xlu1 %v2237_v9, %s4949_s21 }
 0x760   : > { %v2862_v15 = vpop.xlane.xlu0 %2861 }
 0x761   : > { %v2864_v40 = vadd.f32 %v2862_v15, %v2856_v5 }
 0x763   : > { %v4831_v32 = vpop.eup %4830 }
 0x788   : > { %v5704_v18 = vpop.f32.mrb[32].mxu0 }
 0x789   : > { %v4517_v58 = vpop.f32.mrb[33].mxu0 }
 0x78a   : > { %v5706_v27 = vpop.f32.mrb[34].mxu0  ;;  %v4713_v58 = vld [vmem:[%s5080_s24 + $0x8] sm:$0xff]  }
 0x78b   : > { %v4518_v1 = vpop.f32.mrb[35].mxu0  ;;  %4593 = vmatprep.subr.bf16.mxu1 %v4713_v58 }
 0x78c   : > { %4594 = vmatpush3.bf16.msra.mxu1 %v4713_v58  ;;  %v4950_v58 = vmov 0  }
 0x78d   : > { %4595 = vmatprep.subr.bf16.mxu1 %v4714_v2  ;;  %3475 = vmatprep.mubr.bf16.mxu0 %v4950_v58 }
 0x790   : > { %4596 = vmatpush3.bf16.msra.mxu1 %v4714_v2  ;;  %v4728_v2 = vld [vmem:[%s5090_s5 + $0x40] sm:$0xff]  }
 0x795   : > { %v3100_v21 = vpop.xlane.xlu1 %3099 }
 0x799   : > { %v3106_v22 = vpop.xlane.xlu1 %3105  ;;  %v3103_v43 = vpop.xlane.xlu0 %3102 }
 0x79a   : > { %v5708_v57 = vadd.f32 %v3106_v22, %v3100_v21 }
 0x79d   : > { %v1392_v44 = vpop.xlane.xlu1 %1391  ;;  %v3109_v46 = vpop.xlane.xlu0 %3108 }
 0x79e   : > { %v5710_v37 = vadd.f32 %v3109_v46, %v3103_v43 }
 0x7a0   : > { %v2709_v6 = vpop.f32.mrb[36].mxu0 }
 0x7a1   : > { %v2716_v47 = vmul.f32 %v4829_v61, %v2709_v6  ;;  %v4541_v17 = vpop.f32.mrb[37].mxu0  ;;  %v1398_v63 = vpop.xlane.xlu1 %1397 }
 0x7a2   : > { %v2712_v16 = vpop.f32.mrb[38].mxu0  ;;  %v1402_v42 = vadd.f32 %v1398_v63, %v1392_v44  ;;  %v1395_v52 = vpop.xlane.xlu0 %1394 }
 0x7a3   : > { %v2717_v60 = vmul.f32 %v4831_v32, %v2712_v16  ;;  %v4542_v12 = vpop.f32.mrb[39].mxu0  ;;  %2720 = vrot.lane.b32.xlu0 %v2716_v47, %s4947_s27  ;;  %v4872_v32 = vld [vmem:[#allocation3] sm:$0xff] }
 0x7a4   : > { %4832 = vrcp.f32 %v1402_v42 }
 0x7a5   : > { %2722 = vrot.lane.b32.xlu1 %v2717_v60, %s4947_s27  ;;  %v2368_v30 = vpop.xlane.xlu1 %2367  ;;  %v4873_v60 = vld [vmem:[#allocation3 + $0x10] sm:$0xff] }
 0x7a6   : > { %v1401_v25 = vpop.xlane.xlu0 %1400 }
 0x7a7   : > { %v1403_v38 = vadd.f32 %v1401_v25, %v1395_v52 }
 0x7a9   : > { %4834 = vrcp.f32 %v1403_v38  ;;  %v2374_v48 = vpop.xlane.xlu1 %2373  ;;  %v4875_v38 = vld [vmem:[#allocation3 + $0x18] sm:$0xff] }
 0x7aa   : > { %4836 = vrcp.f32 %v2863_v20  ;;  %v2378_v29 = vadd.f32 %v2374_v48, %v2368_v30  ;;  %v2371_v24 = vpop.xlane.xlu0 %2370  ;;  %v4874_v30 = vld [vmem:[#allocation3 + $0x8] sm:$0xff] }
 0x7ab   : > { %4838 = vrcp.f32 %v2864_v40 }
 0x7ac   : > { %4840 = vrcp.f32 %v2378_v29 }
 0x7ae   : > { %v4833_v45 = vpop.eup %4832  ;;  %v2377_v34 = vpop.xlane.xlu0 %2376 }
 0x7af   : > { %v2379_v3 = vadd.f32 %v2377_v34, %v2371_v24  ;;  %v1496_v19 = vmul.f32 %v4833_v45, %v5638_v56 }
 0x7b1   : > { %4842 = vrcp.f32 %v2379_v3  ;;  %1498 = vst.msk [vmem:[#allocation4] sm:$0xff] %vm1272_vm3, %v1496_v19 }
 0x7b2   : > { %4844 = vrcp.f32 %v5708_v57 }
 0x7b3   : > { %v4835_v35 = vpop.eup %4834  ;;  %4846 = vrcp.f32 %v5710_v37 }
 0x7b4   : > { %v4837_v49 = vpop.eup %4836  ;;  %v2956_v51 = vpop.f32.mrb[40].mxu0  ;;  %v1497_v41 = vmul.f32 %v4835_v35, %v5643_v26 }
 0x7b5   : > { %v4839_v54 = vpop.eup %4838  ;;  %v2963_v55 = vmul.f32 %v4837_v49, %v2956_v51  ;;  %v4565_v50 = vpop.f32.mrb[41].mxu0 }
 0x7b6   : > { %v4841_v4 = vpop.eup %4840  ;;  %v2959_v10 = vpop.f32.mrb[42].mxu0  ;;  %1499 = vst.msk [vmem:[#allocation4 + $0x8] sm:$0xff] %vm1272_vm3, %v1497_v41 }
 0x7b7   : > { %v2964_v53 = vmul.f32 %v4839_v54, %v2959_v10  ;;  %v4566_v39 = vpop.f32.mrb[43].mxu0  ;;  %2967 = vrot.lane.b32.xlu0 %v2963_v55, %s4948_s29  ;;  %v2472_v56 = vmul.f32 %v4841_v4, %v5704_v18 }
 0x7b8   : > { %v1745_v59 = vpop.permute.xlu1 %1744 }
 0x7b9   : > { %1751 = vst.msk [vmem:[#allocation4] sm:$0xff] %vm1750_vm5, %v1745_v59  ;;  %2969 = vrot.lane.b32.xlu1 %v2964_v53, %s4948_s29 }
 0x7ba   : > { %2474 = vst.msk [vmem:[#allocation4 + $0x10] sm:$0xff] %vm1272_vm3, %v2472_v56 }
 0x7bb   : > { %v4843_v26 = vpop.eup %4842 }
 0x7bc   : > { %v1747_v0 = vpop.permute.xlu0 %1746  ;;  %v2473_v8 = vmul.f32 %v4843_v26, %v5706_v27  ;;  %v4715_v27 = vld [vmem:[%s5080_s24 + $0x18] sm:$0xff]   ;;  %v4845_v33 = vpop.eup %4844 }
 0x7bd   : > { %1752 = vst.msk [vmem:[#allocation4 + $0x8] sm:$0xff] %vm1750_vm5, %v1747_v0  ;;  %4597 = vmatprep.subr.bf16.mxu1 %v4715_v27  ;;  %v4847_v7 = vpop.eup %4846 }
 0x7be   : > { %2475 = vst.msk [vmem:[#allocation4 + $0x18] sm:$0xff] %vm1272_vm3, %v2473_v8  ;;  %4598 = vmatpush3.bf16.msra.mxu1 %v4715_v27  ;;  %v4718_v8 = vld [vmem:[%s5085_s30 + $0x4] ss:$8 sps:$4 sm:$0xff]  }
 0x7bf   : > { %3443 = vmatprep.subr.bf16.mxu0 %v4718_v8  ;;  %v4729_v27 = vld [vmem:[%s5090_s5] sm:$0xff]   ;;  %4295 = vmatprep.subr.bf16.mxu1 %v4728_v2 }
 0x7c0   : > { %v1993_v14 = vpop.permute.xlu1 %1992 }
 0x7c1   : > { %1999 = vst.msk [vmem:[#allocation4] sm:$0xff] %vm1998_vm6, %v1993_v14  ;;  %v4716_v14 = vld [vmem:[%s5085_s30] ss:$8 sps:$4 sm:$0xff]  }
 0x7c2   : > { %3444 = vmatpush1.bf16.msra.mxu0 %v4716_v14 }
 0x7c8   : > { %v1995_v9 = vpop.permute.xlu1 %1994 }
 0x7c9   : > { %2000 = vst.msk [vmem:[#allocation4 + $0x8] sm:$0xff] %vm1998_vm6, %v1995_v9  ;;  %v4721_v9 = vld [vmem:[%s5085_s30 + $0x14] ss:$8 sps:$4 sm:$0xff]  }
 0x7ca   : > { %3445 = vmatprep.subr.bf16.mxu0 %v4721_v9 }
 0x7cf   : > { %v2241_v11 = vpop.permute.xlu0 %2240 }
 0x7d0   : > { %2247 = vst.msk [vmem:[#allocation4] sm:$0xff] %vm2246_vm7, %v2241_v11  ;;  %v4719_v11 = vld [vmem:[%s5085_s30 + $0x10] ss:$8 sps:$4 sm:$0xff]  }
 0x7d1   : > { %v2243_v36 = vpop.permute.xlu1 %2242  ;;  %3446 = vmatpush1.bf16.msra.mxu0 %v4719_v11 }
 0x7d2   : > { %2248 = vst.msk [vmem:[#allocation4 + $0x8] sm:$0xff] %vm2246_vm7, %v2243_v36  ;;  %v4724_v36 = vld [vmem:[%s5085_s30 + $0x24] ss:$8 sps:$4 sm:$0xff]  }
 0x7d3   : > { %3447 = vmatprep.subr.bf16.mxu0 %v4724_v36 }
 0x7d7   : > { %v3222_v23 = vld [vmem:[#allocation4] sm:$0xff] }
 0x7d9   : > { %v3223_v31 = vld [vmem:[#allocation4 + $0x8] sm:$0xff] }
 0x7da   : > { %v3226_v18 = vpack.c.bf16 %v3223_v31, %v3222_v23  ;;  %v4722_v23 = vld [vmem:[%s5085_s30 + $0x20] ss:$8 sps:$4 sm:$0xff]   ;;  %v4727_v31 = vld [vmem:[%s5085_s30 + $0x34] ss:$8 sps:$4 sm:$0xff]  }
 0x7db   : > { %3448 = vmatpush1.bf16.msra.mxu0 %v4722_v23 }
 0x7dc   : > { %4599 = vmatprep.mubr.msk.bf16.mxu1 %vm837_vm2, %v3226_v18  ;;  %v4725_v18 = vld [vmem:[%s5085_s30 + $0x30] ss:$8 sps:$4 sm:$0xff]   ;;  %3449 = vmatprep.subr.bf16.mxu0 %v4727_v31 }
 0x7df   : > { %3450 = vmatpush1.bf16.msra.mxu0 %v4725_v18 }
 0x7ed   : > { %v3203_v1 = vpop.f32.mrb[44].mxu0 }
 0x7ee   : > { %v3210_v5 = vmul.f32 %v4845_v33, %v3203_v1  ;;  %v4589_v62 = vpop.f32.mrb[45].mxu0  ;;  %v4730_v33 = vld [vmem:[%s5090_s5 + $0x48] sm:$0xff]  }
 0x7ef   : > { %v3206_v13 = vpop.f32.mrb[46].mxu0  ;;  %v4731_v1 = vld [vmem:[%s5090_s5 + $0x8] sm:$0xff]  }
 0x7f0   : > { %v3211_v15 = vmul.f32 %v4847_v7, %v3206_v13  ;;  %v4590_v21 = vpop.f32.mrb[47].mxu0  ;;  %3214 = vrot.lane.b32.xlu0 %v3210_v5, %s4949_s21 }
 0x7f2   : > { %3216 = vrot.lane.b32.xlu1 %v3211_v15, %s4949_s21 }
 0x815   : > { %v2721_v22 = vpop.permute.xlu0 %2720 }
 0x816   : > { %2726 = vst.msk [vmem:[#allocation4 + $0x10] sm:$0xff] %vm1750_vm5, %v2721_v22 }
 0x817   : > { %v2723_v43 = vpop.permute.xlu1 %2722 }
 0x818   : > { %2727 = vst.msk [vmem:[#allocation4 + $0x18] sm:$0xff] %vm1750_vm5, %v2723_v43 }
 0x829   : > { %v2968_v57 = vpop.permute.xlu0 %2967 }
 0x82a   : > { %2973 = vst.msk [vmem:[#allocation4 + $0x10] sm:$0xff] %vm1998_vm6, %v2968_v57 }
 0x82b   : > { %v2970_v44 = vpop.permute.xlu1 %2969 }
 0x82c   : > { %2974 = vst.msk [vmem:[#allocation4 + $0x18] sm:$0xff] %vm1998_vm6, %v2970_v44 }
 0x862   : > { %v3215_v46 = vpop.permute.xlu0 %3214 }
 0x863   : > { %3220 = vst.msk [vmem:[#allocation4 + $0x10] sm:$0xff] %vm2246_vm7, %v3215_v46 }
 0x864   : > { %v3217_v37 = vpop.permute.xlu1 %3216 }
 0x865   : > { %3221 = vst.msk [vmem:[#allocation4 + $0x18] sm:$0xff] %vm2246_vm7, %v3217_v37 }
 0x86a   : > { %v3224_v61 = vld [vmem:[#allocation4 + $0x10] sm:$0xff] }
 0x86c   : > { %v3225_v6 = vld [vmem:[#allocation4 + $0x18] sm:$0xff] }
 0x86d   : > { %v3227_v47 = vpack.c.bf16 %v3225_v6, %v3224_v61  ;;  %v4142_v6 = vld [vmem:[%s5060_s28 + $0x4] ss:$0 sm:$0xff] }
 0x86f   : > { %4600 = vmatmul.mubr.msk.bf16.vlgmr.msra.gmra.mrb[68].mxu1 %vm837_vm2, %v3227_v47 }
 0x870   : > { %4296 = vmatpush3.bf16.msra.mxu1 %v4729_v27 }
 0x871   : > { %4297 = vmatprep.subr.bf16.mxu1 %v4730_v33 }
 0x874   : > { %4298 = vmatpush3.bf16.msra.mxu1 %v4731_v1 }
 0x942   : > { %v4601_v17 = vpop.f32.mrb[68].mxu1 }
 0x943   : > { %v3300_v63 = vpop.f32.mrb[69].mxu1  ;;  %v5748_v12 = vadd.f32 %v4873_v60, %v4601_v17 }
 0x944   : > { %v5746_v16 = vadd.f32 %v4872_v32, %v3300_v63  ;;  %v4602_v42 = vpop.f32.mrb[70].mxu1 }
 0x945   : > { %v3303_v52 = vpop.f32.mrb[71].mxu1  ;;  %v5756_v48 = vadd.f32 %v4875_v38, %v4602_v42  ;;  %v3325_v29 = vsel %vm837_vm2, %v5748_v12, 0.0 }
 0x946   : > { %v5750_v20 = vadd.f32 %v4874_v30, %v3303_v52  ;;  %v3319_v25 = vsel %vm837_vm2, %v5746_v16, 0.0  ;;  %v4143_v52 = vld [vmem:[%s5060_s28 + $0x5] ss:$0 sm:$0xff] }
 0x947   : > { %3320 = vadd.xlane.f32.xlu0 %v3319_v25  ;;  %v3328_v24 = vsel %vm837_vm2, %v5756_v48, 0.0 }
 0x948   : > { %v3322_v40 = vsel %vm837_vm2, %v5750_v20, 0.0 }
 0x949   : > { %3323 = vadd.xlane.f32.xlu1 %v3322_v40 }
 0x94b   : > { %3326 = vadd.xlane.f32.xlu0 %v3325_v29 }
 0x94f   : > { %3329 = vadd.xlane.f32.xlu0 %v3328_v24 }
 0x9d4   : > { %v3321_v28 = vpop.xlane.xlu0 %3320 }
 0x9d5   : > { %v3331_v45 = vmul.f32 0.015625, %v3321_v28 }
 0x9d6   : > { %v3324_v34 = vpop.xlane.xlu1 %3323 }
 0x9d7   : > { %v5763_v3 = vsub.f32 %v5746_v16, %v3331_v45  ;;  %v3332_v19 = vmul.f32 0.015625, %v3324_v34 }
 0x9d8   : > { %v3327_v35 = vpop.xlane.xlu0 %3326 }
 0x9d9   : > { %v5766_v49 = vsub.f32 %v5750_v20, %v3332_v19  ;;  %v3333_v51 = vmul.f32 0.015625, %v3327_v35  ;;  %v3339_v41 = vmul.f32 %v5763_v3, %v5763_v3  ;;  %v4732_v35 = vld [vmem:[%s5090_s5 + $0x50] sm:$0xff]  }
 0x9da   : > { %4299 = vmatprep.subr.bf16.mxu1 %v4732_v35 }
 0x9db   : > { %v5771_v54 = vsub.f32 %v5748_v12, %v3333_v51  ;;  %v3343_v55 = vsel %vm837_vm2, %v3339_v41, 0.0  ;;  %v3340_v50 = vmul.f32 %v5766_v49, %v5766_v49  ;;  %v4734_v51 = vld [vmem:[%s5090_s5 + $0x58] sm:$0xff]  }
 0x9dc   : > { %v3330_v4 = vpop.xlane.xlu0 %3329  ;;  %3344 = vadd.xlane.f32.xlu1 %v3343_v55  ;;  %v4735_v41 = vld [vmem:[%s5090_s5 + $0x18] sm:$0xff]   ;;  %v4737_v55 = vld [vmem:[%s5090_s5 + $0x20] sm:$0xff]  }
 0x9dd   : > { %v3334_v10 = vmul.f32 0.015625, %v3330_v4  ;;  %v3346_v53 = vsel %vm837_vm2, %v3340_v50, 0.0  ;;  %v3341_v39 = vmul.f32 %v5771_v54, %v5771_v54  ;;  %v4738_v50 = vld [vmem:[%s5090_s5 + $0x68] sm:$0xff]  }
 0x9de   : > { %3347 = vadd.xlane.f32.xlu0 %v3346_v53  ;;  %v4739_v4 = vld [vmem:[%s5090_s5 + $0x28] sm:$0xff]   ;;  %v4741_v53 = vld [vmem:[%s5090_s5 + $0x30] sm:$0xff]  }
 0x9df   : > { %v3338_v56 = vsub.f32 %v5756_v48, %v3334_v10  ;;  %v3349_v59 = vsel %vm837_vm2, %v3341_v39, 0.0  ;;  %v4740_v10 = vld [vmem:[%s5090_s5 + $0x70] sm:$0xff]   ;;  %v4742_v39 = vld [vmem:[%s5090_s5 + $0x78] sm:$0xff]  }
 0x9e0   : > { %3350 = vadd.xlane.f32.xlu1 %v3349_v59 }
 0x9e1   : > { %v3342_v26 = vmul.f32 %v3338_v56, %v3338_v56 }
 0x9e3   : > { %v3352_v0 = vsel %vm837_vm2, %v3342_v26, 0.0 }
 0x9e4   : > { %3353 = vadd.xlane.f32.xlu0 %v3352_v0 }
 0xa69   : > { %v3345_v5 = vpop.xlane.xlu1 %3344 }
 0xa6a   : > { %v3355_v62 = vmul.f32 0.015625, %v3345_v5 }
 0xa6b   : > { %v3348_v7 = vpop.xlane.xlu0 %3347 }
 0xa6c   : > { %v3359_v13 = vadd.f32 1e-05, %v3355_v62  ;;  %v3356_v15 = vmul.f32 0.015625, %v3348_v7 }
 0xa6d   : > { %v3351_v21 = vpop.xlane.xlu1 %3350 }
 0xa6e   : > { %4848 = vrsqrt.f32 %v3359_v13  ;;  %v3360_v22 = vadd.f32 1e-05, %v3356_v15  ;;  %v3357_v43 = vmul.f32 0.015625, %v3351_v21 }
 0xa70   : > { %4850 = vrsqrt.f32 %v3360_v22  ;;  %v3361_v57 = vadd.f32 1e-05, %v3357_v43 }
 0xa71   : > { %v3354_v44 = vpop.xlane.xlu0 %3353 }
 0xa72   : > { %4852 = vrsqrt.f32 %v3361_v57  ;;  %v3358_v46 = vmul.f32 0.015625, %v3354_v44 }
 0xa74   : > { %v3362_v37 = vadd.f32 1e-05, %v3358_v46 }
 0xa76   : > { %4854 = vrsqrt.f32 %v3362_v37 }
 0xa78   : > { %v4849_v61 = vpop.eup %4848 }
 0xa79   : > { %v3367_v47 = vmul.f32 %v4849_v61, %v5763_v3 }
 0xa7a   : > { %v4851_v17 = vpop.eup %4850 }
 0xa7b   : > { %v3375_v63 = vmul.f32 %v4142_v6, %v3367_v47  ;;  %v3368_v32 = vmul.f32 %v4851_v17, %v5766_v49  ;;  %v4733_v49 = vld [vmem:[%s5090_s5 + $0x10] sm:$0xff]  }
 0xa7c   : > { %v4853_v42 = vpop.eup %4852  ;;  %4300 = vmatpush3.bf16.msra.mxu1 %v4733_v49 }
 0xa7d   : > { %v3376_v60 = vmul.f32 %v4142_v6, %v3368_v32  ;;  %v3369_v30 = vmul.f32 %v4853_v42, %v5771_v54  ;;  %v3383_v25 = vadd.f32 %v4143_v52, %v3375_v63  ;;  %4301 = vmatprep.subr.bf16.mxu1 %v4734_v51  ;;  %v4736_v54 = vld [vmem:[%s5090_s5 + $0x60] sm:$0xff]  }
 0xa7f   : > { %v3384_v40 = vadd.f32 %v4143_v52, %v3376_v60  ;;  %v3377_v28 = vmul.f32 %v4142_v6, %v3369_v30 }
 0xa80   : > { %v4855_v38 = vpop.eup %4854  ;;  %4302 = vmatpush3.bf16.msra.mxu1 %v4735_v41 }
 0xa81   : > { %v3370_v29 = vmul.f32 %v4855_v38, %v3338_v56  ;;  %v3387_v24 = vpack.c.bf16 %v3384_v40, %v3383_v25  ;;  %v3385_v3 = vadd.f32 %v4143_v52, %v3377_v28  ;;  %4303 = vmatprep.subr.bf16.mxu1 %v4736_v54  ;;  %v4743_v56 = vld [vmem:[%s5090_s5 + $0x38] sm:$0xff]  }
 0xa83   : > { %4152 = vmatmul.mubr.msk.bf16.vlgmr.msra.gmra.mrb[48].mxu0 %vm837_vm2, %v3387_v24  ;;  %v3378_v45 = vmul.f32 %v4142_v6, %v3370_v29 }
 0xa84   : > { %3485 = vmatprep.mubr.bf16.mxu0 %v4950_v58  ;;  %4304 = vmatpush3.bf16.msra.mxu1 %v4737_v55 }
 0xa85   : > { %v3386_v34 = vadd.f32 %v4143_v52, %v3378_v45  ;;  %4305 = vmatprep.subr.bf16.mxu1 %v4738_v50 }
 0xa87   : > { %v3388_v19 = vpack.c.bf16 %v3386_v34, %v3385_v3 }
 0xa88   : > { %4306 = vmatpush3.bf16.msra.mxu1 %v4739_v4 }
 0xa89   : > { %4307 = vmatprep.subr.bf16.mxu1 %v4740_v10 }
 0xa8b   : > { %4153 = vmatmul.mubr.msk.bf16.gmra.mrb[52].mxu0 %vm837_vm2, %v3388_v19 }
 0xa8c   : > { %4308 = vmatpush3.bf16.msra.mxu1 %v4741_v53 }
 0xa8d   : > { %4309 = vmatprep.subr.bf16.mxu1 %v4742_v39 }
 0xa90   : > { %4310 = vmatpush3.bf16.msra.mxu1 %v4743_v56 }
 0xb56   : > { %v3477_v59 = vpop.f32.mrb[48].mxu0 }
 0xb57   : > { %v3504_v26 = vmul.f32 0.70710677, %v3477_v59  ;;  %v3479_v0 = vpop.f32.mrb[49].mxu0  ;;  %v3496_v22 = vmul.f32 0.5, %v3477_v59 }
 0xb58   : > { %v3505_v8 = vmul.f32 0.70710677, %v3479_v0  ;;  %v3481_v14 = vpop.f32.mrb[50].mxu0  ;;  %v3497_v44 = vmul.f32 0.5, %v3479_v0 }
 0xb59   : > { %4856 = verf.f32 %v3504_v26  ;;  %v3506_v9 = vmul.f32 0.70710677, %v3481_v14  ;;  %v3483_v11 = vpop.f32.mrb[51].mxu0  ;;  %v3498_v43 = vmul.f32 0.5, %v3481_v14 }
 0xb5a   : > { %4858 = verf.f32 %v3505_v8  ;;  %v3507_v36 = vmul.f32 0.70710677, %v3483_v11  ;;  %v3499_v46 = vmul.f32 0.5, %v3483_v11 }
 0xb5b   : > { %4860 = verf.f32 %v3506_v9 }
 0xb5c   : > { %4862 = verf.f32 %v3507_v36 }
 0xb5e   : > { %v3487_v23 = vpop.f32.mrb[52].mxu0 }
 0xb5f   : > { %v3508_v31 = vmul.f32 0.70710677, %v3487_v23  ;;  %v3489_v18 = vpop.f32.mrb[53].mxu0  ;;  %v3500_v38 = vmul.f32 0.5, %v3487_v23  ;;  %v4877_v23 = vld [vmem:[%s5905_s11 + $0x8] sm:$0xff] (!%p4170_p6)  }
 0xb60   : > { %v3509_v58 = vmul.f32 0.70710677, %v3489_v18  ;;  %v3491_v2 = vpop.f32.mrb[54].mxu0  ;;  %v3501_v28 = vmul.f32 0.5, %v3489_v18  ;;  %v4171_v18 = vld [vmem:[%s5906_s12] ss:$0 sm:$0xff] (!%p4170_p6) }
 0xb61   : > { %4864 = verf.f32 %v3508_v31  ;;  %v3510_v27 = vmul.f32 0.70710677, %v3491_v2  ;;  %v3493_v33 = vpop.f32.mrb[55].mxu0  ;;  %v3502_v29 = vmul.f32 0.5, %v3491_v2 }
 0xb62   : > { %4866 = verf.f32 %v3509_v58  ;;  %v3511_v1 = vmul.f32 0.70710677, %v3493_v33  ;;  %v3503_v45 = vmul.f32 0.5, %v3493_v33 }
 0xb63   : > { %v4857_v5 = vpop.eup %4856  ;;  %4868 = verf.f32 %v3510_v27 }
 0xb64   : > { %v4859_v62 = vpop.eup %4858  ;;  %v3520_v7 = vadd.f32 1.0, %v4857_v5  ;;  %4870 = verf.f32 %v3511_v1 }
 0xb65   : > { %v4861_v13 = vpop.eup %4860  ;;  %v3521_v15 = vadd.f32 1.0, %v4859_v62 }
 0xb66   : > { %v4863_v21 = vpop.eup %4862  ;;  %v3522_v57 = vadd.f32 1.0, %v4861_v13  ;;  %v3528_v61 = vmul.f32 %v3520_v7, %v3496_v22 }
 0xb67   : > { %v3523_v37 = vadd.f32 1.0, %v4863_v21  ;;  %v3529_v47 = vmul.f32 %v3521_v15, %v3497_v44 }
 0xb68   : > { %v3530_v6 = vmul.f32 %v3522_v57, %v3498_v43 }
 0xb69   : > { %v3531_v17 = vmul.f32 %v3523_v37, %v3499_v46 }
 0xb6a   : > { %v3536_v63 = vpack.c.bf16 %v3530_v6, %v3528_v61 }
 0xb6b   : > { %v4865_v32 = vpop.eup %4864  ;;  %v3537_v42 = vpack.c.bf16 %v3531_v17, %v3529_v47 }
 0xb6c   : > { %v4867_v52 = vpop.eup %4866  ;;  %v3524_v60 = vadd.f32 1.0, %v4865_v32 }
 0xb6d   : > { %v4869_v30 = vpop.eup %4868  ;;  %v3525_v25 = vadd.f32 1.0, %v4867_v52  ;;  %3700 = vmatprep.mubr.bf16.mxu1 %v3537_v42 }
 0xb6e   : > { %v4871_v40 = vpop.eup %4870  ;;  %v3526_v24 = vadd.f32 1.0, %v4869_v30  ;;  %3701 = vmatmul.mubr.bf16.vlgmr.msra.gmra.mrb[72].mxu1 %v3536_v63  ;;  %v3532_v3 = vmul.f32 %v3524_v60, %v3500_v38 }
 0xb6f   : > { %v3527_v34 = vadd.f32 1.0, %v4871_v40  ;;  %v3533_v35 = vmul.f32 %v3525_v25, %v3501_v28 }
 0xb70   : > { %v3534_v19 = vmul.f32 %v3526_v24, %v3502_v29 }
 0xb71   : > { %v3535_v49 = vmul.f32 %v3527_v34, %v3503_v45 }
 0xb72   : > { %v3538_v51 = vpack.c.bf16 %v3534_v19, %v3532_v3 }
 0xb73   : > { %v3539_v41 = vpack.c.bf16 %v3535_v49, %v3533_v35 }
 0xb75   : > { %3708 = vmatprep.mubr.bf16.mxu1 %v3539_v41 }
 0xb76   : > { %3709 = vmatmul.mubr.bf16.gmra.mrb[76].mxu1 %v3538_v51 }
 0xc41   : > { %v4311_v54 = vpop.f32.mrb[72].mxu1 }
 0xc42   : > { %v4312_v55 = vpop.f32.mrb[73].mxu1 }
 0xc43   : > { %v4313_v50 = vadd.f32 %v4312_v55, %v4311_v54  ;;  %v4314_v4 = vpop.f32.mrb[74].mxu1 }
 0xc44   : > { %v4315_v10 = vpop.f32.mrb[75].mxu1 }
 0xc45   : > { %v3717_v53 = vadd.f32 %v4313_v50, %v5746_v16  ;;  %v4316_v39 = vadd.f32 %v4315_v10, %v4314_v4  ;;  %v4876_v16 = vld [vmem:[%s5905_s11] sm:$0xff] (!%p4170_p6)  }
 0xc46   : > { %4603 = vmatprep.subr.bf16.mxu0 (!%p4170_p6), %v4876_v16  ;;  %v4178_v10 = vld [vmem:[%s5923_s26] ss:$0 sm:$0xff] (!%p4170_p6) }
 0xc47   : > { %3721 = vst.msk [vmem:[#allocation3] sm:$0xff] %vm837_vm2, %v3717_v53  ;;  %v3718_v56 = vadd.f32 %v4316_v39, %v5750_v20  ;;  %4604 = vmatpush3.bf16.msra.mxu0 (!%p4170_p6), %v4876_v16  ;;  %v4179_v39 = vld [vmem:[%s5924_s22] ss:$0 sm:$0xff] (!%p4170_p6) }
 0xc48   : > { %4605 = vmatprep.subr.bf16.mxu0 (!%p4170_p6), %v4877_v23 }
 0xc49   : > { %3722 = vst.msk [vmem:[#allocation3 + $0x8] sm:$0xff] %vm837_vm2, %v3718_v56  ;;  %v4317_v59 = vpop.f32.mrb[76].mxu1  ;;  %v3729_v20 = vpack.c.bf16 (!%p4170_p6), %v3718_v56, %v3717_v53 }
 0xc4a   : > { %v4318_v26 = vpop.f32.mrb[77].mxu1 }
 0xc4b   : > { %v4319_v0 = vadd.f32 %v4318_v26, %v4317_v59  ;;  %v4320_v8 = vpop.f32.mrb[78].mxu1  ;;  %3728 = sbr.rel (%p4170_p6) target bundleno = 3695 (0xe6f), region = 88  ;;  %4611 = vmatprep.mubr.msk.bf16.mxu0 (!%p4170_p6), %vm837_vm2, %v3729_v20  ;;  %4606 = vmatpush3.bf16.msra.mxu0 (!%p4170_p6), %v4877_v23 }
 0xc4c   : > { %v4321_v14 = vpop.f32.mrb[79].mxu1 }
 0xc4d   : > { %v3719_v9 = vadd.f32 %v4319_v0, %v5748_v12  ;;  %v4322_v11 = vadd.f32 %v4321_v14, %v4320_v8  ;;  %v4878_v12 = vld [vmem:[%s5905_s11 + $0x10] sm:$0xff] (!%p4170_p6)  }
 0xc4e   : > { %4607 = vmatprep.subr.bf16.mxu0 (!%p4170_p6), %v4878_v12 }
 0xc4f   : > { %3723 = vst.msk [vmem:[#allocation3 + $0x10] sm:$0xff] %vm837_vm2, %v3719_v9  ;;  %v3720_v36 = vadd.f32 %v4322_v11, %v5756_v48  ;;  %v4879_v48 = vld [vmem:[%s5905_s11 + $0x18] sm:$0xff] (!%p4170_p6)   ;;  %4608 = vmatpush3.bf16.msra.mxu0 (!%p4170_p6), %v4878_v12 }
 0xc50   : > { %4609 = vmatprep.subr.bf16.mxu0 (!%p4170_p6), %v4879_v48 }
 0xc51   : > { %3724 = vst.msk [vmem:[#allocation3 + $0x18] sm:$0xff] %vm837_vm2, %v3720_v36  ;;  %v3730_v31 = vpack.c.bf16 (!%p4170_p6), %v3720_v36, %v3719_v9 }
 0xc53   : > { %4610 = vmatpush3.bf16.msra.mxu0 %v4879_v48 }
 0xc56   : > { %4612 = vmatmul.mubr.msk.bf16.vlgmr.msra.gmra.mrb[0].mxu0 %vm837_vm2, %v3730_v31 }
 0xd29   : > { %v4613_v58 = vpop.f32.mrb[0].mxu0 }
 0xd2a   : > { %v3819_v2 = vadd.f32 %v4613_v58, %v4171_v18  ;;  %v3810_v27 = vpop.f32.mrb[1].mxu0 }
 0xd2b   : > { %v3811_v33 = vadd.f32 %v4171_v18, %v3810_v27  ;;  %v4614_v1 = vpop.f32.mrb[2].mxu0 }
 0xd2c   : > { %v3822_v5 = vadd.f32 %v4614_v1, %v4171_v18  ;;  %v3813_v62 = vpop.f32.mrb[3].mxu0  ;;  %v3833_v7 = vsel %vm837_vm2, %v3819_v2, 0.0 }
 0xd2d   : > { %v3814_v13 = vadd.f32 %v4171_v18, %v3813_v62  ;;  %3834 = vadd.xlane.f32.xlu1 %v3833_v7  ;;  %v3827_v15 = vsel %vm837_vm2, %v3811_v33, 0.0 }
 0xd2e   : > { %3828 = vadd.xlane.f32.xlu0 %v3827_v15  ;;  %v3836_v21 = vsel %vm837_vm2, %v3822_v5, 0.0 }
 0xd2f   : > { %v3830_v22 = vsel %vm837_vm2, %v3814_v13, 0.0 }
 0xd31   : > { %3837 = vadd.xlane.f32.xlu1 %v3836_v21 }
 0xd32   : > { %3831 = vadd.xlane.f32.xlu0 %v3830_v22 }
 0xdba   : > { %v3835_v43 = vpop.xlane.xlu1 %3834 }
 0xdbb   : > { %v3841_v57 = vmul.f32 0.015625, %v3835_v43  ;;  %v3829_v44 = vpop.xlane.xlu0 %3828 }
 0xdbc   : > { %v3839_v46 = vmul.f32 0.015625, %v3829_v44 }
 0xdbd   : > { %v3845_v37 = vsub.f32 %v3819_v2, %v3841_v57 }
 0xdbe   : > { %v3843_v61 = vsub.f32 %v3811_v33, %v3839_v46  ;;  %v3838_v6 = vpop.xlane.xlu1 %3837 }
 0xdbf   : > { %v3842_v47 = vmul.f32 0.015625, %v3838_v6  ;;  %v3832_v17 = vpop.xlane.xlu0 %3831  ;;  %v3849_v30 = vmul.f32 %v3845_v37, %v3845_v37 }
 0xdc0   : > { %v3840_v63 = vmul.f32 0.015625, %v3832_v17  ;;  %v3847_v32 = vmul.f32 %v3843_v61, %v3843_v61 }
 0xdc1   : > { %v3846_v42 = vsub.f32 %v3822_v5, %v3842_v47  ;;  %v3857_v40 = vsel %vm837_vm2, %v3849_v30, 0.0 }
 0xdc2   : > { %v3844_v52 = vsub.f32 %v3814_v13, %v3840_v63  ;;  %v3851_v60 = vsel %vm837_vm2, %v3847_v32, 0.0 }
 0xdc3   : > { %3852 = vadd.xlane.f32.xlu0 %v3851_v60  ;;  %v3850_v29 = vmul.f32 %v3846_v42, %v3846_v42 }
 0xdc4   : > { %v3848_v25 = vmul.f32 %v3844_v52, %v3844_v52 }
 0xdc5   : > { %v3860_v24 = vsel %vm837_vm2, %v3850_v29, 0.0 }
 0xdc6   : > { %v3854_v38 = vsel %vm837_vm2, %v3848_v25, 0.0 }
 0xdc7   : > { %3858 = vadd.xlane.f32.xlu0 %v3857_v40  ;;  %3855 = vadd.xlane.f32.xlu1 %v3854_v38 }
 0xdcb   : > { %3861 = vadd.xlane.f32.xlu1 %v3860_v24 }
 0xe50   : > { %v3853_v28 = vpop.xlane.xlu0 %3852 }
 0xe51   : > { %v3863_v45 = vmul.f32 0.015625, %v3853_v28 }
 0xe53   : > { %v3867_v34 = vadd.f32 1e-05, %v3863_v45 }
 0xe54   : > { %v3856_v3 = vpop.xlane.xlu1 %3855  ;;  %v3859_v19 = vpop.xlane.xlu0 %3858 }
 0xe55   : > { %4880 = vrsqrt.f32 %v3867_v34  ;;  %v3864_v35 = vmul.f32 0.015625, %v3856_v3  ;;  %v3865_v49 = vmul.f32 0.015625, %v3859_v19 }
 0xe57   : > { %v3868_v51 = vadd.f32 1e-05, %v3864_v35  ;;  %v3869_v41 = vadd.f32 1e-05, %v3865_v49 }
 0xe58   : > { %v3862_v54 = vpop.xlane.xlu1 %3861 }
 0xe59   : > { %4882 = vrsqrt.f32 %v3868_v51  ;;  %v3866_v55 = vmul.f32 0.015625, %v3862_v54 }
 0xe5a   : > { %4884 = vrsqrt.f32 %v3869_v41 }
 0xe5b   : > { %v3870_v50 = vadd.f32 1e-05, %v3866_v55 }
 0xe5d   : > { %4886 = vrsqrt.f32 %v3870_v50 }
 0xe5f   : > { %v4881_v4 = vpop.eup %4880 }
 0xe60   : > { %v3875_v53 = vmul.f32 %v4881_v4, %v3843_v61 }
 0xe62   : > { %v3885_v56 = vmul.f32 %v4178_v10, %v3875_v53 }
 0xe63   : > { %v4883_v59 = vpop.eup %4882 }
 0xe64   : > { %v4885_v26 = vpop.eup %4884  ;;  %v3895_v0 = vadd.f32 %v4179_v39, %v3885_v56  ;;  %v3876_v8 = vmul.f32 %v4883_v59, %v3844_v52 }
 0xe65   : > { %v3877_v14 = vmul.f32 %v4885_v26, %v3845_v37 }
 0xe66   : > { %3899 = vst.msk [vmem:[#allocation5] sm:$0xff] %vm837_vm2, %v3895_v0  ;;  %v3886_v9 = vmul.f32 %v4178_v10, %v3876_v8 }
 0xe67   : > { %v4887_v11 = vpop.eup %4886  ;;  %v3887_v36 = vmul.f32 %v4178_v10, %v3877_v14 }
 0xe68   : > { %v3896_v16 = vadd.f32 %v4179_v39, %v3886_v9  ;;  %v3878_v20 = vmul.f32 %v4887_v11, %v3846_v42 }
 0xe69   : > { %v3897_v23 = vadd.f32 %v4179_v39, %v3887_v36 }
 0xe6a   : > { %3900 = vst.msk [vmem:[#allocation5 + $0x8] sm:$0xff] %vm837_vm2, %v3896_v16  ;;  %v3888_v12 = vmul.f32 %v4178_v10, %v3878_v20 }
 0xe6b   : > { %3901 = vst.msk [vmem:[#allocation5 + $0x10] sm:$0xff] %vm837_vm2, %v3897_v23 }
 0xe6c   : > { %v3898_v48 = vadd.f32 %v4179_v39, %v3888_v12 }
 0xe6e   : > { %3902 = vst.msk [vmem:[#allocation5 + $0x18] sm:$0xff] %vm837_vm2, %v3898_v48 }
 0xe6f PF: > { %s5925_s16 = sld [smem:[#allocation9_spill]]  ;;  %s4951_s21 = smov [#allocation5]  }
 0xe70   : > { %s3913_s5 = sshll.u32 %s4951_s21, 4  ;;  %s3914_s5 = int_to_ptr.vmem [resolvable:$true] %s3913_s5 }
 0xe71   : > { %s4888_s28 = scalar_lea.vmem %s3914_s5, 512  ;;  %p4895_p11 = scmp.lt.s32.totalorder %s3914_s5, %s3914_s5 }
 0xe72   : > { %p4889_p8 = scmp.ne.s32.totalorder %s3914_s5, %s4888_s28  ;;  %p4896_p12 = scmp.lt.s32.totalorder %s4888_s28, %s4888_s28 }
 0xe74   : > { %p4897_p13 = por %p4896_p12, %p4895_p11 }
 0xe75   : > { %s5926_s27 = sadd.s32 4294967295, %s5925_s16  }
 0xe76   : > { %p5859_p7 = scmp.eq.s32.totalorder %s5926_s27, 1 }
 0xe78   : > { %p4890_p9 = pnand %p4889_p8, %p5859_p7 }
 0xe7a   : > { %p4891_p10 = pneg %p4890_p9 }
 0xe7c   : > { %p4898_p0 = pnand %p4897_p13, %p4891_p10 }
 0xe7e   : > { %4901 = shalt.err (!%p4898_p0)
}
 0xe7f   : > { %s5928_s17 = sld [smem:[#allocation15_spill]] }
 0xe85   : > { %s4902_s15 = scalar_lea.hbm %s5928_s17, 512 }
 0xe86   : > { %p4903_p1 = scmp.ne.s32.totalorder %s5928_s17, %s4902_s15  ;;  %p4908_p4 = scmp.lt.u32.totalorder %s4902_s15, %s5928_s17 }
 0xe88   : > { %p4904_p2 = pnand %p4903_p1, %p5859_p7 }
 0xe8a   : > { %p4905_p3 = pneg %p4904_p2 }
 0xe8c   : > { %p4910_p5 = pnand %p4908_p4, %p4905_p3 }
 0xe8e   : > { %4913 = shalt.err (!%p4910_p5)
}
 0xe8f   : > { %s4952_s25 = smov 128   ;;  %s4953_s23 = smov 8  }
 0xe90   : > { %4648 = dma.vmem_to_hbm [thread:$0]  (%p5859_p7), %s3914_s5, 512, %s5928_s17, [#allocation6], %s4952_s25, %s4952_s25, %s4953_s23  }
 0xe91   : > { %4927 = dma.done.wait (%p5859_p7), [#allocation6], 512  }
 0xe92   : > { %4929 = vsyncadd (%p5859_p7), [#allocation6], 4294966784 }
 0xe93 PF: > { %s5929_s20 = sld [smem:[#allocation9_spill]]  ;;  %s5930_s18 = sld [smem:[#allocation8_spill]] }
 0xe94   : > { %s5931_s19 = sld [smem:[#allocation10_spill]] }
 0xe99   : > { %s26_s20 = sadd.s32 1, %s5929_s20  }
 0xe9a   : > { %p23_p6 = scmp.ge.s32.totalorder %s26_s20, 4  }
 0xe9c   :  { %25 = sbr.rel (!%p23_p6) target bundleno = 8 (0x8), region = 137 }
 0xea3   :  { %3929 = vsyncpa [#allocation6], 1 }
 0xea4   :  { %3931 = vsyncpa [#allocation6 + $0x1], 1 }

</bundles_post_ra>
